<compile_context>
chip_gen: v6e
topology: v6e:2x2x1
jax: 0.10.0
libtpu: 0.0.40
codegen_flags: <defaults>
</compile_context>

<pallas_src>
import numpy as np

import jax
import jax.numpy as jnp
from jax.experimental import pallas as pl
from jax.experimental.pallas import tpu as pltpu


# ------------------------------- kernels -----------------------------------

def _pool_kernel(x_ref, pwm_ref, o_ref):
    """Composite AvgPool(3,2) -> AvgPool(3,3) -> Flatten as one MXU matmul.

    x_ref:   (M, C) f32  backbone features, channels lane-dense (M = B*49 pad)
    pwm_ref: (B, M) f32  block-diagonal composite-pool weight matrix
    o_ref:   (B, C) f32  pooled features
    """
    o_ref[...] = jnp.dot(pwm_ref[...], x_ref[...],
                         preferred_element_type=jnp.float32).astype(o_ref.dtype)


def _tile_step(h, wa_ref, ba_ref, wb_ref, acc_ref):
    """One column tile of a fused Linear+ReLU+Linear pair.

    a_tile = relu(h @ wa_coltile + ba_tile);  acc += a_tile @ wb_rowtile
    Column tiles of wa match row tiles of wb, so summing over tiles
    reproduces relu(h @ wa + ba) @ wb exactly (f32 accumulation).
    """
    a = jnp.dot(h.astype(wa_ref.dtype), wa_ref[...],
                preferred_element_type=jnp.float32)
    a = jnp.maximum(a + ba_ref[...], 0.0)
    acc_ref[...] += jnp.dot(a.astype(wb_ref.dtype), wb_ref[...],
                            preferred_element_type=jnp.float32)


def _encoder_kernel(x_ref, pwm_ref, w1_ref, b1_ref, w2_ref, b2_ref, o_ref,
                    pooled_sc, acc_sc):
    """Pool + encoder (Linear 2208->1024, ReLU, Linear 1024->512, ReLU).

    Grid axis j streams column tiles of W1 / matching row tiles of W2 so the
    matmuls hide under the weight DMA; activations stay resident in VMEM.
    """
    j = pl.program_id(0)

    @pl.when(j == 0)
    def _():
        pooled_sc[...] = jnp.dot(pwm_ref[...], x_ref[...],
                                 preferred_element_type=jnp.float32)
        acc_sc[...] = jnp.zeros_like(acc_sc)

    _tile_step(pooled_sc[...], w1_ref, b1_ref, w2_ref, acc_sc)

    @pl.when(j == pl.num_programs(0) - 1)
    def _():
        o_ref[...] = jnp.maximum(acc_sc[...] + b2_ref[...], 0.0).astype(o_ref.dtype)


def _full_kernel(x_ref, pwm_ref, w1_ref, b1_ref, w2_ref, b2_ref,
                 w3_ref, b3_ref, w4_ref, b4_ref,
                 pool_out_ref, enc_out_ref, dec_out_ref,
                 pooled_sc, enc_acc_sc, enc_sc, dec_acc_sc):
    """Single launch emitting pooled / encoded / decoded heads.

    grid = (phase, tile): phase 0 streams W1/W2 (encoder), phase 1 streams
    W3/W4 (decoder).  Intermediate activations never leave VMEM.
    """
    p = pl.program_id(0)
    j = pl.program_id(1)
    last = pl.num_programs(1) - 1

    @pl.when((p == 0) & (j == 0))
    def _():
        pooled = jnp.dot(pwm_ref[...], x_ref[...],
                         preferred_element_type=jnp.float32)
        pooled_sc[...] = pooled
        pool_out_ref[...] = pooled.astype(pool_out_ref.dtype)
        enc_acc_sc[...] = jnp.zeros_like(enc_acc_sc)
        dec_acc_sc[...] = jnp.zeros_like(dec_acc_sc)

    @pl.when(p == 0)
    def _():
        _tile_step(pooled_sc[...], w1_ref, b1_ref, w2_ref, enc_acc_sc)

    @pl.when((p == 0) & (j == last))
    def _():
        enc = jnp.maximum(enc_acc_sc[...] + b2_ref[...], 0.0)
        enc_sc[...] = enc
        enc_out_ref[...] = enc.astype(enc_out_ref.dtype)

    @pl.when(p == 1)
    def _():
        _tile_step(enc_sc[...], w3_ref, b3_ref, w4_ref, dec_acc_sc)

    @pl.when((p == 1) & (j == last))
    def _():
        dec_out_ref[...] = jnp.maximum(dec_acc_sc[...] + b4_ref[...],
                                       0.0).astype(dec_out_ref.dtype)


# ------------------------- composite pool weights ---------------------------

def _composite_pool_weights(h, w, k1=3, s1=2, k2=3, s2=3):
    """Weight map W such that AvgPool(k2,s2)(AvgPool(k1,s1)(x)) == sum(W * x)
    when the composite pool reduces the spatial dims to 1x1 (7x7 -> 3x3 -> 1x1)."""
    h1, w1 = (h - k1) // s1 + 1, (w - k1) // s1 + 1
    h2, w2 = (h1 - k2) // s2 + 1, (w1 - k2) // s2 + 1
    assert h2 == 1 and w2 == 1, "composite pool must reduce spatial dims to 1x1"
    wt = np.zeros((h, w), np.float32)
    for i1 in range(h1):
        for j1 in range(w1):
            wt[i1 * s1:i1 * s1 + k1, j1 * s1:j1 * s1 + k1] += 1.0
    return wt / float(k1 * k1 * k2 * k2)


# ------------------------------ model wrapper -------------------------------

def _init_linear(key, fan_in, fan_out):
    """PyTorch-style default Linear init (uniform +-1/sqrt(fan_in)).
    Weight stored (in, out), cast once to bf16 (weight streaming is HBM-BW
    bound at batch=2); bias kept f32 as (1, out)."""
    kw, kb = jax.random.split(key)
    bound = 1.0 / (fan_in ** 0.5)
    w = jax.random.uniform(kw, (fan_in, fan_out), jnp.float32, -bound, bound)
    b = jax.random.uniform(kb, (fan_out,), jnp.float32, -bound, bound)
    return w.astype(jnp.bfloat16), b.reshape(1, fan_out)


class GetCNNPallas:
    """JAX/Pallas port of get_CNN.forward (DenseNet-161 backbone stubbed)."""

    FEAT_C, FEAT_H, FEAT_W = 2208, 7, 7
    HID, LAT = 1024, 512
    TN = 512                    # weight column-tile width (multiple of 128; divides HID)
    VMEM_LIMIT = 32 * 1024 * 1024   # fine on all gens; well under v7x's 64 MiB physical

    def __init__(self, key):
        keys = jax.random.split(key, 4)
        # TODO(synk): optional int8 (v5e/v6e) / fp8-e4m3 (v7x) weight storage would
        # halve the HBM-bound weight stream; kept bf16 here for fidelity.
        self.w1, self.b1 = _init_linear(keys[0], self.FEAT_C, self.HID)
        self.w2, self.b2 = _init_linear(keys[1], self.HID, self.LAT)
        self.w3, self.b3 = _init_linear(keys[2], self.LAT, self.HID)
        self.w4, self.b4 = _init_linear(keys[3], self.HID, self.FEAT_C)
        self.pool_w_flat = _composite_pool_weights(
            self.FEAT_H, self.FEAT_W).reshape(-1)

    # ---- wrapper-side layout plumbing (no compute) ----
    def _prep(self, feat_nchw):
        n, c, h, w = feat_nchw.shape
        assert (c, h, w) == (self.FEAT_C, self.FEAT_H, self.FEAT_W)
        hw = h * w
        # Lane-dense layout: channels (2208) on lanes, spatial (49) on sublanes.
        x = jnp.transpose(feat_nchw, (0, 2, 3, 1)).reshape(n * hw, c)
        m = ((n * hw + 7) // 8) * 8
        if m != n * hw:
            x = jnp.pad(x, ((0, m - n * hw), (0, 0)))
        # Block-diagonal composite-pool matrix: pooled = pwm @ x  -> (n, C).
        pwm = np.zeros((n, m), np.float32)
        for b in range(n):
            pwm[b, b * hw:(b + 1) * hw] = self.pool_w_flat
        return x, jnp.asarray(pwm)

    # ---- cnn_output=True path: pool only, no weight traffic ----
    def _pool_only(self, feat):
        x, pwm = self._prep(feat)
        n = feat.shape[0]
        vmem = pl.BlockSpec(memory_space=pltpu.MemorySpace.VMEM)
        return pl.pallas_call(
            _pool_kernel,
            out_shape=jax.ShapeDtypeStruct((n, self.FEAT_C), jnp.float32),
            in_specs=[vmem, vmem],
            out_specs=vmem,
            compiler_params=pltpu.CompilerParams(
                vmem_limit_bytes=self.VMEM_LIMIT),
        )(x, pwm)

    # ---- default path: pool + encoder (streams only W1/W2) ----
    def _encode(self, feat):
        x, pwm = self._prep(feat)
        n, m = feat.shape[0], x.shape[0]
        C, H, L, tn = self.FEAT_C, self.HID, self.LAT, self.TN
        T = H // tn
        gs = pltpu.PrefetchScalarGridSpec(
            num_scalar_prefetch=0,
            grid=(T,),
            in_specs=[
                pl.BlockSpec((m, C), lambda j: (0, 0)),
                pl.BlockSpec((n, m), lambda j: (0, 0)),
                pl.BlockSpec((C, tn), lambda j: (0, j)),   # W1 column tiles
                pl.BlockSpec((1, tn), lambda j: (0, j)),   # b1 tiles
                pl.BlockSpec((tn, L), lambda j: (j, 0)),   # W2 row tiles
                pl.BlockSpec((1, L), lambda j: (0, 0)),    # b2
            ],
            out_specs=pl.BlockSpec((n, L), lambda j: (0, 0)),
            scratch_shapes=[pltpu.VMEM((n, C), jnp.float32),   # pooled
                            pltpu.VMEM((n, L), jnp.float32)],  # enc accumulator
        )
        return pl.pallas_call(
            _encoder_kernel,
            out_shape=jax.ShapeDtypeStruct((n, L), jnp.float32),
            grid_spec=gs,
            compiler_params=pltpu.CompilerParams(
                dimension_semantics=("arbitrary",),
                vmem_limit_bytes=self.VMEM_LIMIT),
        )(x, pwm, self.w1, self.b1, self.w2, self.b2)

    # ---- autoencode / multi-head path: pool + encoder + decoder ----
    def _full(self, feat):
        x, pwm = self._prep(feat)
        n, m = feat.shape[0], x.shape[0]
        C, H, L, tn = self.FEAT_C, self.HID, self.LAT, self.TN
        T = H // tn
        last = T - 1
        # Phase 0 walks encoder tiles (decoder specs parked at tile 0);
        # phase 1 walks decoder tiles (encoder specs parked at their last
        # tile so no re-fetch happens at the phase boundary).
        enc_col = lambda p, j: j * (1 - p) + last * p
        dec_col = lambda p, j: j * p
        gs = pltpu.PrefetchScalarGridSpec(
            num_scalar_prefetch=0,
            grid=(2, T),
            in_specs=[
                pl.BlockSpec((m, C), lambda p, j: (0, 0)),
                pl.BlockSpec((n, m), lambda p, j: (0, 0)),
                pl.BlockSpec((C, tn), lambda p, j: (0, enc_col(p, j))),   # W1
                pl.BlockSpec((1, tn), lambda p, j: (0, enc_col(p, j))),   # b1
                pl.BlockSpec((tn, L), lambda p, j: (enc_col(p, j), 0)),   # W2
                pl.BlockSpec((1, L), lambda p, j: (0, 0)),                # b2
                pl.BlockSpec((L, tn), lambda p, j: (0, dec_col(p, j))),   # W3
                pl.BlockSpec((1, tn), lambda p, j: (0, dec_col(p, j))),   # b3
                pl.BlockSpec((tn, C), lambda p, j: (dec_col(p, j), 0)),   # W4
                pl.BlockSpec((1, C), lambda p, j: (0, 0)),                # b4
            ],
            out_specs=[
                pl.BlockSpec((n, C), lambda p, j: (0, 0)),   # pooled (cnn_model output)
                pl.BlockSpec((n, L), lambda p, j: (0, 0)),   # encoder output
                pl.BlockSpec((n, C), lambda p, j: (0, 0)),   # decoder output
            ],
            scratch_shapes=[pltpu.VMEM((n, C), jnp.float32),   # pooled
                            pltpu.VMEM((n, L), jnp.float32),   # enc accumulator
                            pltpu.VMEM((n, L), jnp.float32),   # encoded (post-ReLU)
                            pltpu.VMEM((n, C), jnp.float32)],  # dec accumulator
        )
        # TODO(synk): on v7x (2 TensorCores) a "parallel" split of each weight
        # stream across cores with a cross-core combine could ~2x the DMA-bound
        # wall; omitted here because of the layer-chain dependency.
        return pl.pallas_call(
            _full_kernel,
            out_shape=(jax.ShapeDtypeStruct((n, C), jnp.float32),
                       jax.ShapeDtypeStruct((n, L), jnp.float32),
                       jax.ShapeDtypeStruct((n, C), jnp.float32)),
            grid_spec=gs,
            compiler_params=pltpu.CompilerParams(
                dimension_semantics=("arbitrary", "arbitrary"),
                vmem_limit_bytes=self.VMEM_LIMIT),
        )(x, pwm, self.w1, self.b1, self.w2, self.b2,
          self.w3, self.b3, self.w4, self.b4)

    # ---- public API (mirrors get_CNN.forward) ----
    def forward(self, x, cnn_output=False, autoencode=False):
        if cnn_output:
            return self._pool_only(x)
        elif autoencode:
            return self._full(x)[2]
        return self._encode(x)

    def forward_all(self, x):
        """(pooled, encoded, decoded) heads from ONE launch — shared weights
        and the feature map are streamed from HBM only once."""
        return self._full(x)


# ----------------------------------- main -----------------------------------

if __name__ == "__main__":
    key = jax.random.PRNGKey(0)
    k_feat, k_params = jax.random.split(key)

    # Stand-in for densenet161.features(image): (N=2, C=2208, H=7, W=7), NCHW.
    # TODO(synk): batch=2 leaves the MXU nearly idle; larger serving batches
    # amortize the weight stream nearly linearly.
    feats = jax.random.normal(k_feat, (2, 2208, 7, 7), dtype=jnp.float32)

    model = GetCNNPallas(k_params)

    # Fused single-launch path producing all three heads.
    pooled, enc_all, dec_all = model.forward_all(feats)

    # Per-mode API (matches get_CNN.forward's signature), one launch each.
    enc = model.forward(feats)                       # -> (2, 512)
    cnn = model.forward(feats, cnn_output=True)      # -> (2, 2208)
    rec = model.forward(feats, autoencode=True)      # -> (2, 2208)
    jax.block_until_ready((pooled, enc_all, dec_all, enc, cnn, rec))

    # ---- pure-JAX references ----
    r1 = jax.lax.reduce_window(feats, 0.0, jax.lax.add,
                               (1, 1, 3, 3), (1, 1, 2, 2), "VALID") / 9.0
    r2 = jax.lax.reduce_window(r1, 0.0, jax.lax.add,
                               (1, 1, 3, 3), (1, 1, 3, 3), "VALID") / 9.0
    ref_pool = r2.reshape(2, -1)

    def ref_layer(h, wgt, b):
        y = jnp.dot(h.astype(jnp.bfloat16), wgt,
                    preferred_element_type=jnp.float32)
        return jnp.maximum(y + b, 0.0)

    ref_enc = ref_layer(ref_layer(ref_pool, model.w1, model.b1),
                        model.w2, model.b2)
    ref_dec = ref_layer(ref_layer(ref_enc, model.w3, model.b3),
                        model.w4, model.b4)

    assert jnp.allclose(cnn, ref_pool, atol=5e-3, rtol=5e-3)
    assert jnp.allclose(pooled, ref_pool, atol=5e-3, rtol=5e-3)
    assert jnp.allclose(enc, ref_enc, atol=1e-2, rtol=1e-2)
    assert jnp.allclose(enc_all, enc, atol=1e-4, rtol=1e-4)
    assert jnp.allclose(dec_all, ref_dec, atol=1e-2, rtol=1e-2)
    assert jnp.allclose(rec, dec_all, atol=1e-4, rtol=1e-4)

    assert enc.shape == (2, 512) and enc.dtype == jnp.float32
    assert cnn.shape == (2, 2208) and rec.shape == (2, 2208)
    assert bool(jnp.all(enc >= 0)) and bool(jnp.all(rec >= 0))   # ReLU outputs

    print("KERNEL_OK")
</pallas_src>

<mosaic_0001>
module attributes {stable_mosaic.version = 11 : i64} {
  func.func @_full_kernel(%arg0: i32, %arg1: i32, %arg2: memref<104x2208xf32, #tpu.memory_space<vmem>>, %arg3: memref<2x104xf32, #tpu.memory_space<vmem>>, %arg4: memref<2208x512xbf16, #tpu.memory_space<vmem>>, %arg5: memref<1x512xf32, #tpu.memory_space<vmem>>, %arg6: memref<512x512xbf16, #tpu.memory_space<vmem>>, %arg7: memref<1x512xf32, #tpu.memory_space<vmem>>, %arg8: memref<512x512xbf16, #tpu.memory_space<vmem>>, %arg9: memref<1x512xf32, #tpu.memory_space<vmem>>, %arg10: memref<512x2208xbf16, #tpu.memory_space<vmem>>, %arg11: memref<1x2208xf32, #tpu.memory_space<vmem>>, %arg12: memref<2x2208xf32, #tpu.memory_space<vmem>>, %arg13: memref<2x512xf32, #tpu.memory_space<vmem>>, %arg14: memref<2x2208xf32, #tpu.memory_space<vmem>>, %arg15: memref<2x2208xf32, #tpu.memory_space<vmem>>, %arg16: memref<2x512xf32, #tpu.memory_space<vmem>>, %arg17: memref<2x512xf32, #tpu.memory_space<vmem>>, %arg18: memref<2x2208xf32, #tpu.memory_space<vmem>>) attributes {dimension_semantics = [#tpu.dimension_semantics<arbitrary>, #tpu.dimension_semantics<arbitrary>], iteration_bounds = array<i64: 2, 2>, scalar_prefetch = 0 : i64, scratch_operands = 4 : i64, tpu.core_type = #tpu.core_type<tc>, window_params = [{pipeline_mode = #tpu.pipeline_mode<synchronous>, transform_indices = @transform_0, window_bounds = array<i64: 104, 2208>}, {pipeline_mode = #tpu.pipeline_mode<synchronous>, transform_indices = @transform_1, window_bounds = array<i64: 2, 104>}, {transform_indices = @transform_2, window_bounds = array<i64: 2208, 512>}, {transform_indices = @transform_3, window_bounds = array<i64: 1, 512>}, {transform_indices = @transform_4, window_bounds = array<i64: 512, 512>}, {pipeline_mode = #tpu.pipeline_mode<synchronous>, transform_indices = @transform_5, window_bounds = array<i64: 1, 512>}, {transform_indices = @transform_6, window_bounds = array<i64: 512, 512>}, {transform_indices = @transform_7, window_bounds = array<i64: 1, 512>}, {transform_indices = @transform_8, window_bounds = array<i64: 512, 2208>}, {pipeline_mode = #tpu.pipeline_mode<synchronous>, transform_indices = @transform_9, window_bounds = array<i64: 1, 2208>}, {pipeline_mode = #tpu.pipeline_mode<synchronous>, transform_indices = @transform_10, window_bounds = array<i64: 2, 2208>}, {pipeline_mode = #tpu.pipeline_mode<synchronous>, transform_indices = @transform_11, window_bounds = array<i64: 2, 512>}, {pipeline_mode = #tpu.pipeline_mode<synchronous>, transform_indices = @transform_12, window_bounds = array<i64: 2, 2208>}]} {
    %c0_i32 = arith.constant 0 : i32
    %0 = arith.cmpi eq, %arg0, %c0_i32 : i32
    %c0_i32_0 = arith.constant 0 : i32
    %1 = arith.cmpi eq, %arg1, %c0_i32_0 : i32
    %2 = arith.andi %0, %1 : i1
    %3 = arith.extui %2 : i1 to i32
    %c0_i32_1 = arith.constant 0 : i32
    %4 = arith.cmpi ne, %3, %c0_i32_1 : i32
    scf.if %4 {
      %c0 = arith.constant 0 : index
      %c0_11 = arith.constant 0 : index
      %21 = vector.load %arg3[%c0, %c0_11] : memref<2x104xf32, #tpu.memory_space<vmem>>, vector<2x104xf32>
      %c0_12 = arith.constant 0 : index
      %c0_13 = arith.constant 0 : index
      %22 = vector.load %arg2[%c0_12, %c0_13] : memref<104x2208xf32, #tpu.memory_space<vmem>>, vector<104x2208xf32>
      %cst = arith.constant dense<0.000000e+00> : vector<2x2208xf32>
      %23 = tpu.matmul %21, %22, %cst {dimension_numbers = #tpu.dot_dimension_numbers<[1], [0], [0], [1], [0, 0, 1, 1], [], []>} : vector<2x104xf32>, vector<104x2208xf32>, vector<2x2208xf32> -> vector<2x2208xf32>
      %c0_14 = arith.constant 0 : index
      %c0_15 = arith.constant 0 : index
      %24 = vector.load %arg15[%c0_14, %c0_15] : memref<2x2208xf32, #tpu.memory_space<vmem>>, vector<2x2208xf32>
      tpu.vector_store %arg15[%c0_14, %c0_15], %23 {strides = array<i32>} : memref<2x2208xf32, #tpu.memory_space<vmem>>, vector<2x2208xf32>,
      %c0_16 = arith.constant 0 : index
      %c0_17 = arith.constant 0 : index
      %25 = vector.load %arg12[%c0_16, %c0_17] : memref<2x2208xf32, #tpu.memory_space<vmem>>, vector<2x2208xf32>
      tpu.vector_store %arg12[%c0_16, %c0_17], %23 {strides = array<i32>} : memref<2x2208xf32, #tpu.memory_space<vmem>>, vector<2x2208xf32>,
      %cst_18 = arith.constant 0.000000e+00 : f32
      %26 = vector.broadcast %cst_18 : f32 to vector<2x512xf32>
      %c0_19 = arith.constant 0 : index
      %c0_20 = arith.constant 0 : index
      %27 = vector.load %arg16[%c0_19, %c0_20] : memref<2x512xf32, #tpu.memory_space<vmem>>, vector<2x512xf32>
      tpu.vector_store %arg16[%c0_19, %c0_20], %26 {strides = array<i32>} : memref<2x512xf32, #tpu.memory_space<vmem>>, vector<2x512xf32>,
      %cst_21 = arith.constant 0.000000e+00 : f32
      %28 = vector.broadcast %cst_21 : f32 to vector<2x2208xf32>
      %c0_22 = arith.constant 0 : index
      %c0_23 = arith.constant 0 : index
      %29 = vector.load %arg18[%c0_22, %c0_23] : memref<2x2208xf32, #tpu.memory_space<vmem>>, vector<2x2208xf32>
      tpu.vector_store %arg18[%c0_22, %c0_23], %28 {strides = array<i32>} : memref<2x2208xf32, #tpu.memory_space<vmem>>, vector<2x2208xf32>,
    } else {
    }
    %c0_i32_2 = arith.constant 0 : i32
    %5 = arith.cmpi eq, %arg0, %c0_i32_2 : i32
    %6 = arith.extui %5 : i1 to i32
    %c0_i32_3 = arith.constant 0 : i32
    %7 = arith.cmpi ne, %6, %c0_i32_3 : i32
    scf.if %7 {
      %c0 = arith.constant 0 : index
      %c0_11 = arith.constant 0 : index
      %21 = vector.load %arg15[%c0, %c0_11] : memref<2x2208xf32, #tpu.memory_space<vmem>>, vector<2x2208xf32>
      %22 = arith.truncf %21 : vector<2x2208xf32> to vector<2x2208xbf16>
      %c0_12 = arith.constant 0 : index
      %c0_13 = arith.constant 0 : index
      %23 = vector.load %arg4[%c0_12, %c0_13] : memref<2208x512xbf16, #tpu.memory_space<vmem>>, vector<2208x512xbf16>
      %cst = arith.constant dense<0.000000e+00> : vector<2x512xf32>
      %24 = tpu.matmul %22, %23, %cst {dimension_numbers = #tpu.dot_dimension_numbers<[1], [0], [0], [1], [0, 0, 1, 1], [], []>} : vector<2x2208xbf16>, vector<2208x512xbf16>, vector<2x512xf32> -> vector<2x512xf32>
      %c0_14 = arith.constant 0 : index
      %c0_15 = arith.constant 0 : index
      %25 = vector.load %arg5[%c0_14, %c0_15] : memref<1x512xf32, #tpu.memory_space<vmem>>, vector<1x512xf32>
      %26 = vector.broadcast %25 : vector<1x512xf32> to vector<2x512xf32>
      %27 = arith.addf %24, %26 : vector<2x512xf32>
      %cst_16 = arith.constant 0.000000e+00 : f32
      %28 = vector.broadcast %cst_16 : f32 to vector<2x512xf32>
      %29 = arith.maximumf %27, %28 : vector<2x512xf32>
      %c0_17 = arith.constant 0 : index
      %c0_18 = arith.constant 0 : index
      %30 = vector.load %arg16[%c0_17, %c0_18] : memref<2x512xf32, #tpu.memory_space<vmem>>, vector<2x512xf32>
      %31 = arith.truncf %29 : vector<2x512xf32> to vector<2x512xbf16>
      %c0_19 = arith.constant 0 : index
      %c0_20 = arith.constant 0 : index
      %32 = vector.load %arg6[%c0_19, %c0_20] : memref<512x512xbf16, #tpu.memory_space<vmem>>, vector<512x512xbf16>
      %cst_21 = arith.constant dense<0.000000e+00> : vector<2x512xf32>
      %33 = tpu.matmul %31, %32, %cst_21 {dimension_numbers = #tpu.dot_dimension_numbers<[1], [0], [0], [1], [0, 0, 1, 1], [], []>} : vector<2x512xbf16>, vector<512x512xbf16>, vector<2x512xf32> -> vector<2x512xf32>
      %34 = arith.addf %30, %33 : vector<2x512xf32>
      %c0_22 = arith.constant 0 : index
      %c0_23 = arith.constant 0 : index
      %35 = vector.load %arg16[%c0_22, %c0_23] : memref<2x512xf32, #tpu.memory_space<vmem>>, vector<2x512xf32>
      tpu.vector_store %arg16[%c0_22, %c0_23], %34 {strides = array<i32>} : memref<2x512xf32, #tpu.memory_space<vmem>>, vector<2x512xf32>,
    } else {
    }
    %c0_i32_4 = arith.constant 0 : i32
    %8 = arith.cmpi eq, %arg0, %c0_i32_4 : i32
    %c1_i32 = arith.constant 1 : i32
    %9 = arith.cmpi eq, %arg1, %c1_i32 : i32
    %10 = arith.andi %8, %9 : i1
    %11 = arith.extui %10 : i1 to i32
    %c0_i32_5 = arith.constant 0 : i32
    %12 = arith.cmpi ne, %11, %c0_i32_5 : i32
    scf.if %12 {
      %c0 = arith.constant 0 : index
      %c0_11 = arith.constant 0 : index
      %21 = vector.load %arg16[%c0, %c0_11] : memref<2x512xf32, #tpu.memory_space<vmem>>, vector<2x512xf32>
      %c0_12 = arith.constant 0 : index
      %c0_13 = arith.constant 0 : index
      %22 = vector.load %arg7[%c0_12, %c0_13] : memref<1x512xf32, #tpu.memory_space<vmem>>, vector<1x512xf32>
      %23 = vector.broadcast %22 : vector<1x512xf32> to vector<2x512xf32>
      %24 = arith.addf %21, %23 : vector<2x512xf32>
      %cst = arith.constant 0.000000e+00 : f32
      %25 = vector.broadcast %cst : f32 to vector<2x512xf32>
      %26 = arith.maximumf %24, %25 : vector<2x512xf32>
      %c0_14 = arith.constant 0 : index
      %c0_15 = arith.constant 0 : index
      %27 = vector.load %arg17[%c0_14, %c0_15] : memref<2x512xf32, #tpu.memory_space<vmem>>, vector<2x512xf32>
      tpu.vector_store %arg17[%c0_14, %c0_15], %26 {strides = array<i32>} : memref<2x512xf32, #tpu.memory_space<vmem>>, vector<2x512xf32>,
      %c0_16 = arith.constant 0 : index
      %c0_17 = arith.constant 0 : index
      %28 = vector.load %arg13[%c0_16, %c0_17] : memref<2x512xf32, #tpu.memory_space<vmem>>, vector<2x512xf32>
      tpu.vector_store %arg13[%c0_16, %c0_17], %26 {strides = array<i32>} : memref<2x512xf32, #tpu.memory_space<vmem>>, vector<2x512xf32>,
    } else {
    }
    %c1_i32_6 = arith.constant 1 : i32
    %13 = arith.cmpi eq, %arg0, %c1_i32_6 : i32
    %14 = arith.extui %13 : i1 to i32
    %c0_i32_7 = arith.constant 0 : i32
    %15 = arith.cmpi ne, %14, %c0_i32_7 : i32
    scf.if %15 {
      %c0 = arith.constant 0 : index
      %c0_11 = arith.constant 0 : index
      %21 = vector.load %arg17[%c0, %c0_11] : memref<2x512xf32, #tpu.memory_space<vmem>>, vector<2x512xf32>
      %22 = arith.truncf %21 : vector<2x512xf32> to vector<2x512xbf16>
      %c0_12 = arith.constant 0 : index
      %c0_13 = arith.constant 0 : index
      %23 = vector.load %arg8[%c0_12, %c0_13] : memref<512x512xbf16, #tpu.memory_space<vmem>>, vector<512x512xbf16>
      %cst = arith.constant dense<0.000000e+00> : vector<2x512xf32>
      %24 = tpu.matmul %22, %23, %cst {dimension_numbers = #tpu.dot_dimension_numbers<[1], [0], [0], [1], [0, 0, 1, 1], [], []>} : vector<2x512xbf16>, vector<512x512xbf16>, vector<2x512xf32> -> vector<2x512xf32>
      %c0_14 = arith.constant 0 : index
      %c0_15 = arith.constant 0 : index
      %25 = vector.load %arg9[%c0_14, %c0_15] : memref<1x512xf32, #tpu.memory_space<vmem>>, vector<1x512xf32>
      %26 = vector.broadcast %25 : vector<1x512xf32> to vector<2x512xf32>
      %27 = arith.addf %24, %26 : vector<2x512xf32>
      %cst_16 = arith.constant 0.000000e+00 : f32
      %28 = vector.broadcast %cst_16 : f32 to vector<2x512xf32>
      %29 = arith.maximumf %27, %28 : vector<2x512xf32>
      %c0_17 = arith.constant 0 : index
      %c0_18 = arith.constant 0 : index
      %30 = vector.load %arg18[%c0_17, %c0_18] : memref<2x2208xf32, #tpu.memory_space<vmem>>, vector<2x2208xf32>
      %31 = arith.truncf %29 : vector<2x512xf32> to vector<2x512xbf16>
      %c0_19 = arith.constant 0 : index
      %c0_20 = arith.constant 0 : index
      %32 = vector.load %arg10[%c0_19, %c0_20] : memref<512x2208xbf16, #tpu.memory_space<vmem>>, vector<512x2208xbf16>
      %cst_21 = arith.constant dense<0.000000e+00> : vector<2x2208xf32>
      %33 = tpu.matmul %31, %32, %cst_21 {dimension_numbers = #tpu.dot_dimension_numbers<[1], [0], [0], [1], [0, 0, 1, 1], [], []>} : vector<2x512xbf16>, vector<512x2208xbf16>, vector<2x2208xf32> -> vector<2x2208xf32>
      %34 = arith.addf %30, %33 : vector<2x2208xf32>
      %c0_22 = arith.constant 0 : index
      %c0_23 = arith.constant 0 : index
      %35 = vector.load %arg18[%c0_22, %c0_23] : memref<2x2208xf32, #tpu.memory_space<vmem>>, vector<2x2208xf32>
      tpu.vector_store %arg18[%c0_22, %c0_23], %34 {strides = array<i32>} : memref<2x2208xf32, #tpu.memory_space<vmem>>, vector<2x2208xf32>,
    } else {
    }
    %c1_i32_8 = arith.constant 1 : i32
    %16 = arith.cmpi eq, %arg0, %c1_i32_8 : i32
    %c1_i32_9 = arith.constant 1 : i32
    %17 = arith.cmpi eq, %arg1, %c1_i32_9 : i32
    %18 = arith.andi %16, %17 : i1
    %19 = arith.extui %18 : i1 to i32
    %c0_i32_10 = arith.constant 0 : i32
    %20 = arith.cmpi ne, %19, %c0_i32_10 : i32
    scf.if %20 {
      %c0 = arith.constant 0 : index
      %c0_11 = arith.constant 0 : index
      %21 = vector.load %arg18[%c0, %c0_11] : memref<2x2208xf32, #tpu.memory_space<vmem>>, vector<2x2208xf32>
      %c0_12 = arith.constant 0 : index
      %c0_13 = arith.constant 0 : index
      %22 = vector.load %arg11[%c0_12, %c0_13] : memref<1x2208xf32, #tpu.memory_space<vmem>>, vector<1x2208xf32>
      %23 = vector.broadcast %22 : vector<1x2208xf32> to vector<2x2208xf32>
      %24 = arith.addf %21, %23 : vector<2x2208xf32>
      %cst = arith.constant 0.000000e+00 : f32
      %25 = vector.broadcast %cst : f32 to vector<2x2208xf32>
      %26 = arith.maximumf %24, %25 : vector<2x2208xf32>
      %c0_14 = arith.constant 0 : index
      %c0_15 = arith.constant 0 : index
      %27 = vector.load %arg14[%c0_14, %c0_15] : memref<2x2208xf32, #tpu.memory_space<vmem>>, vector<2x2208xf32>
      tpu.vector_store %arg14[%c0_14, %c0_15], %26 {strides = array<i32>} : memref<2x2208xf32, #tpu.memory_space<vmem>>, vector<2x2208xf32>,
    } else {
    }
    return
  }
  func.func @transform_0(%arg0: i32, %arg1: i32) -> (i32, i32) {
    %c0_i32 = arith.constant 0 : i32
    %c0_i32_0 = arith.constant 0 : i32
    %c0_i32_1 = arith.constant 0 : i32
    return %c0_i32, %c0_i32_0 : i32, i32
  }
  func.func @transform_1(%arg0: i32, %arg1: i32) -> (i32, i32) {
    %c0_i32 = arith.constant 0 : i32
    %c0_i32_0 = arith.constant 0 : i32
    %c0_i32_1 = arith.constant 0 : i32
    return %c0_i32, %c0_i32_0 : i32, i32
  }
  func.func @transform_2(%arg0: i32, %arg1: i32) -> (i32, i32) {
    %c1_i32 = arith.constant 1 : i32
    %0 = arith.subi %c1_i32, %arg0 : i32
    %1 = arith.muli %arg1, %0 : i32
    %c1_i32_0 = arith.constant 1 : i32
    %2 = arith.muli %c1_i32_0, %arg0 : i32
    %3 = arith.addi %1, %2 : i32
    %c0_i32 = arith.constant 0 : i32
    %c0_i32_1 = arith.constant 0 : i32
    return %c0_i32, %3 : i32, i32
  }
  func.func @transform_3(%arg0: i32, %arg1: i32) -> (i32, i32) {
    %c1_i32 = arith.constant 1 : i32
    %0 = arith.subi %c1_i32, %arg0 : i32
    %1 = arith.muli %arg1, %0 : i32
    %c1_i32_0 = arith.constant 1 : i32
    %2 = arith.muli %c1_i32_0, %arg0 : i32
    %3 = arith.addi %1, %2 : i32
    %c0_i32 = arith.constant 0 : i32
    %c0_i32_1 = arith.constant 0 : i32
    return %c0_i32, %3 : i32, i32
  }
  func.func @transform_4(%arg0: i32, %arg1: i32) -> (i32, i32) {
    %c1_i32 = arith.constant 1 : i32
    %0 = arith.subi %c1_i32, %arg0 : i32
    %1 = arith.muli %arg1, %0 : i32
    %c1_i32_0 = arith.constant 1 : i32
    %2 = arith.muli %c1_i32_0, %arg0 : i32
    %3 = arith.addi %1, %2 : i32
    %c0_i32 = arith.constant 0 : i32
    %c0_i32_1 = arith.constant 0 : i32
    return %3, %c0_i32 : i32, i32
  }
  func.func @transform_5(%arg0: i32, %arg1: i32) -> (i32, i32) {
    %c0_i32 = arith.constant 0 : i32
    %c0_i32_0 = arith.constant 0 : i32
    %c0_i32_1 = arith.constant 0 : i32
    return %c0_i32, %c0_i32_0 : i32, i32
  }
  func.func @transform_6(%arg0: i32, %arg1: i32) -> (i32, i32) {
    %0 = arith.muli %arg1, %arg0 : i32
    %c0_i32 = arith.constant 0 : i32
    %c0_i32_0 = arith.constant 0 : i32
    return %c0_i32, %0 : i32, i32
  }
  func.func @transform_7(%arg0: i32, %arg1: i32) -> (i32, i32) {
    %0 = arith.muli %arg1, %arg0 : i32
    %c0_i32 = arith.constant 0 : i32
    %c0_i32_0 = arith.constant 0 : i32
    return %c0_i32, %0 : i32, i32
  }
  func.func @transform_8(%arg0: i32, %arg1: i32) -> (i32, i32) {
    %0 = arith.muli %arg1, %arg0 : i32
    %c0_i32 = arith.constant 0 : i32
    %c0_i32_0 = arith.constant 0 : i32
    return %0, %c0_i32 : i32, i32
  }
  func.func @transform_9(%arg0: i32, %arg1: i32) -> (i32, i32) {
    %c0_i32 = arith.constant 0 : i32
    %c0_i32_0 = arith.constant 0 : i32
    %c0_i32_1 = arith.constant 0 : i32
    return %c0_i32, %c0_i32_0 : i32, i32
  }
  func.func @transform_10(%arg0: i32, %arg1: i32) -> (i32, i32) {
    %c0_i32 = arith.constant 0 : i32
    %c0_i32_0 = arith.constant 0 : i32
    %c0_i32_1 = arith.constant 0 : i32
    return %c0_i32, %c0_i32_0 : i32, i32
  }
  func.func @transform_11(%arg0: i32, %arg1: i32) -> (i32, i32) {
    %c0_i32 = arith.constant 0 : i32
    %c0_i32_0 = arith.constant 0 : i32
    %c0_i32_1 = arith.constant 0 : i32
    return %c0_i32, %c0_i32_0 : i32, i32
  }
  func.func @transform_12(%arg0: i32, %arg1: i32) -> (i32, i32) {
    %c0_i32 = arith.constant 0 : i32
    %c0_i32_0 = arith.constant 0 : i32
    %c0_i32_1 = arith.constant 0 : i32
    return %c0_i32, %c0_i32_0 : i32, i32
  }
}

</mosaic_0001>

<bundles_post_ra>
// kernel: tpu_custom_call.1
= control target key start
LH: loop header
LB: loop body
LE: loop exit
PB: predicated region body
PF: predicated region fallthrough
CT: control target
= control target key end

     0   :  { %s21776_s0 = inlined_call_operand.vmem [shape: f32[104,2208], index: 0, kind: input, shape index: {}]   ;;  %s21777_s1 = inlined_call_operand.vmem [shape: f32[2,104], index: 1, kind: input, shape index: {}]   ;;  %s21778_s2 = inlined_call_operand.vmem [shape: bf16[2208,1024], index: 2, kind: input, shape index: {}]   ;;  %s21779_s3 = inlined_call_operand.vmem [shape: f32[1,1024], index: 3, kind: input, shape index: {}]   ;;  %s21780_s4 = inlined_call_operand.vmem [shape: bf16[1024,512], index: 4, kind: input, shape index: {}]   ;;  %s21781_s5 = inlined_call_operand.vmem [shape: f32[1,512], index: 5, kind: input, shape index: {}]   ;;  %s21782_s6 = inlined_call_operand.vmem [shape: bf16[512,1024], index: 6, kind: input, shape index: {}]   ;;  %s21783_s7 = inlined_call_operand.vmem [shape: f32[1,1024], index: 7, kind: input, shape index: {}]   ;;  %s21784_s8 = inlined_call_operand.vmem [shape: bf16[1024,2208], index: 8, kind: input, shape index: {}]   ;;  %s21785_s9 = inlined_call_operand.vmem [shape: f32[1,2208], index: 9, kind: input, shape index: {}]   ;;  %s21786_s10 = inlined_call_operand.hbm [shape: f32[2,2208], index: 10, kind: output, shape index: {0}]   ;;  %s21787_s11 = inlined_call_operand.hbm [shape: f32[2,512], index: 11, kind: output, shape index: {1}]   ;;  %s21788_s12 = inlined_call_operand.hbm [shape: f32[2,2208], index: 12, kind: output, shape index: {2}]  }
   0x1   :  { %21793 = sst [smem:[#allocation18_spill]] %s21778_s2 }
   0x2   :  { %21794 = sst [smem:[#allocation19_spill]] %s21779_s3 }
   0x3   :  { %21795 = sst [smem:[#allocation20_spill]] %s21780_s4 }
   0x4   :  { %21796 = sst [smem:[#allocation21_spill]] %s21781_s5 }
   0x5   :  { %21797 = sst [smem:[#allocation22_spill]] %s21782_s6 }
   0x6   :  { %21798 = sst [smem:[#allocation23_spill]] %s21785_s9 }
   0x7   :  { %21799 = sst [smem:[#allocation24_spill]] %s21786_s10 }
   0x8   :  { %21800 = sst [smem:[#allocation25_spill]] %s21787_s11 }
   0x9   :  { %21801 = sst [smem:[#allocation26_spill]] %s21788_s12 }
   0xa   :  { %18 = vsyncpa [#allocation9], 0 }
   0xb   :  { %19 = vsyncpa [#allocation11], 0  ;;  %s17695_s21 = smov 0   ;;  %s17697_s22 = smov 0  }
   0xc   :  { %s17699_s23 = smov 0   ;;  %s17701_s24 = smov 0  }
   0xd   :  { %s17703_s25 = smov 0   ;;  %s17705_s26 = smov 0  }
   0xe   :  { %s17707_s27 = smov 0   ;;  %s17709_s28 = smov 0  }
   0xf   :  { %s17711_s29 = smov 0  }
  0x10 LB: > { %21802 = sst [smem:[#allocation15_spill]] %s17611_s27  ;;  %s34_s13 = sadd.s32 1, %s17611_s27  ;;  %s17619_s29 = sphi %s17711_s29, %s25_s29   ;;  %s17615_s28 = sphi %s17709_s28, %s21828_s28   ;;  %s17611_s27 = sphi %s17707_s27, %s21827_s27   ;;  %s17607_s26 = sphi %s17705_s26, %s21821_s26   ;;  %s17603_s25 = sphi %s17703_s25, %s21820_s25   ;;  %s17599_s24 = sphi %s17701_s24, %s21826_s24   ;;  %s17595_s23 = sphi %s17699_s23, %s21825_s23   ;;  %s17591_s22 = sphi %s17697_s22, %s21824_s22   ;;  %s17587_s21 = sphi %s17695_s21, %s21823_s21  }
  0x11   : > { %21803 = sst [smem:[#allocation16_spill]] %s17615_s28  ;;  %p35_p0 = scmp.ge.s32.totalorder %s34_s13, 2 }
  0x12   : > { %s37_s14 = sadd.s32 1, %s17615_s28  ;;  %s83_s15 = ssub.s32 1, %s17615_s28 }
  0x13   : > { %s21830_s13 = smov (%p35_p0, %s34_s13), 0  ;;  %s21832_s14 = smov (!%p35_p0, %s37_s14), %s17615_s28 }
  0x14   : > { %s84_s16 = smul.u32 %s17611_s27, %s83_s15  ;;  %p99_p1 = scmp.ne.s32.totalorder %s17599_s24, %s17595_s23 }
  0x15   : > { %p39_p2 = scmp.ge.s32.totalorder %s21832_s14, 2  ;;  %p100_p3 = scmp.eq.s32.totalorder %s17619_s29, 0 }
  0x16   : > { %s92_s17 = sadd.s32 1, %s17599_s24  ;;  %s17754_s18 = smul.u32 %s17611_s27, %s17615_s28 }
  0x17   : > { %s21834_s14 = smov (%p39_p2, %s21832_s14), 0  ;;  %s85_s19 = sadd.s32 %s17615_s28, %s84_s16 }
  0x18   : > { %21804 = sst [smem:[#allocation17_spill]] %s21834_s14  ;;  %p17761_p4 = por %p100_p3, %p99_p1 }
  0x19   : > { %s86_s15 = ssub.s32 1, %s21834_s14  ;;  %s201_s30 = smul.u32 %s21834_s14, %s21830_s13 }
  0x1a   : > { %s87_s12 = smul.u32 %s86_s15, %s21830_s13  ;;  %p212_p5 = scmp.ne.s32.totalorder %s17591_s22, %s17587_s21 }
  0x1b   : > { %s202_s10 = ssub.s32 %s17754_s18, %s201_s30  ;;  %s205_s27 = sadd.s32 1, %s17591_s22 }
  0x1c   : > { %s88_s11 = sadd.s32 %s87_s12, %s21834_s14  ;;  %p203_p6 = scmp.eq.s32.totalorder %s202_s10, 0 }
  0x1d   : > { %s89_s9 = ssub.s32 %s85_s19, %s88_s11  ;;  %p17776_p7 = por %p212_p5, %p100_p3 }
  0x1e   : > { %p90_p8 = scmp.eq.s32.totalorder %s89_s9, 0  ;;  %p13861_p9 = scmp.ge.s32.totalorder %s17619_s29, 4 }
  0x1f   : > { %s17781_s16 = scalar_select %p203_p6, %s17591_s22, %s205_s27  }
  0x20   : > { %s17784_s28 = scalar_select %p90_p8, %s17599_s24, %s92_s17  }
  0x21   : > { %390 = sbr.rel (%p13861_p9) target bundleno = 398 (0x18e), region = 32 }
  0x26   : > { %393 = sbr.rel (!%p17761_p4) target bundleno = 324 (0x144), region = 36  ;;  %s395_s12 = sand.u32 (%p17761_p4), 1, %s17599_s24  }
  0x27   : > { %s15282_s10 = sshll.u32 (%p17761_p4), %s85_s19, 4  ;;  %s15285_s11 = smul.u32 (%p17761_p4), 4416, %s395_s12 }
  0x28   : > { %s21807_s2 = sld [smem:[#allocation18_spill]] (%p17761_p4) }
  0x29   : > { %s17801_s9 = scalar_lea.vmem (%p17761_p4), [#allocation6], %s15285_s11 }
  0x2e   : > { %s17793_s14 = scalar_lea.vmem %s21807_s2, %s15282_s10 }
  0x2f   : > { %v416_v0 = vld [vmem:[%s17793_s14] sm:$0xff]  ;;  %v418_v1 = vld [vmem:[%s17793_s14 + $0x8] sm:$0xff] }
  0x30   : > { %v420_v2 = vld [vmem:[%s17793_s14 + $0x20] sm:$0xff]  ;;  %v422_v3 = vld [vmem:[%s17793_s14 + $0x28] sm:$0xff]  ;;  %417 = vst [vmem:[%s17801_s9] sm:$0xff] %v416_v0  ;;  %419 = vst [vmem:[%s17801_s9 + $0x8] sm:$0xff] %v418_v1 }
  0x31   : > { %v424_v4 = vld [vmem:[%s17793_s14 + $0x40] sm:$0xff]  ;;  %v426_v5 = vld [vmem:[%s17793_s14 + $0x48] sm:$0xff]  ;;  %421 = vst [vmem:[%s17801_s9 + $0x10] sm:$0xff] %v420_v2  ;;  %423 = vst [vmem:[%s17801_s9 + $0x18] sm:$0xff] %v422_v3 }
  0x32   : > { %425 = vst [vmem:[%s17801_s9 + $0x20] sm:$0xff] %v424_v4  ;;  %427 = vst [vmem:[%s17801_s9 + $0x28] sm:$0xff] %v426_v5  ;;  %v428_v6 = vld [vmem:[%s17793_s14 + $0x60] sm:$0xff]  ;;  %v430_v7 = vld [vmem:[%s17793_s14 + $0x68] sm:$0xff] }
  0x33   : > { %v432_v8 = vld [vmem:[%s17793_s14 + $0x80] sm:$0xff]  ;;  %429 = vst [vmem:[%s17801_s9 + $0x30] sm:$0xff] %v428_v6  ;;  %431 = vst [vmem:[%s17801_s9 + $0x38] sm:$0xff] %v430_v7  ;;  %v434_v9 = vld [vmem:[%s17793_s14 + $0x88] sm:$0xff] }
  0x34   : > { %433 = vst [vmem:[%s17801_s9 + $0x40] sm:$0xff] %v432_v8  ;;  %v436_v10 = vld [vmem:[%s17793_s14 + $0xa0] sm:$0xff]  ;;  %v438_v11 = vld [vmem:[%s17793_s14 + $0xa8] sm:$0xff]  ;;  %435 = vst [vmem:[%s17801_s9 + $0x48] sm:$0xff] %v434_v9 }
  0x35   : > { %437 = vst [vmem:[%s17801_s9 + $0x50] sm:$0xff] %v436_v10  ;;  %439 = vst [vmem:[%s17801_s9 + $0x58] sm:$0xff] %v438_v11  ;;  %v440_v12 = vld [vmem:[%s17793_s14 + $0xc0] sm:$0xff]  ;;  %v442_v13 = vld [vmem:[%s17793_s14 + $0xc8] sm:$0xff] }
  0x36   : > { %v444_v14 = vld [vmem:[%s17793_s14 + $0xe0] sm:$0xff]  ;;  %441 = vst [vmem:[%s17801_s9 + $0x60] sm:$0xff] %v440_v12  ;;  %443 = vst [vmem:[%s17801_s9 + $0x68] sm:$0xff] %v442_v13  ;;  %v446_v15 = vld [vmem:[%s17793_s14 + $0xe8] sm:$0xff] }
  0x37   : > { %445 = vst [vmem:[%s17801_s9 + $0x70] sm:$0xff] %v444_v14  ;;  %v448_v16 = vld [vmem:[%s17793_s14 + $0x100] sm:$0xff]  ;;  %v450_v17 = vld [vmem:[%s17793_s14 + $0x108] sm:$0xff]  ;;  %447 = vst [vmem:[%s17801_s9 + $0x78] sm:$0xff] %v446_v15 }
  0x38   : > { %449 = vst [vmem:[%s17801_s9 + $0x80] sm:$0xff] %v448_v16  ;;  %451 = vst [vmem:[%s17801_s9 + $0x88] sm:$0xff] %v450_v17  ;;  %v452_v18 = vld [vmem:[%s17793_s14 + $0x120] sm:$0xff]  ;;  %v454_v19 = vld [vmem:[%s17793_s14 + $0x128] sm:$0xff] }
  0x39   : > { %v456_v20 = vld [vmem:[%s17793_s14 + $0x140] sm:$0xff]  ;;  %453 = vst [vmem:[%s17801_s9 + $0x90] sm:$0xff] %v452_v18  ;;  %455 = vst [vmem:[%s17801_s9 + $0x98] sm:$0xff] %v454_v19  ;;  %v458_v21 = vld [vmem:[%s17793_s14 + $0x148] sm:$0xff] }
  0x3a   : > { %457 = vst [vmem:[%s17801_s9 + $0xa0] sm:$0xff] %v456_v20  ;;  %v460_v22 = vld [vmem:[%s17793_s14 + $0x160] sm:$0xff]  ;;  %v462_v23 = vld [vmem:[%s17793_s14 + $0x168] sm:$0xff]  ;;  %459 = vst [vmem:[%s17801_s9 + $0xa8] sm:$0xff] %v458_v21 }
  0x3b   : > { %461 = vst [vmem:[%s17801_s9 + $0xb0] sm:$0xff] %v460_v22  ;;  %463 = vst [vmem:[%s17801_s9 + $0xb8] sm:$0xff] %v462_v23  ;;  %v464_v24 = vld [vmem:[%s17793_s14 + $0x180] sm:$0xff]  ;;  %v466_v25 = vld [vmem:[%s17793_s14 + $0x188] sm:$0xff] }
  0x3c   : > { %v468_v26 = vld [vmem:[%s17793_s14 + $0x1a0] sm:$0xff]  ;;  %465 = vst [vmem:[%s17801_s9 + $0xc0] sm:$0xff] %v464_v24  ;;  %467 = vst [vmem:[%s17801_s9 + $0xc8] sm:$0xff] %v466_v25  ;;  %v470_v27 = vld [vmem:[%s17793_s14 + $0x1a8] sm:$0xff] }
  0x3d   : > { %469 = vst [vmem:[%s17801_s9 + $0xd0] sm:$0xff] %v468_v26  ;;  %v472_v28 = vld [vmem:[%s17793_s14 + $0x1c0] sm:$0xff]  ;;  %v474_v29 = vld [vmem:[%s17793_s14 + $0x1c8] sm:$0xff]  ;;  %471 = vst [vmem:[%s17801_s9 + $0xd8] sm:$0xff] %v470_v27 }
  0x3e   : > { %473 = vst [vmem:[%s17801_s9 + $0xe0] sm:$0xff] %v472_v28  ;;  %475 = vst [vmem:[%s17801_s9 + $0xe8] sm:$0xff] %v474_v29  ;;  %v476_v30 = vld [vmem:[%s17793_s14 + $0x1e0] sm:$0xff]  ;;  %v478_v31 = vld [vmem:[%s17793_s14 + $0x1e8] sm:$0xff] }
  0x3f   : > { %v480_v32 = vld [vmem:[%s17793_s14 + $0x200] sm:$0xff]  ;;  %477 = vst [vmem:[%s17801_s9 + $0xf0] sm:$0xff] %v476_v30  ;;  %479 = vst [vmem:[%s17801_s9 + $0xf8] sm:$0xff] %v478_v31  ;;  %v482_v33 = vld [vmem:[%s17793_s14 + $0x208] sm:$0xff] }
  0x40   : > { %481 = vst [vmem:[%s17801_s9 + $0x100] sm:$0xff] %v480_v32  ;;  %v484_v34 = vld [vmem:[%s17793_s14 + $0x220] sm:$0xff]  ;;  %v486_v35 = vld [vmem:[%s17793_s14 + $0x228] sm:$0xff]  ;;  %483 = vst [vmem:[%s17801_s9 + $0x108] sm:$0xff] %v482_v33 }
  0x41   : > { %485 = vst [vmem:[%s17801_s9 + $0x110] sm:$0xff] %v484_v34  ;;  %487 = vst [vmem:[%s17801_s9 + $0x118] sm:$0xff] %v486_v35  ;;  %v488_v36 = vld [vmem:[%s17793_s14 + $0x240] sm:$0xff]  ;;  %v490_v37 = vld [vmem:[%s17793_s14 + $0x248] sm:$0xff] }
  0x42   : > { %v492_v38 = vld [vmem:[%s17793_s14 + $0x260] sm:$0xff]  ;;  %489 = vst [vmem:[%s17801_s9 + $0x120] sm:$0xff] %v488_v36  ;;  %491 = vst [vmem:[%s17801_s9 + $0x128] sm:$0xff] %v490_v37  ;;  %v494_v39 = vld [vmem:[%s17793_s14 + $0x268] sm:$0xff] }
  0x43   : > { %493 = vst [vmem:[%s17801_s9 + $0x130] sm:$0xff] %v492_v38  ;;  %v496_v40 = vld [vmem:[%s17793_s14 + $0x280] sm:$0xff]  ;;  %v498_v41 = vld [vmem:[%s17793_s14 + $0x288] sm:$0xff]  ;;  %495 = vst [vmem:[%s17801_s9 + $0x138] sm:$0xff] %v494_v39 }
  0x44   : > { %497 = vst [vmem:[%s17801_s9 + $0x140] sm:$0xff] %v496_v40  ;;  %499 = vst [vmem:[%s17801_s9 + $0x148] sm:$0xff] %v498_v41  ;;  %v500_v42 = vld [vmem:[%s17793_s14 + $0x2a0] sm:$0xff]  ;;  %v502_v43 = vld [vmem:[%s17793_s14 + $0x2a8] sm:$0xff] }
  0x45   : > { %v504_v44 = vld [vmem:[%s17793_s14 + $0x2c0] sm:$0xff]  ;;  %501 = vst [vmem:[%s17801_s9 + $0x150] sm:$0xff] %v500_v42  ;;  %503 = vst [vmem:[%s17801_s9 + $0x158] sm:$0xff] %v502_v43  ;;  %v506_v45 = vld [vmem:[%s17793_s14 + $0x2c8] sm:$0xff] }
  0x46   : > { %505 = vst [vmem:[%s17801_s9 + $0x160] sm:$0xff] %v504_v44  ;;  %v508_v46 = vld [vmem:[%s17793_s14 + $0x2e0] sm:$0xff]  ;;  %v510_v47 = vld [vmem:[%s17793_s14 + $0x2e8] sm:$0xff]  ;;  %507 = vst [vmem:[%s17801_s9 + $0x168] sm:$0xff] %v506_v45 }
  0x47   : > { %509 = vst [vmem:[%s17801_s9 + $0x170] sm:$0xff] %v508_v46  ;;  %511 = vst [vmem:[%s17801_s9 + $0x178] sm:$0xff] %v510_v47  ;;  %v512_v48 = vld [vmem:[%s17793_s14 + $0x300] sm:$0xff]  ;;  %v514_v49 = vld [vmem:[%s17793_s14 + $0x308] sm:$0xff] }
  0x48   : > { %v516_v50 = vld [vmem:[%s17793_s14 + $0x320] sm:$0xff]  ;;  %513 = vst [vmem:[%s17801_s9 + $0x180] sm:$0xff] %v512_v48  ;;  %515 = vst [vmem:[%s17801_s9 + $0x188] sm:$0xff] %v514_v49  ;;  %v518_v51 = vld [vmem:[%s17793_s14 + $0x328] sm:$0xff] }
  0x49   : > { %517 = vst [vmem:[%s17801_s9 + $0x190] sm:$0xff] %v516_v50  ;;  %v520_v52 = vld [vmem:[%s17793_s14 + $0x340] sm:$0xff]  ;;  %v522_v53 = vld [vmem:[%s17793_s14 + $0x348] sm:$0xff]  ;;  %519 = vst [vmem:[%s17801_s9 + $0x198] sm:$0xff] %v518_v51 }
  0x4a   : > { %521 = vst [vmem:[%s17801_s9 + $0x1a0] sm:$0xff] %v520_v52  ;;  %523 = vst [vmem:[%s17801_s9 + $0x1a8] sm:$0xff] %v522_v53  ;;  %v524_v54 = vld [vmem:[%s17793_s14 + $0x360] sm:$0xff]  ;;  %v526_v55 = vld [vmem:[%s17793_s14 + $0x368] sm:$0xff] }
  0x4b   : > { %v528_v56 = vld [vmem:[%s17793_s14 + $0x380] sm:$0xff]  ;;  %525 = vst [vmem:[%s17801_s9 + $0x1b0] sm:$0xff] %v524_v54  ;;  %527 = vst [vmem:[%s17801_s9 + $0x1b8] sm:$0xff] %v526_v55  ;;  %v530_v57 = vld [vmem:[%s17793_s14 + $0x388] sm:$0xff] }
  0x4c   : > { %529 = vst [vmem:[%s17801_s9 + $0x1c0] sm:$0xff] %v528_v56  ;;  %v532_v58 = vld [vmem:[%s17793_s14 + $0x3a0] sm:$0xff]  ;;  %v534_v59 = vld [vmem:[%s17793_s14 + $0x3a8] sm:$0xff]  ;;  %531 = vst [vmem:[%s17801_s9 + $0x1c8] sm:$0xff] %v530_v57 }
  0x4d   : > { %533 = vst [vmem:[%s17801_s9 + $0x1d0] sm:$0xff] %v532_v58  ;;  %535 = vst [vmem:[%s17801_s9 + $0x1d8] sm:$0xff] %v534_v59  ;;  %v536_v60 = vld [vmem:[%s17793_s14 + $0x3c0] sm:$0xff]  ;;  %v538_v61 = vld [vmem:[%s17793_s14 + $0x3c8] sm:$0xff] }
  0x4e   : > { %v540_v62 = vld [vmem:[%s17793_s14 + $0x3e0] sm:$0xff]  ;;  %537 = vst [vmem:[%s17801_s9 + $0x1e0] sm:$0xff] %v536_v60  ;;  %539 = vst [vmem:[%s17801_s9 + $0x1e8] sm:$0xff] %v538_v61  ;;  %v542_v63 = vld [vmem:[%s17793_s14 + $0x3e8] sm:$0xff] }
  0x4f   : > { %541 = vst [vmem:[%s17801_s9 + $0x1f0] sm:$0xff] %v540_v62  ;;  %v544_v0 = vld [vmem:[%s17793_s14 + $0x400] sm:$0xff]  ;;  %v546_v1 = vld [vmem:[%s17793_s14 + $0x408] sm:$0xff]  ;;  %543 = vst [vmem:[%s17801_s9 + $0x1f8] sm:$0xff] %v542_v63 }
  0x50   : > { %545 = vst [vmem:[%s17801_s9 + $0x200] sm:$0xff] %v544_v0  ;;  %547 = vst [vmem:[%s17801_s9 + $0x208] sm:$0xff] %v546_v1  ;;  %v548_v2 = vld [vmem:[%s17793_s14 + $0x420] sm:$0xff]  ;;  %v550_v3 = vld [vmem:[%s17793_s14 + $0x428] sm:$0xff] }
  0x51   : > { %v552_v4 = vld [vmem:[%s17793_s14 + $0x440] sm:$0xff]  ;;  %549 = vst [vmem:[%s17801_s9 + $0x210] sm:$0xff] %v548_v2  ;;  %551 = vst [vmem:[%s17801_s9 + $0x218] sm:$0xff] %v550_v3  ;;  %v554_v5 = vld [vmem:[%s17793_s14 + $0x448] sm:$0xff] }
  0x52   : > { %553 = vst [vmem:[%s17801_s9 + $0x220] sm:$0xff] %v552_v4  ;;  %v556_v6 = vld [vmem:[%s17793_s14 + $0x460] sm:$0xff]  ;;  %v558_v7 = vld [vmem:[%s17793_s14 + $0x468] sm:$0xff]  ;;  %555 = vst [vmem:[%s17801_s9 + $0x228] sm:$0xff] %v554_v5 }
  0x53   : > { %557 = vst [vmem:[%s17801_s9 + $0x230] sm:$0xff] %v556_v6  ;;  %559 = vst [vmem:[%s17801_s9 + $0x238] sm:$0xff] %v558_v7  ;;  %v560_v8 = vld [vmem:[%s17793_s14 + $0x480] sm:$0xff]  ;;  %v562_v9 = vld [vmem:[%s17793_s14 + $0x488] sm:$0xff] }
  0x54   : > { %v564_v10 = vld [vmem:[%s17793_s14 + $0x4a0] sm:$0xff]  ;;  %561 = vst [vmem:[%s17801_s9 + $0x240] sm:$0xff] %v560_v8  ;;  %563 = vst [vmem:[%s17801_s9 + $0x248] sm:$0xff] %v562_v9  ;;  %v566_v11 = vld [vmem:[%s17793_s14 + $0x4a8] sm:$0xff] }
  0x55   : > { %565 = vst [vmem:[%s17801_s9 + $0x250] sm:$0xff] %v564_v10  ;;  %v568_v12 = vld [vmem:[%s17793_s14 + $0x4c0] sm:$0xff]  ;;  %v570_v13 = vld [vmem:[%s17793_s14 + $0x4c8] sm:$0xff]  ;;  %567 = vst [vmem:[%s17801_s9 + $0x258] sm:$0xff] %v566_v11 }
  0x56   : > { %569 = vst [vmem:[%s17801_s9 + $0x260] sm:$0xff] %v568_v12  ;;  %571 = vst [vmem:[%s17801_s9 + $0x268] sm:$0xff] %v570_v13  ;;  %v572_v14 = vld [vmem:[%s17793_s14 + $0x4e0] sm:$0xff]  ;;  %v574_v15 = vld [vmem:[%s17793_s14 + $0x4e8] sm:$0xff] }
  0x57   : > { %v576_v16 = vld [vmem:[%s17793_s14 + $0x500] sm:$0xff]  ;;  %573 = vst [vmem:[%s17801_s9 + $0x270] sm:$0xff] %v572_v14  ;;  %575 = vst [vmem:[%s17801_s9 + $0x278] sm:$0xff] %v574_v15  ;;  %v578_v17 = vld [vmem:[%s17793_s14 + $0x508] sm:$0xff] }
  0x58   : > { %577 = vst [vmem:[%s17801_s9 + $0x280] sm:$0xff] %v576_v16  ;;  %v580_v18 = vld [vmem:[%s17793_s14 + $0x520] sm:$0xff]  ;;  %v582_v19 = vld [vmem:[%s17793_s14 + $0x528] sm:$0xff]  ;;  %579 = vst [vmem:[%s17801_s9 + $0x288] sm:$0xff] %v578_v17 }
  0x59   : > { %581 = vst [vmem:[%s17801_s9 + $0x290] sm:$0xff] %v580_v18  ;;  %583 = vst [vmem:[%s17801_s9 + $0x298] sm:$0xff] %v582_v19  ;;  %v584_v20 = vld [vmem:[%s17793_s14 + $0x540] sm:$0xff]  ;;  %v586_v21 = vld [vmem:[%s17793_s14 + $0x548] sm:$0xff] }
  0x5a   : > { %v588_v22 = vld [vmem:[%s17793_s14 + $0x560] sm:$0xff]  ;;  %585 = vst [vmem:[%s17801_s9 + $0x2a0] sm:$0xff] %v584_v20  ;;  %587 = vst [vmem:[%s17801_s9 + $0x2a8] sm:$0xff] %v586_v21  ;;  %v590_v23 = vld [vmem:[%s17793_s14 + $0x568] sm:$0xff] }
  0x5b   : > { %589 = vst [vmem:[%s17801_s9 + $0x2b0] sm:$0xff] %v588_v22  ;;  %v592_v24 = vld [vmem:[%s17793_s14 + $0x580] sm:$0xff]  ;;  %v594_v25 = vld [vmem:[%s17793_s14 + $0x588] sm:$0xff]  ;;  %591 = vst [vmem:[%s17801_s9 + $0x2b8] sm:$0xff] %v590_v23 }
  0x5c   : > { %593 = vst [vmem:[%s17801_s9 + $0x2c0] sm:$0xff] %v592_v24  ;;  %595 = vst [vmem:[%s17801_s9 + $0x2c8] sm:$0xff] %v594_v25  ;;  %v596_v26 = vld [vmem:[%s17793_s14 + $0x5a0] sm:$0xff]  ;;  %v598_v27 = vld [vmem:[%s17793_s14 + $0x5a8] sm:$0xff] }
  0x5d   : > { %v600_v28 = vld [vmem:[%s17793_s14 + $0x5c0] sm:$0xff]  ;;  %597 = vst [vmem:[%s17801_s9 + $0x2d0] sm:$0xff] %v596_v26  ;;  %599 = vst [vmem:[%s17801_s9 + $0x2d8] sm:$0xff] %v598_v27  ;;  %v602_v29 = vld [vmem:[%s17793_s14 + $0x5c8] sm:$0xff] }
  0x5e   : > { %601 = vst [vmem:[%s17801_s9 + $0x2e0] sm:$0xff] %v600_v28  ;;  %v604_v30 = vld [vmem:[%s17793_s14 + $0x5e0] sm:$0xff]  ;;  %v606_v31 = vld [vmem:[%s17793_s14 + $0x5e8] sm:$0xff]  ;;  %603 = vst [vmem:[%s17801_s9 + $0x2e8] sm:$0xff] %v602_v29 }
  0x5f   : > { %605 = vst [vmem:[%s17801_s9 + $0x2f0] sm:$0xff] %v604_v30  ;;  %607 = vst [vmem:[%s17801_s9 + $0x2f8] sm:$0xff] %v606_v31  ;;  %v608_v32 = vld [vmem:[%s17793_s14 + $0x600] sm:$0xff]  ;;  %v610_v33 = vld [vmem:[%s17793_s14 + $0x608] sm:$0xff] }
  0x60   : > { %v612_v34 = vld [vmem:[%s17793_s14 + $0x620] sm:$0xff]  ;;  %609 = vst [vmem:[%s17801_s9 + $0x300] sm:$0xff] %v608_v32  ;;  %611 = vst [vmem:[%s17801_s9 + $0x308] sm:$0xff] %v610_v33  ;;  %v614_v35 = vld [vmem:[%s17793_s14 + $0x628] sm:$0xff] }
  0x61   : > { %613 = vst [vmem:[%s17801_s9 + $0x310] sm:$0xff] %v612_v34  ;;  %v616_v36 = vld [vmem:[%s17793_s14 + $0x640] sm:$0xff]  ;;  %v618_v37 = vld [vmem:[%s17793_s14 + $0x648] sm:$0xff]  ;;  %615 = vst [vmem:[%s17801_s9 + $0x318] sm:$0xff] %v614_v35 }
  0x62   : > { %617 = vst [vmem:[%s17801_s9 + $0x320] sm:$0xff] %v616_v36  ;;  %619 = vst [vmem:[%s17801_s9 + $0x328] sm:$0xff] %v618_v37  ;;  %v620_v38 = vld [vmem:[%s17793_s14 + $0x660] sm:$0xff]  ;;  %v622_v39 = vld [vmem:[%s17793_s14 + $0x668] sm:$0xff] }
  0x63   : > { %v624_v40 = vld [vmem:[%s17793_s14 + $0x680] sm:$0xff]  ;;  %621 = vst [vmem:[%s17801_s9 + $0x330] sm:$0xff] %v620_v38  ;;  %623 = vst [vmem:[%s17801_s9 + $0x338] sm:$0xff] %v622_v39  ;;  %v626_v41 = vld [vmem:[%s17793_s14 + $0x688] sm:$0xff] }
  0x64   : > { %625 = vst [vmem:[%s17801_s9 + $0x340] sm:$0xff] %v624_v40  ;;  %v628_v42 = vld [vmem:[%s17793_s14 + $0x6a0] sm:$0xff]  ;;  %v630_v43 = vld [vmem:[%s17793_s14 + $0x6a8] sm:$0xff]  ;;  %627 = vst [vmem:[%s17801_s9 + $0x348] sm:$0xff] %v626_v41 }
  0x65   : > { %629 = vst [vmem:[%s17801_s9 + $0x350] sm:$0xff] %v628_v42  ;;  %631 = vst [vmem:[%s17801_s9 + $0x358] sm:$0xff] %v630_v43  ;;  %v632_v44 = vld [vmem:[%s17793_s14 + $0x6c0] sm:$0xff]  ;;  %v634_v45 = vld [vmem:[%s17793_s14 + $0x6c8] sm:$0xff] }
  0x66   : > { %v636_v46 = vld [vmem:[%s17793_s14 + $0x6e0] sm:$0xff]  ;;  %633 = vst [vmem:[%s17801_s9 + $0x360] sm:$0xff] %v632_v44  ;;  %635 = vst [vmem:[%s17801_s9 + $0x368] sm:$0xff] %v634_v45  ;;  %v638_v47 = vld [vmem:[%s17793_s14 + $0x6e8] sm:$0xff] }
  0x67   : > { %637 = vst [vmem:[%s17801_s9 + $0x370] sm:$0xff] %v636_v46  ;;  %v640_v48 = vld [vmem:[%s17793_s14 + $0x700] sm:$0xff]  ;;  %v642_v49 = vld [vmem:[%s17793_s14 + $0x708] sm:$0xff]  ;;  %639 = vst [vmem:[%s17801_s9 + $0x378] sm:$0xff] %v638_v47 }
  0x68   : > { %641 = vst [vmem:[%s17801_s9 + $0x380] sm:$0xff] %v640_v48  ;;  %643 = vst [vmem:[%s17801_s9 + $0x388] sm:$0xff] %v642_v49  ;;  %v644_v50 = vld [vmem:[%s17793_s14 + $0x720] sm:$0xff]  ;;  %v646_v51 = vld [vmem:[%s17793_s14 + $0x728] sm:$0xff] }
  0x69   : > { %v648_v52 = vld [vmem:[%s17793_s14 + $0x740] sm:$0xff]  ;;  %645 = vst [vmem:[%s17801_s9 + $0x390] sm:$0xff] %v644_v50  ;;  %647 = vst [vmem:[%s17801_s9 + $0x398] sm:$0xff] %v646_v51  ;;  %v650_v53 = vld [vmem:[%s17793_s14 + $0x748] sm:$0xff] }
  0x6a   : > { %649 = vst [vmem:[%s17801_s9 + $0x3a0] sm:$0xff] %v648_v52  ;;  %v652_v54 = vld [vmem:[%s17793_s14 + $0x760] sm:$0xff]  ;;  %v654_v55 = vld [vmem:[%s17793_s14 + $0x768] sm:$0xff]  ;;  %651 = vst [vmem:[%s17801_s9 + $0x3a8] sm:$0xff] %v650_v53 }
  0x6b   : > { %653 = vst [vmem:[%s17801_s9 + $0x3b0] sm:$0xff] %v652_v54  ;;  %655 = vst [vmem:[%s17801_s9 + $0x3b8] sm:$0xff] %v654_v55  ;;  %v656_v56 = vld [vmem:[%s17793_s14 + $0x780] sm:$0xff]  ;;  %v658_v57 = vld [vmem:[%s17793_s14 + $0x788] sm:$0xff] }
  0x6c   : > { %v660_v58 = vld [vmem:[%s17793_s14 + $0x7a0] sm:$0xff]  ;;  %657 = vst [vmem:[%s17801_s9 + $0x3c0] sm:$0xff] %v656_v56  ;;  %659 = vst [vmem:[%s17801_s9 + $0x3c8] sm:$0xff] %v658_v57  ;;  %v662_v59 = vld [vmem:[%s17793_s14 + $0x7a8] sm:$0xff] }
  0x6d   : > { %661 = vst [vmem:[%s17801_s9 + $0x3d0] sm:$0xff] %v660_v58  ;;  %v664_v60 = vld [vmem:[%s17793_s14 + $0x7c0] sm:$0xff]  ;;  %v666_v61 = vld [vmem:[%s17793_s14 + $0x7c8] sm:$0xff]  ;;  %663 = vst [vmem:[%s17801_s9 + $0x3d8] sm:$0xff] %v662_v59 }
  0x6e   : > { %665 = vst [vmem:[%s17801_s9 + $0x3e0] sm:$0xff] %v664_v60  ;;  %667 = vst [vmem:[%s17801_s9 + $0x3e8] sm:$0xff] %v666_v61  ;;  %v668_v62 = vld [vmem:[%s17793_s14 + $0x7e0] sm:$0xff]  ;;  %v670_v63 = vld [vmem:[%s17793_s14 + $0x7e8] sm:$0xff] }
  0x6f   : > { %v672_v0 = vld [vmem:[%s17793_s14 + $0x800] sm:$0xff]  ;;  %669 = vst [vmem:[%s17801_s9 + $0x3f0] sm:$0xff] %v668_v62  ;;  %671 = vst [vmem:[%s17801_s9 + $0x3f8] sm:$0xff] %v670_v63  ;;  %v674_v1 = vld [vmem:[%s17793_s14 + $0x808] sm:$0xff] }
  0x70   : > { %673 = vst [vmem:[%s17801_s9 + $0x400] sm:$0xff] %v672_v0  ;;  %v676_v2 = vld [vmem:[%s17793_s14 + $0x820] sm:$0xff]  ;;  %v678_v3 = vld [vmem:[%s17793_s14 + $0x828] sm:$0xff]  ;;  %675 = vst [vmem:[%s17801_s9 + $0x408] sm:$0xff] %v674_v1 }
  0x71   : > { %677 = vst [vmem:[%s17801_s9 + $0x410] sm:$0xff] %v676_v2  ;;  %679 = vst [vmem:[%s17801_s9 + $0x418] sm:$0xff] %v678_v3  ;;  %v680_v4 = vld [vmem:[%s17793_s14 + $0x840] sm:$0xff]  ;;  %v682_v5 = vld [vmem:[%s17793_s14 + $0x848] sm:$0xff] }
  0x72   : > { %v684_v6 = vld [vmem:[%s17793_s14 + $0x860] sm:$0xff]  ;;  %681 = vst [vmem:[%s17801_s9 + $0x420] sm:$0xff] %v680_v4  ;;  %683 = vst [vmem:[%s17801_s9 + $0x428] sm:$0xff] %v682_v5  ;;  %v686_v7 = vld [vmem:[%s17793_s14 + $0x868] sm:$0xff] }
  0x73   : > { %685 = vst [vmem:[%s17801_s9 + $0x430] sm:$0xff] %v684_v6  ;;  %v688_v8 = vld [vmem:[%s17793_s14 + $0x880] sm:$0xff]  ;;  %v690_v9 = vld [vmem:[%s17793_s14 + $0x888] sm:$0xff]  ;;  %687 = vst [vmem:[%s17801_s9 + $0x438] sm:$0xff] %v686_v7 }
  0x74   : > { %689 = vst [vmem:[%s17801_s9 + $0x440] sm:$0xff] %v688_v8  ;;  %691 = vst [vmem:[%s17801_s9 + $0x448] sm:$0xff] %v690_v9  ;;  %v692_v10 = vld [vmem:[%s17793_s14 + $0x8a0] sm:$0xff]  ;;  %v694_v11 = vld [vmem:[%s17793_s14 + $0x8a8] sm:$0xff] }
  0x75   : > { %v696_v12 = vld [vmem:[%s17793_s14 + $0x8c0] sm:$0xff]  ;;  %693 = vst [vmem:[%s17801_s9 + $0x450] sm:$0xff] %v692_v10  ;;  %695 = vst [vmem:[%s17801_s9 + $0x458] sm:$0xff] %v694_v11  ;;  %v698_v13 = vld [vmem:[%s17793_s14 + $0x8c8] sm:$0xff] }
  0x76   : > { %697 = vst [vmem:[%s17801_s9 + $0x460] sm:$0xff] %v696_v12  ;;  %v700_v14 = vld [vmem:[%s17793_s14 + $0x8e0] sm:$0xff]  ;;  %v702_v15 = vld [vmem:[%s17793_s14 + $0x8e8] sm:$0xff]  ;;  %699 = vst [vmem:[%s17801_s9 + $0x468] sm:$0xff] %v698_v13 }
  0x77   : > { %701 = vst [vmem:[%s17801_s9 + $0x470] sm:$0xff] %v700_v14  ;;  %703 = vst [vmem:[%s17801_s9 + $0x478] sm:$0xff] %v702_v15  ;;  %v704_v16 = vld [vmem:[%s17793_s14 + $0x900] sm:$0xff]  ;;  %v706_v17 = vld [vmem:[%s17793_s14 + $0x908] sm:$0xff] }
  0x78   : > { %v708_v18 = vld [vmem:[%s17793_s14 + $0x920] sm:$0xff]  ;;  %705 = vst [vmem:[%s17801_s9 + $0x480] sm:$0xff] %v704_v16  ;;  %707 = vst [vmem:[%s17801_s9 + $0x488] sm:$0xff] %v706_v17  ;;  %v710_v19 = vld [vmem:[%s17793_s14 + $0x928] sm:$0xff] }
  0x79   : > { %709 = vst [vmem:[%s17801_s9 + $0x490] sm:$0xff] %v708_v18  ;;  %v712_v20 = vld [vmem:[%s17793_s14 + $0x940] sm:$0xff]  ;;  %v714_v21 = vld [vmem:[%s17793_s14 + $0x948] sm:$0xff]  ;;  %711 = vst [vmem:[%s17801_s9 + $0x498] sm:$0xff] %v710_v19 }
  0x7a   : > { %713 = vst [vmem:[%s17801_s9 + $0x4a0] sm:$0xff] %v712_v20  ;;  %715 = vst [vmem:[%s17801_s9 + $0x4a8] sm:$0xff] %v714_v21  ;;  %v716_v22 = vld [vmem:[%s17793_s14 + $0x960] sm:$0xff]  ;;  %v718_v23 = vld [vmem:[%s17793_s14 + $0x968] sm:$0xff] }
  0x7b   : > { %v720_v24 = vld [vmem:[%s17793_s14 + $0x980] sm:$0xff]  ;;  %717 = vst [vmem:[%s17801_s9 + $0x4b0] sm:$0xff] %v716_v22  ;;  %719 = vst [vmem:[%s17801_s9 + $0x4b8] sm:$0xff] %v718_v23  ;;  %v722_v25 = vld [vmem:[%s17793_s14 + $0x988] sm:$0xff] }
  0x7c   : > { %721 = vst [vmem:[%s17801_s9 + $0x4c0] sm:$0xff] %v720_v24  ;;  %v724_v26 = vld [vmem:[%s17793_s14 + $0x9a0] sm:$0xff]  ;;  %v726_v27 = vld [vmem:[%s17793_s14 + $0x9a8] sm:$0xff]  ;;  %723 = vst [vmem:[%s17801_s9 + $0x4c8] sm:$0xff] %v722_v25 }
  0x7d   : > { %725 = vst [vmem:[%s17801_s9 + $0x4d0] sm:$0xff] %v724_v26  ;;  %727 = vst [vmem:[%s17801_s9 + $0x4d8] sm:$0xff] %v726_v27  ;;  %v728_v28 = vld [vmem:[%s17793_s14 + $0x9c0] sm:$0xff]  ;;  %v730_v29 = vld [vmem:[%s17793_s14 + $0x9c8] sm:$0xff] }
  0x7e   : > { %v732_v30 = vld [vmem:[%s17793_s14 + $0x9e0] sm:$0xff]  ;;  %729 = vst [vmem:[%s17801_s9 + $0x4e0] sm:$0xff] %v728_v28  ;;  %731 = vst [vmem:[%s17801_s9 + $0x4e8] sm:$0xff] %v730_v29  ;;  %v734_v31 = vld [vmem:[%s17793_s14 + $0x9e8] sm:$0xff] }
  0x7f   : > { %733 = vst [vmem:[%s17801_s9 + $0x4f0] sm:$0xff] %v732_v30  ;;  %v736_v32 = vld [vmem:[%s17793_s14 + $0xa00] sm:$0xff]  ;;  %v738_v33 = vld [vmem:[%s17793_s14 + $0xa08] sm:$0xff]  ;;  %735 = vst [vmem:[%s17801_s9 + $0x4f8] sm:$0xff] %v734_v31 }
  0x80   : > { %737 = vst [vmem:[%s17801_s9 + $0x500] sm:$0xff] %v736_v32  ;;  %739 = vst [vmem:[%s17801_s9 + $0x508] sm:$0xff] %v738_v33  ;;  %v740_v34 = vld [vmem:[%s17793_s14 + $0xa20] sm:$0xff]  ;;  %v742_v35 = vld [vmem:[%s17793_s14 + $0xa28] sm:$0xff] }
  0x81   : > { %v744_v36 = vld [vmem:[%s17793_s14 + $0xa40] sm:$0xff]  ;;  %741 = vst [vmem:[%s17801_s9 + $0x510] sm:$0xff] %v740_v34  ;;  %743 = vst [vmem:[%s17801_s9 + $0x518] sm:$0xff] %v742_v35  ;;  %v746_v37 = vld [vmem:[%s17793_s14 + $0xa48] sm:$0xff] }
  0x82   : > { %745 = vst [vmem:[%s17801_s9 + $0x520] sm:$0xff] %v744_v36  ;;  %v748_v38 = vld [vmem:[%s17793_s14 + $0xa60] sm:$0xff]  ;;  %v750_v39 = vld [vmem:[%s17793_s14 + $0xa68] sm:$0xff]  ;;  %747 = vst [vmem:[%s17801_s9 + $0x528] sm:$0xff] %v746_v37 }
  0x83   : > { %749 = vst [vmem:[%s17801_s9 + $0x530] sm:$0xff] %v748_v38  ;;  %751 = vst [vmem:[%s17801_s9 + $0x538] sm:$0xff] %v750_v39  ;;  %v752_v40 = vld [vmem:[%s17793_s14 + $0xa80] sm:$0xff]  ;;  %v754_v41 = vld [vmem:[%s17793_s14 + $0xa88] sm:$0xff] }
  0x84   : > { %v756_v42 = vld [vmem:[%s17793_s14 + $0xaa0] sm:$0xff]  ;;  %753 = vst [vmem:[%s17801_s9 + $0x540] sm:$0xff] %v752_v40  ;;  %755 = vst [vmem:[%s17801_s9 + $0x548] sm:$0xff] %v754_v41  ;;  %v758_v43 = vld [vmem:[%s17793_s14 + $0xaa8] sm:$0xff] }
  0x85   : > { %757 = vst [vmem:[%s17801_s9 + $0x550] sm:$0xff] %v756_v42  ;;  %v760_v44 = vld [vmem:[%s17793_s14 + $0xac0] sm:$0xff]  ;;  %v762_v45 = vld [vmem:[%s17793_s14 + $0xac8] sm:$0xff]  ;;  %759 = vst [vmem:[%s17801_s9 + $0x558] sm:$0xff] %v758_v43 }
  0x86   : > { %761 = vst [vmem:[%s17801_s9 + $0x560] sm:$0xff] %v760_v44  ;;  %763 = vst [vmem:[%s17801_s9 + $0x568] sm:$0xff] %v762_v45  ;;  %v764_v46 = vld [vmem:[%s17793_s14 + $0xae0] sm:$0xff]  ;;  %v766_v47 = vld [vmem:[%s17793_s14 + $0xae8] sm:$0xff] }
  0x87   : > { %v768_v48 = vld [vmem:[%s17793_s14 + $0xb00] sm:$0xff]  ;;  %765 = vst [vmem:[%s17801_s9 + $0x570] sm:$0xff] %v764_v46  ;;  %767 = vst [vmem:[%s17801_s9 + $0x578] sm:$0xff] %v766_v47  ;;  %v770_v49 = vld [vmem:[%s17793_s14 + $0xb08] sm:$0xff] }
  0x88   : > { %769 = vst [vmem:[%s17801_s9 + $0x580] sm:$0xff] %v768_v48  ;;  %v772_v50 = vld [vmem:[%s17793_s14 + $0xb20] sm:$0xff]  ;;  %v774_v51 = vld [vmem:[%s17793_s14 + $0xb28] sm:$0xff]  ;;  %771 = vst [vmem:[%s17801_s9 + $0x588] sm:$0xff] %v770_v49 }
  0x89   : > { %773 = vst [vmem:[%s17801_s9 + $0x590] sm:$0xff] %v772_v50  ;;  %775 = vst [vmem:[%s17801_s9 + $0x598] sm:$0xff] %v774_v51  ;;  %v776_v52 = vld [vmem:[%s17793_s14 + $0xb40] sm:$0xff]  ;;  %v778_v53 = vld [vmem:[%s17793_s14 + $0xb48] sm:$0xff] }
  0x8a   : > { %v780_v54 = vld [vmem:[%s17793_s14 + $0xb60] sm:$0xff]  ;;  %777 = vst [vmem:[%s17801_s9 + $0x5a0] sm:$0xff] %v776_v52  ;;  %779 = vst [vmem:[%s17801_s9 + $0x5a8] sm:$0xff] %v778_v53  ;;  %v782_v55 = vld [vmem:[%s17793_s14 + $0xb68] sm:$0xff] }
  0x8b   : > { %781 = vst [vmem:[%s17801_s9 + $0x5b0] sm:$0xff] %v780_v54  ;;  %v784_v56 = vld [vmem:[%s17793_s14 + $0xb80] sm:$0xff]  ;;  %v786_v57 = vld [vmem:[%s17793_s14 + $0xb88] sm:$0xff]  ;;  %783 = vst [vmem:[%s17801_s9 + $0x5b8] sm:$0xff] %v782_v55 }
  0x8c   : > { %785 = vst [vmem:[%s17801_s9 + $0x5c0] sm:$0xff] %v784_v56  ;;  %787 = vst [vmem:[%s17801_s9 + $0x5c8] sm:$0xff] %v786_v57  ;;  %v788_v58 = vld [vmem:[%s17793_s14 + $0xba0] sm:$0xff]  ;;  %v790_v59 = vld [vmem:[%s17793_s14 + $0xba8] sm:$0xff] }
  0x8d   : > { %v792_v60 = vld [vmem:[%s17793_s14 + $0xbc0] sm:$0xff]  ;;  %789 = vst [vmem:[%s17801_s9 + $0x5d0] sm:$0xff] %v788_v58  ;;  %791 = vst [vmem:[%s17801_s9 + $0x5d8] sm:$0xff] %v790_v59  ;;  %v794_v61 = vld [vmem:[%s17793_s14 + $0xbc8] sm:$0xff] }
  0x8e   : > { %793 = vst [vmem:[%s17801_s9 + $0x5e0] sm:$0xff] %v792_v60  ;;  %v796_v62 = vld [vmem:[%s17793_s14 + $0xbe0] sm:$0xff]  ;;  %v798_v63 = vld [vmem:[%s17793_s14 + $0xbe8] sm:$0xff]  ;;  %795 = vst [vmem:[%s17801_s9 + $0x5e8] sm:$0xff] %v794_v61 }
  0x8f   : > { %797 = vst [vmem:[%s17801_s9 + $0x5f0] sm:$0xff] %v796_v62  ;;  %799 = vst [vmem:[%s17801_s9 + $0x5f8] sm:$0xff] %v798_v63  ;;  %v800_v0 = vld [vmem:[%s17793_s14 + $0xc00] sm:$0xff]  ;;  %v802_v1 = vld [vmem:[%s17793_s14 + $0xc08] sm:$0xff] }
  0x90   : > { %v804_v2 = vld [vmem:[%s17793_s14 + $0xc20] sm:$0xff]  ;;  %801 = vst [vmem:[%s17801_s9 + $0x600] sm:$0xff] %v800_v0  ;;  %803 = vst [vmem:[%s17801_s9 + $0x608] sm:$0xff] %v802_v1  ;;  %v806_v3 = vld [vmem:[%s17793_s14 + $0xc28] sm:$0xff] }
  0x91   : > { %805 = vst [vmem:[%s17801_s9 + $0x610] sm:$0xff] %v804_v2  ;;  %v808_v4 = vld [vmem:[%s17793_s14 + $0xc40] sm:$0xff]  ;;  %v810_v5 = vld [vmem:[%s17793_s14 + $0xc48] sm:$0xff]  ;;  %807 = vst [vmem:[%s17801_s9 + $0x618] sm:$0xff] %v806_v3 }
  0x92   : > { %809 = vst [vmem:[%s17801_s9 + $0x620] sm:$0xff] %v808_v4  ;;  %811 = vst [vmem:[%s17801_s9 + $0x628] sm:$0xff] %v810_v5  ;;  %v812_v6 = vld [vmem:[%s17793_s14 + $0xc60] sm:$0xff]  ;;  %v814_v7 = vld [vmem:[%s17793_s14 + $0xc68] sm:$0xff] }
  0x93   : > { %v816_v8 = vld [vmem:[%s17793_s14 + $0xc80] sm:$0xff]  ;;  %813 = vst [vmem:[%s17801_s9 + $0x630] sm:$0xff] %v812_v6  ;;  %815 = vst [vmem:[%s17801_s9 + $0x638] sm:$0xff] %v814_v7  ;;  %v818_v9 = vld [vmem:[%s17793_s14 + $0xc88] sm:$0xff] }
  0x94   : > { %817 = vst [vmem:[%s17801_s9 + $0x640] sm:$0xff] %v816_v8  ;;  %v820_v10 = vld [vmem:[%s17793_s14 + $0xca0] sm:$0xff]  ;;  %v822_v11 = vld [vmem:[%s17793_s14 + $0xca8] sm:$0xff]  ;;  %819 = vst [vmem:[%s17801_s9 + $0x648] sm:$0xff] %v818_v9 }
  0x95   : > { %821 = vst [vmem:[%s17801_s9 + $0x650] sm:$0xff] %v820_v10  ;;  %823 = vst [vmem:[%s17801_s9 + $0x658] sm:$0xff] %v822_v11  ;;  %v824_v12 = vld [vmem:[%s17793_s14 + $0xcc0] sm:$0xff]  ;;  %v826_v13 = vld [vmem:[%s17793_s14 + $0xcc8] sm:$0xff] }
  0x96   : > { %v828_v14 = vld [vmem:[%s17793_s14 + $0xce0] sm:$0xff]  ;;  %825 = vst [vmem:[%s17801_s9 + $0x660] sm:$0xff] %v824_v12  ;;  %827 = vst [vmem:[%s17801_s9 + $0x668] sm:$0xff] %v826_v13  ;;  %v830_v15 = vld [vmem:[%s17793_s14 + $0xce8] sm:$0xff] }
  0x97   : > { %829 = vst [vmem:[%s17801_s9 + $0x670] sm:$0xff] %v828_v14  ;;  %v832_v16 = vld [vmem:[%s17793_s14 + $0xd00] sm:$0xff]  ;;  %v834_v17 = vld [vmem:[%s17793_s14 + $0xd08] sm:$0xff]  ;;  %831 = vst [vmem:[%s17801_s9 + $0x678] sm:$0xff] %v830_v15 }
  0x98   : > { %833 = vst [vmem:[%s17801_s9 + $0x680] sm:$0xff] %v832_v16  ;;  %835 = vst [vmem:[%s17801_s9 + $0x688] sm:$0xff] %v834_v17  ;;  %v836_v18 = vld [vmem:[%s17793_s14 + $0xd20] sm:$0xff]  ;;  %v838_v19 = vld [vmem:[%s17793_s14 + $0xd28] sm:$0xff] }
  0x99   : > { %v840_v20 = vld [vmem:[%s17793_s14 + $0xd40] sm:$0xff]  ;;  %837 = vst [vmem:[%s17801_s9 + $0x690] sm:$0xff] %v836_v18  ;;  %839 = vst [vmem:[%s17801_s9 + $0x698] sm:$0xff] %v838_v19  ;;  %v842_v21 = vld [vmem:[%s17793_s14 + $0xd48] sm:$0xff] }
  0x9a   : > { %841 = vst [vmem:[%s17801_s9 + $0x6a0] sm:$0xff] %v840_v20  ;;  %v844_v22 = vld [vmem:[%s17793_s14 + $0xd60] sm:$0xff]  ;;  %v846_v23 = vld [vmem:[%s17793_s14 + $0xd68] sm:$0xff]  ;;  %843 = vst [vmem:[%s17801_s9 + $0x6a8] sm:$0xff] %v842_v21 }
  0x9b   : > { %845 = vst [vmem:[%s17801_s9 + $0x6b0] sm:$0xff] %v844_v22  ;;  %847 = vst [vmem:[%s17801_s9 + $0x6b8] sm:$0xff] %v846_v23  ;;  %v848_v24 = vld [vmem:[%s17793_s14 + $0xd80] sm:$0xff]  ;;  %v850_v25 = vld [vmem:[%s17793_s14 + $0xd88] sm:$0xff] }
  0x9c   : > { %v852_v26 = vld [vmem:[%s17793_s14 + $0xda0] sm:$0xff]  ;;  %849 = vst [vmem:[%s17801_s9 + $0x6c0] sm:$0xff] %v848_v24  ;;  %851 = vst [vmem:[%s17801_s9 + $0x6c8] sm:$0xff] %v850_v25  ;;  %v854_v27 = vld [vmem:[%s17793_s14 + $0xda8] sm:$0xff] }
  0x9d   : > { %853 = vst [vmem:[%s17801_s9 + $0x6d0] sm:$0xff] %v852_v26  ;;  %v856_v28 = vld [vmem:[%s17793_s14 + $0xdc0] sm:$0xff]  ;;  %v858_v29 = vld [vmem:[%s17793_s14 + $0xdc8] sm:$0xff]  ;;  %855 = vst [vmem:[%s17801_s9 + $0x6d8] sm:$0xff] %v854_v27 }
  0x9e   : > { %857 = vst [vmem:[%s17801_s9 + $0x6e0] sm:$0xff] %v856_v28  ;;  %859 = vst [vmem:[%s17801_s9 + $0x6e8] sm:$0xff] %v858_v29  ;;  %v860_v30 = vld [vmem:[%s17793_s14 + $0xde0] sm:$0xff]  ;;  %v862_v31 = vld [vmem:[%s17793_s14 + $0xde8] sm:$0xff] }
  0x9f   : > { %v864_v32 = vld [vmem:[%s17793_s14 + $0xe00] sm:$0xff]  ;;  %861 = vst [vmem:[%s17801_s9 + $0x6f0] sm:$0xff] %v860_v30  ;;  %863 = vst [vmem:[%s17801_s9 + $0x6f8] sm:$0xff] %v862_v31  ;;  %v866_v33 = vld [vmem:[%s17793_s14 + $0xe08] sm:$0xff] }
  0xa0   : > { %865 = vst [vmem:[%s17801_s9 + $0x700] sm:$0xff] %v864_v32  ;;  %v868_v34 = vld [vmem:[%s17793_s14 + $0xe20] sm:$0xff]  ;;  %v870_v35 = vld [vmem:[%s17793_s14 + $0xe28] sm:$0xff]  ;;  %867 = vst [vmem:[%s17801_s9 + $0x708] sm:$0xff] %v866_v33 }
  0xa1   : > { %869 = vst [vmem:[%s17801_s9 + $0x710] sm:$0xff] %v868_v34  ;;  %871 = vst [vmem:[%s17801_s9 + $0x718] sm:$0xff] %v870_v35  ;;  %v872_v36 = vld [vmem:[%s17793_s14 + $0xe40] sm:$0xff]  ;;  %v874_v37 = vld [vmem:[%s17793_s14 + $0xe48] sm:$0xff] }
  0xa2   : > { %v876_v38 = vld [vmem:[%s17793_s14 + $0xe60] sm:$0xff]  ;;  %873 = vst [vmem:[%s17801_s9 + $0x720] sm:$0xff] %v872_v36  ;;  %875 = vst [vmem:[%s17801_s9 + $0x728] sm:$0xff] %v874_v37  ;;  %v878_v39 = vld [vmem:[%s17793_s14 + $0xe68] sm:$0xff] }
  0xa3   : > { %877 = vst [vmem:[%s17801_s9 + $0x730] sm:$0xff] %v876_v38  ;;  %v880_v40 = vld [vmem:[%s17793_s14 + $0xe80] sm:$0xff]  ;;  %v882_v41 = vld [vmem:[%s17793_s14 + $0xe88] sm:$0xff]  ;;  %879 = vst [vmem:[%s17801_s9 + $0x738] sm:$0xff] %v878_v39 }
  0xa4   : > { %881 = vst [vmem:[%s17801_s9 + $0x740] sm:$0xff] %v880_v40  ;;  %883 = vst [vmem:[%s17801_s9 + $0x748] sm:$0xff] %v882_v41  ;;  %v884_v42 = vld [vmem:[%s17793_s14 + $0xea0] sm:$0xff]  ;;  %v886_v43 = vld [vmem:[%s17793_s14 + $0xea8] sm:$0xff] }
  0xa5   : > { %v888_v44 = vld [vmem:[%s17793_s14 + $0xec0] sm:$0xff]  ;;  %885 = vst [vmem:[%s17801_s9 + $0x750] sm:$0xff] %v884_v42  ;;  %887 = vst [vmem:[%s17801_s9 + $0x758] sm:$0xff] %v886_v43  ;;  %v890_v45 = vld [vmem:[%s17793_s14 + $0xec8] sm:$0xff] }
  0xa6   : > { %889 = vst [vmem:[%s17801_s9 + $0x760] sm:$0xff] %v888_v44  ;;  %v892_v46 = vld [vmem:[%s17793_s14 + $0xee0] sm:$0xff]  ;;  %v894_v47 = vld [vmem:[%s17793_s14 + $0xee8] sm:$0xff]  ;;  %891 = vst [vmem:[%s17801_s9 + $0x768] sm:$0xff] %v890_v45 }
  0xa7   : > { %893 = vst [vmem:[%s17801_s9 + $0x770] sm:$0xff] %v892_v46  ;;  %895 = vst [vmem:[%s17801_s9 + $0x778] sm:$0xff] %v894_v47  ;;  %v896_v48 = vld [vmem:[%s17793_s14 + $0xf00] sm:$0xff]  ;;  %v898_v49 = vld [vmem:[%s17793_s14 + $0xf08] sm:$0xff] }
  0xa8   : > { %v900_v50 = vld [vmem:[%s17793_s14 + $0xf20] sm:$0xff]  ;;  %897 = vst [vmem:[%s17801_s9 + $0x780] sm:$0xff] %v896_v48  ;;  %899 = vst [vmem:[%s17801_s9 + $0x788] sm:$0xff] %v898_v49  ;;  %v902_v51 = vld [vmem:[%s17793_s14 + $0xf28] sm:$0xff] }
  0xa9   : > { %901 = vst [vmem:[%s17801_s9 + $0x790] sm:$0xff] %v900_v50  ;;  %v904_v52 = vld [vmem:[%s17793_s14 + $0xf40] sm:$0xff]  ;;  %v906_v53 = vld [vmem:[%s17793_s14 + $0xf48] sm:$0xff]  ;;  %903 = vst [vmem:[%s17801_s9 + $0x798] sm:$0xff] %v902_v51 }
  0xaa   : > { %905 = vst [vmem:[%s17801_s9 + $0x7a0] sm:$0xff] %v904_v52  ;;  %907 = vst [vmem:[%s17801_s9 + $0x7a8] sm:$0xff] %v906_v53  ;;  %v908_v54 = vld [vmem:[%s17793_s14 + $0xf60] sm:$0xff]  ;;  %v910_v55 = vld [vmem:[%s17793_s14 + $0xf68] sm:$0xff] }
  0xab   : > { %v912_v56 = vld [vmem:[%s17793_s14 + $0xf80] sm:$0xff]  ;;  %909 = vst [vmem:[%s17801_s9 + $0x7b0] sm:$0xff] %v908_v54  ;;  %911 = vst [vmem:[%s17801_s9 + $0x7b8] sm:$0xff] %v910_v55  ;;  %v914_v57 = vld [vmem:[%s17793_s14 + $0xf88] sm:$0xff] }
  0xac   : > { %913 = vst [vmem:[%s17801_s9 + $0x7c0] sm:$0xff] %v912_v56  ;;  %v916_v58 = vld [vmem:[%s17793_s14 + $0xfa0] sm:$0xff]  ;;  %v918_v59 = vld [vmem:[%s17793_s14 + $0xfa8] sm:$0xff]  ;;  %915 = vst [vmem:[%s17801_s9 + $0x7c8] sm:$0xff] %v914_v57 }
  0xad   : > { %917 = vst [vmem:[%s17801_s9 + $0x7d0] sm:$0xff] %v916_v58  ;;  %919 = vst [vmem:[%s17801_s9 + $0x7d8] sm:$0xff] %v918_v59  ;;  %v920_v60 = vld [vmem:[%s17793_s14 + $0xfc0] sm:$0xff]  ;;  %v922_v61 = vld [vmem:[%s17793_s14 + $0xfc8] sm:$0xff] }
  0xae   : > { %v924_v62 = vld [vmem:[%s17793_s14 + $0xfe0] sm:$0xff]  ;;  %921 = vst [vmem:[%s17801_s9 + $0x7e0] sm:$0xff] %v920_v60  ;;  %923 = vst [vmem:[%s17801_s9 + $0x7e8] sm:$0xff] %v922_v61  ;;  %v926_v63 = vld [vmem:[%s17793_s14 + $0xfe8] sm:$0xff] }
  0xaf   : > { %925 = vst [vmem:[%s17801_s9 + $0x7f0] sm:$0xff] %v924_v62  ;;  %v928_v0 = vld [vmem:[%s17793_s14 + $0x1000] sm:$0xff]  ;;  %v930_v1 = vld [vmem:[%s17793_s14 + $0x1008] sm:$0xff]  ;;  %927 = vst [vmem:[%s17801_s9 + $0x7f8] sm:$0xff] %v926_v63 }
  0xb0   : > { %929 = vst [vmem:[%s17801_s9 + $0x800] sm:$0xff] %v928_v0  ;;  %931 = vst [vmem:[%s17801_s9 + $0x808] sm:$0xff] %v930_v1  ;;  %v932_v2 = vld [vmem:[%s17793_s14 + $0x1020] sm:$0xff]  ;;  %v934_v3 = vld [vmem:[%s17793_s14 + $0x1028] sm:$0xff] }
  0xb1   : > { %v936_v4 = vld [vmem:[%s17793_s14 + $0x1040] sm:$0xff]  ;;  %933 = vst [vmem:[%s17801_s9 + $0x810] sm:$0xff] %v932_v2  ;;  %935 = vst [vmem:[%s17801_s9 + $0x818] sm:$0xff] %v934_v3  ;;  %v938_v5 = vld [vmem:[%s17793_s14 + $0x1048] sm:$0xff] }
  0xb2   : > { %937 = vst [vmem:[%s17801_s9 + $0x820] sm:$0xff] %v936_v4  ;;  %v940_v6 = vld [vmem:[%s17793_s14 + $0x1060] sm:$0xff]  ;;  %v942_v7 = vld [vmem:[%s17793_s14 + $0x1068] sm:$0xff]  ;;  %939 = vst [vmem:[%s17801_s9 + $0x828] sm:$0xff] %v938_v5 }
  0xb3   : > { %941 = vst [vmem:[%s17801_s9 + $0x830] sm:$0xff] %v940_v6  ;;  %943 = vst [vmem:[%s17801_s9 + $0x838] sm:$0xff] %v942_v7  ;;  %v944_v8 = vld [vmem:[%s17793_s14 + $0x1080] sm:$0xff]  ;;  %v946_v9 = vld [vmem:[%s17793_s14 + $0x1088] sm:$0xff] }
  0xb4   : > { %v948_v10 = vld [vmem:[%s17793_s14 + $0x10a0] sm:$0xff]  ;;  %945 = vst [vmem:[%s17801_s9 + $0x840] sm:$0xff] %v944_v8  ;;  %947 = vst [vmem:[%s17801_s9 + $0x848] sm:$0xff] %v946_v9  ;;  %v950_v11 = vld [vmem:[%s17793_s14 + $0x10a8] sm:$0xff] }
  0xb5   : > { %949 = vst [vmem:[%s17801_s9 + $0x850] sm:$0xff] %v948_v10  ;;  %v952_v12 = vld [vmem:[%s17793_s14 + $0x10c0] sm:$0xff]  ;;  %v954_v13 = vld [vmem:[%s17793_s14 + $0x10c8] sm:$0xff]  ;;  %951 = vst [vmem:[%s17801_s9 + $0x858] sm:$0xff] %v950_v11 }
  0xb6   : > { %953 = vst [vmem:[%s17801_s9 + $0x860] sm:$0xff] %v952_v12  ;;  %955 = vst [vmem:[%s17801_s9 + $0x868] sm:$0xff] %v954_v13  ;;  %v956_v14 = vld [vmem:[%s17793_s14 + $0x10e0] sm:$0xff]  ;;  %v958_v15 = vld [vmem:[%s17793_s14 + $0x10e8] sm:$0xff] }
  0xb7   : > { %v960_v16 = vld [vmem:[%s17793_s14 + $0x1100] sm:$0xff]  ;;  %957 = vst [vmem:[%s17801_s9 + $0x870] sm:$0xff] %v956_v14  ;;  %959 = vst [vmem:[%s17801_s9 + $0x878] sm:$0xff] %v958_v15  ;;  %v962_v17 = vld [vmem:[%s17793_s14 + $0x1108] sm:$0xff] }
  0xb8   : > { %961 = vst [vmem:[%s17801_s9 + $0x880] sm:$0xff] %v960_v16  ;;  %v964_v18 = vld [vmem:[%s17793_s14 + $0x1120] sm:$0xff]  ;;  %v966_v19 = vld [vmem:[%s17793_s14 + $0x1128] sm:$0xff]  ;;  %963 = vst [vmem:[%s17801_s9 + $0x888] sm:$0xff] %v962_v17 }
  0xb9   : > { %965 = vst [vmem:[%s17801_s9 + $0x890] sm:$0xff] %v964_v18  ;;  %967 = vst [vmem:[%s17801_s9 + $0x898] sm:$0xff] %v966_v19  ;;  %v968_v20 = vld [vmem:[%s17793_s14 + $0x1140] sm:$0xff]  ;;  %v970_v21 = vld [vmem:[%s17793_s14 + $0x1148] sm:$0xff] }
  0xba   : > { %v972_v22 = vld [vmem:[%s17793_s14 + $0x1160] sm:$0xff]  ;;  %969 = vst [vmem:[%s17801_s9 + $0x8a0] sm:$0xff] %v968_v20  ;;  %971 = vst [vmem:[%s17801_s9 + $0x8a8] sm:$0xff] %v970_v21  ;;  %v974_v23 = vld [vmem:[%s17793_s14 + $0x1168] sm:$0xff] }
  0xbb   : > { %973 = vst [vmem:[%s17801_s9 + $0x8b0] sm:$0xff] %v972_v22  ;;  %v976_v24 = vld [vmem:[%s17793_s14 + $0x1180] sm:$0xff]  ;;  %v978_v25 = vld [vmem:[%s17793_s14 + $0x1188] sm:$0xff]  ;;  %975 = vst [vmem:[%s17801_s9 + $0x8b8] sm:$0xff] %v974_v23 }
  0xbc   : > { %977 = vst [vmem:[%s17801_s9 + $0x8c0] sm:$0xff] %v976_v24  ;;  %979 = vst [vmem:[%s17801_s9 + $0x8c8] sm:$0xff] %v978_v25  ;;  %v980_v26 = vld [vmem:[%s17793_s14 + $0x11a0] sm:$0xff]  ;;  %v982_v27 = vld [vmem:[%s17793_s14 + $0x11a8] sm:$0xff] }
  0xbd   : > { %v984_v28 = vld [vmem:[%s17793_s14 + $0x11c0] sm:$0xff]  ;;  %981 = vst [vmem:[%s17801_s9 + $0x8d0] sm:$0xff] %v980_v26  ;;  %983 = vst [vmem:[%s17801_s9 + $0x8d8] sm:$0xff] %v982_v27  ;;  %v986_v29 = vld [vmem:[%s17793_s14 + $0x11c8] sm:$0xff] }
  0xbe   : > { %985 = vst [vmem:[%s17801_s9 + $0x8e0] sm:$0xff] %v984_v28  ;;  %v988_v30 = vld [vmem:[%s17793_s14 + $0x11e0] sm:$0xff]  ;;  %v990_v31 = vld [vmem:[%s17793_s14 + $0x11e8] sm:$0xff]  ;;  %987 = vst [vmem:[%s17801_s9 + $0x8e8] sm:$0xff] %v986_v29 }
  0xbf   : > { %989 = vst [vmem:[%s17801_s9 + $0x8f0] sm:$0xff] %v988_v30  ;;  %991 = vst [vmem:[%s17801_s9 + $0x8f8] sm:$0xff] %v990_v31  ;;  %v992_v32 = vld [vmem:[%s17793_s14 + $0x1200] sm:$0xff]  ;;  %v994_v33 = vld [vmem:[%s17793_s14 + $0x1208] sm:$0xff] }
  0xc0   : > { %v996_v34 = vld [vmem:[%s17793_s14 + $0x1220] sm:$0xff]  ;;  %993 = vst [vmem:[%s17801_s9 + $0x900] sm:$0xff] %v992_v32  ;;  %995 = vst [vmem:[%s17801_s9 + $0x908] sm:$0xff] %v994_v33  ;;  %v998_v35 = vld [vmem:[%s17793_s14 + $0x1228] sm:$0xff] }
  0xc1   : > { %997 = vst [vmem:[%s17801_s9 + $0x910] sm:$0xff] %v996_v34  ;;  %v1000_v36 = vld [vmem:[%s17793_s14 + $0x1240] sm:$0xff]  ;;  %v1002_v37 = vld [vmem:[%s17793_s14 + $0x1248] sm:$0xff]  ;;  %999 = vst [vmem:[%s17801_s9 + $0x918] sm:$0xff] %v998_v35 }
  0xc2   : > { %1001 = vst [vmem:[%s17801_s9 + $0x920] sm:$0xff] %v1000_v36  ;;  %1003 = vst [vmem:[%s17801_s9 + $0x928] sm:$0xff] %v1002_v37  ;;  %v1004_v38 = vld [vmem:[%s17793_s14 + $0x1260] sm:$0xff]  ;;  %v1006_v39 = vld [vmem:[%s17793_s14 + $0x1268] sm:$0xff] }
  0xc3   : > { %v1008_v40 = vld [vmem:[%s17793_s14 + $0x1280] sm:$0xff]  ;;  %1005 = vst [vmem:[%s17801_s9 + $0x930] sm:$0xff] %v1004_v38  ;;  %1007 = vst [vmem:[%s17801_s9 + $0x938] sm:$0xff] %v1006_v39  ;;  %v1010_v41 = vld [vmem:[%s17793_s14 + $0x1288] sm:$0xff] }
  0xc4   : > { %1009 = vst [vmem:[%s17801_s9 + $0x940] sm:$0xff] %v1008_v40  ;;  %v1012_v42 = vld [vmem:[%s17793_s14 + $0x12a0] sm:$0xff]  ;;  %v1014_v43 = vld [vmem:[%s17793_s14 + $0x12a8] sm:$0xff]  ;;  %1011 = vst [vmem:[%s17801_s9 + $0x948] sm:$0xff] %v1010_v41 }
  0xc5   : > { %1013 = vst [vmem:[%s17801_s9 + $0x950] sm:$0xff] %v1012_v42  ;;  %1015 = vst [vmem:[%s17801_s9 + $0x958] sm:$0xff] %v1014_v43  ;;  %v1016_v44 = vld [vmem:[%s17793_s14 + $0x12c0] sm:$0xff]  ;;  %v1018_v45 = vld [vmem:[%s17793_s14 + $0x12c8] sm:$0xff] }
  0xc6   : > { %v1020_v46 = vld [vmem:[%s17793_s14 + $0x12e0] sm:$0xff]  ;;  %1017 = vst [vmem:[%s17801_s9 + $0x960] sm:$0xff] %v1016_v44  ;;  %1019 = vst [vmem:[%s17801_s9 + $0x968] sm:$0xff] %v1018_v45  ;;  %v1022_v47 = vld [vmem:[%s17793_s14 + $0x12e8] sm:$0xff] }
  0xc7   : > { %1021 = vst [vmem:[%s17801_s9 + $0x970] sm:$0xff] %v1020_v46  ;;  %v1024_v48 = vld [vmem:[%s17793_s14 + $0x1300] sm:$0xff]  ;;  %v1026_v49 = vld [vmem:[%s17793_s14 + $0x1308] sm:$0xff]  ;;  %1023 = vst [vmem:[%s17801_s9 + $0x978] sm:$0xff] %v1022_v47 }
  0xc8   : > { %1025 = vst [vmem:[%s17801_s9 + $0x980] sm:$0xff] %v1024_v48  ;;  %1027 = vst [vmem:[%s17801_s9 + $0x988] sm:$0xff] %v1026_v49  ;;  %v1028_v50 = vld [vmem:[%s17793_s14 + $0x1320] sm:$0xff]  ;;  %v1030_v51 = vld [vmem:[%s17793_s14 + $0x1328] sm:$0xff] }
  0xc9   : > { %v1032_v52 = vld [vmem:[%s17793_s14 + $0x1340] sm:$0xff]  ;;  %1029 = vst [vmem:[%s17801_s9 + $0x990] sm:$0xff] %v1028_v50  ;;  %1031 = vst [vmem:[%s17801_s9 + $0x998] sm:$0xff] %v1030_v51  ;;  %v1034_v53 = vld [vmem:[%s17793_s14 + $0x1348] sm:$0xff] }
  0xca   : > { %1033 = vst [vmem:[%s17801_s9 + $0x9a0] sm:$0xff] %v1032_v52  ;;  %v1036_v54 = vld [vmem:[%s17793_s14 + $0x1360] sm:$0xff]  ;;  %v1038_v55 = vld [vmem:[%s17793_s14 + $0x1368] sm:$0xff]  ;;  %1035 = vst [vmem:[%s17801_s9 + $0x9a8] sm:$0xff] %v1034_v53 }
  0xcb   : > { %1037 = vst [vmem:[%s17801_s9 + $0x9b0] sm:$0xff] %v1036_v54  ;;  %1039 = vst [vmem:[%s17801_s9 + $0x9b8] sm:$0xff] %v1038_v55  ;;  %v1040_v56 = vld [vmem:[%s17793_s14 + $0x1380] sm:$0xff]  ;;  %v1042_v57 = vld [vmem:[%s17793_s14 + $0x1388] sm:$0xff] }
  0xcc   : > { %v1044_v58 = vld [vmem:[%s17793_s14 + $0x13a0] sm:$0xff]  ;;  %1041 = vst [vmem:[%s17801_s9 + $0x9c0] sm:$0xff] %v1040_v56  ;;  %1043 = vst [vmem:[%s17801_s9 + $0x9c8] sm:$0xff] %v1042_v57  ;;  %v1046_v59 = vld [vmem:[%s17793_s14 + $0x13a8] sm:$0xff] }
  0xcd   : > { %1045 = vst [vmem:[%s17801_s9 + $0x9d0] sm:$0xff] %v1044_v58  ;;  %v1048_v60 = vld [vmem:[%s17793_s14 + $0x13c0] sm:$0xff]  ;;  %v1050_v61 = vld [vmem:[%s17793_s14 + $0x13c8] sm:$0xff]  ;;  %1047 = vst [vmem:[%s17801_s9 + $0x9d8] sm:$0xff] %v1046_v59 }
  0xce   : > { %1049 = vst [vmem:[%s17801_s9 + $0x9e0] sm:$0xff] %v1048_v60  ;;  %1051 = vst [vmem:[%s17801_s9 + $0x9e8] sm:$0xff] %v1050_v61  ;;  %v1052_v62 = vld [vmem:[%s17793_s14 + $0x13e0] sm:$0xff]  ;;  %v1054_v63 = vld [vmem:[%s17793_s14 + $0x13e8] sm:$0xff] }
  0xcf   : > { %v1056_v0 = vld [vmem:[%s17793_s14 + $0x1400] sm:$0xff]  ;;  %1053 = vst [vmem:[%s17801_s9 + $0x9f0] sm:$0xff] %v1052_v62  ;;  %1055 = vst [vmem:[%s17801_s9 + $0x9f8] sm:$0xff] %v1054_v63  ;;  %v1058_v1 = vld [vmem:[%s17793_s14 + $0x1408] sm:$0xff] }
  0xd0   : > { %1057 = vst [vmem:[%s17801_s9 + $0xa00] sm:$0xff] %v1056_v0  ;;  %v1060_v2 = vld [vmem:[%s17793_s14 + $0x1420] sm:$0xff]  ;;  %v1062_v3 = vld [vmem:[%s17793_s14 + $0x1428] sm:$0xff]  ;;  %1059 = vst [vmem:[%s17801_s9 + $0xa08] sm:$0xff] %v1058_v1 }
  0xd1   : > { %1061 = vst [vmem:[%s17801_s9 + $0xa10] sm:$0xff] %v1060_v2  ;;  %1063 = vst [vmem:[%s17801_s9 + $0xa18] sm:$0xff] %v1062_v3  ;;  %v1064_v4 = vld [vmem:[%s17793_s14 + $0x1440] sm:$0xff]  ;;  %v1066_v5 = vld [vmem:[%s17793_s14 + $0x1448] sm:$0xff] }
  0xd2   : > { %v1068_v6 = vld [vmem:[%s17793_s14 + $0x1460] sm:$0xff]  ;;  %1065 = vst [vmem:[%s17801_s9 + $0xa20] sm:$0xff] %v1064_v4  ;;  %1067 = vst [vmem:[%s17801_s9 + $0xa28] sm:$0xff] %v1066_v5  ;;  %v1070_v7 = vld [vmem:[%s17793_s14 + $0x1468] sm:$0xff] }
  0xd3   : > { %1069 = vst [vmem:[%s17801_s9 + $0xa30] sm:$0xff] %v1068_v6  ;;  %v1072_v8 = vld [vmem:[%s17793_s14 + $0x1480] sm:$0xff]  ;;  %v1074_v9 = vld [vmem:[%s17793_s14 + $0x1488] sm:$0xff]  ;;  %1071 = vst [vmem:[%s17801_s9 + $0xa38] sm:$0xff] %v1070_v7 }
  0xd4   : > { %1073 = vst [vmem:[%s17801_s9 + $0xa40] sm:$0xff] %v1072_v8  ;;  %1075 = vst [vmem:[%s17801_s9 + $0xa48] sm:$0xff] %v1074_v9  ;;  %v1076_v10 = vld [vmem:[%s17793_s14 + $0x14a0] sm:$0xff]  ;;  %v1078_v11 = vld [vmem:[%s17793_s14 + $0x14a8] sm:$0xff] }
  0xd5   : > { %v1080_v12 = vld [vmem:[%s17793_s14 + $0x14c0] sm:$0xff]  ;;  %1077 = vst [vmem:[%s17801_s9 + $0xa50] sm:$0xff] %v1076_v10  ;;  %1079 = vst [vmem:[%s17801_s9 + $0xa58] sm:$0xff] %v1078_v11  ;;  %v1082_v13 = vld [vmem:[%s17793_s14 + $0x14c8] sm:$0xff] }
  0xd6   : > { %1081 = vst [vmem:[%s17801_s9 + $0xa60] sm:$0xff] %v1080_v12  ;;  %v1084_v14 = vld [vmem:[%s17793_s14 + $0x14e0] sm:$0xff]  ;;  %v1086_v15 = vld [vmem:[%s17793_s14 + $0x14e8] sm:$0xff]  ;;  %1083 = vst [vmem:[%s17801_s9 + $0xa68] sm:$0xff] %v1082_v13 }
  0xd7   : > { %1085 = vst [vmem:[%s17801_s9 + $0xa70] sm:$0xff] %v1084_v14  ;;  %1087 = vst [vmem:[%s17801_s9 + $0xa78] sm:$0xff] %v1086_v15  ;;  %v1088_v16 = vld [vmem:[%s17793_s14 + $0x1500] sm:$0xff]  ;;  %v1090_v17 = vld [vmem:[%s17793_s14 + $0x1508] sm:$0xff] }
  0xd8   : > { %v1092_v18 = vld [vmem:[%s17793_s14 + $0x1520] sm:$0xff]  ;;  %1089 = vst [vmem:[%s17801_s9 + $0xa80] sm:$0xff] %v1088_v16  ;;  %1091 = vst [vmem:[%s17801_s9 + $0xa88] sm:$0xff] %v1090_v17  ;;  %v1094_v19 = vld [vmem:[%s17793_s14 + $0x1528] sm:$0xff] }
  0xd9   : > { %1093 = vst [vmem:[%s17801_s9 + $0xa90] sm:$0xff] %v1092_v18  ;;  %v1096_v20 = vld [vmem:[%s17793_s14 + $0x1540] sm:$0xff]  ;;  %v1098_v21 = vld [vmem:[%s17793_s14 + $0x1548] sm:$0xff]  ;;  %1095 = vst [vmem:[%s17801_s9 + $0xa98] sm:$0xff] %v1094_v19 }
  0xda   : > { %1097 = vst [vmem:[%s17801_s9 + $0xaa0] sm:$0xff] %v1096_v20  ;;  %1099 = vst [vmem:[%s17801_s9 + $0xaa8] sm:$0xff] %v1098_v21  ;;  %v1100_v22 = vld [vmem:[%s17793_s14 + $0x1560] sm:$0xff]  ;;  %v1102_v23 = vld [vmem:[%s17793_s14 + $0x1568] sm:$0xff] }
  0xdb   : > { %v1104_v24 = vld [vmem:[%s17793_s14 + $0x1580] sm:$0xff]  ;;  %1101 = vst [vmem:[%s17801_s9 + $0xab0] sm:$0xff] %v1100_v22  ;;  %1103 = vst [vmem:[%s17801_s9 + $0xab8] sm:$0xff] %v1102_v23  ;;  %v1106_v25 = vld [vmem:[%s17793_s14 + $0x1588] sm:$0xff] }
  0xdc   : > { %1105 = vst [vmem:[%s17801_s9 + $0xac0] sm:$0xff] %v1104_v24  ;;  %v1108_v26 = vld [vmem:[%s17793_s14 + $0x15a0] sm:$0xff]  ;;  %v1110_v27 = vld [vmem:[%s17793_s14 + $0x15a8] sm:$0xff]  ;;  %1107 = vst [vmem:[%s17801_s9 + $0xac8] sm:$0xff] %v1106_v25 }
  0xdd   : > { %1109 = vst [vmem:[%s17801_s9 + $0xad0] sm:$0xff] %v1108_v26  ;;  %1111 = vst [vmem:[%s17801_s9 + $0xad8] sm:$0xff] %v1110_v27  ;;  %v1112_v28 = vld [vmem:[%s17793_s14 + $0x15c0] sm:$0xff]  ;;  %v1114_v29 = vld [vmem:[%s17793_s14 + $0x15c8] sm:$0xff] }
  0xde   : > { %v1116_v30 = vld [vmem:[%s17793_s14 + $0x15e0] sm:$0xff]  ;;  %1113 = vst [vmem:[%s17801_s9 + $0xae0] sm:$0xff] %v1112_v28  ;;  %1115 = vst [vmem:[%s17801_s9 + $0xae8] sm:$0xff] %v1114_v29  ;;  %v1118_v31 = vld [vmem:[%s17793_s14 + $0x15e8] sm:$0xff] }
  0xdf   : > { %1117 = vst [vmem:[%s17801_s9 + $0xaf0] sm:$0xff] %v1116_v30  ;;  %v1120_v32 = vld [vmem:[%s17793_s14 + $0x1600] sm:$0xff]  ;;  %v1122_v33 = vld [vmem:[%s17793_s14 + $0x1608] sm:$0xff]  ;;  %1119 = vst [vmem:[%s17801_s9 + $0xaf8] sm:$0xff] %v1118_v31 }
  0xe0   : > { %1121 = vst [vmem:[%s17801_s9 + $0xb00] sm:$0xff] %v1120_v32  ;;  %1123 = vst [vmem:[%s17801_s9 + $0xb08] sm:$0xff] %v1122_v33  ;;  %v1124_v34 = vld [vmem:[%s17793_s14 + $0x1620] sm:$0xff]  ;;  %v1126_v35 = vld [vmem:[%s17793_s14 + $0x1628] sm:$0xff] }
  0xe1   : > { %v1128_v36 = vld [vmem:[%s17793_s14 + $0x1640] sm:$0xff]  ;;  %1125 = vst [vmem:[%s17801_s9 + $0xb10] sm:$0xff] %v1124_v34  ;;  %1127 = vst [vmem:[%s17801_s9 + $0xb18] sm:$0xff] %v1126_v35  ;;  %v1130_v37 = vld [vmem:[%s17793_s14 + $0x1648] sm:$0xff] }
  0xe2   : > { %1129 = vst [vmem:[%s17801_s9 + $0xb20] sm:$0xff] %v1128_v36  ;;  %v1132_v38 = vld [vmem:[%s17793_s14 + $0x1660] sm:$0xff]  ;;  %v1134_v39 = vld [vmem:[%s17793_s14 + $0x1668] sm:$0xff]  ;;  %1131 = vst [vmem:[%s17801_s9 + $0xb28] sm:$0xff] %v1130_v37 }
  0xe3   : > { %1133 = vst [vmem:[%s17801_s9 + $0xb30] sm:$0xff] %v1132_v38  ;;  %1135 = vst [vmem:[%s17801_s9 + $0xb38] sm:$0xff] %v1134_v39  ;;  %v1136_v40 = vld [vmem:[%s17793_s14 + $0x1680] sm:$0xff]  ;;  %v1138_v41 = vld [vmem:[%s17793_s14 + $0x1688] sm:$0xff] }
  0xe4   : > { %v1140_v42 = vld [vmem:[%s17793_s14 + $0x16a0] sm:$0xff]  ;;  %1137 = vst [vmem:[%s17801_s9 + $0xb40] sm:$0xff] %v1136_v40  ;;  %1139 = vst [vmem:[%s17801_s9 + $0xb48] sm:$0xff] %v1138_v41  ;;  %v1142_v43 = vld [vmem:[%s17793_s14 + $0x16a8] sm:$0xff] }
  0xe5   : > { %1141 = vst [vmem:[%s17801_s9 + $0xb50] sm:$0xff] %v1140_v42  ;;  %v1144_v44 = vld [vmem:[%s17793_s14 + $0x16c0] sm:$0xff]  ;;  %v1146_v45 = vld [vmem:[%s17793_s14 + $0x16c8] sm:$0xff]  ;;  %1143 = vst [vmem:[%s17801_s9 + $0xb58] sm:$0xff] %v1142_v43 }
  0xe6   : > { %1145 = vst [vmem:[%s17801_s9 + $0xb60] sm:$0xff] %v1144_v44  ;;  %1147 = vst [vmem:[%s17801_s9 + $0xb68] sm:$0xff] %v1146_v45  ;;  %v1148_v46 = vld [vmem:[%s17793_s14 + $0x16e0] sm:$0xff]  ;;  %v1150_v47 = vld [vmem:[%s17793_s14 + $0x16e8] sm:$0xff] }
  0xe7   : > { %v1152_v48 = vld [vmem:[%s17793_s14 + $0x1700] sm:$0xff]  ;;  %1149 = vst [vmem:[%s17801_s9 + $0xb70] sm:$0xff] %v1148_v46  ;;  %1151 = vst [vmem:[%s17801_s9 + $0xb78] sm:$0xff] %v1150_v47  ;;  %v1154_v49 = vld [vmem:[%s17793_s14 + $0x1708] sm:$0xff] }
  0xe8   : > { %1153 = vst [vmem:[%s17801_s9 + $0xb80] sm:$0xff] %v1152_v48  ;;  %v1156_v50 = vld [vmem:[%s17793_s14 + $0x1720] sm:$0xff]  ;;  %v1158_v51 = vld [vmem:[%s17793_s14 + $0x1728] sm:$0xff]  ;;  %1155 = vst [vmem:[%s17801_s9 + $0xb88] sm:$0xff] %v1154_v49 }
  0xe9   : > { %1157 = vst [vmem:[%s17801_s9 + $0xb90] sm:$0xff] %v1156_v50  ;;  %1159 = vst [vmem:[%s17801_s9 + $0xb98] sm:$0xff] %v1158_v51  ;;  %v1160_v52 = vld [vmem:[%s17793_s14 + $0x1740] sm:$0xff]  ;;  %v1162_v53 = vld [vmem:[%s17793_s14 + $0x1748] sm:$0xff] }
  0xea   : > { %v1164_v54 = vld [vmem:[%s17793_s14 + $0x1760] sm:$0xff]  ;;  %1161 = vst [vmem:[%s17801_s9 + $0xba0] sm:$0xff] %v1160_v52  ;;  %1163 = vst [vmem:[%s17801_s9 + $0xba8] sm:$0xff] %v1162_v53  ;;  %v1166_v55 = vld [vmem:[%s17793_s14 + $0x1768] sm:$0xff] }
  0xeb   : > { %1165 = vst [vmem:[%s17801_s9 + $0xbb0] sm:$0xff] %v1164_v54  ;;  %v1168_v56 = vld [vmem:[%s17793_s14 + $0x1780] sm:$0xff]  ;;  %v1170_v57 = vld [vmem:[%s17793_s14 + $0x1788] sm:$0xff]  ;;  %1167 = vst [vmem:[%s17801_s9 + $0xbb8] sm:$0xff] %v1166_v55 }
  0xec   : > { %1169 = vst [vmem:[%s17801_s9 + $0xbc0] sm:$0xff] %v1168_v56  ;;  %1171 = vst [vmem:[%s17801_s9 + $0xbc8] sm:$0xff] %v1170_v57  ;;  %v1172_v58 = vld [vmem:[%s17793_s14 + $0x17a0] sm:$0xff]  ;;  %v1174_v59 = vld [vmem:[%s17793_s14 + $0x17a8] sm:$0xff] }
  0xed   : > { %v1176_v60 = vld [vmem:[%s17793_s14 + $0x17c0] sm:$0xff]  ;;  %1173 = vst [vmem:[%s17801_s9 + $0xbd0] sm:$0xff] %v1172_v58  ;;  %1175 = vst [vmem:[%s17801_s9 + $0xbd8] sm:$0xff] %v1174_v59  ;;  %v1178_v61 = vld [vmem:[%s17793_s14 + $0x17c8] sm:$0xff] }
  0xee   : > { %1177 = vst [vmem:[%s17801_s9 + $0xbe0] sm:$0xff] %v1176_v60  ;;  %v1180_v62 = vld [vmem:[%s17793_s14 + $0x17e0] sm:$0xff]  ;;  %v1182_v63 = vld [vmem:[%s17793_s14 + $0x17e8] sm:$0xff]  ;;  %1179 = vst [vmem:[%s17801_s9 + $0xbe8] sm:$0xff] %v1178_v61 }
  0xef   : > { %1181 = vst [vmem:[%s17801_s9 + $0xbf0] sm:$0xff] %v1180_v62  ;;  %1183 = vst [vmem:[%s17801_s9 + $0xbf8] sm:$0xff] %v1182_v63  ;;  %v1184_v0 = vld [vmem:[%s17793_s14 + $0x1800] sm:$0xff]  ;;  %v1186_v1 = vld [vmem:[%s17793_s14 + $0x1808] sm:$0xff] }
  0xf0   : > { %v1188_v2 = vld [vmem:[%s17793_s14 + $0x1820] sm:$0xff]  ;;  %1185 = vst [vmem:[%s17801_s9 + $0xc00] sm:$0xff] %v1184_v0  ;;  %1187 = vst [vmem:[%s17801_s9 + $0xc08] sm:$0xff] %v1186_v1  ;;  %v1190_v3 = vld [vmem:[%s17793_s14 + $0x1828] sm:$0xff] }
  0xf1   : > { %1189 = vst [vmem:[%s17801_s9 + $0xc10] sm:$0xff] %v1188_v2  ;;  %v1192_v4 = vld [vmem:[%s17793_s14 + $0x1840] sm:$0xff]  ;;  %v1194_v5 = vld [vmem:[%s17793_s14 + $0x1848] sm:$0xff]  ;;  %1191 = vst [vmem:[%s17801_s9 + $0xc18] sm:$0xff] %v1190_v3 }
  0xf2   : > { %1193 = vst [vmem:[%s17801_s9 + $0xc20] sm:$0xff] %v1192_v4  ;;  %1195 = vst [vmem:[%s17801_s9 + $0xc28] sm:$0xff] %v1194_v5  ;;  %v1196_v6 = vld [vmem:[%s17793_s14 + $0x1860] sm:$0xff]  ;;  %v1198_v7 = vld [vmem:[%s17793_s14 + $0x1868] sm:$0xff] }
  0xf3   : > { %v1200_v8 = vld [vmem:[%s17793_s14 + $0x1880] sm:$0xff]  ;;  %1197 = vst [vmem:[%s17801_s9 + $0xc30] sm:$0xff] %v1196_v6  ;;  %1199 = vst [vmem:[%s17801_s9 + $0xc38] sm:$0xff] %v1198_v7  ;;  %v1202_v9 = vld [vmem:[%s17793_s14 + $0x1888] sm:$0xff] }
  0xf4   : > { %1201 = vst [vmem:[%s17801_s9 + $0xc40] sm:$0xff] %v1200_v8  ;;  %v1204_v10 = vld [vmem:[%s17793_s14 + $0x18a0] sm:$0xff]  ;;  %v1206_v11 = vld [vmem:[%s17793_s14 + $0x18a8] sm:$0xff]  ;;  %1203 = vst [vmem:[%s17801_s9 + $0xc48] sm:$0xff] %v1202_v9 }
  0xf5   : > { %1205 = vst [vmem:[%s17801_s9 + $0xc50] sm:$0xff] %v1204_v10  ;;  %1207 = vst [vmem:[%s17801_s9 + $0xc58] sm:$0xff] %v1206_v11  ;;  %v1208_v12 = vld [vmem:[%s17793_s14 + $0x18c0] sm:$0xff]  ;;  %v1210_v13 = vld [vmem:[%s17793_s14 + $0x18c8] sm:$0xff] }
  0xf6   : > { %v1212_v14 = vld [vmem:[%s17793_s14 + $0x18e0] sm:$0xff]  ;;  %1209 = vst [vmem:[%s17801_s9 + $0xc60] sm:$0xff] %v1208_v12  ;;  %1211 = vst [vmem:[%s17801_s9 + $0xc68] sm:$0xff] %v1210_v13  ;;  %v1214_v15 = vld [vmem:[%s17793_s14 + $0x18e8] sm:$0xff] }
  0xf7   : > { %1213 = vst [vmem:[%s17801_s9 + $0xc70] sm:$0xff] %v1212_v14  ;;  %v1216_v16 = vld [vmem:[%s17793_s14 + $0x1900] sm:$0xff]  ;;  %v1218_v17 = vld [vmem:[%s17793_s14 + $0x1908] sm:$0xff]  ;;  %1215 = vst [vmem:[%s17801_s9 + $0xc78] sm:$0xff] %v1214_v15 }
  0xf8   : > { %1217 = vst [vmem:[%s17801_s9 + $0xc80] sm:$0xff] %v1216_v16  ;;  %1219 = vst [vmem:[%s17801_s9 + $0xc88] sm:$0xff] %v1218_v17  ;;  %v1220_v18 = vld [vmem:[%s17793_s14 + $0x1920] sm:$0xff]  ;;  %v1222_v19 = vld [vmem:[%s17793_s14 + $0x1928] sm:$0xff] }
  0xf9   : > { %v1224_v20 = vld [vmem:[%s17793_s14 + $0x1940] sm:$0xff]  ;;  %1221 = vst [vmem:[%s17801_s9 + $0xc90] sm:$0xff] %v1220_v18  ;;  %1223 = vst [vmem:[%s17801_s9 + $0xc98] sm:$0xff] %v1222_v19  ;;  %v1226_v21 = vld [vmem:[%s17793_s14 + $0x1948] sm:$0xff] }
  0xfa   : > { %1225 = vst [vmem:[%s17801_s9 + $0xca0] sm:$0xff] %v1224_v20  ;;  %v1228_v22 = vld [vmem:[%s17793_s14 + $0x1960] sm:$0xff]  ;;  %v1230_v23 = vld [vmem:[%s17793_s14 + $0x1968] sm:$0xff]  ;;  %1227 = vst [vmem:[%s17801_s9 + $0xca8] sm:$0xff] %v1226_v21 }
  0xfb   : > { %1229 = vst [vmem:[%s17801_s9 + $0xcb0] sm:$0xff] %v1228_v22  ;;  %1231 = vst [vmem:[%s17801_s9 + $0xcb8] sm:$0xff] %v1230_v23  ;;  %v1232_v24 = vld [vmem:[%s17793_s14 + $0x1980] sm:$0xff]  ;;  %v1234_v25 = vld [vmem:[%s17793_s14 + $0x1988] sm:$0xff] }
  0xfc   : > { %v1236_v26 = vld [vmem:[%s17793_s14 + $0x19a0] sm:$0xff]  ;;  %1233 = vst [vmem:[%s17801_s9 + $0xcc0] sm:$0xff] %v1232_v24  ;;  %1235 = vst [vmem:[%s17801_s9 + $0xcc8] sm:$0xff] %v1234_v25  ;;  %v1238_v27 = vld [vmem:[%s17793_s14 + $0x19a8] sm:$0xff] }
  0xfd   : > { %1237 = vst [vmem:[%s17801_s9 + $0xcd0] sm:$0xff] %v1236_v26  ;;  %v1240_v28 = vld [vmem:[%s17793_s14 + $0x19c0] sm:$0xff]  ;;  %v1242_v29 = vld [vmem:[%s17793_s14 + $0x19c8] sm:$0xff]  ;;  %1239 = vst [vmem:[%s17801_s9 + $0xcd8] sm:$0xff] %v1238_v27 }
  0xfe   : > { %1241 = vst [vmem:[%s17801_s9 + $0xce0] sm:$0xff] %v1240_v28  ;;  %1243 = vst [vmem:[%s17801_s9 + $0xce8] sm:$0xff] %v1242_v29  ;;  %v1244_v30 = vld [vmem:[%s17793_s14 + $0x19e0] sm:$0xff]  ;;  %v1246_v31 = vld [vmem:[%s17793_s14 + $0x19e8] sm:$0xff] }
  0xff   : > { %v1248_v32 = vld [vmem:[%s17793_s14 + $0x1a00] sm:$0xff]  ;;  %1245 = vst [vmem:[%s17801_s9 + $0xcf0] sm:$0xff] %v1244_v30  ;;  %1247 = vst [vmem:[%s17801_s9 + $0xcf8] sm:$0xff] %v1246_v31  ;;  %v1250_v33 = vld [vmem:[%s17793_s14 + $0x1a08] sm:$0xff] }
 0x100   : > { %1249 = vst [vmem:[%s17801_s9 + $0xd00] sm:$0xff] %v1248_v32  ;;  %v1252_v34 = vld [vmem:[%s17793_s14 + $0x1a20] sm:$0xff]  ;;  %v1254_v35 = vld [vmem:[%s17793_s14 + $0x1a28] sm:$0xff]  ;;  %1251 = vst [vmem:[%s17801_s9 + $0xd08] sm:$0xff] %v1250_v33 }
 0x101   : > { %1253 = vst [vmem:[%s17801_s9 + $0xd10] sm:$0xff] %v1252_v34  ;;  %1255 = vst [vmem:[%s17801_s9 + $0xd18] sm:$0xff] %v1254_v35  ;;  %v1256_v36 = vld [vmem:[%s17793_s14 + $0x1a40] sm:$0xff]  ;;  %v1258_v37 = vld [vmem:[%s17793_s14 + $0x1a48] sm:$0xff] }
 0x102   : > { %v1260_v38 = vld [vmem:[%s17793_s14 + $0x1a60] sm:$0xff]  ;;  %1257 = vst [vmem:[%s17801_s9 + $0xd20] sm:$0xff] %v1256_v36  ;;  %1259 = vst [vmem:[%s17801_s9 + $0xd28] sm:$0xff] %v1258_v37  ;;  %v1262_v39 = vld [vmem:[%s17793_s14 + $0x1a68] sm:$0xff] }
 0x103   : > { %1261 = vst [vmem:[%s17801_s9 + $0xd30] sm:$0xff] %v1260_v38  ;;  %v1264_v40 = vld [vmem:[%s17793_s14 + $0x1a80] sm:$0xff]  ;;  %v1266_v41 = vld [vmem:[%s17793_s14 + $0x1a88] sm:$0xff]  ;;  %1263 = vst [vmem:[%s17801_s9 + $0xd38] sm:$0xff] %v1262_v39 }
 0x104   : > { %1265 = vst [vmem:[%s17801_s9 + $0xd40] sm:$0xff] %v1264_v40  ;;  %1267 = vst [vmem:[%s17801_s9 + $0xd48] sm:$0xff] %v1266_v41  ;;  %v1268_v42 = vld [vmem:[%s17793_s14 + $0x1aa0] sm:$0xff]  ;;  %v1270_v43 = vld [vmem:[%s17793_s14 + $0x1aa8] sm:$0xff] }
 0x105   : > { %v1272_v44 = vld [vmem:[%s17793_s14 + $0x1ac0] sm:$0xff]  ;;  %1269 = vst [vmem:[%s17801_s9 + $0xd50] sm:$0xff] %v1268_v42  ;;  %1271 = vst [vmem:[%s17801_s9 + $0xd58] sm:$0xff] %v1270_v43  ;;  %v1274_v45 = vld [vmem:[%s17793_s14 + $0x1ac8] sm:$0xff] }
 0x106   : > { %1273 = vst [vmem:[%s17801_s9 + $0xd60] sm:$0xff] %v1272_v44  ;;  %v1276_v46 = vld [vmem:[%s17793_s14 + $0x1ae0] sm:$0xff]  ;;  %v1278_v47 = vld [vmem:[%s17793_s14 + $0x1ae8] sm:$0xff]  ;;  %1275 = vst [vmem:[%s17801_s9 + $0xd68] sm:$0xff] %v1274_v45 }
 0x107   : > { %1277 = vst [vmem:[%s17801_s9 + $0xd70] sm:$0xff] %v1276_v46  ;;  %1279 = vst [vmem:[%s17801_s9 + $0xd78] sm:$0xff] %v1278_v47  ;;  %v1280_v48 = vld [vmem:[%s17793_s14 + $0x1b00] sm:$0xff]  ;;  %v1282_v49 = vld [vmem:[%s17793_s14 + $0x1b08] sm:$0xff] }
 0x108   : > { %v1284_v50 = vld [vmem:[%s17793_s14 + $0x1b20] sm:$0xff]  ;;  %1281 = vst [vmem:[%s17801_s9 + $0xd80] sm:$0xff] %v1280_v48  ;;  %1283 = vst [vmem:[%s17801_s9 + $0xd88] sm:$0xff] %v1282_v49  ;;  %v1286_v51 = vld [vmem:[%s17793_s14 + $0x1b28] sm:$0xff] }
 0x109   : > { %1285 = vst [vmem:[%s17801_s9 + $0xd90] sm:$0xff] %v1284_v50  ;;  %v1288_v52 = vld [vmem:[%s17793_s14 + $0x1b40] sm:$0xff]  ;;  %v1290_v53 = vld [vmem:[%s17793_s14 + $0x1b48] sm:$0xff]  ;;  %1287 = vst [vmem:[%s17801_s9 + $0xd98] sm:$0xff] %v1286_v51 }
 0x10a   : > { %1289 = vst [vmem:[%s17801_s9 + $0xda0] sm:$0xff] %v1288_v52  ;;  %1291 = vst [vmem:[%s17801_s9 + $0xda8] sm:$0xff] %v1290_v53  ;;  %v1292_v54 = vld [vmem:[%s17793_s14 + $0x1b60] sm:$0xff]  ;;  %v1294_v55 = vld [vmem:[%s17793_s14 + $0x1b68] sm:$0xff] }
 0x10b   : > { %v1296_v56 = vld [vmem:[%s17793_s14 + $0x1b80] sm:$0xff]  ;;  %1293 = vst [vmem:[%s17801_s9 + $0xdb0] sm:$0xff] %v1292_v54  ;;  %1295 = vst [vmem:[%s17801_s9 + $0xdb8] sm:$0xff] %v1294_v55  ;;  %v1298_v57 = vld [vmem:[%s17793_s14 + $0x1b88] sm:$0xff] }
 0x10c   : > { %1297 = vst [vmem:[%s17801_s9 + $0xdc0] sm:$0xff] %v1296_v56  ;;  %v1300_v58 = vld [vmem:[%s17793_s14 + $0x1ba0] sm:$0xff]  ;;  %v1302_v59 = vld [vmem:[%s17793_s14 + $0x1ba8] sm:$0xff]  ;;  %1299 = vst [vmem:[%s17801_s9 + $0xdc8] sm:$0xff] %v1298_v57 }
 0x10d   : > { %1301 = vst [vmem:[%s17801_s9 + $0xdd0] sm:$0xff] %v1300_v58  ;;  %1303 = vst [vmem:[%s17801_s9 + $0xdd8] sm:$0xff] %v1302_v59  ;;  %v1304_v60 = vld [vmem:[%s17793_s14 + $0x1bc0] sm:$0xff]  ;;  %v1306_v61 = vld [vmem:[%s17793_s14 + $0x1bc8] sm:$0xff] }
 0x10e   : > { %v1308_v62 = vld [vmem:[%s17793_s14 + $0x1be0] sm:$0xff]  ;;  %1305 = vst [vmem:[%s17801_s9 + $0xde0] sm:$0xff] %v1304_v60  ;;  %1307 = vst [vmem:[%s17801_s9 + $0xde8] sm:$0xff] %v1306_v61  ;;  %v1310_v63 = vld [vmem:[%s17793_s14 + $0x1be8] sm:$0xff] }
 0x10f   : > { %1309 = vst [vmem:[%s17801_s9 + $0xdf0] sm:$0xff] %v1308_v62  ;;  %v1312_v0 = vld [vmem:[%s17793_s14 + $0x1c00] sm:$0xff]  ;;  %v1314_v1 = vld [vmem:[%s17793_s14 + $0x1c08] sm:$0xff]  ;;  %1311 = vst [vmem:[%s17801_s9 + $0xdf8] sm:$0xff] %v1310_v63 }
 0x110   : > { %1313 = vst [vmem:[%s17801_s9 + $0xe00] sm:$0xff] %v1312_v0  ;;  %1315 = vst [vmem:[%s17801_s9 + $0xe08] sm:$0xff] %v1314_v1  ;;  %v1316_v2 = vld [vmem:[%s17793_s14 + $0x1c20] sm:$0xff]  ;;  %v1318_v3 = vld [vmem:[%s17793_s14 + $0x1c28] sm:$0xff] }
 0x111   : > { %v1320_v4 = vld [vmem:[%s17793_s14 + $0x1c40] sm:$0xff]  ;;  %1317 = vst [vmem:[%s17801_s9 + $0xe10] sm:$0xff] %v1316_v2  ;;  %1319 = vst [vmem:[%s17801_s9 + $0xe18] sm:$0xff] %v1318_v3  ;;  %v1322_v5 = vld [vmem:[%s17793_s14 + $0x1c48] sm:$0xff] }
 0x112   : > { %1321 = vst [vmem:[%s17801_s9 + $0xe20] sm:$0xff] %v1320_v4  ;;  %v1324_v6 = vld [vmem:[%s17793_s14 + $0x1c60] sm:$0xff]  ;;  %v1326_v7 = vld [vmem:[%s17793_s14 + $0x1c68] sm:$0xff]  ;;  %1323 = vst [vmem:[%s17801_s9 + $0xe28] sm:$0xff] %v1322_v5 }
 0x113   : > { %1325 = vst [vmem:[%s17801_s9 + $0xe30] sm:$0xff] %v1324_v6  ;;  %1327 = vst [vmem:[%s17801_s9 + $0xe38] sm:$0xff] %v1326_v7  ;;  %v1328_v8 = vld [vmem:[%s17793_s14 + $0x1c80] sm:$0xff]  ;;  %v1330_v9 = vld [vmem:[%s17793_s14 + $0x1c88] sm:$0xff] }
 0x114   : > { %v1332_v10 = vld [vmem:[%s17793_s14 + $0x1ca0] sm:$0xff]  ;;  %1329 = vst [vmem:[%s17801_s9 + $0xe40] sm:$0xff] %v1328_v8  ;;  %1331 = vst [vmem:[%s17801_s9 + $0xe48] sm:$0xff] %v1330_v9  ;;  %v1334_v11 = vld [vmem:[%s17793_s14 + $0x1ca8] sm:$0xff] }
 0x115   : > { %1333 = vst [vmem:[%s17801_s9 + $0xe50] sm:$0xff] %v1332_v10  ;;  %v1336_v12 = vld [vmem:[%s17793_s14 + $0x1cc0] sm:$0xff]  ;;  %v1338_v13 = vld [vmem:[%s17793_s14 + $0x1cc8] sm:$0xff]  ;;  %1335 = vst [vmem:[%s17801_s9 + $0xe58] sm:$0xff] %v1334_v11 }
 0x116   : > { %1337 = vst [vmem:[%s17801_s9 + $0xe60] sm:$0xff] %v1336_v12  ;;  %1339 = vst [vmem:[%s17801_s9 + $0xe68] sm:$0xff] %v1338_v13  ;;  %v1340_v14 = vld [vmem:[%s17793_s14 + $0x1ce0] sm:$0xff]  ;;  %v1342_v15 = vld [vmem:[%s17793_s14 + $0x1ce8] sm:$0xff] }
 0x117   : > { %v1344_v16 = vld [vmem:[%s17793_s14 + $0x1d00] sm:$0xff]  ;;  %1341 = vst [vmem:[%s17801_s9 + $0xe70] sm:$0xff] %v1340_v14  ;;  %1343 = vst [vmem:[%s17801_s9 + $0xe78] sm:$0xff] %v1342_v15  ;;  %v1346_v17 = vld [vmem:[%s17793_s14 + $0x1d08] sm:$0xff] }
 0x118   : > { %1345 = vst [vmem:[%s17801_s9 + $0xe80] sm:$0xff] %v1344_v16  ;;  %v1348_v18 = vld [vmem:[%s17793_s14 + $0x1d20] sm:$0xff]  ;;  %v1350_v19 = vld [vmem:[%s17793_s14 + $0x1d28] sm:$0xff]  ;;  %1347 = vst [vmem:[%s17801_s9 + $0xe88] sm:$0xff] %v1346_v17 }
 0x119   : > { %1349 = vst [vmem:[%s17801_s9 + $0xe90] sm:$0xff] %v1348_v18  ;;  %1351 = vst [vmem:[%s17801_s9 + $0xe98] sm:$0xff] %v1350_v19  ;;  %v1352_v20 = vld [vmem:[%s17793_s14 + $0x1d40] sm:$0xff]  ;;  %v1354_v21 = vld [vmem:[%s17793_s14 + $0x1d48] sm:$0xff] }
 0x11a   : > { %v1356_v22 = vld [vmem:[%s17793_s14 + $0x1d60] sm:$0xff]  ;;  %1353 = vst [vmem:[%s17801_s9 + $0xea0] sm:$0xff] %v1352_v20  ;;  %1355 = vst [vmem:[%s17801_s9 + $0xea8] sm:$0xff] %v1354_v21  ;;  %v1358_v23 = vld [vmem:[%s17793_s14 + $0x1d68] sm:$0xff] }
 0x11b   : > { %1357 = vst [vmem:[%s17801_s9 + $0xeb0] sm:$0xff] %v1356_v22  ;;  %v1360_v24 = vld [vmem:[%s17793_s14 + $0x1d80] sm:$0xff]  ;;  %v1362_v25 = vld [vmem:[%s17793_s14 + $0x1d88] sm:$0xff]  ;;  %1359 = vst [vmem:[%s17801_s9 + $0xeb8] sm:$0xff] %v1358_v23 }
 0x11c   : > { %1361 = vst [vmem:[%s17801_s9 + $0xec0] sm:$0xff] %v1360_v24  ;;  %1363 = vst [vmem:[%s17801_s9 + $0xec8] sm:$0xff] %v1362_v25  ;;  %v1364_v26 = vld [vmem:[%s17793_s14 + $0x1da0] sm:$0xff]  ;;  %v1366_v27 = vld [vmem:[%s17793_s14 + $0x1da8] sm:$0xff] }
 0x11d   : > { %v1368_v28 = vld [vmem:[%s17793_s14 + $0x1dc0] sm:$0xff]  ;;  %1365 = vst [vmem:[%s17801_s9 + $0xed0] sm:$0xff] %v1364_v26  ;;  %1367 = vst [vmem:[%s17801_s9 + $0xed8] sm:$0xff] %v1366_v27  ;;  %v1370_v29 = vld [vmem:[%s17793_s14 + $0x1dc8] sm:$0xff] }
 0x11e   : > { %1369 = vst [vmem:[%s17801_s9 + $0xee0] sm:$0xff] %v1368_v28  ;;  %v1372_v30 = vld [vmem:[%s17793_s14 + $0x1de0] sm:$0xff]  ;;  %v1374_v31 = vld [vmem:[%s17793_s14 + $0x1de8] sm:$0xff]  ;;  %1371 = vst [vmem:[%s17801_s9 + $0xee8] sm:$0xff] %v1370_v29 }
 0x11f   : > { %1373 = vst [vmem:[%s17801_s9 + $0xef0] sm:$0xff] %v1372_v30  ;;  %1375 = vst [vmem:[%s17801_s9 + $0xef8] sm:$0xff] %v1374_v31  ;;  %v1376_v32 = vld [vmem:[%s17793_s14 + $0x1e00] sm:$0xff]  ;;  %v1378_v33 = vld [vmem:[%s17793_s14 + $0x1e08] sm:$0xff] }
 0x120   : > { %v1380_v34 = vld [vmem:[%s17793_s14 + $0x1e20] sm:$0xff]  ;;  %1377 = vst [vmem:[%s17801_s9 + $0xf00] sm:$0xff] %v1376_v32  ;;  %1379 = vst [vmem:[%s17801_s9 + $0xf08] sm:$0xff] %v1378_v33  ;;  %v1382_v35 = vld [vmem:[%s17793_s14 + $0x1e28] sm:$0xff] }
 0x121   : > { %1381 = vst [vmem:[%s17801_s9 + $0xf10] sm:$0xff] %v1380_v34  ;;  %v1384_v36 = vld [vmem:[%s17793_s14 + $0x1e40] sm:$0xff]  ;;  %v1386_v37 = vld [vmem:[%s17793_s14 + $0x1e48] sm:$0xff]  ;;  %1383 = vst [vmem:[%s17801_s9 + $0xf18] sm:$0xff] %v1382_v35 }
 0x122   : > { %1385 = vst [vmem:[%s17801_s9 + $0xf20] sm:$0xff] %v1384_v36  ;;  %1387 = vst [vmem:[%s17801_s9 + $0xf28] sm:$0xff] %v1386_v37  ;;  %v1388_v38 = vld [vmem:[%s17793_s14 + $0x1e60] sm:$0xff]  ;;  %v1390_v39 = vld [vmem:[%s17793_s14 + $0x1e68] sm:$0xff] }
 0x123   : > { %v1392_v40 = vld [vmem:[%s17793_s14 + $0x1e80] sm:$0xff]  ;;  %1389 = vst [vmem:[%s17801_s9 + $0xf30] sm:$0xff] %v1388_v38  ;;  %1391 = vst [vmem:[%s17801_s9 + $0xf38] sm:$0xff] %v1390_v39  ;;  %v1394_v41 = vld [vmem:[%s17793_s14 + $0x1e88] sm:$0xff] }
 0x124   : > { %1393 = vst [vmem:[%s17801_s9 + $0xf40] sm:$0xff] %v1392_v40  ;;  %v1396_v42 = vld [vmem:[%s17793_s14 + $0x1ea0] sm:$0xff]  ;;  %v1398_v43 = vld [vmem:[%s17793_s14 + $0x1ea8] sm:$0xff]  ;;  %1395 = vst [vmem:[%s17801_s9 + $0xf48] sm:$0xff] %v1394_v41 }
 0x125   : > { %1397 = vst [vmem:[%s17801_s9 + $0xf50] sm:$0xff] %v1396_v42  ;;  %1399 = vst [vmem:[%s17801_s9 + $0xf58] sm:$0xff] %v1398_v43  ;;  %v1400_v44 = vld [vmem:[%s17793_s14 + $0x1ec0] sm:$0xff]  ;;  %v1402_v45 = vld [vmem:[%s17793_s14 + $0x1ec8] sm:$0xff] }
 0x126   : > { %v1404_v46 = vld [vmem:[%s17793_s14 + $0x1ee0] sm:$0xff]  ;;  %1401 = vst [vmem:[%s17801_s9 + $0xf60] sm:$0xff] %v1400_v44  ;;  %1403 = vst [vmem:[%s17801_s9 + $0xf68] sm:$0xff] %v1402_v45  ;;  %v1406_v47 = vld [vmem:[%s17793_s14 + $0x1ee8] sm:$0xff] }
 0x127   : > { %1405 = vst [vmem:[%s17801_s9 + $0xf70] sm:$0xff] %v1404_v46  ;;  %v1408_v48 = vld [vmem:[%s17793_s14 + $0x1f00] sm:$0xff]  ;;  %v1410_v49 = vld [vmem:[%s17793_s14 + $0x1f08] sm:$0xff]  ;;  %1407 = vst [vmem:[%s17801_s9 + $0xf78] sm:$0xff] %v1406_v47 }
 0x128   : > { %1409 = vst [vmem:[%s17801_s9 + $0xf80] sm:$0xff] %v1408_v48  ;;  %1411 = vst [vmem:[%s17801_s9 + $0xf88] sm:$0xff] %v1410_v49  ;;  %v1412_v50 = vld [vmem:[%s17793_s14 + $0x1f20] sm:$0xff]  ;;  %v1414_v51 = vld [vmem:[%s17793_s14 + $0x1f28] sm:$0xff] }
 0x129   : > { %v1416_v52 = vld [vmem:[%s17793_s14 + $0x1f40] sm:$0xff]  ;;  %1413 = vst [vmem:[%s17801_s9 + $0xf90] sm:$0xff] %v1412_v50  ;;  %1415 = vst [vmem:[%s17801_s9 + $0xf98] sm:$0xff] %v1414_v51  ;;  %v1418_v53 = vld [vmem:[%s17793_s14 + $0x1f48] sm:$0xff] }
 0x12a   : > { %1417 = vst [vmem:[%s17801_s9 + $0xfa0] sm:$0xff] %v1416_v52  ;;  %v1420_v54 = vld [vmem:[%s17793_s14 + $0x1f60] sm:$0xff]  ;;  %v1422_v55 = vld [vmem:[%s17793_s14 + $0x1f68] sm:$0xff]  ;;  %1419 = vst [vmem:[%s17801_s9 + $0xfa8] sm:$0xff] %v1418_v53 }
 0x12b   : > { %1421 = vst [vmem:[%s17801_s9 + $0xfb0] sm:$0xff] %v1420_v54  ;;  %1423 = vst [vmem:[%s17801_s9 + $0xfb8] sm:$0xff] %v1422_v55  ;;  %v1424_v56 = vld [vmem:[%s17793_s14 + $0x1f80] sm:$0xff]  ;;  %v1426_v57 = vld [vmem:[%s17793_s14 + $0x1f88] sm:$0xff] }
 0x12c   : > { %v1428_v58 = vld [vmem:[%s17793_s14 + $0x1fa0] sm:$0xff]  ;;  %1425 = vst [vmem:[%s17801_s9 + $0xfc0] sm:$0xff] %v1424_v56  ;;  %1427 = vst [vmem:[%s17801_s9 + $0xfc8] sm:$0xff] %v1426_v57  ;;  %v1430_v59 = vld [vmem:[%s17793_s14 + $0x1fa8] sm:$0xff] }
 0x12d   : > { %1429 = vst [vmem:[%s17801_s9 + $0xfd0] sm:$0xff] %v1428_v58  ;;  %v1432_v60 = vld [vmem:[%s17793_s14 + $0x1fc0] sm:$0xff]  ;;  %v1434_v61 = vld [vmem:[%s17793_s14 + $0x1fc8] sm:$0xff]  ;;  %1431 = vst [vmem:[%s17801_s9 + $0xfd8] sm:$0xff] %v1430_v59 }
 0x12e   : > { %1433 = vst [vmem:[%s17801_s9 + $0xfe0] sm:$0xff] %v1432_v60  ;;  %1435 = vst [vmem:[%s17801_s9 + $0xfe8] sm:$0xff] %v1434_v61  ;;  %v1436_v62 = vld [vmem:[%s17793_s14 + $0x1fe0] sm:$0xff]  ;;  %v1438_v63 = vld [vmem:[%s17793_s14 + $0x1fe8] sm:$0xff] }
 0x12f   : > { %v1440_v0 = vld [vmem:[%s17793_s14 + $0x2000] sm:$0xff]  ;;  %1437 = vst [vmem:[%s17801_s9 + $0xff0] sm:$0xff] %v1436_v62  ;;  %1439 = vst [vmem:[%s17801_s9 + $0xff8] sm:$0xff] %v1438_v63  ;;  %v1442_v1 = vld [vmem:[%s17793_s14 + $0x2008] sm:$0xff] }
 0x130   : > { %1441 = vst [vmem:[%s17801_s9 + $0x1000] sm:$0xff] %v1440_v0  ;;  %v1444_v2 = vld [vmem:[%s17793_s14 + $0x2020] sm:$0xff]  ;;  %v1446_v3 = vld [vmem:[%s17793_s14 + $0x2028] sm:$0xff]  ;;  %1443 = vst [vmem:[%s17801_s9 + $0x1008] sm:$0xff] %v1442_v1 }
 0x131   : > { %1445 = vst [vmem:[%s17801_s9 + $0x1010] sm:$0xff] %v1444_v2  ;;  %1447 = vst [vmem:[%s17801_s9 + $0x1018] sm:$0xff] %v1446_v3  ;;  %v1448_v4 = vld [vmem:[%s17793_s14 + $0x2040] sm:$0xff]  ;;  %v1450_v5 = vld [vmem:[%s17793_s14 + $0x2048] sm:$0xff] }
 0x132   : > { %v1452_v6 = vld [vmem:[%s17793_s14 + $0x2060] sm:$0xff]  ;;  %1449 = vst [vmem:[%s17801_s9 + $0x1020] sm:$0xff] %v1448_v4  ;;  %1451 = vst [vmem:[%s17801_s9 + $0x1028] sm:$0xff] %v1450_v5  ;;  %v1454_v7 = vld [vmem:[%s17793_s14 + $0x2068] sm:$0xff] }
 0x133   : > { %1453 = vst [vmem:[%s17801_s9 + $0x1030] sm:$0xff] %v1452_v6  ;;  %v1456_v8 = vld [vmem:[%s17793_s14 + $0x2080] sm:$0xff]  ;;  %v1458_v9 = vld [vmem:[%s17793_s14 + $0x2088] sm:$0xff]  ;;  %1455 = vst [vmem:[%s17801_s9 + $0x1038] sm:$0xff] %v1454_v7 }
 0x134   : > { %1457 = vst [vmem:[%s17801_s9 + $0x1040] sm:$0xff] %v1456_v8  ;;  %1459 = vst [vmem:[%s17801_s9 + $0x1048] sm:$0xff] %v1458_v9  ;;  %v1460_v10 = vld [vmem:[%s17793_s14 + $0x20a0] sm:$0xff]  ;;  %v1462_v11 = vld [vmem:[%s17793_s14 + $0x20a8] sm:$0xff] }
 0x135   : > { %v1464_v12 = vld [vmem:[%s17793_s14 + $0x20c0] sm:$0xff]  ;;  %1461 = vst [vmem:[%s17801_s9 + $0x1050] sm:$0xff] %v1460_v10  ;;  %1463 = vst [vmem:[%s17801_s9 + $0x1058] sm:$0xff] %v1462_v11  ;;  %v1466_v13 = vld [vmem:[%s17793_s14 + $0x20c8] sm:$0xff] }
 0x136   : > { %1465 = vst [vmem:[%s17801_s9 + $0x1060] sm:$0xff] %v1464_v12  ;;  %v1468_v14 = vld [vmem:[%s17793_s14 + $0x20e0] sm:$0xff]  ;;  %v1470_v15 = vld [vmem:[%s17793_s14 + $0x20e8] sm:$0xff]  ;;  %1467 = vst [vmem:[%s17801_s9 + $0x1068] sm:$0xff] %v1466_v13 }
 0x137   : > { %1469 = vst [vmem:[%s17801_s9 + $0x1070] sm:$0xff] %v1468_v14  ;;  %1471 = vst [vmem:[%s17801_s9 + $0x1078] sm:$0xff] %v1470_v15  ;;  %v1472_v16 = vld [vmem:[%s17793_s14 + $0x2100] sm:$0xff]  ;;  %v1474_v17 = vld [vmem:[%s17793_s14 + $0x2108] sm:$0xff] }
 0x138   : > { %v1476_v18 = vld [vmem:[%s17793_s14 + $0x2120] sm:$0xff]  ;;  %1473 = vst [vmem:[%s17801_s9 + $0x1080] sm:$0xff] %v1472_v16  ;;  %1475 = vst [vmem:[%s17801_s9 + $0x1088] sm:$0xff] %v1474_v17  ;;  %v1478_v19 = vld [vmem:[%s17793_s14 + $0x2128] sm:$0xff] }
 0x139   : > { %1477 = vst [vmem:[%s17801_s9 + $0x1090] sm:$0xff] %v1476_v18  ;;  %v1480_v20 = vld [vmem:[%s17793_s14 + $0x2140] sm:$0xff]  ;;  %v1482_v21 = vld [vmem:[%s17793_s14 + $0x2148] sm:$0xff]  ;;  %1479 = vst [vmem:[%s17801_s9 + $0x1098] sm:$0xff] %v1478_v19 }
 0x13a   : > { %1481 = vst [vmem:[%s17801_s9 + $0x10a0] sm:$0xff] %v1480_v20  ;;  %1483 = vst [vmem:[%s17801_s9 + $0x10a8] sm:$0xff] %v1482_v21  ;;  %v1484_v22 = vld [vmem:[%s17793_s14 + $0x2160] sm:$0xff]  ;;  %v1486_v23 = vld [vmem:[%s17793_s14 + $0x2168] sm:$0xff] }
 0x13b   : > { %v1488_v24 = vld [vmem:[%s17793_s14 + $0x2180] sm:$0xff]  ;;  %1485 = vst [vmem:[%s17801_s9 + $0x10b0] sm:$0xff] %v1484_v22  ;;  %1487 = vst [vmem:[%s17801_s9 + $0x10b8] sm:$0xff] %v1486_v23  ;;  %v1490_v25 = vld [vmem:[%s17793_s14 + $0x2188] sm:$0xff] }
 0x13c   : > { %1489 = vst [vmem:[%s17801_s9 + $0x10c0] sm:$0xff] %v1488_v24  ;;  %v1492_v26 = vld [vmem:[%s17793_s14 + $0x21a0] sm:$0xff]  ;;  %v1494_v27 = vld [vmem:[%s17793_s14 + $0x21a8] sm:$0xff]  ;;  %1491 = vst [vmem:[%s17801_s9 + $0x10c8] sm:$0xff] %v1490_v25 }
 0x13d   : > { %1493 = vst [vmem:[%s17801_s9 + $0x10d0] sm:$0xff] %v1492_v26  ;;  %1495 = vst [vmem:[%s17801_s9 + $0x10d8] sm:$0xff] %v1494_v27  ;;  %v1496_v28 = vld [vmem:[%s17793_s14 + $0x21c0] sm:$0xff]  ;;  %v1498_v29 = vld [vmem:[%s17793_s14 + $0x21c8] sm:$0xff] }
 0x13e   : > { %v1500_v30 = vld [vmem:[%s17793_s14 + $0x21e0] sm:$0xff]  ;;  %1497 = vst [vmem:[%s17801_s9 + $0x10e0] sm:$0xff] %v1496_v28  ;;  %1499 = vst [vmem:[%s17801_s9 + $0x10e8] sm:$0xff] %v1498_v29  ;;  %v1502_v31 = vld [vmem:[%s17793_s14 + $0x21e8] sm:$0xff] }
 0x13f   : > { %1501 = vst [vmem:[%s17801_s9 + $0x10f0] sm:$0xff] %v1500_v30  ;;  %v1504_v32 = vld [vmem:[%s17793_s14 + $0x2200] sm:$0xff]  ;;  %v1506_v33 = vld [vmem:[%s17793_s14 + $0x2208] sm:$0xff]  ;;  %1503 = vst [vmem:[%s17801_s9 + $0x10f8] sm:$0xff] %v1502_v31 }
 0x140   : > { %1505 = vst [vmem:[%s17801_s9 + $0x1100] sm:$0xff] %v1504_v32  ;;  %1507 = vst [vmem:[%s17801_s9 + $0x1108] sm:$0xff] %v1506_v33  ;;  %v1508_v34 = vld [vmem:[%s17793_s14 + $0x2220] sm:$0xff]  ;;  %v1510_v35 = vld [vmem:[%s17793_s14 + $0x2228] sm:$0xff] }
 0x141   : > { %v1512_v36 = vld [vmem:[%s17793_s14 + $0x2240] sm:$0xff]  ;;  %1509 = vst [vmem:[%s17801_s9 + $0x1110] sm:$0xff] %v1508_v34  ;;  %1511 = vst [vmem:[%s17801_s9 + $0x1118] sm:$0xff] %v1510_v35  ;;  %v1514_v37 = vld [vmem:[%s17793_s14 + $0x2248] sm:$0xff] }
 0x142   : > { %1513 = vst [vmem:[%s17801_s9 + $0x1120] sm:$0xff] %v1512_v36  ;;  %v1516_v38 = vld [vmem:[%s17793_s14 + $0x2260] sm:$0xff]  ;;  %v1518_v39 = vld [vmem:[%s17793_s14 + $0x2268] sm:$0xff]  ;;  %1515 = vst [vmem:[%s17801_s9 + $0x1128] sm:$0xff] %v1514_v37 }
 0x143   : > { %1517 = vst [vmem:[%s17801_s9 + $0x1130] sm:$0xff] %v1516_v38  ;;  %1519 = vst [vmem:[%s17801_s9 + $0x1138] sm:$0xff] %v1518_v39 }
 0x144 PF: > { %1555 = sbr.rel (!%p17776_p7) target bundleno = 398 (0x18e), region = 67  ;;  %s1557_s27 = sand.u32 (%p17776_p7), 1, %s17591_s22  }
 0x145   : > { %s15283_s17 = sshll.u32 (%p17776_p7), %s17754_s18, 4  ;;  %s13864_s19 = sshll.u32 (%p17776_p7), %s1557_s27, 10 }
 0x146   : > { %s21808_s6 = sld [smem:[#allocation22_spill]] (%p17776_p7)  ;;  %s18913_s5 = scalar_lea.vmem (%p17776_p7), [#allocation7], %s13864_s19 }
 0x14c   : > { %s18908_s10 = scalar_lea.vmem %s21808_s6, %s15283_s17 }
 0x14d   : > { %v1576_v40 = vld [vmem:[%s18908_s10] sm:$0xff]  ;;  %v1578_v41 = vld [vmem:[%s18908_s10 + $0x8] sm:$0xff] }
 0x14e   : > { %v1580_v42 = vld [vmem:[%s18908_s10 + $0x20] sm:$0xff]  ;;  %1577 = vst [vmem:[%s18913_s5] sm:$0xff] %v1576_v40  ;;  %1579 = vst [vmem:[%s18913_s5 + $0x8] sm:$0xff] %v1578_v41  ;;  %v1582_v43 = vld [vmem:[%s18908_s10 + $0x28] sm:$0xff] }
 0x14f   : > { %1581 = vst [vmem:[%s18913_s5 + $0x10] sm:$0xff] %v1580_v42  ;;  %v1584_v44 = vld [vmem:[%s18908_s10 + $0x40] sm:$0xff]  ;;  %v1586_v45 = vld [vmem:[%s18908_s10 + $0x48] sm:$0xff]  ;;  %1583 = vst [vmem:[%s18913_s5 + $0x18] sm:$0xff] %v1582_v43 }
 0x150   : > { %1585 = vst [vmem:[%s18913_s5 + $0x20] sm:$0xff] %v1584_v44  ;;  %1587 = vst [vmem:[%s18913_s5 + $0x28] sm:$0xff] %v1586_v45  ;;  %v1588_v46 = vld [vmem:[%s18908_s10 + $0x60] sm:$0xff]  ;;  %v1590_v47 = vld [vmem:[%s18908_s10 + $0x68] sm:$0xff] }
 0x151   : > { %v1592_v48 = vld [vmem:[%s18908_s10 + $0x80] sm:$0xff]  ;;  %1589 = vst [vmem:[%s18913_s5 + $0x30] sm:$0xff] %v1588_v46  ;;  %1591 = vst [vmem:[%s18913_s5 + $0x38] sm:$0xff] %v1590_v47  ;;  %v1594_v49 = vld [vmem:[%s18908_s10 + $0x88] sm:$0xff] }
 0x152   : > { %1593 = vst [vmem:[%s18913_s5 + $0x40] sm:$0xff] %v1592_v48  ;;  %v1596_v50 = vld [vmem:[%s18908_s10 + $0xa0] sm:$0xff]  ;;  %v1598_v51 = vld [vmem:[%s18908_s10 + $0xa8] sm:$0xff]  ;;  %1595 = vst [vmem:[%s18913_s5 + $0x48] sm:$0xff] %v1594_v49 }
 0x153   : > { %1597 = vst [vmem:[%s18913_s5 + $0x50] sm:$0xff] %v1596_v50  ;;  %1599 = vst [vmem:[%s18913_s5 + $0x58] sm:$0xff] %v1598_v51  ;;  %v1600_v52 = vld [vmem:[%s18908_s10 + $0xc0] sm:$0xff]  ;;  %v1602_v53 = vld [vmem:[%s18908_s10 + $0xc8] sm:$0xff] }
 0x154   : > { %v1604_v54 = vld [vmem:[%s18908_s10 + $0xe0] sm:$0xff]  ;;  %1601 = vst [vmem:[%s18913_s5 + $0x60] sm:$0xff] %v1600_v52  ;;  %1603 = vst [vmem:[%s18913_s5 + $0x68] sm:$0xff] %v1602_v53  ;;  %v1606_v55 = vld [vmem:[%s18908_s10 + $0xe8] sm:$0xff] }
 0x155   : > { %1605 = vst [vmem:[%s18913_s5 + $0x70] sm:$0xff] %v1604_v54  ;;  %v1608_v56 = vld [vmem:[%s18908_s10 + $0x100] sm:$0xff]  ;;  %v1610_v57 = vld [vmem:[%s18908_s10 + $0x108] sm:$0xff]  ;;  %1607 = vst [vmem:[%s18913_s5 + $0x78] sm:$0xff] %v1606_v55 }
 0x156   : > { %1609 = vst [vmem:[%s18913_s5 + $0x80] sm:$0xff] %v1608_v56  ;;  %1611 = vst [vmem:[%s18913_s5 + $0x88] sm:$0xff] %v1610_v57  ;;  %v1612_v58 = vld [vmem:[%s18908_s10 + $0x120] sm:$0xff]  ;;  %v1614_v59 = vld [vmem:[%s18908_s10 + $0x128] sm:$0xff] }
 0x157   : > { %v1616_v60 = vld [vmem:[%s18908_s10 + $0x140] sm:$0xff]  ;;  %1613 = vst [vmem:[%s18913_s5 + $0x90] sm:$0xff] %v1612_v58  ;;  %1615 = vst [vmem:[%s18913_s5 + $0x98] sm:$0xff] %v1614_v59  ;;  %v1618_v61 = vld [vmem:[%s18908_s10 + $0x148] sm:$0xff] }
 0x158   : > { %1617 = vst [vmem:[%s18913_s5 + $0xa0] sm:$0xff] %v1616_v60  ;;  %v1620_v62 = vld [vmem:[%s18908_s10 + $0x160] sm:$0xff]  ;;  %v1622_v63 = vld [vmem:[%s18908_s10 + $0x168] sm:$0xff]  ;;  %1619 = vst [vmem:[%s18913_s5 + $0xa8] sm:$0xff] %v1618_v61 }
 0x159   : > { %1621 = vst [vmem:[%s18913_s5 + $0xb0] sm:$0xff] %v1620_v62  ;;  %1623 = vst [vmem:[%s18913_s5 + $0xb8] sm:$0xff] %v1622_v63  ;;  %v1624_v0 = vld [vmem:[%s18908_s10 + $0x180] sm:$0xff]  ;;  %v1626_v1 = vld [vmem:[%s18908_s10 + $0x188] sm:$0xff] }
 0x15a   : > { %v1628_v2 = vld [vmem:[%s18908_s10 + $0x1a0] sm:$0xff]  ;;  %1625 = vst [vmem:[%s18913_s5 + $0xc0] sm:$0xff] %v1624_v0  ;;  %1627 = vst [vmem:[%s18913_s5 + $0xc8] sm:$0xff] %v1626_v1  ;;  %v1630_v3 = vld [vmem:[%s18908_s10 + $0x1a8] sm:$0xff] }
 0x15b   : > { %1629 = vst [vmem:[%s18913_s5 + $0xd0] sm:$0xff] %v1628_v2  ;;  %v1632_v4 = vld [vmem:[%s18908_s10 + $0x1c0] sm:$0xff]  ;;  %v1634_v5 = vld [vmem:[%s18908_s10 + $0x1c8] sm:$0xff]  ;;  %1631 = vst [vmem:[%s18913_s5 + $0xd8] sm:$0xff] %v1630_v3 }
 0x15c   : > { %1633 = vst [vmem:[%s18913_s5 + $0xe0] sm:$0xff] %v1632_v4  ;;  %1635 = vst [vmem:[%s18913_s5 + $0xe8] sm:$0xff] %v1634_v5  ;;  %v1636_v6 = vld [vmem:[%s18908_s10 + $0x1e0] sm:$0xff]  ;;  %v1638_v7 = vld [vmem:[%s18908_s10 + $0x1e8] sm:$0xff] }
 0x15d   : > { %v1640_v8 = vld [vmem:[%s18908_s10 + $0x200] sm:$0xff]  ;;  %1637 = vst [vmem:[%s18913_s5 + $0xf0] sm:$0xff] %v1636_v6  ;;  %1639 = vst [vmem:[%s18913_s5 + $0xf8] sm:$0xff] %v1638_v7  ;;  %v1642_v9 = vld [vmem:[%s18908_s10 + $0x208] sm:$0xff] }
 0x15e   : > { %1641 = vst [vmem:[%s18913_s5 + $0x100] sm:$0xff] %v1640_v8  ;;  %v1644_v10 = vld [vmem:[%s18908_s10 + $0x220] sm:$0xff]  ;;  %v1646_v11 = vld [vmem:[%s18908_s10 + $0x228] sm:$0xff]  ;;  %1643 = vst [vmem:[%s18913_s5 + $0x108] sm:$0xff] %v1642_v9 }
 0x15f   : > { %1645 = vst [vmem:[%s18913_s5 + $0x110] sm:$0xff] %v1644_v10  ;;  %1647 = vst [vmem:[%s18913_s5 + $0x118] sm:$0xff] %v1646_v11  ;;  %v1648_v12 = vld [vmem:[%s18908_s10 + $0x240] sm:$0xff]  ;;  %v1650_v13 = vld [vmem:[%s18908_s10 + $0x248] sm:$0xff] }
 0x160   : > { %v1652_v14 = vld [vmem:[%s18908_s10 + $0x260] sm:$0xff]  ;;  %1649 = vst [vmem:[%s18913_s5 + $0x120] sm:$0xff] %v1648_v12  ;;  %1651 = vst [vmem:[%s18913_s5 + $0x128] sm:$0xff] %v1650_v13  ;;  %v1654_v15 = vld [vmem:[%s18908_s10 + $0x268] sm:$0xff] }
 0x161   : > { %1653 = vst [vmem:[%s18913_s5 + $0x130] sm:$0xff] %v1652_v14  ;;  %v1656_v16 = vld [vmem:[%s18908_s10 + $0x280] sm:$0xff]  ;;  %v1658_v17 = vld [vmem:[%s18908_s10 + $0x288] sm:$0xff]  ;;  %1655 = vst [vmem:[%s18913_s5 + $0x138] sm:$0xff] %v1654_v15 }
 0x162   : > { %1657 = vst [vmem:[%s18913_s5 + $0x140] sm:$0xff] %v1656_v16  ;;  %1659 = vst [vmem:[%s18913_s5 + $0x148] sm:$0xff] %v1658_v17  ;;  %v1660_v18 = vld [vmem:[%s18908_s10 + $0x2a0] sm:$0xff]  ;;  %v1662_v19 = vld [vmem:[%s18908_s10 + $0x2a8] sm:$0xff] }
 0x163   : > { %v1664_v20 = vld [vmem:[%s18908_s10 + $0x2c0] sm:$0xff]  ;;  %1661 = vst [vmem:[%s18913_s5 + $0x150] sm:$0xff] %v1660_v18  ;;  %1663 = vst [vmem:[%s18913_s5 + $0x158] sm:$0xff] %v1662_v19  ;;  %v1666_v21 = vld [vmem:[%s18908_s10 + $0x2c8] sm:$0xff] }
 0x164   : > { %1665 = vst [vmem:[%s18913_s5 + $0x160] sm:$0xff] %v1664_v20  ;;  %v1668_v22 = vld [vmem:[%s18908_s10 + $0x2e0] sm:$0xff]  ;;  %v1670_v23 = vld [vmem:[%s18908_s10 + $0x2e8] sm:$0xff]  ;;  %1667 = vst [vmem:[%s18913_s5 + $0x168] sm:$0xff] %v1666_v21 }
 0x165   : > { %1669 = vst [vmem:[%s18913_s5 + $0x170] sm:$0xff] %v1668_v22  ;;  %1671 = vst [vmem:[%s18913_s5 + $0x178] sm:$0xff] %v1670_v23  ;;  %v1672_v24 = vld [vmem:[%s18908_s10 + $0x300] sm:$0xff]  ;;  %v1674_v25 = vld [vmem:[%s18908_s10 + $0x308] sm:$0xff] }
 0x166   : > { %v1676_v26 = vld [vmem:[%s18908_s10 + $0x320] sm:$0xff]  ;;  %1673 = vst [vmem:[%s18913_s5 + $0x180] sm:$0xff] %v1672_v24  ;;  %1675 = vst [vmem:[%s18913_s5 + $0x188] sm:$0xff] %v1674_v25  ;;  %v1678_v27 = vld [vmem:[%s18908_s10 + $0x328] sm:$0xff] }
 0x167   : > { %1677 = vst [vmem:[%s18913_s5 + $0x190] sm:$0xff] %v1676_v26  ;;  %v1680_v28 = vld [vmem:[%s18908_s10 + $0x340] sm:$0xff]  ;;  %v1682_v29 = vld [vmem:[%s18908_s10 + $0x348] sm:$0xff]  ;;  %1679 = vst [vmem:[%s18913_s5 + $0x198] sm:$0xff] %v1678_v27 }
 0x168   : > { %1681 = vst [vmem:[%s18913_s5 + $0x1a0] sm:$0xff] %v1680_v28  ;;  %1683 = vst [vmem:[%s18913_s5 + $0x1a8] sm:$0xff] %v1682_v29  ;;  %v1684_v30 = vld [vmem:[%s18908_s10 + $0x360] sm:$0xff]  ;;  %v1686_v31 = vld [vmem:[%s18908_s10 + $0x368] sm:$0xff] }
 0x169   : > { %v1688_v32 = vld [vmem:[%s18908_s10 + $0x380] sm:$0xff]  ;;  %1685 = vst [vmem:[%s18913_s5 + $0x1b0] sm:$0xff] %v1684_v30  ;;  %1687 = vst [vmem:[%s18913_s5 + $0x1b8] sm:$0xff] %v1686_v31  ;;  %v1690_v33 = vld [vmem:[%s18908_s10 + $0x388] sm:$0xff] }
 0x16a   : > { %1689 = vst [vmem:[%s18913_s5 + $0x1c0] sm:$0xff] %v1688_v32  ;;  %v1692_v34 = vld [vmem:[%s18908_s10 + $0x3a0] sm:$0xff]  ;;  %v1694_v35 = vld [vmem:[%s18908_s10 + $0x3a8] sm:$0xff]  ;;  %1691 = vst [vmem:[%s18913_s5 + $0x1c8] sm:$0xff] %v1690_v33 }
 0x16b   : > { %1693 = vst [vmem:[%s18913_s5 + $0x1d0] sm:$0xff] %v1692_v34  ;;  %1695 = vst [vmem:[%s18913_s5 + $0x1d8] sm:$0xff] %v1694_v35  ;;  %v1696_v36 = vld [vmem:[%s18908_s10 + $0x3c0] sm:$0xff]  ;;  %v1698_v37 = vld [vmem:[%s18908_s10 + $0x3c8] sm:$0xff] }
 0x16c   : > { %v1700_v38 = vld [vmem:[%s18908_s10 + $0x3e0] sm:$0xff]  ;;  %1697 = vst [vmem:[%s18913_s5 + $0x1e0] sm:$0xff] %v1696_v36  ;;  %1699 = vst [vmem:[%s18913_s5 + $0x1e8] sm:$0xff] %v1698_v37  ;;  %v1702_v39 = vld [vmem:[%s18908_s10 + $0x3e8] sm:$0xff] }
 0x16d   : > { %1701 = vst [vmem:[%s18913_s5 + $0x1f0] sm:$0xff] %v1700_v38  ;;  %v1704_v40 = vld [vmem:[%s18908_s10 + $0x400] sm:$0xff]  ;;  %v1706_v41 = vld [vmem:[%s18908_s10 + $0x408] sm:$0xff]  ;;  %1703 = vst [vmem:[%s18913_s5 + $0x1f8] sm:$0xff] %v1702_v39 }
 0x16e   : > { %1705 = vst [vmem:[%s18913_s5 + $0x200] sm:$0xff] %v1704_v40  ;;  %1707 = vst [vmem:[%s18913_s5 + $0x208] sm:$0xff] %v1706_v41  ;;  %v1708_v42 = vld [vmem:[%s18908_s10 + $0x420] sm:$0xff]  ;;  %v1710_v43 = vld [vmem:[%s18908_s10 + $0x428] sm:$0xff] }
 0x16f   : > { %v1712_v44 = vld [vmem:[%s18908_s10 + $0x440] sm:$0xff]  ;;  %1709 = vst [vmem:[%s18913_s5 + $0x210] sm:$0xff] %v1708_v42  ;;  %1711 = vst [vmem:[%s18913_s5 + $0x218] sm:$0xff] %v1710_v43  ;;  %v1714_v45 = vld [vmem:[%s18908_s10 + $0x448] sm:$0xff] }
 0x170   : > { %1713 = vst [vmem:[%s18913_s5 + $0x220] sm:$0xff] %v1712_v44  ;;  %v1716_v46 = vld [vmem:[%s18908_s10 + $0x460] sm:$0xff]  ;;  %v1718_v47 = vld [vmem:[%s18908_s10 + $0x468] sm:$0xff]  ;;  %1715 = vst [vmem:[%s18913_s5 + $0x228] sm:$0xff] %v1714_v45 }
 0x171   : > { %1717 = vst [vmem:[%s18913_s5 + $0x230] sm:$0xff] %v1716_v46  ;;  %1719 = vst [vmem:[%s18913_s5 + $0x238] sm:$0xff] %v1718_v47  ;;  %v1720_v48 = vld [vmem:[%s18908_s10 + $0x480] sm:$0xff]  ;;  %v1722_v49 = vld [vmem:[%s18908_s10 + $0x488] sm:$0xff] }
 0x172   : > { %v1724_v50 = vld [vmem:[%s18908_s10 + $0x4a0] sm:$0xff]  ;;  %1721 = vst [vmem:[%s18913_s5 + $0x240] sm:$0xff] %v1720_v48  ;;  %1723 = vst [vmem:[%s18913_s5 + $0x248] sm:$0xff] %v1722_v49  ;;  %v1726_v51 = vld [vmem:[%s18908_s10 + $0x4a8] sm:$0xff] }
 0x173   : > { %1725 = vst [vmem:[%s18913_s5 + $0x250] sm:$0xff] %v1724_v50  ;;  %v1728_v52 = vld [vmem:[%s18908_s10 + $0x4c0] sm:$0xff]  ;;  %v1730_v53 = vld [vmem:[%s18908_s10 + $0x4c8] sm:$0xff]  ;;  %1727 = vst [vmem:[%s18913_s5 + $0x258] sm:$0xff] %v1726_v51 }
 0x174   : > { %1729 = vst [vmem:[%s18913_s5 + $0x260] sm:$0xff] %v1728_v52  ;;  %1731 = vst [vmem:[%s18913_s5 + $0x268] sm:$0xff] %v1730_v53  ;;  %v1732_v54 = vld [vmem:[%s18908_s10 + $0x4e0] sm:$0xff]  ;;  %v1734_v55 = vld [vmem:[%s18908_s10 + $0x4e8] sm:$0xff] }
 0x175   : > { %v1736_v56 = vld [vmem:[%s18908_s10 + $0x500] sm:$0xff]  ;;  %1733 = vst [vmem:[%s18913_s5 + $0x270] sm:$0xff] %v1732_v54  ;;  %1735 = vst [vmem:[%s18913_s5 + $0x278] sm:$0xff] %v1734_v55  ;;  %v1738_v57 = vld [vmem:[%s18908_s10 + $0x508] sm:$0xff] }
 0x176   : > { %1737 = vst [vmem:[%s18913_s5 + $0x280] sm:$0xff] %v1736_v56  ;;  %v1740_v58 = vld [vmem:[%s18908_s10 + $0x520] sm:$0xff]  ;;  %v1742_v59 = vld [vmem:[%s18908_s10 + $0x528] sm:$0xff]  ;;  %1739 = vst [vmem:[%s18913_s5 + $0x288] sm:$0xff] %v1738_v57 }
 0x177   : > { %1741 = vst [vmem:[%s18913_s5 + $0x290] sm:$0xff] %v1740_v58  ;;  %1743 = vst [vmem:[%s18913_s5 + $0x298] sm:$0xff] %v1742_v59  ;;  %v1744_v60 = vld [vmem:[%s18908_s10 + $0x540] sm:$0xff]  ;;  %v1746_v61 = vld [vmem:[%s18908_s10 + $0x548] sm:$0xff] }
 0x178   : > { %v1748_v62 = vld [vmem:[%s18908_s10 + $0x560] sm:$0xff]  ;;  %1745 = vst [vmem:[%s18913_s5 + $0x2a0] sm:$0xff] %v1744_v60  ;;  %1747 = vst [vmem:[%s18913_s5 + $0x2a8] sm:$0xff] %v1746_v61  ;;  %v1750_v63 = vld [vmem:[%s18908_s10 + $0x568] sm:$0xff] }
 0x179   : > { %1749 = vst [vmem:[%s18913_s5 + $0x2b0] sm:$0xff] %v1748_v62  ;;  %v1752_v0 = vld [vmem:[%s18908_s10 + $0x580] sm:$0xff]  ;;  %v1754_v1 = vld [vmem:[%s18908_s10 + $0x588] sm:$0xff]  ;;  %1751 = vst [vmem:[%s18913_s5 + $0x2b8] sm:$0xff] %v1750_v63 }
 0x17a   : > { %1753 = vst [vmem:[%s18913_s5 + $0x2c0] sm:$0xff] %v1752_v0  ;;  %1755 = vst [vmem:[%s18913_s5 + $0x2c8] sm:$0xff] %v1754_v1  ;;  %v1756_v2 = vld [vmem:[%s18908_s10 + $0x5a0] sm:$0xff]  ;;  %v1758_v3 = vld [vmem:[%s18908_s10 + $0x5a8] sm:$0xff] }
 0x17b   : > { %v1760_v4 = vld [vmem:[%s18908_s10 + $0x5c0] sm:$0xff]  ;;  %1757 = vst [vmem:[%s18913_s5 + $0x2d0] sm:$0xff] %v1756_v2  ;;  %1759 = vst [vmem:[%s18913_s5 + $0x2d8] sm:$0xff] %v1758_v3  ;;  %v1762_v5 = vld [vmem:[%s18908_s10 + $0x5c8] sm:$0xff] }
 0x17c   : > { %1761 = vst [vmem:[%s18913_s5 + $0x2e0] sm:$0xff] %v1760_v4  ;;  %v1764_v6 = vld [vmem:[%s18908_s10 + $0x5e0] sm:$0xff]  ;;  %v1766_v7 = vld [vmem:[%s18908_s10 + $0x5e8] sm:$0xff]  ;;  %1763 = vst [vmem:[%s18913_s5 + $0x2e8] sm:$0xff] %v1762_v5 }
 0x17d   : > { %1765 = vst [vmem:[%s18913_s5 + $0x2f0] sm:$0xff] %v1764_v6  ;;  %1767 = vst [vmem:[%s18913_s5 + $0x2f8] sm:$0xff] %v1766_v7  ;;  %v1768_v8 = vld [vmem:[%s18908_s10 + $0x600] sm:$0xff]  ;;  %v1770_v9 = vld [vmem:[%s18908_s10 + $0x608] sm:$0xff] }
 0x17e   : > { %v1772_v10 = vld [vmem:[%s18908_s10 + $0x620] sm:$0xff]  ;;  %1769 = vst [vmem:[%s18913_s5 + $0x300] sm:$0xff] %v1768_v8  ;;  %1771 = vst [vmem:[%s18913_s5 + $0x308] sm:$0xff] %v1770_v9  ;;  %v1774_v11 = vld [vmem:[%s18908_s10 + $0x628] sm:$0xff] }
 0x17f   : > { %1773 = vst [vmem:[%s18913_s5 + $0x310] sm:$0xff] %v1772_v10  ;;  %v1776_v12 = vld [vmem:[%s18908_s10 + $0x640] sm:$0xff]  ;;  %v1778_v13 = vld [vmem:[%s18908_s10 + $0x648] sm:$0xff]  ;;  %1775 = vst [vmem:[%s18913_s5 + $0x318] sm:$0xff] %v1774_v11 }
 0x180   : > { %1777 = vst [vmem:[%s18913_s5 + $0x320] sm:$0xff] %v1776_v12  ;;  %1779 = vst [vmem:[%s18913_s5 + $0x328] sm:$0xff] %v1778_v13  ;;  %v1780_v14 = vld [vmem:[%s18908_s10 + $0x660] sm:$0xff]  ;;  %v1782_v15 = vld [vmem:[%s18908_s10 + $0x668] sm:$0xff] }
 0x181   : > { %v1784_v16 = vld [vmem:[%s18908_s10 + $0x680] sm:$0xff]  ;;  %1781 = vst [vmem:[%s18913_s5 + $0x330] sm:$0xff] %v1780_v14  ;;  %1783 = vst [vmem:[%s18913_s5 + $0x338] sm:$0xff] %v1782_v15  ;;  %v1786_v17 = vld [vmem:[%s18908_s10 + $0x688] sm:$0xff] }
 0x182   : > { %1785 = vst [vmem:[%s18913_s5 + $0x340] sm:$0xff] %v1784_v16  ;;  %v1788_v18 = vld [vmem:[%s18908_s10 + $0x6a0] sm:$0xff]  ;;  %v1790_v19 = vld [vmem:[%s18908_s10 + $0x6a8] sm:$0xff]  ;;  %1787 = vst [vmem:[%s18913_s5 + $0x348] sm:$0xff] %v1786_v17 }
 0x183   : > { %1789 = vst [vmem:[%s18913_s5 + $0x350] sm:$0xff] %v1788_v18  ;;  %1791 = vst [vmem:[%s18913_s5 + $0x358] sm:$0xff] %v1790_v19  ;;  %v1792_v20 = vld [vmem:[%s18908_s10 + $0x6c0] sm:$0xff]  ;;  %v1794_v21 = vld [vmem:[%s18908_s10 + $0x6c8] sm:$0xff] }
 0x184   : > { %v1796_v22 = vld [vmem:[%s18908_s10 + $0x6e0] sm:$0xff]  ;;  %1793 = vst [vmem:[%s18913_s5 + $0x360] sm:$0xff] %v1792_v20  ;;  %1795 = vst [vmem:[%s18913_s5 + $0x368] sm:$0xff] %v1794_v21  ;;  %v1798_v23 = vld [vmem:[%s18908_s10 + $0x6e8] sm:$0xff] }
 0x185   : > { %1797 = vst [vmem:[%s18913_s5 + $0x370] sm:$0xff] %v1796_v22  ;;  %v1800_v24 = vld [vmem:[%s18908_s10 + $0x700] sm:$0xff]  ;;  %v1802_v25 = vld [vmem:[%s18908_s10 + $0x708] sm:$0xff]  ;;  %1799 = vst [vmem:[%s18913_s5 + $0x378] sm:$0xff] %v1798_v23 }
 0x186   : > { %1801 = vst [vmem:[%s18913_s5 + $0x380] sm:$0xff] %v1800_v24  ;;  %1803 = vst [vmem:[%s18913_s5 + $0x388] sm:$0xff] %v1802_v25  ;;  %v1804_v26 = vld [vmem:[%s18908_s10 + $0x720] sm:$0xff]  ;;  %v1806_v27 = vld [vmem:[%s18908_s10 + $0x728] sm:$0xff] }
 0x187   : > { %v1808_v28 = vld [vmem:[%s18908_s10 + $0x740] sm:$0xff]  ;;  %1805 = vst [vmem:[%s18913_s5 + $0x390] sm:$0xff] %v1804_v26  ;;  %1807 = vst [vmem:[%s18913_s5 + $0x398] sm:$0xff] %v1806_v27  ;;  %v1810_v29 = vld [vmem:[%s18908_s10 + $0x748] sm:$0xff] }
 0x188   : > { %1809 = vst [vmem:[%s18913_s5 + $0x3a0] sm:$0xff] %v1808_v28  ;;  %v1812_v30 = vld [vmem:[%s18908_s10 + $0x760] sm:$0xff]  ;;  %v1814_v31 = vld [vmem:[%s18908_s10 + $0x768] sm:$0xff]  ;;  %1811 = vst [vmem:[%s18913_s5 + $0x3a8] sm:$0xff] %v1810_v29 }
 0x189   : > { %1813 = vst [vmem:[%s18913_s5 + $0x3b0] sm:$0xff] %v1812_v30  ;;  %1815 = vst [vmem:[%s18913_s5 + $0x3b8] sm:$0xff] %v1814_v31  ;;  %v1816_v32 = vld [vmem:[%s18908_s10 + $0x780] sm:$0xff]  ;;  %v1818_v33 = vld [vmem:[%s18908_s10 + $0x788] sm:$0xff] }
 0x18a   : > { %v1820_v34 = vld [vmem:[%s18908_s10 + $0x7a0] sm:$0xff]  ;;  %1817 = vst [vmem:[%s18913_s5 + $0x3c0] sm:$0xff] %v1816_v32  ;;  %1819 = vst [vmem:[%s18913_s5 + $0x3c8] sm:$0xff] %v1818_v33  ;;  %v1822_v35 = vld [vmem:[%s18908_s10 + $0x7a8] sm:$0xff] }
 0x18b   : > { %1821 = vst [vmem:[%s18913_s5 + $0x3d0] sm:$0xff] %v1820_v34  ;;  %v1824_v36 = vld [vmem:[%s18908_s10 + $0x7c0] sm:$0xff]  ;;  %v1826_v37 = vld [vmem:[%s18908_s10 + $0x7c8] sm:$0xff]  ;;  %1823 = vst [vmem:[%s18913_s5 + $0x3d8] sm:$0xff] %v1822_v35 }
 0x18c   : > { %1825 = vst [vmem:[%s18913_s5 + $0x3e0] sm:$0xff] %v1824_v36  ;;  %1827 = vst [vmem:[%s18913_s5 + $0x3e8] sm:$0xff] %v1826_v37  ;;  %v1828_v38 = vld [vmem:[%s18908_s10 + $0x7e0] sm:$0xff]  ;;  %v1830_v39 = vld [vmem:[%s18908_s10 + $0x7e8] sm:$0xff] }
 0x18d   : > { %1829 = vst [vmem:[%s18913_s5 + $0x3f0] sm:$0xff] %v1828_v38  ;;  %1831 = vst [vmem:[%s18913_s5 + $0x3f8] sm:$0xff] %v1830_v39 }
 0x18e PF: > { %p13867_p10 = scmp.ge.s32.totalorder %s17619_s29, 1  ;;  %p1858_p11 = scmp.lt.s32.totalorder %s17619_s29, 5 }
 0x190   : > { %p1859_p12 = pnand %p13867_p10, %p1858_p11 }
 0x191   : > { %s1865_s14 = sand.u32 (!%p1859_p12), 1, %s17595_s23   ;;  %s1872_s18 = sand.u32 (!%p1859_p12), 1, %s17587_s21  }
 0x192   : > { %1862 = sbr.rel (%p1859_p12) target bundleno = 2955 (0xb8b), region = 98  ;;  %s13868_s30 = sshll.u32 (!%p1859_p12), %s1872_s18, 10 }
 0x193   : > { %s15286_s11 = smul.u32 (!%p1859_p12), 4416, %s1865_s14  ;;  %s1944_s15 = ssub.s32 (!%p1859_p12), 1, %s17607_s26 }
 0x194   : > { %s1945_s9 = smul.u32 (!%p1859_p12), %s17603_s25, %s1944_s15  ;;  %p1987_p13 = scmp.eq.s32.totalorder (!%p1859_p12), %s17607_s26, 0 }
 0x195   : > { %s1970_s27 = smul.u32 (!%p1859_p12), %s17603_s25, %s17607_s26  ;;  %p1988_p0 = scmp.eq.s32.totalorder (!%p1859_p12), %s17603_s25, 0 }
 0x196   : > { %s1946_s17 = sadd.s32 (!%p1859_p12), %s17607_s26, %s1945_s9  ;;  %s21809_s3 = sld [smem:[#allocation19_spill]] (!%p1859_p12) }
 0x197   : > { %s13869_s19 = sshll.u32 %s1946_s17, 2  ;;  %s13870_s20 = sshll.u32 %s1946_s17, 6 }
 0x198   : > { %p1948_p1 = scmp.lt.s32.totalorder %s13869_s19, 7  ;;  %p1959_p2 = scmp.lt.s32.totalorder %s13870_s20, 127 }
 0x199   : > { %s13873_s12 = sshll.u32 %s1970_s27, 2  ;;  %s13874_s10 = sshll.u32 %s1970_s27, 6 }
 0x19a   : > { %s21836_s19 = smov (!%p1948_p1, %s13869_s19), 7  ;;  %s21838_s20 = smov (!%p1959_p2, %s13870_s20), 127 }
 0x19b   : > { %p1972_p3 = scmp.lt.s32.totalorder %s13873_s12, 7  ;;  %s15284_s14 = sshll.u32 %s21838_s20, 4 }
 0x19c   : > { %s19182_s5 = scalar_lea.vmem %s21809_s3, %s21836_s19  ;;  %p1979_p4 = scmp.lt.s32.totalorder %s13874_s10, 127 }
 0x19d   : > { %s21810_s4 = sld [smem:[#allocation20_spill]]  ;;  %p1989_p5 = pnand %p1988_p0, %p1987_p13 }
 0x19e   : > { %s21840_s12 = smov (!%p1972_p3, %s13873_s12), 7  ;;  %s21842_s10 = smov (!%p1979_p4, %s13874_s10), 127 }
 0x19f   : > { %s1974_s19 = scalar_lea.vmem %s21783_s7, %s21840_s12  ;;  %s15287_s23 = smul.u32 72, %s21842_s10 }
 0x1a0   : > { %s19204_s18 = scalar_lea.vmem [#allocation6], %s15286_s11  ;;  %1992 = sbr.rel (%p1989_p5) target bundleno = 760 (0x2f8), region = 110 }
 0x1a1   : > { %s19202_s2 = scalar_lea.vmem %s21784_s8, %s15287_s23 }
 0x1a3   : > { %s19187_s9 = scalar_lea.vmem %s21810_s4, %s15284_s14  ;;  %s19206_s14 = scalar_lea.vmem [#allocation7], %s13868_s30 }
 0x1a5   : > { %v2211_v40 = vld [vmem:[%s21776_s0 + $0x6c8] sm:$0xff]  ;;  %v2213_v41 = vld [vmem:[%s21776_s0 + $0x6d8] sm:$0xff]  ;;  %v2210_v42 = vld [vmem:[%s21776_s0 + $0x6c0] sm:$0xff]  ;;  %v17621_v46 = vmov 0.0   ;;  %vm2228_vm0 = vcmask 850944   ;;  %vm2974_vm1 = vcmask 1041408  }
 0x1a6   : > { %2238 = vmatprep.subr.mxu0 %v2211_v40  ;;  %2309 = vmatprep.subr.mxu1 %v2213_v41  ;;  %v2212_v43 = vld [vmem:[%s21776_s0 + $0x6d0] sm:$0xff]  ;;  %v2193_v44 = vld [vmem:[%s21776_s0 + $0x638] sm:$0xff]  ;;  %v2195_v45 = vld [vmem:[%s21776_s0 + $0x648] sm:$0xff]  ;;  %2983 = vst [vmem:[#allocation3] sm:$0xff] %v17621_v46  ;;  %vm2975_vm2 = vcmask 257026  }
 0x1a7   : > { %2984 = vst [vmem:[#allocation5] sm:$0xff] %v17621_v46  ;;  %2985 = vst [vmem:[#allocation5 + $0x8] sm:$0xff] %v17621_v46  ;;  %2239 = vmatpush1.msra.mxu0 %v2210_v42  ;;  %2310 = vmatpush1.msra.mxu1 %v2212_v43  ;;  %v2192_v47 = vld [vmem:[%s21776_s0 + $0x630] sm:$0xff]  ;;  %v2194_v48 = vld [vmem:[%s21776_s0 + $0x640] sm:$0xff] }
 0x1a8   : > { %2986 = vst [vmem:[#allocation5 + $0x10] sm:$0xff] %v17621_v46  ;;  %2987 = vst [vmem:[#allocation5 + $0x18] sm:$0xff] %v17621_v46  ;;  %v2175_v49 = vld [vmem:[%s21776_s0 + $0x5a8] sm:$0xff]  ;;  %2240 = vmatprep.subr.mxu0 %v2193_v44  ;;  %2311 = vmatprep.subr.mxu1 %v2195_v45  ;;  %v2177_v50 = vld [vmem:[%s21776_s0 + $0x5b8] sm:$0xff] }
 0x1a9   : > { %v2174_v51 = vld [vmem:[%s21776_s0 + $0x5a0] sm:$0xff]  ;;  %v2176_v52 = vld [vmem:[%s21776_s0 + $0x5b0] sm:$0xff]  ;;  %2241 = vmatpush1.msra.mxu0 %v2192_v47  ;;  %2312 = vmatpush1.msra.mxu1 %v2194_v48  ;;  %v2157_v53 = vld [vmem:[%s21776_s0 + $0x518] sm:$0xff] }
 0x1aa   : > { %v2159_v54 = vld [vmem:[%s21776_s0 + $0x528] sm:$0xff]  ;;  %2242 = vmatprep.subr.mxu0 %v2175_v49  ;;  %2313 = vmatprep.subr.mxu1 %v2177_v50  ;;  %v2156_v55 = vld [vmem:[%s21776_s0 + $0x510] sm:$0xff]  ;;  %v2158_v56 = vld [vmem:[%s21776_s0 + $0x520] sm:$0xff] }
 0x1ab   : > { %2243 = vmatpush1.msra.mxu0 %v2174_v51  ;;  %2314 = vmatpush1.msra.mxu1 %v2176_v52  ;;  %v2139_v57 = vld [vmem:[%s21776_s0 + $0x488] sm:$0xff]  ;;  %v2141_v58 = vld [vmem:[%s21776_s0 + $0x498] sm:$0xff]  ;;  %v2138_v59 = vld [vmem:[%s21776_s0 + $0x480] sm:$0xff] }
 0x1ac   : > { %2244 = vmatprep.subr.mxu0 %v2157_v53  ;;  %2315 = vmatprep.subr.mxu1 %v2159_v54  ;;  %v2140_v60 = vld [vmem:[%s21776_s0 + $0x490] sm:$0xff]  ;;  %v2121_v61 = vld [vmem:[%s21776_s0 + $0x3f8] sm:$0xff]  ;;  %v2123_v62 = vld [vmem:[%s21776_s0 + $0x408] sm:$0xff] }
 0x1ad   : > { %2245 = vmatpush1.msra.mxu0 %v2156_v55  ;;  %2316 = vmatpush1.msra.mxu1 %v2158_v56  ;;  %v2120_v63 = vld [vmem:[%s21776_s0 + $0x3f0] sm:$0xff]  ;;  %v2122_v0 = vld [vmem:[%s21776_s0 + $0x400] sm:$0xff]  ;;  %v2103_v1 = vld [vmem:[%s21776_s0 + $0x368] sm:$0xff] }
 0x1ae   : > { %2246 = vmatprep.subr.mxu0 %v2139_v57  ;;  %2317 = vmatprep.subr.mxu1 %v2141_v58  ;;  %v2105_v2 = vld [vmem:[%s21776_s0 + $0x378] sm:$0xff]  ;;  %v2102_v3 = vld [vmem:[%s21776_s0 + $0x360] sm:$0xff]  ;;  %v2104_v4 = vld [vmem:[%s21776_s0 + $0x370] sm:$0xff] }
 0x1af   : > { %2247 = vmatpush1.msra.mxu0 %v2138_v59  ;;  %2318 = vmatpush1.msra.mxu1 %v2140_v60  ;;  %v2085_v5 = vld [vmem:[%s21776_s0 + $0x2d8] sm:$0xff]  ;;  %v2087_v6 = vld [vmem:[%s21776_s0 + $0x2e8] sm:$0xff]  ;;  %v2084_v7 = vld [vmem:[%s21776_s0 + $0x2d0] sm:$0xff] }
 0x1b0   : > { %2248 = vmatprep.subr.mxu0 %v2121_v61  ;;  %2319 = vmatprep.subr.mxu1 %v2123_v62  ;;  %v2086_v8 = vld [vmem:[%s21776_s0 + $0x2e0] sm:$0xff]  ;;  %v2067_v9 = vld [vmem:[%s21776_s0 + $0x248] sm:$0xff]  ;;  %v2069_v10 = vld [vmem:[%s21776_s0 + $0x258] sm:$0xff] }
 0x1b1   : > { %2249 = vmatpush1.msra.mxu0 %v2120_v63  ;;  %2320 = vmatpush1.msra.mxu1 %v2122_v0  ;;  %v2066_v11 = vld [vmem:[%s21776_s0 + $0x240] sm:$0xff]  ;;  %v2068_v12 = vld [vmem:[%s21776_s0 + $0x250] sm:$0xff]  ;;  %v2049_v13 = vld [vmem:[%s21776_s0 + $0x1b8] sm:$0xff] }
 0x1b2   : > { %2250 = vmatprep.subr.mxu0 %v2103_v1  ;;  %2321 = vmatprep.subr.mxu1 %v2105_v2  ;;  %v2051_v14 = vld [vmem:[%s21776_s0 + $0x1c8] sm:$0xff]  ;;  %v2048_v15 = vld [vmem:[%s21776_s0 + $0x1b0] sm:$0xff]  ;;  %v2050_v16 = vld [vmem:[%s21776_s0 + $0x1c0] sm:$0xff] }
 0x1b3   : > { %2251 = vmatpush1.msra.mxu0 %v2102_v3  ;;  %2322 = vmatpush1.msra.mxu1 %v2104_v4  ;;  %v2031_v17 = vld [vmem:[%s21776_s0 + $0x128] sm:$0xff]  ;;  %v2033_v18 = vld [vmem:[%s21776_s0 + $0x138] sm:$0xff]  ;;  %v2030_v19 = vld [vmem:[%s21776_s0 + $0x120] sm:$0xff] }
 0x1b4   : > { %2252 = vmatprep.subr.mxu0 %v2085_v5  ;;  %2323 = vmatprep.subr.mxu1 %v2087_v6  ;;  %v2032_v20 = vld [vmem:[%s21776_s0 + $0x130] sm:$0xff]  ;;  %v2013_v21 = vld [vmem:[%s21776_s0 + $0x98] sm:$0xff]  ;;  %v2015_v22 = vld [vmem:[%s21776_s0 + $0xa8] sm:$0xff] }
 0x1b5   : > { %2253 = vmatpush1.msra.mxu0 %v2084_v7  ;;  %2324 = vmatpush1.msra.mxu1 %v2086_v8  ;;  %v2012_v23 = vld [vmem:[%s21776_s0 + $0x90] sm:$0xff]  ;;  %v2014_v24 = vld [vmem:[%s21776_s0 + $0xa0] sm:$0xff]  ;;  %v1995_v25 = vld [vmem:[%s21776_s0 + $0x8] sm:$0xff] }
 0x1b6   : > { %2254 = vmatprep.subr.mxu0 %v2067_v9  ;;  %2325 = vmatprep.subr.mxu1 %v2069_v10  ;;  %v1997_v26 = vld [vmem:[%s21776_s0 + $0x18] sm:$0xff]  ;;  %v1994_v27 = vld [vmem:[%s21776_s0] sm:$0xff]  ;;  %v1996_v28 = vld [vmem:[%s21776_s0 + $0x10] sm:$0xff] }
 0x1b7   : > { %2255 = vmatpush1.msra.mxu0 %v2066_v11  ;;  %2326 = vmatpush1.msra.mxu1 %v2068_v12  ;;  %v19372_v29 = vld [vmem:[%s21777_s1] sm:$0x3]  ;;  %v2215_v30 = vld [vmem:[%s21776_s0 + $0x6e8] sm:$0xff]  ;;  %v2217_v31 = vld [vmem:[%s21776_s0 + $0x6f8] sm:$0xff] }
 0x1b8   : > { %2256 = vmatprep.subr.mxu0 %v2049_v13  ;;  %2327 = vmatprep.subr.mxu1 %v2051_v14  ;;  %v2214_v32 = vld [vmem:[%s21776_s0 + $0x6e0] sm:$0xff]  ;;  %v2216_v33 = vld [vmem:[%s21776_s0 + $0x6f0] sm:$0xff]  ;;  %v2197_v34 = vld [vmem:[%s21776_s0 + $0x658] sm:$0xff] }
 0x1b9   : > { %2257 = vmatpush1.msra.mxu0 %v2048_v15  ;;  %2328 = vmatpush1.msra.mxu1 %v2050_v16  ;;  %v2199_v35 = vld [vmem:[%s21776_s0 + $0x668] sm:$0xff]  ;;  %v2196_v36 = vld [vmem:[%s21776_s0 + $0x650] sm:$0xff]  ;;  %v2198_v37 = vld [vmem:[%s21776_s0 + $0x660] sm:$0xff] }
 0x1ba   : > { %2258 = vmatprep.subr.mxu0 %v2031_v17  ;;  %2329 = vmatprep.subr.mxu1 %v2033_v18  ;;  %v2179_v38 = vld [vmem:[%s21776_s0 + $0x5c8] sm:$0xff]  ;;  %v2181_v39 = vld [vmem:[%s21776_s0 + $0x5d8] sm:$0xff]  ;;  %v2178_v40 = vld [vmem:[%s21776_s0 + $0x5c0] sm:$0xff] }
 0x1bb   : > { %2259 = vmatpush1.msra.mxu0 %v2030_v19  ;;  %2330 = vmatpush1.msra.mxu1 %v2032_v20  ;;  %v2180_v41 = vld [vmem:[%s21776_s0 + $0x5d0] sm:$0xff]  ;;  %v2161_v42 = vld [vmem:[%s21776_s0 + $0x538] sm:$0xff]  ;;  %v2163_v43 = vld [vmem:[%s21776_s0 + $0x548] sm:$0xff] }
 0x1bc   : > { %2260 = vmatprep.subr.mxu0 %v2013_v21  ;;  %2331 = vmatprep.subr.mxu1 %v2015_v22  ;;  %v2160_v44 = vld [vmem:[%s21776_s0 + $0x530] sm:$0xff]  ;;  %v2162_v45 = vld [vmem:[%s21776_s0 + $0x540] sm:$0xff]  ;;  %v2143_v47 = vld [vmem:[%s21776_s0 + $0x4a8] sm:$0xff] }
 0x1bd   : > { %2261 = vmatpush1.msra.mxu0 %v2012_v23  ;;  %2332 = vmatpush1.msra.mxu1 %v2014_v24  ;;  %v2145_v48 = vld [vmem:[%s21776_s0 + $0x4b8] sm:$0xff]  ;;  %v2142_v49 = vld [vmem:[%s21776_s0 + $0x4a0] sm:$0xff]  ;;  %v2144_v50 = vld [vmem:[%s21776_s0 + $0x4b0] sm:$0xff] }
 0x1be   : > { %2262 = vmatprep.subr.mxu0 %v1995_v25  ;;  %2333 = vmatprep.subr.mxu1 %v1997_v26  ;;  %v2125_v51 = vld [vmem:[%s21776_s0 + $0x418] sm:$0xff]  ;;  %v2127_v52 = vld [vmem:[%s21776_s0 + $0x428] sm:$0xff]  ;;  %v2124_v53 = vld [vmem:[%s21776_s0 + $0x410] sm:$0xff] }
 0x1bf   : > { %2263 = vmatpush1.msra.mxu0 %v1994_v27  ;;  %2296 = vmatprep.mubr.f32.mxu0 %v17621_v46  ;;  %v2126_v54 = vld [vmem:[%s21776_s0 + $0x420] sm:$0xff]  ;;  %v2107_v55 = vld [vmem:[%s21776_s0 + $0x388] sm:$0xff]  ;;  %v2109_v56 = vld [vmem:[%s21776_s0 + $0x398] sm:$0xff] }
 0x1c0   : > { %2334 = vmatpush1.msra.mxu1 %v1996_v28  ;;  %2367 = vmatprep.mubr.f32.mxu1 %v17621_v46  ;;  %v2106_v57 = vld [vmem:[%s21776_s0 + $0x380] sm:$0xff]  ;;  %v2108_v58 = vld [vmem:[%s21776_s0 + $0x390] sm:$0xff]  ;;  %v2089_v59 = vld [vmem:[%s21776_s0 + $0x2f8] sm:$0xff] }
 0x1c1   : > { %13876 = vmatmul.mubr.msk.f32.vlgmr.msra.gmra.mxu0 %vm2228_vm0, %v19372_v29  ;;  %13877 = vmatmul.mubr.msk.f32.vlgmr.msra.gmra.mxu1 %vm2228_vm0, %v19372_v29  ;;  %v2091_v60 = vld [vmem:[%s21776_s0 + $0x308] sm:$0xff]  ;;  %v2088_v61 = vld [vmem:[%s21776_s0 + $0x2f0] sm:$0xff]  ;;  %v2090_v62 = vld [vmem:[%s21776_s0 + $0x300] sm:$0xff] }
 0x1c2   : > { %2380 = vmatprep.subr.mxu0 %v2215_v30  ;;  %2451 = vmatprep.subr.mxu1 %v2217_v31  ;;  %v2071_v63 = vld [vmem:[%s21776_s0 + $0x268] sm:$0xff]  ;;  %v2073_v0 = vld [vmem:[%s21776_s0 + $0x278] sm:$0xff]  ;;  %v2070_v1 = vld [vmem:[%s21776_s0 + $0x260] sm:$0xff] }
 0x1c3   : > { %2381 = vmatpush1.msra.mxu0 %v2214_v32  ;;  %2452 = vmatpush1.msra.mxu1 %v2216_v33  ;;  %v2072_v2 = vld [vmem:[%s21776_s0 + $0x270] sm:$0xff]  ;;  %v2053_v3 = vld [vmem:[%s21776_s0 + $0x1d8] sm:$0xff]  ;;  %v2055_v4 = vld [vmem:[%s21776_s0 + $0x1e8] sm:$0xff] }
 0x1c4   : > { %2382 = vmatprep.subr.mxu0 %v2197_v34  ;;  %2453 = vmatprep.subr.mxu1 %v2199_v35  ;;  %v2052_v5 = vld [vmem:[%s21776_s0 + $0x1d0] sm:$0xff]  ;;  %v2054_v6 = vld [vmem:[%s21776_s0 + $0x1e0] sm:$0xff]  ;;  %v2035_v7 = vld [vmem:[%s21776_s0 + $0x148] sm:$0xff] }
 0x1c5   : > { %2383 = vmatpush1.msra.mxu0 %v2196_v36  ;;  %2454 = vmatpush1.msra.mxu1 %v2198_v37  ;;  %v2037_v8 = vld [vmem:[%s21776_s0 + $0x158] sm:$0xff]  ;;  %v2034_v9 = vld [vmem:[%s21776_s0 + $0x140] sm:$0xff]  ;;  %v2036_v10 = vld [vmem:[%s21776_s0 + $0x150] sm:$0xff] }
 0x1c6   : > { %2384 = vmatprep.subr.mxu0 %v2179_v38  ;;  %2455 = vmatprep.subr.mxu1 %v2181_v39  ;;  %v2017_v11 = vld [vmem:[%s21776_s0 + $0xb8] sm:$0xff]  ;;  %v2019_v12 = vld [vmem:[%s21776_s0 + $0xc8] sm:$0xff]  ;;  %v2016_v13 = vld [vmem:[%s21776_s0 + $0xb0] sm:$0xff] }
 0x1c7   : > { %2385 = vmatpush1.msra.mxu0 %v2178_v40  ;;  %2456 = vmatpush1.msra.mxu1 %v2180_v41  ;;  %v2018_v14 = vld [vmem:[%s21776_s0 + $0xc0] sm:$0xff]  ;;  %v1999_v15 = vld [vmem:[%s21776_s0 + $0x28] sm:$0xff]  ;;  %v2001_v16 = vld [vmem:[%s21776_s0 + $0x38] sm:$0xff] }
 0x1c8   : > { %2386 = vmatprep.subr.mxu0 %v2161_v42  ;;  %2457 = vmatprep.subr.mxu1 %v2163_v43  ;;  %v1998_v17 = vld [vmem:[%s21776_s0 + $0x20] sm:$0xff]  ;;  %v2000_v18 = vld [vmem:[%s21776_s0 + $0x30] sm:$0xff]  ;;  %v2219_v19 = vld [vmem:[%s21776_s0 + $0x708] sm:$0xff] }
 0x1c9   : > { %2387 = vmatpush1.msra.mxu0 %v2160_v44  ;;  %2458 = vmatpush1.msra.mxu1 %v2162_v45  ;;  %v2221_v20 = vld [vmem:[%s21776_s0 + $0x718] sm:$0xff]  ;;  %v2218_v21 = vld [vmem:[%s21776_s0 + $0x700] sm:$0xff]  ;;  %v2220_v22 = vld [vmem:[%s21776_s0 + $0x710] sm:$0xff] }
 0x1ca   : > { %2388 = vmatprep.subr.mxu0 %v2143_v47  ;;  %2459 = vmatprep.subr.mxu1 %v2145_v48  ;;  %v2201_v23 = vld [vmem:[%s21776_s0 + $0x678] sm:$0xff]  ;;  %v2203_v24 = vld [vmem:[%s21776_s0 + $0x688] sm:$0xff]  ;;  %v2200_v25 = vld [vmem:[%s21776_s0 + $0x670] sm:$0xff] }
 0x1cb   : > { %2389 = vmatpush1.msra.mxu0 %v2142_v49  ;;  %2460 = vmatpush1.msra.mxu1 %v2144_v50  ;;  %v2202_v26 = vld [vmem:[%s21776_s0 + $0x680] sm:$0xff]  ;;  %v2183_v27 = vld [vmem:[%s21776_s0 + $0x5e8] sm:$0xff]  ;;  %v2185_v28 = vld [vmem:[%s21776_s0 + $0x5f8] sm:$0xff] }
 0x1cc   : > { %2390 = vmatprep.subr.mxu0 %v2125_v51  ;;  %2461 = vmatprep.subr.mxu1 %v2127_v52  ;;  %v2182_v30 = vld [vmem:[%s21776_s0 + $0x5e0] sm:$0xff]  ;;  %v2184_v31 = vld [vmem:[%s21776_s0 + $0x5f0] sm:$0xff]  ;;  %v2165_v32 = vld [vmem:[%s21776_s0 + $0x558] sm:$0xff] }
 0x1cd   : > { %2391 = vmatpush1.msra.mxu0 %v2124_v53  ;;  %2462 = vmatpush1.msra.mxu1 %v2126_v54  ;;  %v2167_v33 = vld [vmem:[%s21776_s0 + $0x568] sm:$0xff]  ;;  %v2164_v34 = vld [vmem:[%s21776_s0 + $0x550] sm:$0xff]  ;;  %v2166_v35 = vld [vmem:[%s21776_s0 + $0x560] sm:$0xff] }
 0x1ce   : > { %2392 = vmatprep.subr.mxu0 %v2107_v55  ;;  %2463 = vmatprep.subr.mxu1 %v2109_v56  ;;  %v2147_v36 = vld [vmem:[%s21776_s0 + $0x4c8] sm:$0xff]  ;;  %v2149_v37 = vld [vmem:[%s21776_s0 + $0x4d8] sm:$0xff]  ;;  %v2146_v38 = vld [vmem:[%s21776_s0 + $0x4c0] sm:$0xff] }
 0x1cf   : > { %2393 = vmatpush1.msra.mxu0 %v2106_v57  ;;  %2464 = vmatpush1.msra.mxu1 %v2108_v58  ;;  %v2148_v39 = vld [vmem:[%s21776_s0 + $0x4d0] sm:$0xff]  ;;  %v2129_v40 = vld [vmem:[%s21776_s0 + $0x438] sm:$0xff]  ;;  %v2131_v41 = vld [vmem:[%s21776_s0 + $0x448] sm:$0xff] }
 0x1d0   : > { %2394 = vmatprep.subr.mxu0 %v2089_v59  ;;  %2465 = vmatprep.subr.mxu1 %v2091_v60  ;;  %v2128_v42 = vld [vmem:[%s21776_s0 + $0x430] sm:$0xff]  ;;  %v2130_v43 = vld [vmem:[%s21776_s0 + $0x440] sm:$0xff]  ;;  %v2111_v44 = vld [vmem:[%s21776_s0 + $0x3a8] sm:$0xff] }
 0x1d1   : > { %2395 = vmatpush1.msra.mxu0 %v2088_v61  ;;  %2466 = vmatpush1.msra.mxu1 %v2090_v62  ;;  %v2113_v45 = vld [vmem:[%s21776_s0 + $0x3b8] sm:$0xff]  ;;  %v2110_v47 = vld [vmem:[%s21776_s0 + $0x3a0] sm:$0xff]  ;;  %v2112_v48 = vld [vmem:[%s21776_s0 + $0x3b0] sm:$0xff] }
 0x1d2   : > { %2396 = vmatprep.subr.mxu0 %v2071_v63  ;;  %2467 = vmatprep.subr.mxu1 %v2073_v0  ;;  %v2093_v49 = vld [vmem:[%s21776_s0 + $0x318] sm:$0xff]  ;;  %v2095_v50 = vld [vmem:[%s21776_s0 + $0x328] sm:$0xff]  ;;  %v2092_v51 = vld [vmem:[%s21776_s0 + $0x310] sm:$0xff] }
 0x1d3   : > { %2397 = vmatpush1.msra.mxu0 %v2070_v1  ;;  %2468 = vmatpush1.msra.mxu1 %v2072_v2  ;;  %v2094_v52 = vld [vmem:[%s21776_s0 + $0x320] sm:$0xff]  ;;  %v2075_v53 = vld [vmem:[%s21776_s0 + $0x288] sm:$0xff]  ;;  %v2077_v54 = vld [vmem:[%s21776_s0 + $0x298] sm:$0xff] }
 0x1d4   : > { %2398 = vmatprep.subr.mxu0 %v2053_v3  ;;  %2469 = vmatprep.subr.mxu1 %v2055_v4  ;;  %v2074_v55 = vld [vmem:[%s21776_s0 + $0x280] sm:$0xff]  ;;  %v2076_v56 = vld [vmem:[%s21776_s0 + $0x290] sm:$0xff]  ;;  %v2057_v57 = vld [vmem:[%s21776_s0 + $0x1f8] sm:$0xff] }
 0x1d5   : > { %2399 = vmatpush1.msra.mxu0 %v2052_v5  ;;  %2470 = vmatpush1.msra.mxu1 %v2054_v6  ;;  %v2059_v58 = vld [vmem:[%s21776_s0 + $0x208] sm:$0xff]  ;;  %v2056_v59 = vld [vmem:[%s21776_s0 + $0x1f0] sm:$0xff]  ;;  %v2058_v60 = vld [vmem:[%s21776_s0 + $0x200] sm:$0xff] }
 0x1d6   : > { %2400 = vmatprep.subr.mxu0 %v2035_v7  ;;  %2471 = vmatprep.subr.mxu1 %v2037_v8  ;;  %v2039_v61 = vld [vmem:[%s21776_s0 + $0x168] sm:$0xff]  ;;  %v2041_v62 = vld [vmem:[%s21776_s0 + $0x178] sm:$0xff]  ;;  %v2038_v63 = vld [vmem:[%s21776_s0 + $0x160] sm:$0xff] }
 0x1d7   : > { %2401 = vmatpush1.msra.mxu0 %v2034_v9  ;;  %2472 = vmatpush1.msra.mxu1 %v2036_v10  ;;  %v2040_v0 = vld [vmem:[%s21776_s0 + $0x170] sm:$0xff]  ;;  %v2021_v1 = vld [vmem:[%s21776_s0 + $0xd8] sm:$0xff]  ;;  %v2023_v2 = vld [vmem:[%s21776_s0 + $0xe8] sm:$0xff] }
 0x1d8   : > { %2402 = vmatprep.subr.mxu0 %v2017_v11  ;;  %2473 = vmatprep.subr.mxu1 %v2019_v12  ;;  %v2020_v3 = vld [vmem:[%s21776_s0 + $0xd0] sm:$0xff]  ;;  %v2022_v4 = vld [vmem:[%s21776_s0 + $0xe0] sm:$0xff]  ;;  %v2003_v5 = vld [vmem:[%s21776_s0 + $0x48] sm:$0xff] }
 0x1d9   : > { %2403 = vmatpush1.msra.mxu0 %v2016_v13  ;;  %2474 = vmatpush1.msra.mxu1 %v2018_v14  ;;  %v2005_v6 = vld [vmem:[%s21776_s0 + $0x58] sm:$0xff]  ;;  %v2002_v7 = vld [vmem:[%s21776_s0 + $0x40] sm:$0xff]  ;;  %v2004_v8 = vld [vmem:[%s21776_s0 + $0x50] sm:$0xff] }
 0x1da   : > { %2404 = vmatprep.subr.mxu0 %v1999_v15  ;;  %2475 = vmatprep.subr.mxu1 %v2001_v16  ;;  %v2223_v9 = vld [vmem:[%s21776_s0 + $0x728] sm:$0xff]  ;;  %v2225_v10 = vld [vmem:[%s21776_s0 + $0x738] sm:$0xff]  ;;  %v2222_v11 = vld [vmem:[%s21776_s0 + $0x720] sm:$0xff] }
 0x1db   : > { %2405 = vmatpush1.msra.mxu0 %v1998_v17  ;;  %2438 = vmatprep.mubr.f32.mxu0 %v17621_v46  ;;  %v2224_v12 = vld [vmem:[%s21776_s0 + $0x730] sm:$0xff]  ;;  %v2205_v13 = vld [vmem:[%s21776_s0 + $0x698] sm:$0xff]  ;;  %v2207_v14 = vld [vmem:[%s21776_s0 + $0x6a8] sm:$0xff] }
 0x1dc   : > { %2476 = vmatpush1.msra.mxu1 %v2000_v18  ;;  %2509 = vmatprep.mubr.f32.mxu1 %v17621_v46  ;;  %v2204_v15 = vld [vmem:[%s21776_s0 + $0x690] sm:$0xff]  ;;  %v2206_v16 = vld [vmem:[%s21776_s0 + $0x6a0] sm:$0xff]  ;;  %v2187_v17 = vld [vmem:[%s21776_s0 + $0x608] sm:$0xff] }
 0x1dd   : > { %13878 = vmatmul.mubr.msk.f32.vlgmr.msra.gmra.mxu0 %vm2228_vm0, %v19372_v29  ;;  %13879 = vmatmul.mubr.msk.f32.vlgmr.msra.gmra.mxu1 %vm2228_vm0, %v19372_v29  ;;  %v2189_v18 = vld [vmem:[%s21776_s0 + $0x618] sm:$0xff]  ;;  %vm19947_vm3 = vmor %vm2975_vm2, %vm2974_vm1 }
 0x1de   : > { %2522 = vmatprep.subr.mxu0 %v2219_v19  ;;  %2593 = vmatprep.subr.mxu1 %v2221_v20  ;;  %v2186_v19 = vld [vmem:[%s21776_s0 + $0x600] sm:$0xff]  ;;  %v2188_v20 = vld [vmem:[%s21776_s0 + $0x610] sm:$0xff]  ;;  %2988 = vst.msk [vmem:[#allocation5 + $0x20] sm:$0xf] %vm19947_vm3, %v17621_v46 }
 0x1df   : > { %2523 = vmatpush1.msra.mxu0 %v2218_v21  ;;  %2594 = vmatpush1.msra.mxu1 %v2220_v22  ;;  %v2169_v21 = vld [vmem:[%s21776_s0 + $0x578] sm:$0xff]  ;;  %v2171_v22 = vld [vmem:[%s21776_s0 + $0x588] sm:$0xff] }
 0x1e0   : > { %2524 = vmatprep.subr.mxu0 %v2201_v23  ;;  %2595 = vmatprep.subr.mxu1 %v2203_v24  ;;  %v2168_v23 = vld [vmem:[%s21776_s0 + $0x570] sm:$0xff]  ;;  %v2170_v24 = vld [vmem:[%s21776_s0 + $0x580] sm:$0xff] }
 0x1e1   : > { %2525 = vmatpush1.msra.mxu0 %v2200_v25  ;;  %2596 = vmatpush1.msra.mxu1 %v2202_v26  ;;  %v2151_v25 = vld [vmem:[%s21776_s0 + $0x4e8] sm:$0xff]  ;;  %v2153_v26 = vld [vmem:[%s21776_s0 + $0x4f8] sm:$0xff] }
 0x1e2   : > { %2526 = vmatprep.subr.mxu0 %v2183_v27  ;;  %2597 = vmatprep.subr.mxu1 %v2185_v28  ;;  %v2150_v27 = vld [vmem:[%s21776_s0 + $0x4e0] sm:$0xff]  ;;  %v2152_v28 = vld [vmem:[%s21776_s0 + $0x4f0] sm:$0xff] }
 0x1e3   : > { %2527 = vmatpush1.msra.mxu0 %v2182_v30  ;;  %2598 = vmatpush1.msra.mxu1 %v2184_v31  ;;  %v2133_v30 = vld [vmem:[%s21776_s0 + $0x458] sm:$0xff]  ;;  %v2135_v31 = vld [vmem:[%s21776_s0 + $0x468] sm:$0xff] }
 0x1e4   : > { %2528 = vmatprep.subr.mxu0 %v2165_v32  ;;  %2599 = vmatprep.subr.mxu1 %v2167_v33  ;;  %v2132_v32 = vld [vmem:[%s21776_s0 + $0x450] sm:$0xff]  ;;  %v2134_v33 = vld [vmem:[%s21776_s0 + $0x460] sm:$0xff] }
 0x1e5   : > { %2529 = vmatpush1.msra.mxu0 %v2164_v34  ;;  %2600 = vmatpush1.msra.mxu1 %v2166_v35  ;;  %v2115_v34 = vld [vmem:[%s21776_s0 + $0x3c8] sm:$0xff]  ;;  %v2117_v35 = vld [vmem:[%s21776_s0 + $0x3d8] sm:$0xff] }
 0x1e6   : > { %2530 = vmatprep.subr.mxu0 %v2147_v36  ;;  %2601 = vmatprep.subr.mxu1 %v2149_v37  ;;  %v2114_v36 = vld [vmem:[%s21776_s0 + $0x3c0] sm:$0xff]  ;;  %v2116_v37 = vld [vmem:[%s21776_s0 + $0x3d0] sm:$0xff] }
 0x1e7   : > { %2531 = vmatpush1.msra.mxu0 %v2146_v38  ;;  %2602 = vmatpush1.msra.mxu1 %v2148_v39  ;;  %v2097_v38 = vld [vmem:[%s21776_s0 + $0x338] sm:$0xff]  ;;  %v2099_v39 = vld [vmem:[%s21776_s0 + $0x348] sm:$0xff] }
 0x1e8   : > { %2532 = vmatprep.subr.mxu0 %v2129_v40  ;;  %2603 = vmatprep.subr.mxu1 %v2131_v41  ;;  %v2096_v40 = vld [vmem:[%s21776_s0 + $0x330] sm:$0xff]  ;;  %v2098_v41 = vld [vmem:[%s21776_s0 + $0x340] sm:$0xff] }
 0x1e9   : > { %2533 = vmatpush1.msra.mxu0 %v2128_v42  ;;  %2604 = vmatpush1.msra.mxu1 %v2130_v43  ;;  %v2079_v42 = vld [vmem:[%s21776_s0 + $0x2a8] sm:$0xff]  ;;  %v2081_v43 = vld [vmem:[%s21776_s0 + $0x2b8] sm:$0xff] }
 0x1ea   : > { %2534 = vmatprep.subr.mxu0 %v2111_v44  ;;  %2605 = vmatprep.subr.mxu1 %v2113_v45  ;;  %v2078_v44 = vld [vmem:[%s21776_s0 + $0x2a0] sm:$0xff]  ;;  %v2080_v45 = vld [vmem:[%s21776_s0 + $0x2b0] sm:$0xff] }
 0x1eb   : > { %2535 = vmatpush1.msra.mxu0 %v2110_v47  ;;  %2606 = vmatpush1.msra.mxu1 %v2112_v48  ;;  %v2061_v47 = vld [vmem:[%s21776_s0 + $0x218] sm:$0xff]  ;;  %v2063_v48 = vld [vmem:[%s21776_s0 + $0x228] sm:$0xff] }
 0x1ec   : > { %2536 = vmatprep.subr.mxu0 %v2093_v49  ;;  %2607 = vmatprep.subr.mxu1 %v2095_v50  ;;  %v2060_v49 = vld [vmem:[%s21776_s0 + $0x210] sm:$0xff]  ;;  %v2062_v50 = vld [vmem:[%s21776_s0 + $0x220] sm:$0xff] }
 0x1ed   : > { %2537 = vmatpush1.msra.mxu0 %v2092_v51  ;;  %2608 = vmatpush1.msra.mxu1 %v2094_v52  ;;  %v2043_v51 = vld [vmem:[%s21776_s0 + $0x188] sm:$0xff]  ;;  %v2045_v52 = vld [vmem:[%s21776_s0 + $0x198] sm:$0xff] }
 0x1ee   : > { %2538 = vmatprep.subr.mxu0 %v2075_v53  ;;  %2609 = vmatprep.subr.mxu1 %v2077_v54  ;;  %v2042_v53 = vld [vmem:[%s21776_s0 + $0x180] sm:$0xff]  ;;  %v2044_v54 = vld [vmem:[%s21776_s0 + $0x190] sm:$0xff] }
 0x1ef   : > { %2539 = vmatpush1.msra.mxu0 %v2074_v55  ;;  %2610 = vmatpush1.msra.mxu1 %v2076_v56  ;;  %v2025_v55 = vld [vmem:[%s21776_s0 + $0xf8] sm:$0xff]  ;;  %v2027_v56 = vld [vmem:[%s21776_s0 + $0x108] sm:$0xff] }
 0x1f0   : > { %2540 = vmatprep.subr.mxu0 %v2057_v57  ;;  %2611 = vmatprep.subr.mxu1 %v2059_v58  ;;  %v2024_v57 = vld [vmem:[%s21776_s0 + $0xf0] sm:$0xff]  ;;  %v2026_v58 = vld [vmem:[%s21776_s0 + $0x100] sm:$0xff] }
 0x1f1   : > { %2541 = vmatpush1.msra.mxu0 %v2056_v59  ;;  %2612 = vmatpush1.msra.mxu1 %v2058_v60  ;;  %v2007_v59 = vld [vmem:[%s21776_s0 + $0x68] sm:$0xff]  ;;  %v2009_v60 = vld [vmem:[%s21776_s0 + $0x78] sm:$0xff] }
 0x1f2   : > { %2542 = vmatprep.subr.mxu0 %v2039_v61  ;;  %2613 = vmatprep.subr.mxu1 %v2041_v62  ;;  %v2006_v61 = vld [vmem:[%s21776_s0 + $0x60] sm:$0xff]  ;;  %v2008_v62 = vld [vmem:[%s21776_s0 + $0x70] sm:$0xff] }
 0x1f3   : > { %2543 = vmatpush1.msra.mxu0 %v2038_v63  ;;  %2614 = vmatpush1.msra.mxu1 %v2040_v0  ;;  %v2227_v63 = vld [vmem:[%s21776_s0 + $0x748] sm:$0xff]  ;;  %v2226_v0 = vld [vmem:[%s21776_s0 + $0x740] sm:$0xff] }
 0x1f4   : > { %2544 = vmatprep.subr.mxu0 %v2021_v1  ;;  %2615 = vmatprep.subr.mxu1 %v2023_v2  ;;  %v2209_v1 = vld [vmem:[%s21776_s0 + $0x6b8] sm:$0xff]  ;;  %v2208_v2 = vld [vmem:[%s21776_s0 + $0x6b0] sm:$0xff] }
 0x1f5   : > { %2545 = vmatpush1.msra.mxu0 %v2020_v3  ;;  %2616 = vmatpush1.msra.mxu1 %v2022_v4  ;;  %v2191_v3 = vld [vmem:[%s21776_s0 + $0x628] sm:$0xff]  ;;  %v2190_v4 = vld [vmem:[%s21776_s0 + $0x620] sm:$0xff] }
 0x1f6   : > { %2546 = vmatprep.subr.mxu0 %v2003_v5  ;;  %2617 = vmatprep.subr.mxu1 %v2005_v6  ;;  %v2173_v5 = vld [vmem:[%s21776_s0 + $0x598] sm:$0xff]  ;;  %v2172_v6 = vld [vmem:[%s21776_s0 + $0x590] sm:$0xff] }
 0x1f7   : > { %2547 = vmatpush1.msra.mxu0 %v2002_v7  ;;  %2580 = vmatprep.mubr.f32.mxu0 %v17621_v46  ;;  %v2155_v7 = vld [vmem:[%s21776_s0 + $0x508] sm:$0xff] }
 0x1f8   : > { %2618 = vmatpush1.msra.mxu1 %v2004_v8  ;;  %2651 = vmatprep.mubr.f32.mxu1 %v17621_v46  ;;  %v2154_v8 = vld [vmem:[%s21776_s0 + $0x500] sm:$0xff] }
 0x1f9   : > { %13880 = vmatmul.mubr.msk.f32.vlgmr.msra.gmra.mxu0 %vm2228_vm0, %v19372_v29  ;;  %13881 = vmatmul.mubr.msk.f32.vlgmr.msra.gmra.mxu1 %vm2228_vm0, %v19372_v29 }
 0x1fa   : > { %2664 = vmatprep.subr.mxu0 %v2223_v9  ;;  %2735 = vmatprep.subr.mxu1 %v2225_v10  ;;  %v2137_v9 = vld [vmem:[%s21776_s0 + $0x478] sm:$0xff]  ;;  %v2136_v10 = vld [vmem:[%s21776_s0 + $0x470] sm:$0xff] }
 0x1fb   : > { %2665 = vmatpush1.msra.mxu0 %v2222_v11  ;;  %2736 = vmatpush1.msra.mxu1 %v2224_v12  ;;  %v2119_v11 = vld [vmem:[%s21776_s0 + $0x3e8] sm:$0xff]  ;;  %v2118_v12 = vld [vmem:[%s21776_s0 + $0x3e0] sm:$0xff] }
 0x1fc   : > { %2666 = vmatprep.subr.mxu0 %v2205_v13  ;;  %2737 = vmatprep.subr.mxu1 %v2207_v14  ;;  %v2101_v13 = vld [vmem:[%s21776_s0 + $0x358] sm:$0xff]  ;;  %v2100_v14 = vld [vmem:[%s21776_s0 + $0x350] sm:$0xff] }
 0x1fd   : > { %2667 = vmatpush1.msra.mxu0 %v2204_v15  ;;  %2738 = vmatpush1.msra.mxu1 %v2206_v16  ;;  %v2083_v15 = vld [vmem:[%s21776_s0 + $0x2c8] sm:$0xff]  ;;  %v2082_v16 = vld [vmem:[%s21776_s0 + $0x2c0] sm:$0xff] }
 0x1fe   : > { %2668 = vmatprep.subr.mxu0 %v2187_v17  ;;  %2739 = vmatprep.subr.mxu1 %v2189_v18  ;;  %v2065_v17 = vld [vmem:[%s21776_s0 + $0x238] sm:$0xff]  ;;  %v2064_v18 = vld [vmem:[%s21776_s0 + $0x230] sm:$0xff] }
 0x1ff   : > { %2669 = vmatpush1.msra.mxu0 %v2186_v19  ;;  %2740 = vmatpush1.msra.mxu1 %v2188_v20  ;;  %v2047_v19 = vld [vmem:[%s21776_s0 + $0x1a8] sm:$0xff]  ;;  %v2046_v20 = vld [vmem:[%s21776_s0 + $0x1a0] sm:$0xff] }
 0x200   : > { %2670 = vmatprep.subr.mxu0 %v2169_v21  ;;  %2741 = vmatprep.subr.mxu1 %v2171_v22  ;;  %v2029_v21 = vld [vmem:[%s21776_s0 + $0x118] sm:$0xff]  ;;  %v2028_v22 = vld [vmem:[%s21776_s0 + $0x110] sm:$0xff] }
 0x201   : > { %2671 = vmatpush1.msra.mxu0 %v2168_v23  ;;  %2742 = vmatpush1.msra.mxu1 %v2170_v24  ;;  %v2011_v23 = vld [vmem:[%s21776_s0 + $0x88] sm:$0xff]  ;;  %v2010_v24 = vld [vmem:[%s21776_s0 + $0x80] sm:$0xff] }
 0x202   : > { %2672 = vmatprep.subr.mxu0 %v2151_v25  ;;  %2743 = vmatprep.subr.mxu1 %v2153_v26  ;;  %v17622_v26 = vmov 1983009808  }
 0x203   : > { %2673 = vmatpush1.msra.mxu0 %v2150_v27  ;;  %2744 = vmatpush1.msra.mxu1 %v2152_v28  ;;  %v2892_v27 = vunpack.c.l.s4 %v17622_v26  ;;  %v2894_v28 = vlaneseq }
 0x204   : > { %2674 = vmatprep.subr.mxu0 %v2133_v30  ;;  %2745 = vmatprep.subr.mxu1 %v2135_v31 }
 0x205   : > { %2675 = vmatpush1.msra.mxu0 %v2132_v32  ;;  %2746 = vmatpush1.msra.mxu1 %v2134_v33  ;;  %v2893_v30 = vunpack.c.0.s8 %v2892_v27  ;;  %v2895_v31 = vshrl.u32 %v2894_v28, 7 }
 0x206   : > { %2676 = vmatprep.subr.mxu0 %v2115_v34  ;;  %2747 = vmatprep.subr.mxu1 %v2117_v35 }
 0x207   : > { %2677 = vmatpush1.msra.mxu0 %v2114_v36  ;;  %2748 = vmatpush1.msra.mxu1 %v2116_v37  ;;  %v2896_v34 = vsub.s32 %v2893_v30, %v2895_v31 }
 0x208   : > { %2678 = vmatprep.subr.mxu0 %v2097_v38  ;;  %2749 = vmatprep.subr.mxu1 %v2099_v39 }
 0x209   : > { %2679 = vmatpush1.msra.mxu0 %v2096_v40  ;;  %2750 = vmatpush1.msra.mxu1 %v2098_v41 }
 0x20a   : > { %2680 = vmatprep.subr.mxu0 %v2079_v42  ;;  %2751 = vmatprep.subr.mxu1 %v2081_v43 }
 0x20b   : > { %2681 = vmatpush1.msra.mxu0 %v2078_v44  ;;  %2752 = vmatpush1.msra.mxu1 %v2080_v45 }
 0x20c   : > { %2682 = vmatprep.subr.mxu0 %v2061_v47  ;;  %2753 = vmatprep.subr.mxu1 %v2063_v48 }
 0x20d   : > { %2683 = vmatpush1.msra.mxu0 %v2060_v49  ;;  %2754 = vmatpush1.msra.mxu1 %v2062_v50 }
 0x20e   : > { %2684 = vmatprep.subr.mxu0 %v2043_v51  ;;  %2755 = vmatprep.subr.mxu1 %v2045_v52 }
 0x20f   : > { %2685 = vmatpush1.msra.mxu0 %v2042_v53  ;;  %2756 = vmatpush1.msra.mxu1 %v2044_v54 }
 0x210   : > { %2686 = vmatprep.subr.mxu0 %v2025_v55  ;;  %2757 = vmatprep.subr.mxu1 %v2027_v56 }
 0x211   : > { %2687 = vmatpush1.msra.mxu0 %v2024_v57  ;;  %2758 = vmatpush1.msra.mxu1 %v2026_v58 }
 0x212   : > { %2688 = vmatprep.subr.mxu0 %v2007_v59  ;;  %2759 = vmatprep.subr.mxu1 %v2009_v60 }
 0x213   : > { %2689 = vmatpush1.msra.mxu0 %v2006_v61  ;;  %2722 = vmatprep.mubr.f32.mxu0 %v17621_v46 }
 0x214   : > { %2760 = vmatpush1.msra.mxu1 %v2008_v62  ;;  %2793 = vmatprep.mubr.f32.mxu1 %v17621_v46 }
 0x215   : > { %13882 = vmatmul.mubr.msk.f32.vlgmr.msra.gmra.mxu0 %vm2228_vm0, %v19372_v29  ;;  %13883 = vmatmul.mubr.msk.f32.vlgmr.msra.gmra.mxu1 %vm2228_vm0, %v19372_v29 }
 0x216   : > { %2806 = vmatprep.subr.mxu0 %v2227_v63  ;;  %2864 = vmatprep.mubr.f32.mxu0 %v17621_v46 }
 0x217   : > { %2807 = vmatpush1.msra.mxu0 %v2226_v0 }
 0x218   : > { %2808 = vmatprep.subr.mxu0 %v2209_v1 }
 0x219   : > { %2809 = vmatpush1.msra.mxu0 %v2208_v2 }
 0x21a   : > { %2810 = vmatprep.subr.mxu0 %v2191_v3 }
 0x21b   : > { %2811 = vmatpush1.msra.mxu0 %v2190_v4 }
 0x21c   : > { %2812 = vmatprep.subr.mxu0 %v2173_v5 }
 0x21d   : > { %2813 = vmatpush1.msra.mxu0 %v2172_v6 }
 0x21e   : > { %2814 = vmatprep.subr.mxu0 %v2155_v7 }
 0x21f   : > { %2815 = vmatpush1.msra.mxu0 %v2154_v8 }
 0x220   : > { %2816 = vmatprep.subr.mxu0 %v2137_v9 }
 0x221   : > { %2817 = vmatpush1.msra.mxu0 %v2136_v10 }
 0x222   : > { %2818 = vmatprep.subr.mxu0 %v2119_v11 }
 0x223   : > { %2819 = vmatpush1.msra.mxu0 %v2118_v12 }
 0x224   : > { %2820 = vmatprep.subr.mxu0 %v2101_v13 }
 0x225   : > { %2821 = vmatpush1.msra.mxu0 %v2100_v14 }
 0x226   : > { %2822 = vmatprep.subr.mxu0 %v2083_v15 }
 0x227   : > { %2823 = vmatpush1.msra.mxu0 %v2082_v16 }
 0x228   : > { %2824 = vmatprep.subr.mxu0 %v2065_v17 }
 0x229   : > { %2825 = vmatpush1.msra.mxu0 %v2064_v18 }
 0x22a   : > { %2826 = vmatprep.subr.mxu0 %v2047_v19 }
 0x22b   : > { %2827 = vmatpush1.msra.mxu0 %v2046_v20 }
 0x22c   : > { %2828 = vmatprep.subr.mxu0 %v2029_v21 }
 0x22d   : > { %2829 = vmatpush1.msra.mxu0 %v2028_v22 }
 0x22e   : > { %2830 = vmatprep.subr.mxu0 %v2011_v23 }
 0x22f   : > { %2831 = vmatpush1.msra.mxu0 %v2010_v24 }
 0x230   : > { %13884 = vmatmul.mubr.msk.f32.vlgmr.msra.gmra.mxu0 %vm2228_vm0, %v19372_v29 }
 0x281   : > { %v2298_v32 = vpop.f32.mrf.mxu0  ;;  %v2369_v33 = vpop.f32.mrf.mxu1 }
 0x283   : > { %v2300_v35 = vpop.f32.mrf.mxu0  ;;  %v2371_v29 = vpop.f32.mrf.mxu1 }
 0x284   : > { %v2889_v36 = vcombine.low %v2298_v32, %v2300_v35  ;;  %v2890_v37 = vcombine.low %v2369_v33, %v2371_v29 }
 0x286   : > { %v2897_v38 = vrot.slane %v2889_v36, %v2896_v34  ;;  %v2904_v39 = vrot.slane %v2890_v37, %v2896_v34 }
 0x288   : > { %v2905_v40 = vcombine.low %v2897_v38, %v2904_v39 }
 0x28a   : > { %2970 = vst [vmem:[#allocation2] sm:$0xff] %v2905_v40  ;;  %2978 = vst [vmem:[#allocation8] sm:$0xff] %v2905_v40 }
 0x29d   : > { %v2440_v41 = vpop.f32.mrf.mxu0  ;;  %v2511_v42 = vpop.f32.mrf.mxu1 }
 0x29f   : > { %v2442_v46 = vpop.f32.mrf.mxu0  ;;  %v2513_v43 = vpop.f32.mrf.mxu1 }
 0x2a0   : > { %v2906_v44 = vcombine.low %v2440_v41, %v2442_v46  ;;  %v2907_v45 = vcombine.low %v2511_v42, %v2513_v43 }
 0x2a2   : > { %v2914_v47 = vrot.slane %v2906_v44, %v2896_v34  ;;  %v2921_v48 = vrot.slane %v2907_v45, %v2896_v34 }
 0x2a4   : > { %v2922_v49 = vcombine.low %v2914_v47, %v2921_v48 }
 0x2a6   : > { %2971 = vst [vmem:[#allocation2 + $0x8] sm:$0xff] %v2922_v49  ;;  %2979 = vst [vmem:[#allocation8 + $0x8] sm:$0xff] %v2922_v49 }
 0x2b9   : > { %v2582_v50 = vpop.f32.mrf.mxu0  ;;  %v2653_v51 = vpop.f32.mrf.mxu1 }
 0x2bb   : > { %v2584_v52 = vpop.f32.mrf.mxu0  ;;  %v2655_v53 = vpop.f32.mrf.mxu1 }
 0x2bc   : > { %v2923_v54 = vcombine.low %v2582_v50, %v2584_v52  ;;  %v2924_v55 = vcombine.low %v2653_v51, %v2655_v53 }
 0x2be   : > { %v2931_v56 = vrot.slane %v2923_v54, %v2896_v34  ;;  %v2938_v57 = vrot.slane %v2924_v55, %v2896_v34 }
 0x2c0   : > { %v2939_v58 = vcombine.low %v2931_v56, %v2938_v57 }
 0x2c2   : > { %2972 = vst [vmem:[#allocation2 + $0x10] sm:$0xff] %v2939_v58  ;;  %2980 = vst [vmem:[#allocation8 + $0x10] sm:$0xff] %v2939_v58 }
 0x2d5   : > { %v2724_v59 = vpop.f32.mrf.mxu0  ;;  %v2795_v60 = vpop.f32.mrf.mxu1 }
 0x2d7   : > { %v2726_v61 = vpop.f32.mrf.mxu0  ;;  %v2797_v62 = vpop.f32.mrf.mxu1 }
 0x2d8   : > { %v2940_v63 = vcombine.low %v2724_v59, %v2726_v61  ;;  %v2941_v0 = vcombine.low %v2795_v60, %v2797_v62 }
 0x2da   : > { %v2948_v1 = vrot.slane %v2940_v63, %v2896_v34  ;;  %v2955_v2 = vrot.slane %v2941_v0, %v2896_v34 }
 0x2dc   : > { %v2956_v3 = vcombine.low %v2948_v1, %v2955_v2 }
 0x2de   : > { %2973 = vst [vmem:[#allocation2 + $0x18] sm:$0xff] %v2956_v3  ;;  %2981 = vst [vmem:[#allocation8 + $0x18] sm:$0xff] %v2956_v3 }
 0x2f0   : > { %v2866_v4 = vpop.f32.mrf.mxu0 }
 0x2f2   : > { %v2868_v5 = vpop.f32.mrf.mxu0 }
 0x2f3   : > { %v2957_v6 = vcombine.low %v2866_v4, %v2868_v5 }
 0x2f5   : > { %v2964_v7 = vrot.slane %v2957_v6, %v2896_v34 }
 0x2f7   : > { %2977 = vst.msk [vmem:[#allocation2 + $0x20] sm:$0xf] %vm19947_vm3, %v2964_v7  ;;  %2982 = vst.msk [vmem:[#allocation8 + $0x20] sm:$0xf] %vm19947_vm3, %v2964_v7 }
 0x2f8 PF: > { %p13885_p6 = scmp.ne.s32.totalorder %s17607_s26, 0 }
 0x2fa   : > { %2991 = sbr.rel (%p13885_p6) target bundleno = 1794 (0x702), region = 114 }
 0x2ff   : > { %v15387_v8 = vld [vmem:[%s19204_s18 + $0xe4] ss:$16 sps:$4 sm:$0xff]   ;;  %v15391_v10 = vld [vmem:[%s19204_s18 + $0xe0] ss:$16 sps:$4 sm:$0xff]   ;;  %v17623_v43 = vmov 1983009808   ;;  %v3006_v45 = vlaneseq }
 0x300   : > { %v15389_v9 = vld [vmem:[%s19204_s18 + $0x2e4] ss:$16 sps:$4 sm:$0xff]   ;;  %6452 = vmatprep.subr.bf16.mxu0 %v15387_v8  ;;  %v15392_v11 = vld [vmem:[%s19204_s18 + $0x2e0] ss:$16 sps:$4 sm:$0xff]   ;;  %v3004_v44 = vunpack.c.l.s4 %v17623_v43  ;;  %v2992_v60 = vld [vmem:[#allocation2] sm:$0xff]  ;;  %vm6448_vm4 = vcmask 261120  }
 0x301   : > { %6493 = vmatprep.subr.bf16.mxu1 %v15389_v9  ;;  %v15393_v12 = vld [vmem:[%s19204_s18 + $0xc4] ss:$16 sps:$4 sm:$0xff]   ;;  %6453 = vmatpush1.bf16.msra.mxu0 %v15391_v10  ;;  %v15397_v14 = vld [vmem:[%s19204_s18 + $0xc0] ss:$16 sps:$4 sm:$0xff]   ;;  %v19998_v51 = vshrl.u32 %v3006_v45, 7  ;;  %v3002_v63 = vcombine.high %v2992_v60, %v2992_v60 }
 0x302   : > { %6494 = vmatpush1.bf16.msra.mxu1 %v15392_v11  ;;  %v15395_v13 = vld [vmem:[%s19204_s18 + $0x2c4] ss:$16 sps:$4 sm:$0xff]   ;;  %6454 = vmatprep.subr.bf16.mxu0 %v15393_v12  ;;  %v15398_v15 = vld [vmem:[%s19204_s18 + $0x2c0] ss:$16 sps:$4 sm:$0xff]   ;;  %v3005_v50 = vunpack.c.0.s8 %v3004_v44 }
 0x303   : > { %6495 = vmatprep.subr.bf16.mxu1 %v15395_v13  ;;  %v15399_v16 = vld [vmem:[%s19204_s18 + $0xa4] ss:$16 sps:$4 sm:$0xff]   ;;  %v15403_v18 = vld [vmem:[%s19204_s18 + $0xa0] ss:$16 sps:$4 sm:$0xff]  }
 0x304   : > { %v15401_v17 = vld [vmem:[%s19204_s18 + $0x2a4] ss:$16 sps:$4 sm:$0xff]   ;;  %v15404_v19 = vld [vmem:[%s19204_s18 + $0x2a0] ss:$16 sps:$4 sm:$0xff]   ;;  %v20006_v57 = vsub.s32 %v3005_v50, %v19998_v51 }
 0x305   : > { %6455 = vmatpush1.bf16.msra.mxu0 %v15397_v14  ;;  %v15405_v20 = vld [vmem:[%s19204_s18 + $0x84] ss:$16 sps:$4 sm:$0xff]   ;;  %v15409_v22 = vld [vmem:[%s19204_s18 + $0x80] ss:$16 sps:$4 sm:$0xff]  }
 0x306   : > { %6496 = vmatpush1.bf16.msra.mxu1 %v15398_v15  ;;  %6456 = vmatprep.subr.bf16.mxu0 %v15399_v16  ;;  %v15407_v21 = vld [vmem:[%s19204_s18 + $0x284] ss:$16 sps:$4 sm:$0xff]   ;;  %v15410_v23 = vld [vmem:[%s19204_s18 + $0x280] ss:$16 sps:$4 sm:$0xff]   ;;  %v3009_v62 = vrot.slane %v2992_v60, %v20006_v57  ;;  %v3016_v4 = vrot.slane %v3002_v63, %v20006_v57 }
 0x307   : > { %6497 = vmatprep.subr.bf16.mxu1 %v15401_v17  ;;  %v15411_v24 = vld [vmem:[%s19204_s18 + $0x64] ss:$16 sps:$4 sm:$0xff]   ;;  %v15415_v26 = vld [vmem:[%s19204_s18 + $0x60] ss:$16 sps:$4 sm:$0xff]  }
 0x308   : > { %v15413_v25 = vld [vmem:[%s19204_s18 + $0x264] ss:$16 sps:$4 sm:$0xff]   ;;  %v15416_v27 = vld [vmem:[%s19204_s18 + $0x260] ss:$16 sps:$4 sm:$0xff]   ;;  %v3017_v3 = vcombine.high %v3009_v62, %v3009_v62  ;;  %v3018_v7 = vcombine.high %v3016_v4, %v3016_v4 }
 0x309   : > { %6457 = vmatpush1.bf16.msra.mxu0 %v15403_v18  ;;  %v15417_v28 = vld [vmem:[%s19204_s18 + $0x44] ss:$16 sps:$4 sm:$0xff]   ;;  %v15421_v31 = vld [vmem:[%s19204_s18 + $0x40] ss:$16 sps:$4 sm:$0xff]  }
 0x30a   : > { %6498 = vmatpush1.bf16.msra.mxu1 %v15404_v19  ;;  %6458 = vmatprep.subr.bf16.mxu0 %v15405_v20  ;;  %v15419_v30 = vld [vmem:[%s19204_s18 + $0x244] ss:$16 sps:$4 sm:$0xff]   ;;  %v15422_v32 = vld [vmem:[%s19204_s18 + $0x240] ss:$16 sps:$4 sm:$0xff]   ;;  %v20017_v6 = vpack.c.bf16 %v3017_v3, %v3017_v3  ;;  %v20022_v11 = vpack.c.bf16 %v3018_v7, %v3018_v7 }
 0x30b   : > { %6499 = vmatprep.subr.bf16.mxu1 %v15407_v21  ;;  %v15423_v33 = vld [vmem:[%s19204_s18 + $0x24] ss:$16 sps:$4 sm:$0xff]   ;;  %v15427_v35 = vld [vmem:[%s19204_s18 + $0x20] ss:$16 sps:$4 sm:$0xff]  }
 0x30c   : > { %v15425_v34 = vld [vmem:[%s19204_s18 + $0x224] ss:$16 sps:$4 sm:$0xff]   ;;  %v15428_v29 = vld [vmem:[%s19204_s18 + $0x220] ss:$16 sps:$4 sm:$0xff]   ;;  %6484 = vmatprep.mubr.bf16.mxu0 %v20017_v6  ;;  %6525 = vmatprep.mubr.bf16.mxu1 %v20022_v11 }
 0x30d   : > { %6459 = vmatpush1.bf16.msra.mxu0 %v15409_v22  ;;  %v15429_v36 = vld [vmem:[%s19204_s18 + $0x4] ss:$16 sps:$4 sm:$0xff]   ;;  %v15433_v38 = vld [vmem:[%s19204_s18] ss:$16 sps:$4 sm:$0xff]  }
 0x30e   : > { %6500 = vmatpush1.bf16.msra.mxu1 %v15410_v23  ;;  %6460 = vmatprep.subr.bf16.mxu0 %v15411_v24  ;;  %v15431_v37 = vld [vmem:[%s19204_s18 + $0x204] ss:$16 sps:$4 sm:$0xff]   ;;  %v15434_v39 = vld [vmem:[%s19204_s18 + $0x200] ss:$16 sps:$4 sm:$0xff]   ;;  %v20038_v24 = vpack.c.bf16 %v3009_v62, %v3009_v62 }
 0x30f   : > { %6501 = vmatprep.subr.bf16.mxu1 %v15413_v25  ;;  %v15435_v40 = vld [vmem:[%s19204_s18 + $0x1e4] ss:$16 sps:$4 sm:$0xff]   ;;  %v15439_v42 = vld [vmem:[%s19204_s18 + $0x1e0] ss:$16 sps:$4 sm:$0xff]   ;;  %v20040_v25 = vpack.c.bf16 %v3016_v4, %v3016_v4 }
 0x310   : > { %v15437_v41 = vld [vmem:[%s19204_s18 + $0x3e4] ss:$16 sps:$4 sm:$0xff]   ;;  %v15440_v46 = vld [vmem:[%s19204_s18 + $0x3e0] ss:$16 sps:$4 sm:$0xff]  }
 0x311   : > { %6461 = vmatpush1.bf16.msra.mxu0 %v15415_v26  ;;  %v15441_v47 = vld [vmem:[%s19204_s18 + $0x1c4] ss:$16 sps:$4 sm:$0xff]   ;;  %v15445_v49 = vld [vmem:[%s19204_s18 + $0x1c0] ss:$16 sps:$4 sm:$0xff]  }
 0x312   : > { %6502 = vmatpush1.bf16.msra.mxu1 %v15416_v27  ;;  %6462 = vmatprep.subr.bf16.mxu0 %v15417_v28  ;;  %v15443_v48 = vld [vmem:[%s19204_s18 + $0x3c4] ss:$16 sps:$4 sm:$0xff]   ;;  %v15446_v52 = vld [vmem:[%s19204_s18 + $0x3c0] ss:$16 sps:$4 sm:$0xff]  }
 0x313   : > { %6503 = vmatprep.subr.bf16.mxu1 %v15419_v30  ;;  %v15447_v53 = vld [vmem:[%s19204_s18 + $0x1a4] ss:$16 sps:$4 sm:$0xff]   ;;  %v15451_v55 = vld [vmem:[%s19204_s18 + $0x1a0] ss:$16 sps:$4 sm:$0xff]  }
 0x314   : > { %v15449_v54 = vld [vmem:[%s19204_s18 + $0x3a4] ss:$16 sps:$4 sm:$0xff]   ;;  %v15452_v56 = vld [vmem:[%s19204_s18 + $0x3a0] ss:$16 sps:$4 sm:$0xff]  }
 0x315   : > { %6463 = vmatpush1.bf16.msra.mxu0 %v15421_v31  ;;  %v15453_v58 = vld [vmem:[%s19204_s18 + $0x184] ss:$16 sps:$4 sm:$0xff]   ;;  %v15457_v61 = vld [vmem:[%s19204_s18 + $0x180] ss:$16 sps:$4 sm:$0xff]  }
 0x316   : > { %6504 = vmatpush1.bf16.msra.mxu1 %v15422_v32  ;;  %6464 = vmatprep.subr.bf16.mxu0 %v15423_v33  ;;  %v15455_v59 = vld [vmem:[%s19204_s18 + $0x384] ss:$16 sps:$4 sm:$0xff]   ;;  %v15458_v0 = vld [vmem:[%s19204_s18 + $0x380] ss:$16 sps:$4 sm:$0xff]  }
 0x317   : > { %6505 = vmatprep.subr.bf16.mxu1 %v15425_v34  ;;  %v15459_v1 = vld [vmem:[%s19204_s18 + $0x164] ss:$16 sps:$4 sm:$0xff]   ;;  %v15463_v5 = vld [vmem:[%s19204_s18 + $0x160] ss:$16 sps:$4 sm:$0xff]  }
 0x318   : > { %v15461_v2 = vld [vmem:[%s19204_s18 + $0x364] ss:$16 sps:$4 sm:$0xff]   ;;  %v15464_v8 = vld [vmem:[%s19204_s18 + $0x360] ss:$16 sps:$4 sm:$0xff]  }
 0x319   : > { %6465 = vmatpush1.bf16.msra.mxu0 %v15427_v35  ;;  %v15465_v9 = vld [vmem:[%s19204_s18 + $0x144] ss:$16 sps:$4 sm:$0xff]   ;;  %v15469_v12 = vld [vmem:[%s19204_s18 + $0x140] ss:$16 sps:$4 sm:$0xff]  }
 0x31a   : > { %6506 = vmatpush1.bf16.msra.mxu1 %v15428_v29  ;;  %6466 = vmatprep.subr.bf16.mxu0 %v15429_v36  ;;  %v15467_v10 = vld [vmem:[%s19204_s18 + $0x344] ss:$16 sps:$4 sm:$0xff]   ;;  %v15470_v13 = vld [vmem:[%s19204_s18 + $0x340] ss:$16 sps:$4 sm:$0xff]  }
 0x31b   : > { %6507 = vmatprep.subr.bf16.mxu1 %v15431_v37  ;;  %v15471_v14 = vld [vmem:[%s19204_s18 + $0x124] ss:$16 sps:$4 sm:$0xff]   ;;  %v15475_v16 = vld [vmem:[%s19204_s18 + $0x120] ss:$16 sps:$4 sm:$0xff]  }
 0x31c   : > { %v15473_v15 = vld [vmem:[%s19204_s18 + $0x324] ss:$16 sps:$4 sm:$0xff]   ;;  %v15476_v17 = vld [vmem:[%s19204_s18 + $0x320] ss:$16 sps:$4 sm:$0xff]  }
 0x31d   : > { %6467 = vmatpush1.bf16.msra.mxu0 %v15433_v38  ;;  %v15477_v18 = vld [vmem:[%s19204_s18 + $0x104] ss:$16 sps:$4 sm:$0xff]   ;;  %v15481_v20 = vld [vmem:[%s19204_s18 + $0x100] ss:$16 sps:$4 sm:$0xff]  }
 0x31e   : > { %6508 = vmatpush1.bf16.msra.mxu1 %v15434_v39  ;;  %6468 = vmatprep.subr.bf16.mxu0 %v15435_v40  ;;  %v15479_v19 = vld [vmem:[%s19204_s18 + $0x304] ss:$16 sps:$4 sm:$0xff]   ;;  %v15482_v21 = vld [vmem:[%s19204_s18 + $0x300] ss:$16 sps:$4 sm:$0xff]  }
 0x31f   : > { %6509 = vmatprep.subr.bf16.mxu1 %v15437_v41  ;;  %v15486_v22 = vld [vmem:[%s19204_s18 + $0x4e4] ss:$16 sps:$4 sm:$0xff]   ;;  %v15484_v26 = vld [vmem:[%s19204_s18 + $0x4e0] ss:$16 sps:$4 sm:$0xff]  }
 0x320   : > { %v15489_v23 = vld [vmem:[%s19204_s18 + $0x6e4] ss:$16 sps:$4 sm:$0xff]   ;;  %v15487_v27 = vld [vmem:[%s19204_s18 + $0x6e0] ss:$16 sps:$4 sm:$0xff]  }
 0x321   : > { %6469 = vmatpush2.bf16.msra.mxu0 %v15439_v42  ;;  %v15492_v28 = vld [vmem:[%s19204_s18 + $0x4c4] ss:$16 sps:$4 sm:$0xff]   ;;  %v15490_v31 = vld [vmem:[%s19204_s18 + $0x4c0] ss:$16 sps:$4 sm:$0xff]  }
 0x322   : > { %6510 = vmatpush2.bf16.msra.mxu1 %v15440_v46  ;;  %6470 = vmatprep.subr.bf16.mxu0 %v15441_v47  ;;  %v15495_v30 = vld [vmem:[%s19204_s18 + $0x6c4] ss:$16 sps:$4 sm:$0xff]   ;;  %v15493_v32 = vld [vmem:[%s19204_s18 + $0x6c0] ss:$16 sps:$4 sm:$0xff]  }
 0x323   : > { %6511 = vmatprep.subr.bf16.mxu1 %v15443_v48  ;;  %v15498_v33 = vld [vmem:[%s19204_s18 + $0x4a4] ss:$16 sps:$4 sm:$0xff]   ;;  %v15496_v35 = vld [vmem:[%s19204_s18 + $0x4a0] ss:$16 sps:$4 sm:$0xff]  }
 0x324   : > { %v15501_v34 = vld [vmem:[%s19204_s18 + $0x6a4] ss:$16 sps:$4 sm:$0xff]   ;;  %v15499_v29 = vld [vmem:[%s19204_s18 + $0x6a0] ss:$16 sps:$4 sm:$0xff]  }
 0x325   : > { %6471 = vmatpush2.bf16.msra.mxu0 %v15445_v49  ;;  %v15504_v36 = vld [vmem:[%s19204_s18 + $0x484] ss:$16 sps:$4 sm:$0xff]   ;;  %v15502_v38 = vld [vmem:[%s19204_s18 + $0x480] ss:$16 sps:$4 sm:$0xff]  }
 0x326   : > { %6512 = vmatpush2.bf16.msra.mxu1 %v15446_v52  ;;  %6472 = vmatprep.subr.bf16.mxu0 %v15447_v53  ;;  %v15507_v37 = vld [vmem:[%s19204_s18 + $0x684] ss:$16 sps:$4 sm:$0xff]   ;;  %v15505_v39 = vld [vmem:[%s19204_s18 + $0x680] ss:$16 sps:$4 sm:$0xff]  }
 0x327   : > { %6513 = vmatprep.subr.bf16.mxu1 %v15449_v54  ;;  %v15510_v40 = vld [vmem:[%s19204_s18 + $0x464] ss:$16 sps:$4 sm:$0xff]   ;;  %v15508_v42 = vld [vmem:[%s19204_s18 + $0x460] ss:$16 sps:$4 sm:$0xff]  }
 0x328   : > { %v15513_v41 = vld [vmem:[%s19204_s18 + $0x664] ss:$16 sps:$4 sm:$0xff]   ;;  %v15511_v46 = vld [vmem:[%s19204_s18 + $0x660] ss:$16 sps:$4 sm:$0xff]  }
 0x329   : > { %6473 = vmatpush2.bf16.msra.mxu0 %v15451_v55  ;;  %v15516_v43 = vld [vmem:[%s19204_s18 + $0x444] ss:$16 sps:$4 sm:$0xff]   ;;  %v15514_v45 = vld [vmem:[%s19204_s18 + $0x440] ss:$16 sps:$4 sm:$0xff]  }
 0x32a   : > { %6514 = vmatpush2.bf16.msra.mxu1 %v15452_v56  ;;  %6474 = vmatprep.subr.bf16.mxu0 %v15453_v58  ;;  %v15519_v44 = vld [vmem:[%s19204_s18 + $0x644] ss:$16 sps:$4 sm:$0xff]   ;;  %v15517_v47 = vld [vmem:[%s19204_s18 + $0x640] ss:$16 sps:$4 sm:$0xff]  }
 0x32b   : > { %6515 = vmatprep.subr.bf16.mxu1 %v15455_v59  ;;  %v15522_v48 = vld [vmem:[%s19204_s18 + $0x424] ss:$16 sps:$4 sm:$0xff]   ;;  %v15520_v54 = vld [vmem:[%s19204_s18 + $0x420] ss:$16 sps:$4 sm:$0xff]  }
 0x32c   : > { %v15525_v49 = vld [vmem:[%s19204_s18 + $0x624] ss:$16 sps:$4 sm:$0xff]   ;;  %v15523_v55 = vld [vmem:[%s19204_s18 + $0x620] ss:$16 sps:$4 sm:$0xff]  }
 0x32d   : > { %6475 = vmatpush2.bf16.msra.mxu0 %v15457_v61  ;;  %v2993_v50 = vld [vmem:[#allocation2 + $0x8] sm:$0xff] }
 0x32e   : > { %6516 = vmatpush2.bf16.msra.mxu1 %v15458_v0  ;;  %6476 = vmatprep.subr.bf16.mxu0 %v15459_v1  ;;  %v20069_v52 = vrot.slane %v2993_v50, %v20006_v57  ;;  %v3019_v53 = vcombine.high %v2993_v50, %v2993_v50  ;;  %v15528_v59 = vld [vmem:[%s19204_s18 + $0x404] ss:$16 sps:$4 sm:$0xff]   ;;  %v15526_v63 = vld [vmem:[%s19204_s18 + $0x400] ss:$16 sps:$4 sm:$0xff]  }
 0x32f   : > { %6517 = vmatprep.subr.bf16.mxu1 %v15461_v2  ;;  %v15531_v60 = vld [vmem:[%s19204_s18 + $0x604] ss:$16 sps:$4 sm:$0xff]   ;;  %v15529_v0 = vld [vmem:[%s19204_s18 + $0x600] ss:$16 sps:$4 sm:$0xff]  }
 0x330   : > { %v3034_v56 = vcombine.high %v20069_v52, %v20069_v52  ;;  %v20076_v58 = vrot.slane %v3019_v53, %v20006_v57  ;;  %v15534_v2 = vld [vmem:[%s19204_s18 + $0x5e4] ss:$16 sps:$4 sm:$0xff]   ;;  %v15532_v4 = vld [vmem:[%s19204_s18 + $0x5e0] ss:$16 sps:$4 sm:$0xff]  }
 0x331   : > { %6477 = vmatpush2.bf16.msra.mxu0 %v15463_v5  ;;  %v15537_v3 = vld [vmem:[%s19204_s18 + $0x7e4] ss:$16 sps:$4 sm:$0xff]   ;;  %v15535_v5 = vld [vmem:[%s19204_s18 + $0x7e0] ss:$16 sps:$4 sm:$0xff]  }
 0x332   : > { %6518 = vmatpush2.bf16.msra.mxu1 %v15464_v8  ;;  %6478 = vmatprep.subr.bf16.mxu0 %v15465_v9  ;;  %v20080_v61 = vpack.c.bf16 %v3034_v56, %v3034_v56  ;;  %v3035_v62 = vcombine.high %v20076_v58, %v20076_v58  ;;  %v15540_v7 = vld [vmem:[%s19204_s18 + $0x5c4] ss:$16 sps:$4 sm:$0xff]   ;;  %v15538_v9 = vld [vmem:[%s19204_s18 + $0x5c0] ss:$16 sps:$4 sm:$0xff]  }
 0x333   : > { %6519 = vmatprep.subr.bf16.mxu1 %v15467_v10  ;;  %v15543_v8 = vld [vmem:[%s19204_s18 + $0x7c4] ss:$16 sps:$4 sm:$0xff]   ;;  %v15541_v10 = vld [vmem:[%s19204_s18 + $0x7c0] ss:$16 sps:$4 sm:$0xff]  }
 0x334   : > { %v20086_v1 = vpack.c.bf16 %v3035_v62, %v3035_v62  ;;  %v15590_v53 = vld [vmem:[%s19204_s18 + $0xac0] ss:$16 sps:$4 sm:$0xff]  }
 0x335   : > { %6479 = vmatpush2.bf16.msra.mxu0 %v15469_v12  ;;  %v15546_v12 = vld [vmem:[%s19204_s18 + $0x5a4] ss:$16 sps:$4 sm:$0xff]   ;;  %v15596_v62 = vld [vmem:[%s19204_s18 + $0xaa0] ss:$16 sps:$4 sm:$0xff]  }
 0x336   : > { %6520 = vmatpush2.bf16.msra.mxu1 %v15470_v13  ;;  %6480 = vmatprep.subr.bf16.mxu0 %v15471_v14  ;;  %v15549_v13 = vld [vmem:[%s19204_s18 + $0x7a4] ss:$16 sps:$4 sm:$0xff]   ;;  %v15544_v14 = vld [vmem:[%s19204_s18 + $0x5a0] ss:$16 sps:$4 sm:$0xff]  }
 0x337   : > { %6521 = vmatprep.subr.bf16.mxu1 %v15473_v15  ;;  %v15547_v15 = vld [vmem:[%s19204_s18 + $0x7a0] ss:$16 sps:$4 sm:$0xff]  }
 0x339   : > { %6481 = vmatpush2.bf16.msra.mxu0 %v15475_v16  ;;  %v15552_v16 = vld [vmem:[%s19204_s18 + $0x584] ss:$16 sps:$4 sm:$0xff]  }
 0x33a   : > { %6522 = vmatpush2.bf16.msra.mxu1 %v15476_v17  ;;  %6482 = vmatprep.subr.bf16.mxu0 %v15477_v18  ;;  %v15555_v17 = vld [vmem:[%s19204_s18 + $0x784] ss:$16 sps:$4 sm:$0xff]   ;;  %v15550_v18 = vld [vmem:[%s19204_s18 + $0x580] ss:$16 sps:$4 sm:$0xff]  }
 0x33b   : > { %6523 = vmatprep.subr.bf16.mxu1 %v15479_v19  ;;  %v15553_v19 = vld [vmem:[%s19204_s18 + $0x780] ss:$16 sps:$4 sm:$0xff]  }
 0x33d   : > { %6483 = vmatpush2.bf16.msra.mxu0 %v15481_v20  ;;  %v15558_v20 = vld [vmem:[%s19204_s18 + $0x564] ss:$16 sps:$4 sm:$0xff]  }
 0x33e   : > { %6524 = vmatpush2.bf16.msra.mxu1 %v15482_v21  ;;  %6534 = vmatprep.subr.bf16.mxu0 %v15486_v22  ;;  %v15561_v21 = vld [vmem:[%s19204_s18 + $0x764] ss:$16 sps:$4 sm:$0xff]   ;;  %v15556_v22 = vld [vmem:[%s19204_s18 + $0x560] ss:$16 sps:$4 sm:$0xff]  }
 0x33f   : > { %6575 = vmatprep.subr.bf16.mxu1 %v15489_v23  ;;  %v15559_v23 = vld [vmem:[%s19204_s18 + $0x760] ss:$16 sps:$4 sm:$0xff]  }
 0x340   : > { %6485 = vmatmul.mubr.bf16.vlgmr.msra.gmra.mxu0 %v20038_v24 }
 0x341   : > { %6526 = vmatmul.mubr.bf16.vlgmr.msra.gmra.mxu1 %v20040_v25  ;;  %6535 = vmatpush1.bf16.msra.mxu0 %v15484_v26  ;;  %v15564_v26 = vld [vmem:[%s19204_s18 + $0x544] ss:$16 sps:$4 sm:$0xff]  }
 0x342   : > { %6576 = vmatpush1.bf16.msra.mxu1 %v15487_v27  ;;  %6536 = vmatprep.subr.bf16.mxu0 %v15492_v28  ;;  %v15567_v27 = vld [vmem:[%s19204_s18 + $0x744] ss:$16 sps:$4 sm:$0xff]   ;;  %v15562_v28 = vld [vmem:[%s19204_s18 + $0x540] ss:$16 sps:$4 sm:$0xff]  }
 0x343   : > { %6577 = vmatprep.subr.bf16.mxu1 %v15495_v30  ;;  %6566 = vmatprep.mubr.bf16.mxu0 %v20080_v61  ;;  %v15565_v30 = vld [vmem:[%s19204_s18 + $0x740] ss:$16 sps:$4 sm:$0xff]  }
 0x344   : > { %6607 = vmatprep.mubr.bf16.mxu1 %v20086_v1 }
 0x345   : > { %6537 = vmatpush1.bf16.msra.mxu0 %v15490_v31  ;;  %v15570_v31 = vld [vmem:[%s19204_s18 + $0x524] ss:$16 sps:$4 sm:$0xff]  }
 0x346   : > { %6578 = vmatpush1.bf16.msra.mxu1 %v15493_v32  ;;  %6538 = vmatprep.subr.bf16.mxu0 %v15498_v33  ;;  %v15573_v32 = vld [vmem:[%s19204_s18 + $0x724] ss:$16 sps:$4 sm:$0xff]   ;;  %v15568_v33 = vld [vmem:[%s19204_s18 + $0x520] ss:$16 sps:$4 sm:$0xff]  }
 0x347   : > { %6579 = vmatprep.subr.bf16.mxu1 %v15501_v34  ;;  %v15571_v34 = vld [vmem:[%s19204_s18 + $0x720] ss:$16 sps:$4 sm:$0xff]  }
 0x349   : > { %6539 = vmatpush1.bf16.msra.mxu0 %v15496_v35  ;;  %v15576_v35 = vld [vmem:[%s19204_s18 + $0x504] ss:$16 sps:$4 sm:$0xff]  }
 0x34a   : > { %6580 = vmatpush1.bf16.msra.mxu1 %v15499_v29  ;;  %6540 = vmatprep.subr.bf16.mxu0 %v15504_v36  ;;  %v15579_v29 = vld [vmem:[%s19204_s18 + $0x704] ss:$16 sps:$4 sm:$0xff]   ;;  %v15574_v36 = vld [vmem:[%s19204_s18 + $0x500] ss:$16 sps:$4 sm:$0xff]  }
 0x34b   : > { %6581 = vmatprep.subr.bf16.mxu1 %v15507_v37  ;;  %v15577_v37 = vld [vmem:[%s19204_s18 + $0x700] ss:$16 sps:$4 sm:$0xff]  }
 0x34d   : > { %6541 = vmatpush1.bf16.msra.mxu0 %v15502_v38  ;;  %v15583_v38 = vld [vmem:[%s19204_s18 + $0x8e4] ss:$16 sps:$4 sm:$0xff]  }
 0x34e   : > { %6582 = vmatpush1.bf16.msra.mxu1 %v15505_v39  ;;  %6542 = vmatprep.subr.bf16.mxu0 %v15510_v40  ;;  %v15586_v39 = vld [vmem:[%s19204_s18 + $0xae4] ss:$16 sps:$4 sm:$0xff]   ;;  %v20126_v40 = vpack.c.bf16 %v20069_v52, %v20069_v52 }
 0x34f   : > { %6583 = vmatprep.subr.bf16.mxu1 %v15513_v41  ;;  %v20130_v41 = vpack.c.bf16 %v20076_v58, %v20076_v58 }
 0x351   : > { %6543 = vmatpush1.bf16.msra.mxu0 %v15508_v42  ;;  %v15581_v42 = vld [vmem:[%s19204_s18 + $0x8e0] ss:$16 sps:$4 sm:$0xff]  }
 0x352   : > { %6584 = vmatpush1.bf16.msra.mxu1 %v15511_v46  ;;  %6544 = vmatprep.subr.bf16.mxu0 %v15516_v43  ;;  %v15584_v46 = vld [vmem:[%s19204_s18 + $0xae0] ss:$16 sps:$4 sm:$0xff]   ;;  %v15589_v43 = vld [vmem:[%s19204_s18 + $0x8c4] ss:$16 sps:$4 sm:$0xff]  }
 0x353   : > { %6585 = vmatprep.subr.bf16.mxu1 %v15519_v44  ;;  %v2994_v44 = vld [vmem:[#allocation2 + $0x10] sm:$0xff] }
 0x355   : > { %6545 = vmatpush1.bf16.msra.mxu0 %v15514_v45  ;;  %v15592_v45 = vld [vmem:[%s19204_s18 + $0xac4] ss:$16 sps:$4 sm:$0xff]  }
 0x356   : > { %6586 = vmatpush1.bf16.msra.mxu1 %v15517_v47  ;;  %6546 = vmatprep.subr.bf16.mxu0 %v15522_v48  ;;  %v20137_v47 = vrot.slane %v2994_v44, %v20006_v57  ;;  %v3036_v48 = vcombine.high %v2994_v44, %v2994_v44  ;;  %v15656_v44 = vld [vmem:[%s19204_s18 + $0xb60] ss:$16 sps:$4 sm:$0xff]  }
 0x357   : > { %6587 = vmatprep.subr.bf16.mxu1 %v15525_v49  ;;  %v15587_v49 = vld [vmem:[%s19204_s18 + $0x8c0] ss:$16 sps:$4 sm:$0xff]  }
 0x358   : > { %v3051_v50 = vcombine.high %v20137_v47, %v20137_v47  ;;  %v20145_v52 = vrot.slane %v3036_v48, %v20006_v57  ;;  %v15664_v48 = vld [vmem:[%s19204_s18 + $0xb44] ss:$16 sps:$4 sm:$0xff]  }
 0x359   : > { %6547 = vmatpush1.bf16.msra.mxu0 %v15520_v54  ;;  %v15595_v54 = vld [vmem:[%s19204_s18 + $0x8a4] ss:$16 sps:$4 sm:$0xff]  }
 0x35a   : > { %6588 = vmatpush1.bf16.msra.mxu1 %v15523_v55  ;;  %6548 = vmatprep.subr.bf16.mxu0 %v15528_v59  ;;  %v15598_v55 = vld [vmem:[%s19204_s18 + $0xaa4] ss:$16 sps:$4 sm:$0xff]   ;;  %v20150_v56 = vpack.c.bf16 %v3051_v50, %v3051_v50  ;;  %v3052_v58 = vcombine.high %v20145_v52, %v20145_v52  ;;  %v15593_v59 = vld [vmem:[%s19204_s18 + $0x8a0] ss:$16 sps:$4 sm:$0xff]  }
 0x35b   : > { %6589 = vmatprep.subr.bf16.mxu1 %v15531_v60  ;;  %v2995_v50 = vld [vmem:[#allocation2 + $0x18] sm:$0xff] }
 0x35c   : > { %v20156_v60 = vpack.c.bf16 %v3052_v58, %v3052_v58  ;;  %v3053_v58 = vcombine.high %v2995_v50, %v2995_v50 }
 0x35d   : > { %6549 = vmatpush1.bf16.msra.mxu0 %v15526_v63  ;;  %v15601_v63 = vld [vmem:[%s19204_s18 + $0x884] ss:$16 sps:$4 sm:$0xff]  }
 0x35e   : > { %6590 = vmatpush1.bf16.msra.mxu1 %v15529_v0  ;;  %6550 = vmatprep.subr.bf16.mxu0 %v15534_v2  ;;  %v15604_v0 = vld [vmem:[%s19204_s18 + $0xa84] ss:$16 sps:$4 sm:$0xff]   ;;  %v15599_v2 = vld [vmem:[%s19204_s18 + $0x880] ss:$16 sps:$4 sm:$0xff]  }
 0x35f   : > { %6591 = vmatprep.subr.bf16.mxu1 %v15537_v3  ;;  %v15602_v3 = vld [vmem:[%s19204_s18 + $0xa80] ss:$16 sps:$4 sm:$0xff]  }
 0x361   : > { %6551 = vmatpush2.bf16.msra.mxu0 %v15532_v4  ;;  %v15607_v4 = vld [vmem:[%s19204_s18 + $0x864] ss:$16 sps:$4 sm:$0xff]  }
 0x362   : > { %6592 = vmatpush2.bf16.msra.mxu1 %v15535_v5  ;;  %6552 = vmatprep.subr.bf16.mxu0 %v15540_v7  ;;  %v15610_v5 = vld [vmem:[%s19204_s18 + $0xa64] ss:$16 sps:$4 sm:$0xff]   ;;  %v15605_v7 = vld [vmem:[%s19204_s18 + $0x860] ss:$16 sps:$4 sm:$0xff]  }
 0x363   : > { %6593 = vmatprep.subr.bf16.mxu1 %v15543_v8  ;;  %v15608_v8 = vld [vmem:[%s19204_s18 + $0xa60] ss:$16 sps:$4 sm:$0xff]  }
 0x365   : > { %6553 = vmatpush2.bf16.msra.mxu0 %v15538_v9  ;;  %v15613_v9 = vld [vmem:[%s19204_s18 + $0x844] ss:$16 sps:$4 sm:$0xff]  }
 0x366   : > { %6594 = vmatpush2.bf16.msra.mxu1 %v15541_v10  ;;  %6554 = vmatprep.subr.bf16.mxu0 %v15546_v12  ;;  %v15616_v10 = vld [vmem:[%s19204_s18 + $0xa44] ss:$16 sps:$4 sm:$0xff]   ;;  %v15611_v12 = vld [vmem:[%s19204_s18 + $0x840] ss:$16 sps:$4 sm:$0xff]  }
 0x367   : > { %6595 = vmatprep.subr.bf16.mxu1 %v15549_v13  ;;  %v15614_v13 = vld [vmem:[%s19204_s18 + $0xa40] ss:$16 sps:$4 sm:$0xff]  }
 0x369   : > { %6555 = vmatpush2.bf16.msra.mxu0 %v15544_v14  ;;  %v15619_v14 = vld [vmem:[%s19204_s18 + $0x824] ss:$16 sps:$4 sm:$0xff]  }
 0x36a   : > { %6596 = vmatpush2.bf16.msra.mxu1 %v15547_v15  ;;  %6556 = vmatprep.subr.bf16.mxu0 %v15552_v16  ;;  %v15622_v15 = vld [vmem:[%s19204_s18 + $0xa24] ss:$16 sps:$4 sm:$0xff]   ;;  %v15617_v16 = vld [vmem:[%s19204_s18 + $0x820] ss:$16 sps:$4 sm:$0xff]  }
 0x36b   : > { %6597 = vmatprep.subr.bf16.mxu1 %v15555_v17  ;;  %v15620_v17 = vld [vmem:[%s19204_s18 + $0xa20] ss:$16 sps:$4 sm:$0xff]  }
 0x36d   : > { %6557 = vmatpush2.bf16.msra.mxu0 %v15550_v18  ;;  %v15625_v18 = vld [vmem:[%s19204_s18 + $0x804] ss:$16 sps:$4 sm:$0xff]  }
 0x36e   : > { %6598 = vmatpush2.bf16.msra.mxu1 %v15553_v19  ;;  %6558 = vmatprep.subr.bf16.mxu0 %v15558_v20  ;;  %v15628_v19 = vld [vmem:[%s19204_s18 + $0xa04] ss:$16 sps:$4 sm:$0xff]   ;;  %v15623_v20 = vld [vmem:[%s19204_s18 + $0x800] ss:$16 sps:$4 sm:$0xff]  }
 0x36f   : > { %6599 = vmatprep.subr.bf16.mxu1 %v15561_v21  ;;  %v15626_v21 = vld [vmem:[%s19204_s18 + $0xa00] ss:$16 sps:$4 sm:$0xff]  }
 0x371   : > { %6559 = vmatpush2.bf16.msra.mxu0 %v15556_v22  ;;  %v15631_v22 = vld [vmem:[%s19204_s18 + $0x9e4] ss:$16 sps:$4 sm:$0xff]  }
 0x372   : > { %6600 = vmatpush2.bf16.msra.mxu1 %v15559_v23  ;;  %6560 = vmatprep.subr.bf16.mxu0 %v15564_v26  ;;  %v15634_v23 = vld [vmem:[%s19204_s18 + $0xbe4] ss:$16 sps:$4 sm:$0xff]   ;;  %v15629_v26 = vld [vmem:[%s19204_s18 + $0x9e0] ss:$16 sps:$4 sm:$0xff]  }
 0x373   : > { %6601 = vmatprep.subr.bf16.mxu1 %v15567_v27  ;;  %v15632_v27 = vld [vmem:[%s19204_s18 + $0xbe0] ss:$16 sps:$4 sm:$0xff]  }
 0x375   : > { %6561 = vmatpush2.bf16.msra.mxu0 %v15562_v28  ;;  %v15637_v28 = vld [vmem:[%s19204_s18 + $0x9c4] ss:$16 sps:$4 sm:$0xff]  }
 0x376   : > { %6602 = vmatpush2.bf16.msra.mxu1 %v15565_v30  ;;  %6562 = vmatprep.subr.bf16.mxu0 %v15570_v31  ;;  %v15640_v30 = vld [vmem:[%s19204_s18 + $0xbc4] ss:$16 sps:$4 sm:$0xff]   ;;  %v15635_v31 = vld [vmem:[%s19204_s18 + $0x9c0] ss:$16 sps:$4 sm:$0xff]  }
 0x377   : > { %6603 = vmatprep.subr.bf16.mxu1 %v15573_v32  ;;  %v15638_v32 = vld [vmem:[%s19204_s18 + $0xbc0] ss:$16 sps:$4 sm:$0xff]  }
 0x379   : > { %6563 = vmatpush2.bf16.msra.mxu0 %v15568_v33  ;;  %v15643_v33 = vld [vmem:[%s19204_s18 + $0x9a4] ss:$16 sps:$4 sm:$0xff]  }
 0x37a   : > { %6604 = vmatpush2.bf16.msra.mxu1 %v15571_v34  ;;  %6564 = vmatprep.subr.bf16.mxu0 %v15576_v35  ;;  %v15646_v34 = vld [vmem:[%s19204_s18 + $0xba4] ss:$16 sps:$4 sm:$0xff]   ;;  %v15641_v35 = vld [vmem:[%s19204_s18 + $0x9a0] ss:$16 sps:$4 sm:$0xff]  }
 0x37b   : > { %6605 = vmatprep.subr.bf16.mxu1 %v15579_v29  ;;  %v15644_v29 = vld [vmem:[%s19204_s18 + $0xba0] ss:$16 sps:$4 sm:$0xff]  }
 0x37d   : > { %6565 = vmatpush2.bf16.msra.mxu0 %v15574_v36  ;;  %v15649_v36 = vld [vmem:[%s19204_s18 + $0x984] ss:$16 sps:$4 sm:$0xff]  }
 0x37e   : > { %6606 = vmatpush2.bf16.msra.mxu1 %v15577_v37  ;;  %6616 = vmatprep.subr.bf16.mxu0 %v15583_v38  ;;  %v15652_v37 = vld [vmem:[%s19204_s18 + $0xb84] ss:$16 sps:$4 sm:$0xff]   ;;  %v15647_v38 = vld [vmem:[%s19204_s18 + $0x980] ss:$16 sps:$4 sm:$0xff]  }
 0x37f   : > { %6657 = vmatprep.subr.bf16.mxu1 %v15586_v39  ;;  %v15650_v39 = vld [vmem:[%s19204_s18 + $0xb80] ss:$16 sps:$4 sm:$0xff]  }
 0x380   : > { %6567 = vmatmul.mubr.bf16.vlgmr.msra.gmra.mxu0 %v20126_v40 }
 0x381   : > { %6608 = vmatmul.mubr.bf16.vlgmr.msra.gmra.mxu1 %v20130_v41  ;;  %6617 = vmatpush1.bf16.msra.mxu0 %v15581_v42  ;;  %v15655_v42 = vld [vmem:[%s19204_s18 + $0x964] ss:$16 sps:$4 sm:$0xff]  }
 0x382   : > { %6658 = vmatpush1.bf16.msra.mxu1 %v15584_v46  ;;  %6618 = vmatprep.subr.bf16.mxu0 %v15589_v43  ;;  %v15658_v46 = vld [vmem:[%s19204_s18 + $0xb64] ss:$16 sps:$4 sm:$0xff]   ;;  %v15653_v43 = vld [vmem:[%s19204_s18 + $0x960] ss:$16 sps:$4 sm:$0xff]  }
 0x383   : > { %6659 = vmatprep.subr.bf16.mxu1 %v15592_v45  ;;  %6648 = vmatprep.mubr.bf16.mxu0 %v20150_v56  ;;  %v15661_v45 = vld [vmem:[%s19204_s18 + $0x944] ss:$16 sps:$4 sm:$0xff]  }
 0x384   : > { %6689 = vmatprep.mubr.bf16.mxu1 %v20156_v60 }
 0x385   : > { %6619 = vmatpush1.bf16.msra.mxu0 %v15587_v49  ;;  %v15659_v49 = vld [vmem:[%s19204_s18 + $0x940] ss:$16 sps:$4 sm:$0xff]  }
 0x386   : > { %6660 = vmatpush1.bf16.msra.mxu1 %v15590_v53  ;;  %6620 = vmatprep.subr.bf16.mxu0 %v15595_v54  ;;  %v15662_v53 = vld [vmem:[%s19204_s18 + $0xb40] ss:$16 sps:$4 sm:$0xff]   ;;  %v15667_v54 = vld [vmem:[%s19204_s18 + $0x924] ss:$16 sps:$4 sm:$0xff]  }
 0x387   : > { %6661 = vmatprep.subr.bf16.mxu1 %v15598_v55  ;;  %v15670_v55 = vld [vmem:[%s19204_s18 + $0xb24] ss:$16 sps:$4 sm:$0xff]  }
 0x389   : > { %6621 = vmatpush1.bf16.msra.mxu0 %v15593_v59  ;;  %v15665_v59 = vld [vmem:[%s19204_s18 + $0x920] ss:$16 sps:$4 sm:$0xff]  }
 0x38a   : > { %6662 = vmatpush1.bf16.msra.mxu1 %v15596_v62  ;;  %6622 = vmatprep.subr.bf16.mxu0 %v15601_v63  ;;  %v15668_v62 = vld [vmem:[%s19204_s18 + $0xb20] ss:$16 sps:$4 sm:$0xff]   ;;  %v15673_v63 = vld [vmem:[%s19204_s18 + $0x904] ss:$16 sps:$4 sm:$0xff]  }
 0x38b   : > { %6663 = vmatprep.subr.bf16.mxu1 %v15604_v0  ;;  %v15676_v0 = vld [vmem:[%s19204_s18 + $0xb04] ss:$16 sps:$4 sm:$0xff]  }
 0x38d   : > { %6623 = vmatpush1.bf16.msra.mxu0 %v15599_v2  ;;  %v20211_v2 = vrot.slane %v2995_v50, %v20006_v57  ;;  %v15731_v50 = vld [vmem:[%s19204_s18 + $0xfe4] ss:$16 sps:$4 sm:$0xff]  }
 0x38e   : > { %6664 = vmatpush1.bf16.msra.mxu1 %v15602_v3  ;;  %6624 = vmatprep.subr.bf16.mxu0 %v15607_v4  ;;  %v20214_v3 = vrot.slane %v3053_v58, %v20006_v57  ;;  %v15671_v4 = vld [vmem:[%s19204_s18 + $0x900] ss:$16 sps:$4 sm:$0xff]   ;;  %v15737_v58 = vld [vmem:[%s19204_s18 + $0xfc4] ss:$16 sps:$4 sm:$0xff]  }
 0x38f   : > { %6665 = vmatprep.subr.bf16.mxu1 %v15610_v5  ;;  %v15674_v5 = vld [vmem:[%s19204_s18 + $0xb00] ss:$16 sps:$4 sm:$0xff]  }
 0x391   : > { %6625 = vmatpush1.bf16.msra.mxu0 %v15605_v7  ;;  %v15680_v7 = vld [vmem:[%s19204_s18 + $0xce4] ss:$16 sps:$4 sm:$0xff]  }
 0x392   : > { %6666 = vmatpush1.bf16.msra.mxu1 %v15608_v8  ;;  %6626 = vmatprep.subr.bf16.mxu0 %v15613_v9  ;;  %v15683_v8 = vld [vmem:[%s19204_s18 + $0xee4] ss:$16 sps:$4 sm:$0xff]   ;;  %v3068_v9 = vcombine.high %v20211_v2, %v20211_v2 }
 0x393   : > { %6667 = vmatprep.subr.bf16.mxu1 %v15616_v10  ;;  %v3069_v10 = vcombine.high %v20214_v3, %v20214_v3 }
 0x395   : > { %6627 = vmatpush1.bf16.msra.mxu0 %v15611_v12  ;;  %v20226_v12 = vpack.c.bf16 %v20137_v47, %v20137_v47  ;;  %v20238_v47 = vpack.c.bf16 %v3069_v10, %v3069_v10  ;;  %v15747_v10 = vld [vmem:[%s19204_s18 + $0xf80] ss:$16 sps:$4 sm:$0xff]  }
 0x396   : > { %6668 = vmatpush1.bf16.msra.mxu1 %v15614_v13  ;;  %6628 = vmatprep.subr.bf16.mxu0 %v15619_v14  ;;  %v20230_v13 = vpack.c.bf16 %v20145_v52, %v20145_v52  ;;  %v15678_v14 = vld [vmem:[%s19204_s18 + $0xce0] ss:$16 sps:$4 sm:$0xff]  }
 0x397   : > { %6669 = vmatprep.subr.bf16.mxu1 %v15622_v15  ;;  %v15681_v15 = vld [vmem:[%s19204_s18 + $0xee0] ss:$16 sps:$4 sm:$0xff]  }
 0x398   : > { %v15684_v52 = vld [vmem:[%s19204_s18 + $0xcc0] ss:$16 sps:$4 sm:$0xff]  }
 0x399   : > { %6629 = vmatpush1.bf16.msra.mxu0 %v15617_v16  ;;  %v15686_v16 = vld [vmem:[%s19204_s18 + $0xcc4] ss:$16 sps:$4 sm:$0xff]  }
 0x39a   : > { %6670 = vmatpush1.bf16.msra.mxu1 %v15620_v17  ;;  %6630 = vmatprep.subr.bf16.mxu0 %v15625_v18  ;;  %v15689_v17 = vld [vmem:[%s19204_s18 + $0xec4] ss:$16 sps:$4 sm:$0xff]   ;;  %v20236_v18 = vpack.c.bf16 %v3068_v9, %v3068_v9  ;;  %v15744_v9 = vld [vmem:[%s19204_s18 + $0xd80] ss:$16 sps:$4 sm:$0xff]  }
 0x39b   : > { %6671 = vmatprep.subr.bf16.mxu1 %v15628_v19  ;;  %v15687_v19 = vld [vmem:[%s19204_s18 + $0xec0] ss:$16 sps:$4 sm:$0xff]  }
 0x39d   : > { %6631 = vmatpush1.bf16.msra.mxu0 %v15623_v20  ;;  %v15692_v20 = vld [vmem:[%s19204_s18 + $0xca4] ss:$16 sps:$4 sm:$0xff]  }
 0x39e   : > { %6672 = vmatpush1.bf16.msra.mxu1 %v15626_v21  ;;  %6632 = vmatprep.subr.bf16.mxu0 %v15631_v22  ;;  %v15695_v21 = vld [vmem:[%s19204_s18 + $0xea4] ss:$16 sps:$4 sm:$0xff]   ;;  %v15690_v22 = vld [vmem:[%s19204_s18 + $0xca0] ss:$16 sps:$4 sm:$0xff]  }
 0x39f   : > { %6673 = vmatprep.subr.bf16.mxu1 %v15634_v23  ;;  %v15693_v23 = vld [vmem:[%s19204_s18 + $0xea0] ss:$16 sps:$4 sm:$0xff]  }
 0x3a1   : > { %6633 = vmatpush2.bf16.msra.mxu0 %v15629_v26  ;;  %v15698_v26 = vld [vmem:[%s19204_s18 + $0xc84] ss:$16 sps:$4 sm:$0xff]  }
 0x3a2   : > { %6674 = vmatpush2.bf16.msra.mxu1 %v15632_v27  ;;  %6634 = vmatprep.subr.bf16.mxu0 %v15637_v28  ;;  %v15701_v27 = vld [vmem:[%s19204_s18 + $0xe84] ss:$16 sps:$4 sm:$0xff]   ;;  %v15696_v28 = vld [vmem:[%s19204_s18 + $0xc80] ss:$16 sps:$4 sm:$0xff]  }
 0x3a3   : > { %6675 = vmatprep.subr.bf16.mxu1 %v15640_v30  ;;  %v15699_v30 = vld [vmem:[%s19204_s18 + $0xe80] ss:$16 sps:$4 sm:$0xff]  }
 0x3a5   : > { %6635 = vmatpush2.bf16.msra.mxu0 %v15635_v31  ;;  %v15704_v31 = vld [vmem:[%s19204_s18 + $0xc64] ss:$16 sps:$4 sm:$0xff]  }
 0x3a6   : > { %6676 = vmatpush2.bf16.msra.mxu1 %v15638_v32  ;;  %6636 = vmatprep.subr.bf16.mxu0 %v15643_v33  ;;  %v15707_v32 = vld [vmem:[%s19204_s18 + $0xe64] ss:$16 sps:$4 sm:$0xff]   ;;  %v15702_v33 = vld [vmem:[%s19204_s18 + $0xc60] ss:$16 sps:$4 sm:$0xff]  }
 0x3a7   : > { %6677 = vmatprep.subr.bf16.mxu1 %v15646_v34  ;;  %v15705_v34 = vld [vmem:[%s19204_s18 + $0xe60] ss:$16 sps:$4 sm:$0xff]  }
 0x3a9   : > { %6637 = vmatpush2.bf16.msra.mxu0 %v15641_v35  ;;  %v15710_v35 = vld [vmem:[%s19204_s18 + $0xc44] ss:$16 sps:$4 sm:$0xff]  }
 0x3aa   : > { %6678 = vmatpush2.bf16.msra.mxu1 %v15644_v29  ;;  %6638 = vmatprep.subr.bf16.mxu0 %v15649_v36  ;;  %v15713_v29 = vld [vmem:[%s19204_s18 + $0xe44] ss:$16 sps:$4 sm:$0xff]   ;;  %v15708_v36 = vld [vmem:[%s19204_s18 + $0xc40] ss:$16 sps:$4 sm:$0xff]  }
 0x3ab   : > { %6679 = vmatprep.subr.bf16.mxu1 %v15652_v37  ;;  %v15711_v37 = vld [vmem:[%s19204_s18 + $0xe40] ss:$16 sps:$4 sm:$0xff]  }
 0x3ad   : > { %6639 = vmatpush2.bf16.msra.mxu0 %v15647_v38  ;;  %v15716_v38 = vld [vmem:[%s19204_s18 + $0xc24] ss:$16 sps:$4 sm:$0xff]  }
 0x3ae   : > { %6680 = vmatpush2.bf16.msra.mxu1 %v15650_v39  ;;  %6640 = vmatprep.subr.bf16.mxu0 %v15655_v42  ;;  %v15719_v39 = vld [vmem:[%s19204_s18 + $0xe24] ss:$16 sps:$4 sm:$0xff]   ;;  %v15714_v42 = vld [vmem:[%s19204_s18 + $0xc20] ss:$16 sps:$4 sm:$0xff]  }
 0x3af   : > { %6681 = vmatprep.subr.bf16.mxu1 %v15658_v46  ;;  %v15717_v46 = vld [vmem:[%s19204_s18 + $0xe20] ss:$16 sps:$4 sm:$0xff]  }
 0x3b1   : > { %6641 = vmatpush2.bf16.msra.mxu0 %v15653_v43  ;;  %v15722_v43 = vld [vmem:[%s19204_s18 + $0xc04] ss:$16 sps:$4 sm:$0xff]  }
 0x3b2   : > { %6682 = vmatpush2.bf16.msra.mxu1 %v15656_v44  ;;  %6642 = vmatprep.subr.bf16.mxu0 %v15661_v45  ;;  %v15725_v44 = vld [vmem:[%s19204_s18 + $0xe04] ss:$16 sps:$4 sm:$0xff]   ;;  %v15720_v45 = vld [vmem:[%s19204_s18 + $0xc00] ss:$16 sps:$4 sm:$0xff]  }
 0x3b3   : > { %6683 = vmatprep.subr.bf16.mxu1 %v15664_v48  ;;  %v15723_v48 = vld [vmem:[%s19204_s18 + $0xe00] ss:$16 sps:$4 sm:$0xff]  }
 0x3b5   : > { %6643 = vmatpush2.bf16.msra.mxu0 %v15659_v49  ;;  %v15728_v49 = vld [vmem:[%s19204_s18 + $0xde4] ss:$16 sps:$4 sm:$0xff]  }
 0x3b6   : > { %6684 = vmatpush2.bf16.msra.mxu1 %v15662_v53  ;;  %6644 = vmatprep.subr.bf16.mxu0 %v15667_v54  ;;  %v15726_v53 = vld [vmem:[%s19204_s18 + $0xde0] ss:$16 sps:$4 sm:$0xff]  }
 0x3b7   : > { %6685 = vmatprep.subr.bf16.mxu1 %v15670_v55  ;;  %v15729_v54 = vld [vmem:[%s19204_s18 + $0xfe0] ss:$16 sps:$4 sm:$0xff]   ;;  %v15734_v55 = vld [vmem:[%s19204_s18 + $0xdc4] ss:$16 sps:$4 sm:$0xff]  }
 0x3b9   : > { %6645 = vmatpush2.bf16.msra.mxu0 %v15665_v59  ;;  %v15732_v59 = vld [vmem:[%s19204_s18 + $0xdc0] ss:$16 sps:$4 sm:$0xff]  }
 0x3ba   : > { %6686 = vmatpush2.bf16.msra.mxu1 %v15668_v62  ;;  %6646 = vmatprep.subr.bf16.mxu0 %v15673_v63  ;;  %v15735_v62 = vld [vmem:[%s19204_s18 + $0xfc0] ss:$16 sps:$4 sm:$0xff]   ;;  %v15740_v63 = vld [vmem:[%s19204_s18 + $0xda4] ss:$16 sps:$4 sm:$0xff]  }
 0x3bb   : > { %6687 = vmatprep.subr.bf16.mxu1 %v15676_v0  ;;  %v15743_v0 = vld [vmem:[%s19204_s18 + $0xfa4] ss:$16 sps:$4 sm:$0xff]  }
 0x3bd   : > { %6647 = vmatpush2.bf16.msra.mxu0 %v15671_v4  ;;  %v15738_v4 = vld [vmem:[%s19204_s18 + $0xda0] ss:$16 sps:$4 sm:$0xff]  }
 0x3be   : > { %6688 = vmatpush2.bf16.msra.mxu1 %v15674_v5  ;;  %6698 = vmatprep.subr.bf16.mxu0 %v15680_v7  ;;  %v15741_v5 = vld [vmem:[%s19204_s18 + $0xfa0] ss:$16 sps:$4 sm:$0xff]   ;;  %v15746_v7 = vld [vmem:[%s19204_s18 + $0xd84] ss:$16 sps:$4 sm:$0xff]  }
 0x3bf   : > { %6739 = vmatprep.subr.bf16.mxu1 %v15683_v8  ;;  %v15749_v8 = vld [vmem:[%s19204_s18 + $0xf84] ss:$16 sps:$4 sm:$0xff]  }
 0x3c0   : > { %6649 = vmatmul.mubr.bf16.vlgmr.msra.gmra.mxu0 %v20226_v12 }
 0x3c1   : > { %6690 = vmatmul.mubr.bf16.vlgmr.msra.gmra.mxu1 %v20230_v13  ;;  %6699 = vmatpush1.bf16.msra.mxu0 %v15678_v14  ;;  %v15752_v14 = vld [vmem:[%s19204_s18 + $0xd64] ss:$16 sps:$4 sm:$0xff]  }
 0x3c2   : > { %6740 = vmatpush1.bf16.msra.mxu1 %v15681_v15  ;;  %6700 = vmatprep.subr.bf16.mxu0 %v15686_v16  ;;  %v15755_v15 = vld [vmem:[%s19204_s18 + $0xf64] ss:$16 sps:$4 sm:$0xff]   ;;  %v15750_v16 = vld [vmem:[%s19204_s18 + $0xd60] ss:$16 sps:$4 sm:$0xff]  }
 0x3c3   : > { %6741 = vmatprep.subr.bf16.mxu1 %v15689_v17  ;;  %6730 = vmatprep.mubr.bf16.mxu0 %v20236_v18  ;;  %v15753_v17 = vld [vmem:[%s19204_s18 + $0xf60] ss:$16 sps:$4 sm:$0xff]  }
 0x3c4   : > { %6771 = vmatprep.mubr.bf16.mxu1 %v20238_v47 }
 0x3c5   : > { %6701 = vmatpush1.bf16.msra.mxu0 %v15684_v52  ;;  %v15758_v52 = vld [vmem:[%s19204_s18 + $0xd44] ss:$16 sps:$4 sm:$0xff]  }
 0x3c6   : > { %6742 = vmatpush1.bf16.msra.mxu1 %v15687_v19  ;;  %6702 = vmatprep.subr.bf16.mxu0 %v15692_v20  ;;  %v15761_v19 = vld [vmem:[%s19204_s18 + $0xf44] ss:$16 sps:$4 sm:$0xff]   ;;  %v15756_v20 = vld [vmem:[%s19204_s18 + $0xd40] ss:$16 sps:$4 sm:$0xff]  }
 0x3c7   : > { %6743 = vmatprep.subr.bf16.mxu1 %v15695_v21  ;;  %v15759_v21 = vld [vmem:[%s19204_s18 + $0xf40] ss:$16 sps:$4 sm:$0xff]  }
 0x3c9   : > { %6703 = vmatpush1.bf16.msra.mxu0 %v15690_v22  ;;  %v15764_v22 = vld [vmem:[%s19204_s18 + $0xd24] ss:$16 sps:$4 sm:$0xff]  }
 0x3ca   : > { %6744 = vmatpush1.bf16.msra.mxu1 %v15693_v23  ;;  %6704 = vmatprep.subr.bf16.mxu0 %v15698_v26  ;;  %v15767_v23 = vld [vmem:[%s19204_s18 + $0xf24] ss:$16 sps:$4 sm:$0xff]   ;;  %v15762_v26 = vld [vmem:[%s19204_s18 + $0xd20] ss:$16 sps:$4 sm:$0xff]  }
 0x3cb   : > { %6745 = vmatprep.subr.bf16.mxu1 %v15701_v27  ;;  %v15765_v27 = vld [vmem:[%s19204_s18 + $0xf20] ss:$16 sps:$4 sm:$0xff]  }
 0x3cd   : > { %6705 = vmatpush1.bf16.msra.mxu0 %v15696_v28  ;;  %v15770_v28 = vld [vmem:[%s19204_s18 + $0xd04] ss:$16 sps:$4 sm:$0xff]  }
 0x3ce   : > { %6746 = vmatpush1.bf16.msra.mxu1 %v15699_v30  ;;  %6706 = vmatprep.subr.bf16.mxu0 %v15704_v31  ;;  %v15773_v30 = vld [vmem:[%s19204_s18 + $0xf04] ss:$16 sps:$4 sm:$0xff]   ;;  %v15768_v31 = vld [vmem:[%s19204_s18 + $0xd00] ss:$16 sps:$4 sm:$0xff]  }
 0x3cf   : > { %6747 = vmatprep.subr.bf16.mxu1 %v15707_v32  ;;  %v20301_v32 = vld.sshfl [vmem:[#allocation2 + $0x20] sm:$0x33 pattern:$0x76325410] }
 0x3d1   : > { %6707 = vmatpush1.bf16.msra.mxu0 %v15702_v33  ;;  %v15771_v33 = vld [vmem:[%s19204_s18 + $0xf00] ss:$16 sps:$4 sm:$0xff]  }
 0x3d2   : > { %6748 = vmatpush1.bf16.msra.mxu1 %v15705_v34  ;;  %6708 = vmatprep.subr.bf16.mxu0 %v15710_v35  ;;  %v3666_v34 = vld [vmem:[%s19182_s5] sm:$0xf]  ;;  %v3670_v35 = vsub.s32 0, %v19998_v51 }
 0x3d3   : > { %6749 = vmatprep.subr.bf16.mxu1 %v15713_v29  ;;  %v15777_v29 = vld [vmem:[%s19204_s18 + $0x10e4] ss:$16 sps:$4 sm:$0xff]  }
 0x3d5   : > { %6709 = vmatpush1.bf16.msra.mxu0 %v15708_v36  ;;  %v15780_v36 = vld [vmem:[%s19204_s18 + $0xec] ss:$16 sps:$4 sm:$0xff]  }
 0x3d6   : > { %6750 = vmatpush1.bf16.msra.mxu1 %v15711_v37  ;;  %6710 = vmatprep.subr.bf16.mxu0 %v15716_v38  ;;  %v3674_v37 = vsub.s32 1, %v19998_v51  ;;  %v3077_v38 = vcombine.high %v20301_v32, %v20301_v32 }
 0x3d7   : > { %6751 = vmatprep.subr.bf16.mxu1 %v15719_v39  ;;  %v20313_v39 = vpack.c.bf16 %v20211_v2, %v20211_v2 }
 0x3d9   : > { %6711 = vmatpush1.bf16.msra.mxu0 %v15714_v42  ;;  %v20317_v42 = vpack.c.bf16 %v20214_v3, %v20214_v3  ;;  %v15781_v3 = vld [vmem:[%s19204_s18 + $0x10c0] ss:$16 sps:$4 sm:$0xff]  }
 0x3da   : > { %6752 = vmatpush1.bf16.msra.mxu1 %v15717_v46  ;;  %6712 = vmatprep.subr.bf16.mxu0 %v15722_v43  ;;  %v3671_v46 = vrot.slane %v3666_v34, %v3670_v35  ;;  %v15775_v43 = vld [vmem:[%s19204_s18 + $0x10e0] ss:$16 sps:$4 sm:$0xff]   ;;  %v15819_v35 = vld [vmem:[%s19204_s18 + $0x1004] ss:$16 sps:$4 sm:$0xff]  }
 0x3db   : > { %6753 = vmatprep.subr.bf16.mxu1 %v15725_v44  ;;  %v15778_v44 = vld [vmem:[%s19204_s18 + $0xe8] ss:$16 sps:$4 sm:$0xff]  }
 0x3dd   : > { %6713 = vmatpush1.bf16.msra.mxu0 %v15720_v45  ;;  %v15783_v45 = vld [vmem:[%s19204_s18 + $0x10c4] ss:$16 sps:$4 sm:$0xff]  }
 0x3de   : > { %6754 = vmatpush1.bf16.msra.mxu1 %v15723_v48  ;;  %6714 = vmatprep.subr.bf16.mxu0 %v15728_v49  ;;  %v15786_v48 = vld [vmem:[%s19204_s18 + $0xcc] ss:$16 sps:$4 sm:$0xff]   ;;  %v3675_v49 = vrot.slane %v3666_v34, %v3674_v37  ;;  %v15814_v34 = vld [vmem:[%s19204_s18 + $0x28] ss:$16 sps:$4 sm:$0xff]  }
 0x3df   : > { %6755 = vmatprep.subr.bf16.mxu1 %v15731_v50  ;;  %v20323_v50 = vpack.c.bf16 %v3077_v38, %v3077_v38  ;;  %v15820_v37 = vld [vmem:[%s19204_s18 + $0x8] ss:$16 sps:$4 sm:$0xff]   ;;  %v15825_v38 = vld [vmem:[%s19204_s18 + $0x1124] ss:$16 sps:$4 sm:$0xff]  }
 0x3e1   : > { %6715 = vmatpush2.bf16.msra.mxu0 %v15726_v53 }
 0x3e2   : > { %6756 = vmatpush2.bf16.msra.mxu1 %v15729_v54  ;;  %6716 = vmatprep.subr.bf16.mxu0 %v15734_v55  ;;  %v15784_v55 = vld [vmem:[%s19204_s18 + $0xc8] ss:$16 sps:$4 sm:$0xff]  }
 0x3e3   : > { %6757 = vmatprep.subr.bf16.mxu1 %v15737_v58  ;;  %v15789_v58 = vld [vmem:[%s19204_s18 + $0x10a4] ss:$16 sps:$4 sm:$0xff]  }
 0x3e5   : > { %6717 = vmatpush2.bf16.msra.mxu0 %v15732_v59 }
 0x3e6   : > { %6758 = vmatpush2.bf16.msra.mxu1 %v15735_v62  ;;  %6718 = vmatprep.subr.bf16.mxu0 %v15740_v63  ;;  %v15792_v63 = vld [vmem:[%s19204_s18 + $0xac] ss:$16 sps:$4 sm:$0xff]  }
 0x3e7   : > { %6759 = vmatprep.subr.bf16.mxu1 %v15743_v0 }
 0x3e9   : > { %6719 = vmatpush2.bf16.msra.mxu0 %v15738_v4 }
 0x3ea   : > { %6760 = vmatpush2.bf16.msra.mxu1 %v15741_v5  ;;  %6720 = vmatprep.subr.bf16.mxu0 %v15746_v7  ;;  %v15787_v5 = vld [vmem:[%s19204_s18 + $0x10a0] ss:$16 sps:$4 sm:$0xff]  }
 0x3eb   : > { %6761 = vmatprep.subr.bf16.mxu1 %v15749_v8 }
 0x3ed   : > { %6721 = vmatpush2.bf16.msra.mxu0 %v15744_v9  ;;  %v15790_v9 = vld [vmem:[%s19204_s18 + $0xa8] ss:$16 sps:$4 sm:$0xff]  }
 0x3ee   : > { %6762 = vmatpush2.bf16.msra.mxu1 %v15747_v10  ;;  %6722 = vmatprep.subr.bf16.mxu0 %v15752_v14 }
 0x3ef   : > { %6763 = vmatprep.subr.bf16.mxu1 %v15755_v15 }
 0x3f1   : > { %6723 = vmatpush2.bf16.msra.mxu0 %v15750_v16  ;;  %v15795_v16 = vld [vmem:[%s19204_s18 + $0x1084] ss:$16 sps:$4 sm:$0xff]  }
 0x3f2   : > { %6764 = vmatpush2.bf16.msra.mxu1 %v15753_v17  ;;  %6724 = vmatprep.subr.bf16.mxu0 %v15758_v52  ;;  %v15798_v17 = vld [vmem:[%s19204_s18 + $0x8c] ss:$16 sps:$4 sm:$0xff]   ;;  %v15796_v52 = vld [vmem:[%s19204_s18 + $0x88] ss:$16 sps:$4 sm:$0xff]  }
 0x3f3   : > { %6765 = vmatprep.subr.bf16.mxu1 %v15761_v19  ;;  %v15801_v19 = vld [vmem:[%s19204_s18 + $0x1064] ss:$16 sps:$4 sm:$0xff]  }
 0x3f5   : > { %6725 = vmatpush2.bf16.msra.mxu0 %v15756_v20  ;;  %v15804_v20 = vld [vmem:[%s19204_s18 + $0x6c] ss:$16 sps:$4 sm:$0xff]  }
 0x3f6   : > { %6766 = vmatpush2.bf16.msra.mxu1 %v15759_v21  ;;  %6726 = vmatprep.subr.bf16.mxu0 %v15764_v22  ;;  %v15799_v21 = vld [vmem:[%s19204_s18 + $0x1060] ss:$16 sps:$4 sm:$0xff]   ;;  %v15802_v22 = vld [vmem:[%s19204_s18 + $0x68] ss:$16 sps:$4 sm:$0xff]  }
 0x3f7   : > { %6767 = vmatprep.subr.bf16.mxu1 %v15767_v23  ;;  %v15807_v23 = vld [vmem:[%s19204_s18 + $0x1044] ss:$16 sps:$4 sm:$0xff]  }
 0x3f9   : > { %6727 = vmatpush2.bf16.msra.mxu0 %v15762_v26  ;;  %v15810_v26 = vld [vmem:[%s19204_s18 + $0x4c] ss:$16 sps:$4 sm:$0xff]  }
 0x3fa   : > { %6768 = vmatpush2.bf16.msra.mxu1 %v15765_v27  ;;  %6728 = vmatprep.subr.bf16.mxu0 %v15770_v28  ;;  %v15805_v27 = vld [vmem:[%s19204_s18 + $0x1040] ss:$16 sps:$4 sm:$0xff]   ;;  %v15808_v28 = vld [vmem:[%s19204_s18 + $0x48] ss:$16 sps:$4 sm:$0xff]  }
 0x3fb   : > { %6769 = vmatprep.subr.bf16.mxu1 %v15773_v30  ;;  %v15813_v30 = vld [vmem:[%s19204_s18 + $0x1024] ss:$16 sps:$4 sm:$0xff]  }
 0x3fd   : > { %6729 = vmatpush2.bf16.msra.mxu0 %v15768_v31  ;;  %v15816_v31 = vld [vmem:[%s19204_s18 + $0x2c] ss:$16 sps:$4 sm:$0xff]  }
 0x3fe   : > { %6770 = vmatpush2.bf16.msra.mxu1 %v15771_v33  ;;  %6780 = vmatprep.subr.bf16.mxu0 %v15777_v29  ;;  %v15811_v33 = vld [vmem:[%s19204_s18 + $0x1020] ss:$16 sps:$4 sm:$0xff]   ;;  %v15822_v29 = vld [vmem:[%s19204_s18 + $0xc] ss:$16 sps:$4 sm:$0xff]  }
 0x3ff   : > { %6821 = vmatprep.subr.bf16.mxu1 %v15780_v36  ;;  %v15817_v36 = vld [vmem:[%s19204_s18 + $0x1000] ss:$16 sps:$4 sm:$0xff]  }
 0x400   : > { %v6486_v2 = vpop.f32.mrf.mxu0  ;;  %6731 = vmatmul.mubr.bf16.vlgmr.msra.gmra.mxu0 %v20313_v39 }
 0x401   : > { %v6527_v53 = vpop.f32.mrf.mxu1  ;;  %6772 = vmatmul.mubr.bf16.vlgmr.msra.gmra.mxu1 %v20317_v42  ;;  %v6487_v54 = vadd.f32 %v6486_v2, %v3671_v46  ;;  %6781 = vmatpush1.bf16.msra.mxu0 %v15775_v43  ;;  %v15828_v46 = vld [vmem:[%s19204_s18 + $0x1ec] ss:$16 sps:$4 sm:$0xff]   ;;  %v15823_v43 = vld [vmem:[%s19204_s18 + $0x1120] ss:$16 sps:$4 sm:$0xff]   ;;  %v15832_v2 = vld [vmem:[%s19204_s18 + $0x1c8] ss:$16 sps:$4 sm:$0xff]  }
 0x402   : > { %6822 = vmatpush1.bf16.msra.mxu1 %v15778_v44  ;;  %v6488_v59 = vpop.f32.mrf.mxu0  ;;  %6782 = vmatprep.subr.bf16.mxu0 %v15783_v45  ;;  %v15826_v44 = vld [vmem:[%s19204_s18 + $0x1e8] ss:$16 sps:$4 sm:$0xff]   ;;  %v15831_v45 = vld [vmem:[%s19204_s18 + $0x1104] ss:$16 sps:$4 sm:$0xff]  }
 0x403   : > { %v6529_v62 = vpop.f32.mrf.mxu1  ;;  %6823 = vmatprep.subr.bf16.mxu1 %v15786_v48  ;;  %v20331_v0 = vadd.f32 %v6527_v53, %v6487_v54  ;;  %v6489_v4 = vadd.f32 %v6488_v59, %v3675_v49  ;;  %14439 = vmatprep.mubr.msk.bf16.mxu0 %vm6448_vm4, %v20323_v50  ;;  %v15834_v48 = vld [vmem:[%s19204_s18 + $0x1cc] ss:$16 sps:$4 sm:$0xff]   ;;  %v15829_v49 = vld [vmem:[%s19204_s18 + $0x1100] ss:$16 sps:$4 sm:$0xff]   ;;  %v15835_v54 = vld [vmem:[%s19204_s18 + $0x1a8] ss:$16 sps:$4 sm:$0xff]  }
 0x404   : > { %6853 = vmatprep.mubr.bf16.mxu1 %v20017_v6  ;;  %v6490_v7 = vpop.f32.mrf.mxu0  ;;  %v15793_v6 = vld [vmem:[%s19204_s18 + $0x1080] ss:$16 sps:$4 sm:$0xff]   ;;  %v15837_v53 = vld [vmem:[%s19204_s18 + $0x1ac] ss:$16 sps:$4 sm:$0xff]  }
 0x405   : > { %v6531_v8 = vpop.f32.mrf.mxu1  ;;  %v20338_v10 = vadd.f32 %v6529_v62, %v6489_v4  ;;  %6783 = vmatpush1.bf16.msra.mxu0 %v15781_v3  ;;  %v15840_v3 = vld [vmem:[%s19204_s18 + $0x2ec] ss:$16 sps:$4 sm:$0xff]   ;;  %v15844_v4 = vld [vmem:[%s19204_s18 + $0x2c8] ss:$16 sps:$4 sm:$0xff]  }
 0x406   : > { %6824 = vmatpush1.bf16.msra.mxu1 %v15784_v55  ;;  %v6491_v14 = vpop.f32.mrf.mxu0  ;;  %6784 = vmatprep.subr.bf16.mxu0 %v15789_v58  ;;  %v15838_v55 = vld [vmem:[%s19204_s18 + $0x2e8] ss:$16 sps:$4 sm:$0xff]   ;;  %v20374_v58 = vpack.c.bf16 %v20301_v32, %v20301_v32  ;;  %v15843_v59 = vld [vmem:[%s19204_s18 + $0x18c] ss:$16 sps:$4 sm:$0xff]  }
 0x407   : > { %v6532_v15 = vpop.f32.mrf.mxu1  ;;  %6825 = vmatprep.subr.bf16.mxu1 %v15792_v63  ;;  %v15846_v62 = vld [vmem:[%s19204_s18 + $0x2cc] ss:$16 sps:$4 sm:$0xff]   ;;  %v15841_v63 = vld [vmem:[%s19204_s18 + $0x188] ss:$16 sps:$4 sm:$0xff]  }
 0x408   : > { %v15849_v32 = vld [vmem:[%s19204_s18 + $0x16c] ss:$16 sps:$4 sm:$0xff]   ;;  %v15847_v7 = vld [vmem:[%s19204_s18 + $0x168] ss:$16 sps:$4 sm:$0xff]  }
 0x409   : > { %6785 = vmatpush1.bf16.msra.mxu0 %v15787_v5  ;;  %v15852_v5 = vld [vmem:[%s19204_s18 + $0x2ac] ss:$16 sps:$4 sm:$0xff]   ;;  %v15850_v8 = vld [vmem:[%s19204_s18 + $0x2a8] ss:$16 sps:$4 sm:$0xff]  }
 0x40a   : > { %6826 = vmatpush1.bf16.msra.mxu1 %v15790_v9  ;;  %6786 = vmatprep.subr.bf16.mxu0 %v15795_v16  ;;  %v15855_v9 = vld [vmem:[%s19204_s18 + $0x14c] ss:$16 sps:$4 sm:$0xff]   ;;  %v15853_v15 = vld [vmem:[%s19204_s18 + $0x148] ss:$16 sps:$4 sm:$0xff]  }
 0x40b   : > { %6827 = vmatprep.subr.bf16.mxu1 %v15798_v17  ;;  %v15858_v14 = vld [vmem:[%s19204_s18 + $0x28c] ss:$16 sps:$4 sm:$0xff]   ;;  %v15856_v16 = vld [vmem:[%s19204_s18 + $0x288] ss:$16 sps:$4 sm:$0xff]  }
 0x40c   : > { %v15864_v17 = vld [vmem:[%s19204_s18 + $0x26c] ss:$16 sps:$4 sm:$0xff]  }
 0x40d   : > { %6787 = vmatpush1.bf16.msra.mxu0 %v15793_v6  ;;  %v15859_v6 = vld [vmem:[%s19204_s18 + $0x128] ss:$16 sps:$4 sm:$0xff]  }
 0x40e   : > { %6828 = vmatpush1.bf16.msra.mxu1 %v15796_v52  ;;  %6788 = vmatprep.subr.bf16.mxu0 %v15801_v19  ;;  %v15862_v52 = vld [vmem:[%s19204_s18 + $0x268] ss:$16 sps:$4 sm:$0xff]   ;;  %v15867_v19 = vld [vmem:[%s19204_s18 + $0x10c] ss:$16 sps:$4 sm:$0xff]  }
 0x40f   : > { %6829 = vmatprep.subr.bf16.mxu1 %v15804_v20  ;;  %v15870_v20 = vld [vmem:[%s19204_s18 + $0x24c] ss:$16 sps:$4 sm:$0xff]  }
 0x411   : > { %6789 = vmatpush1.bf16.msra.mxu0 %v15799_v21  ;;  %v15865_v21 = vld [vmem:[%s19204_s18 + $0x108] ss:$16 sps:$4 sm:$0xff]  }
 0x412   : > { %6830 = vmatpush1.bf16.msra.mxu1 %v15802_v22  ;;  %6790 = vmatprep.subr.bf16.mxu0 %v15807_v23  ;;  %v15868_v22 = vld [vmem:[%s19204_s18 + $0x248] ss:$16 sps:$4 sm:$0xff]   ;;  %v15873_v23 = vld [vmem:[%s19204_s18 + $0x22c] ss:$16 sps:$4 sm:$0xff]  }
 0x413   : > { %6831 = vmatprep.subr.bf16.mxu1 %v15810_v26  ;;  %v15876_v26 = vld [vmem:[%s19204_s18 + $0x4ec] ss:$16 sps:$4 sm:$0xff]  }
 0x415   : > { %6791 = vmatpush1.bf16.msra.mxu0 %v15805_v27  ;;  %v15871_v27 = vld [vmem:[%s19204_s18 + $0x228] ss:$16 sps:$4 sm:$0xff]  }
 0x416   : > { %6832 = vmatpush1.bf16.msra.mxu1 %v15808_v28  ;;  %6792 = vmatprep.subr.bf16.mxu0 %v15813_v30  ;;  %v15874_v28 = vld [vmem:[%s19204_s18 + $0x4e8] ss:$16 sps:$4 sm:$0xff]   ;;  %v15879_v30 = vld [vmem:[%s19204_s18 + $0x20c] ss:$16 sps:$4 sm:$0xff]  }
 0x417   : > { %6833 = vmatprep.subr.bf16.mxu1 %v15816_v31  ;;  %v15882_v31 = vld [vmem:[%s19204_s18 + $0x4cc] ss:$16 sps:$4 sm:$0xff]  }
 0x419   : > { %6793 = vmatpush1.bf16.msra.mxu0 %v15811_v33  ;;  %v15877_v33 = vld [vmem:[%s19204_s18 + $0x208] ss:$16 sps:$4 sm:$0xff]  }
 0x41a   : > { %6834 = vmatpush1.bf16.msra.mxu1 %v15814_v34  ;;  %6794 = vmatprep.subr.bf16.mxu0 %v15819_v35  ;;  %v15880_v34 = vld [vmem:[%s19204_s18 + $0x4c8] ss:$16 sps:$4 sm:$0xff]  }
 0x41b   : > { %6835 = vmatprep.subr.bf16.mxu1 %v15822_v29 }
 0x41d   : > { %6795 = vmatpush1.bf16.msra.mxu0 %v15817_v36 }
 0x41e   : > { %6836 = vmatpush1.bf16.msra.mxu1 %v15820_v37  ;;  %6808 = vmatprep.subr.bf16.mxu0 %v15825_v38 }
 0x41f   : > { %6837 = vmatprep.subr.bf16.mxu1 %v15828_v46  ;;  %v15885_v46 = vld [vmem:[%s19204_s18 + $0x3ec] ss:$16 sps:$4 sm:$0xff]  }
 0x421   : > { %6809 = vmatpush2.bf16.msra.mxu0 %v15823_v43  ;;  %v15888_v43 = vld [vmem:[%s19204_s18 + $0x4ac] ss:$16 sps:$4 sm:$0xff]  }
 0x422   : > { %6838 = vmatpush2.bf16.msra.mxu1 %v15826_v44  ;;  %6810 = vmatprep.subr.bf16.mxu0 %v15831_v45 }
 0x423   : > { %6839 = vmatprep.subr.bf16.mxu1 %v15834_v48  ;;  %v15883_v48 = vld [vmem:[%s19204_s18 + $0x3e8] ss:$16 sps:$4 sm:$0xff]  }
 0x425   : > { %6811 = vmatpush2.bf16.msra.mxu0 %v15829_v49  ;;  %v15886_v49 = vld [vmem:[%s19204_s18 + $0x4a8] ss:$16 sps:$4 sm:$0xff]  }
 0x426   : > { %6840 = vmatpush2.bf16.msra.mxu1 %v15832_v2  ;;  %6862 = vmatprep.subr.bf16.mxu0 %v15840_v3 }
 0x427   : > { %6841 = vmatprep.subr.bf16.mxu1 %v15837_v53 }
 0x428   : > { %6813 = vmatmul.mubr.bf16.vlgmr.msra.gmra.mxu0 %v20374_v58 }
 0x429   : > { %6863 = vmatpush1.bf16.msra.mxu0 %v15838_v55  ;;  %6894 = vmatprep.mubr.bf16.mxu0 %v20022_v11  ;;  %v15861_v11 = vld [vmem:[%s19204_s18 + $0x12c] ss:$16 sps:$4 sm:$0xff]   ;;  %v15892_v55 = vld [vmem:[%s19204_s18 + $0x488] ss:$16 sps:$4 sm:$0xff]  }
 0x42a   : > { %6842 = vmatpush2.bf16.msra.mxu1 %v15835_v54  ;;  %6864 = vmatprep.subr.bf16.mxu0 %v15846_v62  ;;  %v15894_v54 = vld [vmem:[%s19204_s18 + $0x48c] ss:$16 sps:$4 sm:$0xff]  }
 0x42b   : > { %6843 = vmatprep.subr.bf16.mxu1 %v15843_v59  ;;  %v15897_v59 = vld [vmem:[%s19204_s18 + $0x3ac] ss:$16 sps:$4 sm:$0xff]  }
 0x42c   : > { %v15900_v62 = vld [vmem:[%s19204_s18 + $0x46c] ss:$16 sps:$4 sm:$0xff]  }
 0x42d   : > { %6865 = vmatpush1.bf16.msra.mxu0 %v15844_v4  ;;  %v15898_v4 = vld [vmem:[%s19204_s18 + $0x468] ss:$16 sps:$4 sm:$0xff]  }
 0x42e   : > { %6844 = vmatpush2.bf16.msra.mxu1 %v15841_v63  ;;  %6866 = vmatprep.subr.bf16.mxu0 %v15852_v5  ;;  %v15895_v63 = vld [vmem:[%s19204_s18 + $0x3a8] ss:$16 sps:$4 sm:$0xff]   ;;  %v15906_v5 = vld [vmem:[%s19204_s18 + $0x44c] ss:$16 sps:$4 sm:$0xff]  }
 0x42f   : > { %6845 = vmatprep.subr.bf16.mxu1 %v15849_v32  ;;  %v15903_v32 = vld [vmem:[%s19204_s18 + $0x38c] ss:$16 sps:$4 sm:$0xff]  }
 0x431   : > { %6867 = vmatpush1.bf16.msra.mxu0 %v15850_v8  ;;  %v15904_v8 = vld [vmem:[%s19204_s18 + $0x448] ss:$16 sps:$4 sm:$0xff]  }
 0x432   : > { %6846 = vmatpush2.bf16.msra.mxu1 %v15847_v7  ;;  %6868 = vmatprep.subr.bf16.mxu0 %v15858_v14  ;;  %v15901_v7 = vld [vmem:[%s19204_s18 + $0x388] ss:$16 sps:$4 sm:$0xff]   ;;  %v15912_v14 = vld [vmem:[%s19204_s18 + $0x42c] ss:$16 sps:$4 sm:$0xff]  }
 0x433   : > { %6847 = vmatprep.subr.bf16.mxu1 %v15855_v9  ;;  %v15909_v9 = vld [vmem:[%s19204_s18 + $0x36c] ss:$16 sps:$4 sm:$0xff]  }
 0x435   : > { %6869 = vmatpush1.bf16.msra.mxu0 %v15856_v16  ;;  %v15910_v16 = vld [vmem:[%s19204_s18 + $0x428] ss:$16 sps:$4 sm:$0xff]  }
 0x436   : > { %6848 = vmatpush2.bf16.msra.mxu1 %v15853_v15  ;;  %6870 = vmatprep.subr.bf16.mxu0 %v15864_v17  ;;  %v15907_v15 = vld [vmem:[%s19204_s18 + $0x368] ss:$16 sps:$4 sm:$0xff]   ;;  %v15918_v17 = vld [vmem:[%s19204_s18 + $0x40c] ss:$16 sps:$4 sm:$0xff]  }
 0x437   : > { %6849 = vmatprep.subr.bf16.mxu1 %v15861_v11  ;;  %v15915_v11 = vld [vmem:[%s19204_s18 + $0x34c] ss:$16 sps:$4 sm:$0xff]  }
 0x439   : > { %6871 = vmatpush1.bf16.msra.mxu0 %v15862_v52  ;;  %v15916_v52 = vld [vmem:[%s19204_s18 + $0x408] ss:$16 sps:$4 sm:$0xff]  }
 0x43a   : > { %6850 = vmatpush2.bf16.msra.mxu1 %v15859_v6  ;;  %6872 = vmatprep.subr.bf16.mxu0 %v15870_v20  ;;  %v15913_v6 = vld [vmem:[%s19204_s18 + $0x348] ss:$16 sps:$4 sm:$0xff]   ;;  %v15924_v20 = vld [vmem:[%s19204_s18 + $0x5ec] ss:$16 sps:$4 sm:$0xff]  }
 0x43b   : > { %6851 = vmatprep.subr.bf16.mxu1 %v15867_v19  ;;  %v15921_v19 = vld [vmem:[%s19204_s18 + $0x32c] ss:$16 sps:$4 sm:$0xff]  }
 0x43d   : > { %6873 = vmatpush1.bf16.msra.mxu0 %v15868_v22  ;;  %v15922_v22 = vld [vmem:[%s19204_s18 + $0x5e8] ss:$16 sps:$4 sm:$0xff]  }
 0x43e   : > { %6852 = vmatpush2.bf16.msra.mxu1 %v15865_v21  ;;  %6874 = vmatprep.subr.bf16.mxu0 %v15873_v23  ;;  %v15919_v21 = vld [vmem:[%s19204_s18 + $0x328] ss:$16 sps:$4 sm:$0xff]   ;;  %v15927_v23 = vld [vmem:[%s19204_s18 + $0x30c] ss:$16 sps:$4 sm:$0xff]  }
 0x43f   : > { %6903 = vmatprep.subr.bf16.mxu1 %v15876_v26  ;;  %v15930_v26 = vld [vmem:[%s19204_s18 + $0x5cc] ss:$16 sps:$4 sm:$0xff]  }
 0x440   : > { %v6568_v35 = vpop.f32.mrf.mxu0 }
 0x441   : > { %v6609_v29 = vpop.f32.mrf.mxu1  ;;  %6854 = vmatmul.mubr.bf16.vlgmr.msra.gmra.mxu1 %v20038_v24  ;;  %v6569_v36 = vadd.f32 %v6568_v35, %v20331_v0  ;;  %6875 = vmatpush1.bf16.msra.mxu0 %v15871_v27  ;;  %v15925_v27 = vld [vmem:[%s19204_s18 + $0x308] ss:$16 sps:$4 sm:$0xff]   ;;  %v15939_v35 = vld [vmem:[%s19204_s18 + $0x58c] ss:$16 sps:$4 sm:$0xff]  }
 0x442   : > { %6904 = vmatpush1.bf16.msra.mxu1 %v15874_v28  ;;  %v6570_v37 = vpop.f32.mrf.mxu0  ;;  %6876 = vmatprep.subr.bf16.mxu0 %v15879_v30  ;;  %v15928_v28 = vld [vmem:[%s19204_s18 + $0x5c8] ss:$16 sps:$4 sm:$0xff]   ;;  %v15933_v30 = vld [vmem:[%s19204_s18 + $0x5ac] ss:$16 sps:$4 sm:$0xff]  }
 0x443   : > { %v6611_v38 = vpop.f32.mrf.mxu1  ;;  %6905 = vmatprep.subr.bf16.mxu1 %v15882_v31  ;;  %v20410_v44 = vadd.f32 %v6609_v29, %v6569_v36  ;;  %v6571_v45 = vadd.f32 %v6570_v37, %v20338_v10  ;;  %6935 = vmatprep.mubr.bf16.mxu1 %v20080_v61  ;;  %v15891_v10 = vld [vmem:[%s19204_s18 + $0x3cc] ss:$16 sps:$4 sm:$0xff]   ;;  %v15889_v61 = vld [vmem:[%s19204_s18 + $0x3c8] ss:$16 sps:$4 sm:$0xff]  }
 0x444   : > { %v6572_v24 = vpop.f32.mrf.mxu0  ;;  %v15936_v31 = vld [vmem:[%s19204_s18 + $0x6ec] ss:$16 sps:$4 sm:$0xff]   ;;  %v15937_v36 = vld [vmem:[%s19204_s18 + $0x588] ss:$16 sps:$4 sm:$0xff]  }
 0x445   : > { %v6613_v0 = vpop.f32.mrf.mxu1  ;;  %v20416_v2 = vadd.f32 %v6611_v38, %v6571_v45  ;;  %6877 = vmatpush1.bf16.msra.mxu0 %v15877_v33  ;;  %v15931_v33 = vld [vmem:[%s19204_s18 + $0x5a8] ss:$16 sps:$4 sm:$0xff]   ;;  %v15942_v29 = vld [vmem:[%s19204_s18 + $0x6cc] ss:$16 sps:$4 sm:$0xff]  }
 0x446   : > { %6906 = vmatpush1.bf16.msra.mxu1 %v15880_v34  ;;  %v6573_v53 = vpop.f32.mrf.mxu0  ;;  %6878 = vmatprep.subr.bf16.mxu0 %v15885_v46  ;;  %v15934_v34 = vld [vmem:[%s19204_s18 + $0x6e8] ss:$16 sps:$4 sm:$0xff]   ;;  %v15945_v38 = vld [vmem:[%s19204_s18 + $0x56c] ss:$16 sps:$4 sm:$0xff]  }
 0x447   : > { %v6614_v3 = vpop.f32.mrf.mxu1  ;;  %6907 = vmatprep.subr.bf16.mxu1 %v15888_v43  ;;  %v15940_v37 = vld [vmem:[%s19204_s18 + $0x6c8] ss:$16 sps:$4 sm:$0xff]   ;;  %v15948_v46 = vld [vmem:[%s19204_s18 + $0x6ac] ss:$16 sps:$4 sm:$0xff]  }
 0x448   : > { %v15943_v43 = vld [vmem:[%s19204_s18 + $0x568] ss:$16 sps:$4 sm:$0xff]   ;;  %v15957_v0 = vld [vmem:[%s19204_s18 + $0x52c] ss:$16 sps:$4 sm:$0xff]  }
 0x449   : > { %6879 = vmatpush2.bf16.msra.mxu0 %v15883_v48  ;;  %v15946_v45 = vld [vmem:[%s19204_s18 + $0x6a8] ss:$16 sps:$4 sm:$0xff]   ;;  %v15954_v48 = vld [vmem:[%s19204_s18 + $0x68c] ss:$16 sps:$4 sm:$0xff]  }
 0x44a   : > { %6908 = vmatpush1.bf16.msra.mxu1 %v15886_v49  ;;  %6880 = vmatprep.subr.bf16.mxu0 %v15891_v10  ;;  %v15949_v49 = vld [vmem:[%s19204_s18 + $0x548] ss:$16 sps:$4 sm:$0xff]   ;;  %v15963_v10 = vld [vmem:[%s19204_s18 + $0x50c] ss:$16 sps:$4 sm:$0xff]  }
 0x44b   : > { %6909 = vmatprep.subr.bf16.mxu1 %v15894_v54  ;;  %v15952_v24 = vld [vmem:[%s19204_s18 + $0x688] ss:$16 sps:$4 sm:$0xff]   ;;  %v15966_v54 = vld [vmem:[%s19204_s18 + $0x64c] ss:$16 sps:$4 sm:$0xff]  }
 0x44c   : > { %v15955_v53 = vld [vmem:[%s19204_s18 + $0x528] ss:$16 sps:$4 sm:$0xff]  }
 0x44d   : > { %6881 = vmatpush2.bf16.msra.mxu0 %v15889_v61  ;;  %v15958_v3 = vld [vmem:[%s19204_s18 + $0x668] ss:$16 sps:$4 sm:$0xff]  }
 0x44e   : > { %6910 = vmatpush1.bf16.msra.mxu1 %v15892_v55  ;;  %6882 = vmatprep.subr.bf16.mxu0 %v15897_v59  ;;  %v15961_v61 = vld [vmem:[%s19204_s18 + $0x508] ss:$16 sps:$4 sm:$0xff]   ;;  %v15969_v59 = vld [vmem:[%s19204_s18 + $0x62c] ss:$16 sps:$4 sm:$0xff]  }
 0x44f   : > { %6911 = vmatprep.subr.bf16.mxu1 %v15900_v62  ;;  %v15964_v55 = vld [vmem:[%s19204_s18 + $0x648] ss:$16 sps:$4 sm:$0xff]   ;;  %v15972_v62 = vld [vmem:[%s19204_s18 + $0x8ec] ss:$16 sps:$4 sm:$0xff]  }
 0x451   : > { %6883 = vmatpush2.bf16.msra.mxu0 %v15895_v63  ;;  %v15967_v63 = vld [vmem:[%s19204_s18 + $0x628] ss:$16 sps:$4 sm:$0xff]  }
 0x452   : > { %6912 = vmatpush1.bf16.msra.mxu1 %v15898_v4  ;;  %6884 = vmatprep.subr.bf16.mxu0 %v15903_v32  ;;  %v15970_v4 = vld [vmem:[%s19204_s18 + $0x8e8] ss:$16 sps:$4 sm:$0xff]   ;;  %v15975_v32 = vld [vmem:[%s19204_s18 + $0x60c] ss:$16 sps:$4 sm:$0xff]  }
 0x453   : > { %6913 = vmatprep.subr.bf16.mxu1 %v15906_v5  ;;  %v15978_v5 = vld [vmem:[%s19204_s18 + $0x8cc] ss:$16 sps:$4 sm:$0xff]  }
 0x455   : > { %6885 = vmatpush2.bf16.msra.mxu0 %v15901_v7  ;;  %v15973_v7 = vld [vmem:[%s19204_s18 + $0x608] ss:$16 sps:$4 sm:$0xff]  }
 0x456   : > { %6914 = vmatpush1.bf16.msra.mxu1 %v15904_v8  ;;  %6886 = vmatprep.subr.bf16.mxu0 %v15909_v9  ;;  %v15976_v8 = vld [vmem:[%s19204_s18 + $0x8c8] ss:$16 sps:$4 sm:$0xff]  }
 0x457   : > { %6915 = vmatprep.subr.bf16.mxu1 %v15912_v14 }
 0x459   : > { %6887 = vmatpush2.bf16.msra.mxu0 %v15907_v15 }
 0x45a   : > { %6916 = vmatpush1.bf16.msra.mxu1 %v15910_v16  ;;  %6888 = vmatprep.subr.bf16.mxu0 %v15915_v11 }
 0x45b   : > { %6917 = vmatprep.subr.bf16.mxu1 %v15918_v17  ;;  %v15981_v17 = vld [vmem:[%s19204_s18 + $0x7ec] ss:$16 sps:$4 sm:$0xff]  }
 0x45d   : > { %6889 = vmatpush2.bf16.msra.mxu0 %v15913_v6  ;;  %v15984_v6 = vld [vmem:[%s19204_s18 + $0x8ac] ss:$16 sps:$4 sm:$0xff]  }
 0x45e   : > { %6918 = vmatpush1.bf16.msra.mxu1 %v15916_v52  ;;  %6890 = vmatprep.subr.bf16.mxu0 %v15921_v19 }
 0x45f   : > { %6919 = vmatprep.subr.bf16.mxu1 %v15924_v20  ;;  %v15979_v20 = vld [vmem:[%s19204_s18 + $0x7e8] ss:$16 sps:$4 sm:$0xff]  }
 0x461   : > { %6891 = vmatpush2.bf16.msra.mxu0 %v15919_v21  ;;  %v15982_v21 = vld [vmem:[%s19204_s18 + $0x8a8] ss:$16 sps:$4 sm:$0xff]  }
 0x462   : > { %6920 = vmatpush2.bf16.msra.mxu1 %v15922_v22  ;;  %6892 = vmatprep.subr.bf16.mxu0 %v15927_v23 }
 0x463   : > { %6921 = vmatprep.subr.bf16.mxu1 %v15930_v26 }
 0x465   : > { %6893 = vmatpush2.bf16.msra.mxu0 %v15925_v27  ;;  %v15990_v27 = vld [vmem:[%s19204_s18 + $0x88c] ss:$16 sps:$4 sm:$0xff]  }
 0x466   : > { %6922 = vmatpush2.bf16.msra.mxu1 %v15928_v28  ;;  %6944 = vmatprep.subr.bf16.mxu0 %v15936_v31  ;;  %v15988_v28 = vld [vmem:[%s19204_s18 + $0x888] ss:$16 sps:$4 sm:$0xff]   ;;  %v15996_v31 = vld [vmem:[%s19204_s18 + $0x86c] ss:$16 sps:$4 sm:$0xff]  }
 0x467   : > { %6923 = vmatprep.subr.bf16.mxu1 %v15933_v30  ;;  %v15993_v30 = vld [vmem:[%s19204_s18 + $0x7ac] ss:$16 sps:$4 sm:$0xff]  }
 0x468   : > { %6895 = vmatmul.mubr.bf16.vlgmr.msra.gmra.mxu0 %v20040_v25  ;;  %v15951_v25 = vld [vmem:[%s19204_s18 + $0x54c] ss:$16 sps:$4 sm:$0xff]  }
 0x469   : > { %6945 = vmatpush1.bf16.msra.mxu0 %v15934_v34  ;;  %6976 = vmatprep.mubr.bf16.mxu0 %v20086_v1  ;;  %v15960_v1 = vld [vmem:[%s19204_s18 + $0x66c] ss:$16 sps:$4 sm:$0xff]   ;;  %v15994_v34 = vld [vmem:[%s19204_s18 + $0x868] ss:$16 sps:$4 sm:$0xff]  }
 0x46a   : > { %6924 = vmatpush2.bf16.msra.mxu1 %v15931_v33  ;;  %6946 = vmatprep.subr.bf16.mxu0 %v15942_v29  ;;  %v15991_v33 = vld [vmem:[%s19204_s18 + $0x7a8] ss:$16 sps:$4 sm:$0xff]   ;;  %v16002_v29 = vld [vmem:[%s19204_s18 + $0x84c] ss:$16 sps:$4 sm:$0xff]  }
 0x46b   : > { %6925 = vmatprep.subr.bf16.mxu1 %v15939_v35  ;;  %v15999_v35 = vld [vmem:[%s19204_s18 + $0x78c] ss:$16 sps:$4 sm:$0xff]  }
 0x46d   : > { %6947 = vmatpush1.bf16.msra.mxu0 %v15940_v37  ;;  %v16000_v37 = vld [vmem:[%s19204_s18 + $0x848] ss:$16 sps:$4 sm:$0xff]  }
 0x46e   : > { %6926 = vmatpush2.bf16.msra.mxu1 %v15937_v36  ;;  %6948 = vmatprep.subr.bf16.mxu0 %v15948_v46  ;;  %v15997_v36 = vld [vmem:[%s19204_s18 + $0x788] ss:$16 sps:$4 sm:$0xff]   ;;  %v16008_v46 = vld [vmem:[%s19204_s18 + $0x82c] ss:$16 sps:$4 sm:$0xff]  }
 0x46f   : > { %6927 = vmatprep.subr.bf16.mxu1 %v15945_v38  ;;  %v16005_v38 = vld [vmem:[%s19204_s18 + $0x76c] ss:$16 sps:$4 sm:$0xff]  }
 0x471   : > { %6949 = vmatpush1.bf16.msra.mxu0 %v15946_v45  ;;  %v16006_v45 = vld [vmem:[%s19204_s18 + $0x828] ss:$16 sps:$4 sm:$0xff]  }
 0x472   : > { %6928 = vmatpush2.bf16.msra.mxu1 %v15943_v43  ;;  %6950 = vmatprep.subr.bf16.mxu0 %v15954_v48  ;;  %v16003_v43 = vld [vmem:[%s19204_s18 + $0x768] ss:$16 sps:$4 sm:$0xff]   ;;  %v16014_v48 = vld [vmem:[%s19204_s18 + $0x80c] ss:$16 sps:$4 sm:$0xff]  }
 0x473   : > { %6929 = vmatprep.subr.bf16.mxu1 %v15951_v25  ;;  %v16011_v25 = vld [vmem:[%s19204_s18 + $0x74c] ss:$16 sps:$4 sm:$0xff]  }
 0x475   : > { %6951 = vmatpush1.bf16.msra.mxu0 %v15952_v24  ;;  %v16012_v24 = vld [vmem:[%s19204_s18 + $0x808] ss:$16 sps:$4 sm:$0xff]  }
 0x476   : > { %6930 = vmatpush2.bf16.msra.mxu1 %v15949_v49  ;;  %6952 = vmatprep.subr.bf16.mxu0 %v15960_v1  ;;  %v16009_v49 = vld [vmem:[%s19204_s18 + $0x748] ss:$16 sps:$4 sm:$0xff]   ;;  %v16020_v1 = vld [vmem:[%s19204_s18 + $0x9ec] ss:$16 sps:$4 sm:$0xff]  }
 0x477   : > { %6931 = vmatprep.subr.bf16.mxu1 %v15957_v0  ;;  %v16017_v0 = vld [vmem:[%s19204_s18 + $0x72c] ss:$16 sps:$4 sm:$0xff]  }
 0x479   : > { %6953 = vmatpush1.bf16.msra.mxu0 %v15958_v3  ;;  %v16018_v3 = vld [vmem:[%s19204_s18 + $0x9e8] ss:$16 sps:$4 sm:$0xff]  }
 0x47a   : > { %6932 = vmatpush2.bf16.msra.mxu1 %v15955_v53  ;;  %6954 = vmatprep.subr.bf16.mxu0 %v15966_v54  ;;  %v16015_v53 = vld [vmem:[%s19204_s18 + $0x728] ss:$16 sps:$4 sm:$0xff]   ;;  %v16026_v54 = vld [vmem:[%s19204_s18 + $0x9cc] ss:$16 sps:$4 sm:$0xff]  }
 0x47b   : > { %6933 = vmatprep.subr.bf16.mxu1 %v15963_v10  ;;  %v16023_v10 = vld [vmem:[%s19204_s18 + $0x70c] ss:$16 sps:$4 sm:$0xff]  }
 0x47d   : > { %6955 = vmatpush1.bf16.msra.mxu0 %v15964_v55  ;;  %v16024_v55 = vld [vmem:[%s19204_s18 + $0x9c8] ss:$16 sps:$4 sm:$0xff]  }
 0x47e   : > { %6934 = vmatpush2.bf16.msra.mxu1 %v15961_v61  ;;  %6956 = vmatprep.subr.bf16.mxu0 %v15969_v59  ;;  %v16021_v61 = vld [vmem:[%s19204_s18 + $0x708] ss:$16 sps:$4 sm:$0xff]   ;;  %v16029_v59 = vld [vmem:[%s19204_s18 + $0x9ac] ss:$16 sps:$4 sm:$0xff]  }
 0x47f   : > { %6985 = vmatprep.subr.bf16.mxu1 %v15972_v62  ;;  %v16032_v62 = vld [vmem:[%s19204_s18 + $0xaec] ss:$16 sps:$4 sm:$0xff]  }
 0x480   : > { %v6650_v9 = vpop.f32.mrf.mxu0 }
 0x481   : > { %v6691_v14 = vpop.f32.mrf.mxu1  ;;  %6936 = vmatmul.mubr.bf16.vlgmr.msra.gmra.mxu1 %v20126_v40  ;;  %v6651_v15 = vadd.f32 %v6650_v9, %v20410_v44  ;;  %6957 = vmatpush1.bf16.msra.mxu0 %v15967_v63  ;;  %v16027_v63 = vld [vmem:[%s19204_s18 + $0x9a8] ss:$16 sps:$4 sm:$0xff]   ;;  %v16041_v9 = vld [vmem:[%s19204_s18 + $0x96c] ss:$16 sps:$4 sm:$0xff]  }
 0x482   : > { %6986 = vmatpush1.bf16.msra.mxu1 %v15970_v4  ;;  %v6652_v16 = vpop.f32.mrf.mxu0  ;;  %6958 = vmatprep.subr.bf16.mxu0 %v15975_v32  ;;  %v16030_v4 = vld [vmem:[%s19204_s18 + $0xae8] ss:$16 sps:$4 sm:$0xff]   ;;  %v16035_v32 = vld [vmem:[%s19204_s18 + $0x98c] ss:$16 sps:$4 sm:$0xff]  }
 0x483   : > { %v6693_v11 = vpop.f32.mrf.mxu1  ;;  %6987 = vmatprep.subr.bf16.mxu1 %v15978_v5  ;;  %v20484_v52 = vadd.f32 %v6691_v14, %v6651_v15  ;;  %v6653_v19 = vadd.f32 %v6652_v16, %v20416_v2  ;;  %7017 = vmatprep.mubr.bf16.mxu1 %v20150_v56  ;;  %v15987_v2 = vld [vmem:[%s19204_s18 + $0x7cc] ss:$16 sps:$4 sm:$0xff]   ;;  %v15985_v56 = vld [vmem:[%s19204_s18 + $0x7c8] ss:$16 sps:$4 sm:$0xff]  }
 0x484   : > { %v6654_v40 = vpop.f32.mrf.mxu0  ;;  %v16038_v5 = vld [vmem:[%s19204_s18 + $0xacc] ss:$16 sps:$4 sm:$0xff]   ;;  %v16039_v15 = vld [vmem:[%s19204_s18 + $0x968] ss:$16 sps:$4 sm:$0xff]  }
 0x485   : > { %v6695_v44 = vpop.f32.mrf.mxu1  ;;  %v20490_v22 = vadd.f32 %v6693_v11, %v6653_v19  ;;  %6959 = vmatpush1.bf16.msra.mxu0 %v15973_v7  ;;  %v16033_v7 = vld [vmem:[%s19204_s18 + $0x988] ss:$16 sps:$4 sm:$0xff]   ;;  %v16044_v14 = vld [vmem:[%s19204_s18 + $0xaac] ss:$16 sps:$4 sm:$0xff]  }
 0x486   : > { %6988 = vmatpush1.bf16.msra.mxu1 %v15976_v8  ;;  %v6655_v23 = vpop.f32.mrf.mxu0  ;;  %6960 = vmatprep.subr.bf16.mxu0 %v15981_v17  ;;  %v16036_v8 = vld [vmem:[%s19204_s18 + $0xac8] ss:$16 sps:$4 sm:$0xff]   ;;  %v16047_v16 = vld [vmem:[%s19204_s18 + $0x94c] ss:$16 sps:$4 sm:$0xff]  }
 0x487   : > { %v6696_v26 = vpop.f32.mrf.mxu1  ;;  %6989 = vmatprep.subr.bf16.mxu1 %v15984_v6  ;;  %v16050_v11 = vld [vmem:[%s19204_s18 + $0xa8c] ss:$16 sps:$4 sm:$0xff]   ;;  %v16045_v17 = vld [vmem:[%s19204_s18 + $0x948] ss:$16 sps:$4 sm:$0xff]  }
 0x488   : > { %v16048_v6 = vld [vmem:[%s19204_s18 + $0xa88] ss:$16 sps:$4 sm:$0xff]   ;;  %v16056_v19 = vld [vmem:[%s19204_s18 + $0xa6c] ss:$16 sps:$4 sm:$0xff]  }
 0x489   : > { %6961 = vmatpush2.bf16.msra.mxu0 %v15979_v20  ;;  %v16051_v20 = vld [vmem:[%s19204_s18 + $0x928] ss:$16 sps:$4 sm:$0xff]   ;;  %v16059_v40 = vld [vmem:[%s19204_s18 + $0x90c] ss:$16 sps:$4 sm:$0xff]  }
 0x48a   : > { %6990 = vmatpush1.bf16.msra.mxu1 %v15982_v21  ;;  %6962 = vmatprep.subr.bf16.mxu0 %v15987_v2  ;;  %v16054_v21 = vld [vmem:[%s19204_s18 + $0xa68] ss:$16 sps:$4 sm:$0xff]   ;;  %v16062_v44 = vld [vmem:[%s19204_s18 + $0xa4c] ss:$16 sps:$4 sm:$0xff]  }
 0x48b   : > { %6991 = vmatprep.subr.bf16.mxu1 %v15990_v27  ;;  %v16057_v23 = vld [vmem:[%s19204_s18 + $0x908] ss:$16 sps:$4 sm:$0xff]   ;;  %v16065_v2 = vld [vmem:[%s19204_s18 + $0xa2c] ss:$16 sps:$4 sm:$0xff]  }
 0x48c   : > { %v16060_v26 = vld [vmem:[%s19204_s18 + $0xa48] ss:$16 sps:$4 sm:$0xff]   ;;  %v16068_v27 = vld [vmem:[%s19204_s18 + $0xcec] ss:$16 sps:$4 sm:$0xff]  }
 0x48d   : > { %6963 = vmatpush2.bf16.msra.mxu0 %v15985_v56  ;;  %v16063_v56 = vld [vmem:[%s19204_s18 + $0xa28] ss:$16 sps:$4 sm:$0xff]  }
 0x48e   : > { %6992 = vmatpush1.bf16.msra.mxu1 %v15988_v28  ;;  %6964 = vmatprep.subr.bf16.mxu0 %v15993_v30  ;;  %v16066_v28 = vld [vmem:[%s19204_s18 + $0xce8] ss:$16 sps:$4 sm:$0xff]   ;;  %v16071_v30 = vld [vmem:[%s19204_s18 + $0xa0c] ss:$16 sps:$4 sm:$0xff]  }
 0x48f   : > { %6993 = vmatprep.subr.bf16.mxu1 %v15996_v31  ;;  %v16074_v31 = vld [vmem:[%s19204_s18 + $0xccc] ss:$16 sps:$4 sm:$0xff]  }
 0x491   : > { %6965 = vmatpush2.bf16.msra.mxu0 %v15991_v33 }
 0x492   : > { %6994 = vmatpush1.bf16.msra.mxu1 %v15994_v34  ;;  %6966 = vmatprep.subr.bf16.mxu0 %v15999_v35 }
 0x493   : > { %6995 = vmatprep.subr.bf16.mxu1 %v16002_v29  ;;  %v16069_v29 = vld [vmem:[%s19204_s18 + $0xa08] ss:$16 sps:$4 sm:$0xff]  }
 0x495   : > { %6967 = vmatpush2.bf16.msra.mxu0 %v15997_v36  ;;  %v16072_v36 = vld [vmem:[%s19204_s18 + $0xcc8] ss:$16 sps:$4 sm:$0xff]  }
 0x496   : > { %6996 = vmatpush1.bf16.msra.mxu1 %v16000_v37  ;;  %6968 = vmatprep.subr.bf16.mxu0 %v16005_v38 }
 0x497   : > { %6997 = vmatprep.subr.bf16.mxu1 %v16008_v46  ;;  %v16077_v46 = vld [vmem:[%s19204_s18 + $0xbec] ss:$16 sps:$4 sm:$0xff]  }
 0x499   : > { %6969 = vmatpush2.bf16.msra.mxu0 %v16003_v43  ;;  %v16080_v43 = vld [vmem:[%s19204_s18 + $0xcac] ss:$16 sps:$4 sm:$0xff]  }
 0x49a   : > { %6998 = vmatpush1.bf16.msra.mxu1 %v16006_v45  ;;  %6970 = vmatprep.subr.bf16.mxu0 %v16011_v25 }
 0x49b   : > { %6999 = vmatprep.subr.bf16.mxu1 %v16014_v48 }
 0x49d   : > { %6971 = vmatpush2.bf16.msra.mxu0 %v16009_v49  ;;  %v16075_v49 = vld [vmem:[%s19204_s18 + $0xbe8] ss:$16 sps:$4 sm:$0xff]  }
 0x49e   : > { %7000 = vmatpush1.bf16.msra.mxu1 %v16012_v24  ;;  %6972 = vmatprep.subr.bf16.mxu0 %v16017_v0  ;;  %v16078_v24 = vld [vmem:[%s19204_s18 + $0xca8] ss:$16 sps:$4 sm:$0xff]  }
 0x49f   : > { %7001 = vmatprep.subr.bf16.mxu1 %v16020_v1 }
 0x4a1   : > { %6973 = vmatpush2.bf16.msra.mxu0 %v16015_v53  ;;  %v16081_v53 = vld [vmem:[%s19204_s18 + $0xbc8] ss:$16 sps:$4 sm:$0xff]  }
 0x4a2   : > { %7002 = vmatpush2.bf16.msra.mxu1 %v16018_v3  ;;  %6974 = vmatprep.subr.bf16.mxu0 %v16023_v10  ;;  %v16084_v3 = vld [vmem:[%s19204_s18 + $0xc88] ss:$16 sps:$4 sm:$0xff]   ;;  %v16089_v10 = vld [vmem:[%s19204_s18 + $0xbac] ss:$16 sps:$4 sm:$0xff]  }
 0x4a3   : > { %7003 = vmatprep.subr.bf16.mxu1 %v16026_v54  ;;  %v16092_v54 = vld [vmem:[%s19204_s18 + $0xc6c] ss:$16 sps:$4 sm:$0xff]  }
 0x4a5   : > { %6975 = vmatpush2.bf16.msra.mxu0 %v16021_v61  ;;  %v16087_v61 = vld [vmem:[%s19204_s18 + $0xba8] ss:$16 sps:$4 sm:$0xff]  }
 0x4a6   : > { %7004 = vmatpush2.bf16.msra.mxu1 %v16024_v55  ;;  %7026 = vmatprep.subr.bf16.mxu0 %v16032_v62  ;;  %v16090_v55 = vld [vmem:[%s19204_s18 + $0xc68] ss:$16 sps:$4 sm:$0xff]   ;;  %v16098_v62 = vld [vmem:[%s19204_s18 + $0xc4c] ss:$16 sps:$4 sm:$0xff]  }
 0x4a7   : > { %7005 = vmatprep.subr.bf16.mxu1 %v16029_v59  ;;  %v16095_v59 = vld [vmem:[%s19204_s18 + $0xb8c] ss:$16 sps:$4 sm:$0xff]  }
 0x4a8   : > { %6977 = vmatmul.mubr.bf16.vlgmr.msra.gmra.mxu0 %v20130_v41  ;;  %v16042_v41 = vld [vmem:[%s19204_s18 + $0xaa8] ss:$16 sps:$4 sm:$0xff]  }
 0x4a9   : > { %7027 = vmatpush1.bf16.msra.mxu0 %v16030_v4  ;;  %7058 = vmatprep.mubr.bf16.mxu0 %v20156_v60  ;;  %v16053_v60 = vld [vmem:[%s19204_s18 + $0x92c] ss:$16 sps:$4 sm:$0xff]   ;;  %v16096_v4 = vld [vmem:[%s19204_s18 + $0xc48] ss:$16 sps:$4 sm:$0xff]  }
 0x4aa   : > { %7006 = vmatpush2.bf16.msra.mxu1 %v16027_v63  ;;  %7028 = vmatprep.subr.bf16.mxu0 %v16038_v5  ;;  %v16093_v63 = vld [vmem:[%s19204_s18 + $0xb88] ss:$16 sps:$4 sm:$0xff]   ;;  %v16104_v5 = vld [vmem:[%s19204_s18 + $0xc2c] ss:$16 sps:$4 sm:$0xff]  }
 0x4ab   : > { %7007 = vmatprep.subr.bf16.mxu1 %v16035_v32  ;;  %v16101_v32 = vld [vmem:[%s19204_s18 + $0xb6c] ss:$16 sps:$4 sm:$0xff]  }
 0x4ad   : > { %7029 = vmatpush1.bf16.msra.mxu0 %v16036_v8  ;;  %v16102_v8 = vld [vmem:[%s19204_s18 + $0xc28] ss:$16 sps:$4 sm:$0xff]  }
 0x4ae   : > { %7008 = vmatpush2.bf16.msra.mxu1 %v16033_v7  ;;  %7030 = vmatprep.subr.bf16.mxu0 %v16044_v14  ;;  %v16099_v7 = vld [vmem:[%s19204_s18 + $0xb68] ss:$16 sps:$4 sm:$0xff]   ;;  %v16110_v14 = vld [vmem:[%s19204_s18 + $0xc0c] ss:$16 sps:$4 sm:$0xff]  }
 0x4af   : > { %7009 = vmatprep.subr.bf16.mxu1 %v16041_v9  ;;  %v16107_v9 = vld [vmem:[%s19204_s18 + $0xb4c] ss:$16 sps:$4 sm:$0xff]  }
 0x4b1   : > { %7031 = vmatpush1.bf16.msra.mxu0 %v16042_v41  ;;  %v16108_v41 = vld [vmem:[%s19204_s18 + $0xc08] ss:$16 sps:$4 sm:$0xff]  }
 0x4b2   : > { %7010 = vmatpush2.bf16.msra.mxu1 %v16039_v15  ;;  %7032 = vmatprep.subr.bf16.mxu0 %v16050_v11  ;;  %v16105_v15 = vld [vmem:[%s19204_s18 + $0xb48] ss:$16 sps:$4 sm:$0xff]   ;;  %v16116_v11 = vld [vmem:[%s19204_s18 + $0xdec] ss:$16 sps:$4 sm:$0xff]  }
 0x4b3   : > { %7011 = vmatprep.subr.bf16.mxu1 %v16047_v16  ;;  %v16113_v16 = vld [vmem:[%s19204_s18 + $0xb2c] ss:$16 sps:$4 sm:$0xff]  }
 0x4b5   : > { %7033 = vmatpush1.bf16.msra.mxu0 %v16048_v6  ;;  %v16114_v6 = vld [vmem:[%s19204_s18 + $0xde8] ss:$16 sps:$4 sm:$0xff]  }
 0x4b6   : > { %7012 = vmatpush2.bf16.msra.mxu1 %v16045_v17  ;;  %7034 = vmatprep.subr.bf16.mxu0 %v16056_v19  ;;  %v16111_v17 = vld [vmem:[%s19204_s18 + $0xb28] ss:$16 sps:$4 sm:$0xff]   ;;  %v16122_v19 = vld [vmem:[%s19204_s18 + $0xdcc] ss:$16 sps:$4 sm:$0xff]  }
 0x4b7   : > { %7013 = vmatprep.subr.bf16.mxu1 %v16053_v60  ;;  %v16119_v60 = vld [vmem:[%s19204_s18 + $0xb0c] ss:$16 sps:$4 sm:$0xff]  }
 0x4b9   : > { %7035 = vmatpush1.bf16.msra.mxu0 %v16054_v21  ;;  %v16120_v21 = vld [vmem:[%s19204_s18 + $0xdc8] ss:$16 sps:$4 sm:$0xff]  }
 0x4ba   : > { %7014 = vmatpush2.bf16.msra.mxu1 %v16051_v20  ;;  %7036 = vmatprep.subr.bf16.mxu0 %v16062_v44  ;;  %v16117_v20 = vld [vmem:[%s19204_s18 + $0xb08] ss:$16 sps:$4 sm:$0xff]   ;;  %v16128_v44 = vld [vmem:[%s19204_s18 + $0xeec] ss:$16 sps:$4 sm:$0xff]  }
 0x4bb   : > { %7015 = vmatprep.subr.bf16.mxu1 %v16059_v40  ;;  %v16125_v40 = vld [vmem:[%s19204_s18 + $0xdac] ss:$16 sps:$4 sm:$0xff]  }
 0x4bd   : > { %7037 = vmatpush1.bf16.msra.mxu0 %v16060_v26  ;;  %v16126_v26 = vld [vmem:[%s19204_s18 + $0xee8] ss:$16 sps:$4 sm:$0xff]  }
 0x4be   : > { %7016 = vmatpush2.bf16.msra.mxu1 %v16057_v23  ;;  %7038 = vmatprep.subr.bf16.mxu0 %v16065_v2  ;;  %v16123_v23 = vld [vmem:[%s19204_s18 + $0xda8] ss:$16 sps:$4 sm:$0xff]   ;;  %v16131_v2 = vld [vmem:[%s19204_s18 + $0xd8c] ss:$16 sps:$4 sm:$0xff]  }
 0x4bf   : > { %7067 = vmatprep.subr.bf16.mxu1 %v16068_v27  ;;  %v16134_v27 = vld [vmem:[%s19204_s18 + $0xecc] ss:$16 sps:$4 sm:$0xff]  }
 0x4c0   : > { %v6732_v33 = vpop.f32.mrf.mxu0 }
 0x4c1   : > { %v6773_v34 = vpop.f32.mrf.mxu1  ;;  %7018 = vmatmul.mubr.bf16.vlgmr.msra.gmra.mxu1 %v20226_v12  ;;  %v6733_v35 = vadd.f32 %v6732_v33, %v20484_v52  ;;  %7039 = vmatpush1.bf16.msra.mxu0 %v16063_v56 }
 0x4c2   : > { %7068 = vmatpush1.bf16.msra.mxu1 %v16066_v28  ;;  %v6734_v37 = vpop.f32.mrf.mxu0  ;;  %7040 = vmatprep.subr.bf16.mxu0 %v16071_v30  ;;  %v16129_v30 = vld [vmem:[%s19204_s18 + $0xd88] ss:$16 sps:$4 sm:$0xff]  }
 0x4c3   : > { %v6775_v38 = vpop.f32.mrf.mxu1  ;;  %7069 = vmatprep.subr.bf16.mxu1 %v16074_v31  ;;  %v20558_v45 = vadd.f32 %v6773_v34, %v6733_v35  ;;  %v6735_v12 = vadd.f32 %v6734_v37, %v20490_v22  ;;  %7099 = vmatprep.mubr.bf16.mxu1 %v20236_v18  ;;  %v16083_v22 = vld [vmem:[%s19204_s18 + $0xbcc] ss:$16 sps:$4 sm:$0xff]   ;;  %v16132_v31 = vld [vmem:[%s19204_s18 + $0xec8] ss:$16 sps:$4 sm:$0xff]  }
 0x4c4   : > { %v6736_v52 = vpop.f32.mrf.mxu0  ;;  %v16086_v18 = vld [vmem:[%s19204_s18 + $0xc8c] ss:$16 sps:$4 sm:$0xff]  }
 0x4c5   : > { %v6777_v25 = vpop.f32.mrf.mxu1  ;;  %v20562_v48 = vadd.f32 %v6775_v38, %v6735_v12  ;;  %7041 = vmatpush1.bf16.msra.mxu0 %v16069_v29  ;;  %v16137_v34 = vld [vmem:[%s19204_s18 + $0xd6c] ss:$16 sps:$4 sm:$0xff]   ;;  %v16135_v29 = vld [vmem:[%s19204_s18 + $0xd68] ss:$16 sps:$4 sm:$0xff]  }
 0x4c6   : > { %7070 = vmatpush1.bf16.msra.mxu1 %v16072_v36  ;;  %v6737_v0 = vpop.f32.mrf.mxu0  ;;  %7042 = vmatprep.subr.bf16.mxu0 %v16077_v46  ;;  %v16140_v35 = vld [vmem:[%s19204_s18 + $0xeac] ss:$16 sps:$4 sm:$0xff]   ;;  %v16138_v36 = vld [vmem:[%s19204_s18 + $0xea8] ss:$16 sps:$4 sm:$0xff]  }
 0x4c7   : > { %v6778_v1 = vpop.f32.mrf.mxu1  ;;  %7071 = vmatprep.subr.bf16.mxu1 %v16080_v43  ;;  %v16143_v38 = vld [vmem:[%s19204_s18 + $0xd4c] ss:$16 sps:$4 sm:$0xff]   ;;  %v16141_v43 = vld [vmem:[%s19204_s18 + $0xd48] ss:$16 sps:$4 sm:$0xff]  }
 0x4c8   : > { %v16146_v46 = vld [vmem:[%s19204_s18 + $0xe8c] ss:$16 sps:$4 sm:$0xff]   ;;  %v16147_v52 = vld [vmem:[%s19204_s18 + $0xd28] ss:$16 sps:$4 sm:$0xff]  }
 0x4c9   : > { %7043 = vmatpush2.bf16.msra.mxu0 %v16075_v49  ;;  %v16152_v12 = vld [vmem:[%s19204_s18 + $0xe6c] ss:$16 sps:$4 sm:$0xff]   ;;  %v16150_v25 = vld [vmem:[%s19204_s18 + $0xe68] ss:$16 sps:$4 sm:$0xff]  }
 0x4ca   : > { %7072 = vmatpush1.bf16.msra.mxu1 %v16078_v24  ;;  %7044 = vmatprep.subr.bf16.mxu0 %v16083_v22  ;;  %v16155_v49 = vld [vmem:[%s19204_s18 + $0xd0c] ss:$16 sps:$4 sm:$0xff]   ;;  %v16153_v0 = vld [vmem:[%s19204_s18 + $0xd08] ss:$16 sps:$4 sm:$0xff]  }
 0x4cb   : > { %7073 = vmatprep.subr.bf16.mxu1 %v16086_v18  ;;  %v16158_v24 = vld [vmem:[%s19204_s18 + $0xe4c] ss:$16 sps:$4 sm:$0xff]   ;;  %v16156_v1 = vld [vmem:[%s19204_s18 + $0xe48] ss:$16 sps:$4 sm:$0xff]  }
 0x4cc   : > { %v16161_v22 = vld [vmem:[%s19204_s18 + $0xe2c] ss:$16 sps:$4 sm:$0xff]  }
 0x4cd   : > { %7045 = vmatpush2.bf16.msra.mxu0 %v16081_v53  ;;  %v16164_v18 = vld [vmem:[%s19204_s18 + $0x10ec] ss:$16 sps:$4 sm:$0xff]   ;;  %v16159_v53 = vld [vmem:[%s19204_s18 + $0xe28] ss:$16 sps:$4 sm:$0xff]  }
 0x4ce   : > { %7074 = vmatpush1.bf16.msra.mxu1 %v16084_v3  ;;  %7046 = vmatprep.subr.bf16.mxu0 %v16089_v10  ;;  %v16162_v3 = vld [vmem:[%s19204_s18 + $0x10e8] ss:$16 sps:$4 sm:$0xff]   ;;  %v16167_v10 = vld [vmem:[%s19204_s18 + $0xe0c] ss:$16 sps:$4 sm:$0xff]  }
 0x4cf   : > { %7075 = vmatprep.subr.bf16.mxu1 %v16092_v54  ;;  %v16170_v54 = vld [vmem:[%s19204_s18 + $0x10cc] ss:$16 sps:$4 sm:$0xff]  }
 0x4d1   : > { %7047 = vmatpush2.bf16.msra.mxu0 %v16087_v61 }
 0x4d2   : > { %7076 = vmatpush1.bf16.msra.mxu1 %v16090_v55  ;;  %7048 = vmatprep.subr.bf16.mxu0 %v16095_v59  ;;  %v16165_v55 = vld [vmem:[%s19204_s18 + $0xe08] ss:$16 sps:$4 sm:$0xff]  }
 0x4d3   : > { %7077 = vmatprep.subr.bf16.mxu1 %v16098_v62  ;;  %v16168_v59 = vld [vmem:[%s19204_s18 + $0x10c8] ss:$16 sps:$4 sm:$0xff]  }
 0x4d5   : > { %7049 = vmatpush2.bf16.msra.mxu0 %v16093_v63  ;;  %v16173_v63 = vld [vmem:[%s19204_s18 + $0xfec] ss:$16 sps:$4 sm:$0xff]  }
 0x4d6   : > { %7078 = vmatpush1.bf16.msra.mxu1 %v16096_v4  ;;  %7050 = vmatprep.subr.bf16.mxu0 %v16101_v32  ;;  %v16176_v4 = vld [vmem:[%s19204_s18 + $0x10ac] ss:$16 sps:$4 sm:$0xff]  }
 0x4d7   : > { %7079 = vmatprep.subr.bf16.mxu1 %v16104_v5  ;;  %v16174_v5 = vld [vmem:[%s19204_s18 + $0x10a8] ss:$16 sps:$4 sm:$0xff]  }
 0x4d9   : > { %7051 = vmatpush2.bf16.msra.mxu0 %v16099_v7 }
 0x4da   : > { %7080 = vmatpush1.bf16.msra.mxu1 %v16102_v8  ;;  %7052 = vmatprep.subr.bf16.mxu0 %v16107_v9  ;;  %v16179_v8 = vld [vmem:[%s19204_s18 + $0xfcc] ss:$16 sps:$4 sm:$0xff]  }
 0x4db   : > { %7081 = vmatprep.subr.bf16.mxu1 %v16110_v14  ;;  %v16182_v9 = vld [vmem:[%s19204_s18 + $0x108c] ss:$16 sps:$4 sm:$0xff]   ;;  %v16177_v14 = vld [vmem:[%s19204_s18 + $0xfc8] ss:$16 sps:$4 sm:$0xff]  }
 0x4dd   : > { %7053 = vmatpush2.bf16.msra.mxu0 %v16105_v15  ;;  %v16185_v15 = vld [vmem:[%s19204_s18 + $0xfac] ss:$16 sps:$4 sm:$0xff]  }
 0x4de   : > { %7082 = vmatpush1.bf16.msra.mxu1 %v16108_v41  ;;  %7054 = vmatprep.subr.bf16.mxu0 %v16113_v16  ;;  %v16188_v41 = vld [vmem:[%s19204_s18 + $0x106c] ss:$16 sps:$4 sm:$0xff]   ;;  %v16183_v16 = vld [vmem:[%s19204_s18 + $0xfa8] ss:$16 sps:$4 sm:$0xff]  }
 0x4df   : > { %7083 = vmatprep.subr.bf16.mxu1 %v16116_v11  ;;  %v16186_v11 = vld [vmem:[%s19204_s18 + $0x1068] ss:$16 sps:$4 sm:$0xff]  }
 0x4e1   : > { %7055 = vmatpush2.bf16.msra.mxu0 %v16111_v17  ;;  %v16191_v17 = vld [vmem:[%s19204_s18 + $0xf8c] ss:$16 sps:$4 sm:$0xff]  }
 0x4e2   : > { %7084 = vmatpush2.bf16.msra.mxu1 %v16114_v6  ;;  %7056 = vmatprep.subr.bf16.mxu0 %v16119_v60  ;;  %v16194_v6 = vld [vmem:[%s19204_s18 + $0x104c] ss:$16 sps:$4 sm:$0xff]   ;;  %v16189_v60 = vld [vmem:[%s19204_s18 + $0xf88] ss:$16 sps:$4 sm:$0xff]  }
 0x4e3   : > { %7085 = vmatprep.subr.bf16.mxu1 %v16122_v19  ;;  %v16192_v19 = vld [vmem:[%s19204_s18 + $0x1048] ss:$16 sps:$4 sm:$0xff]  }
 0x4e5   : > { %7057 = vmatpush2.bf16.msra.mxu0 %v16117_v20  ;;  %v16197_v20 = vld [vmem:[%s19204_s18 + $0xf6c] ss:$16 sps:$4 sm:$0xff]  }
 0x4e6   : > { %7086 = vmatpush2.bf16.msra.mxu1 %v16120_v21  ;;  %7108 = vmatprep.subr.bf16.mxu0 %v16128_v44  ;;  %v16200_v21 = vld [vmem:[%s19204_s18 + $0x102c] ss:$16 sps:$4 sm:$0xff]   ;;  %v16198_v44 = vld [vmem:[%s19204_s18 + $0x1028] ss:$16 sps:$4 sm:$0xff]  }
 0x4e7   : > { %7087 = vmatprep.subr.bf16.mxu1 %v16125_v40  ;;  %v16195_v40 = vld [vmem:[%s19204_s18 + $0xf68] ss:$16 sps:$4 sm:$0xff]  }
 0x4e8   : > { %v6814_v56 = vpop.f32.mrf.mxu0  ;;  %7059 = vmatmul.mubr.bf16.vlgmr.msra.gmra.mxu0 %v20230_v13 }
 0x4e9   : > { %v20602_v28 = vadd.f32 %v6814_v56, %v20558_v45  ;;  %7109 = vmatpush1.bf16.msra.mxu0 %v16126_v26  ;;  %7140 = vmatprep.mubr.bf16.mxu0 %v20238_v47  ;;  %v16144_v47 = vld [vmem:[%s19204_s18 + $0xe88] ss:$16 sps:$4 sm:$0xff]   ;;  %v16149_v45 = vld [vmem:[%s19204_s18 + $0xd2c] ss:$16 sps:$4 sm:$0xff]  }
 0x4ea   : > { %7088 = vmatpush2.bf16.msra.mxu1 %v16123_v23  ;;  %v20606_v33 = vpop.f32.mrf.mxu0  ;;  %7110 = vmatprep.subr.bf16.mxu0 %v16134_v27  ;;  %v16203_v23 = vld [vmem:[%s19204_s18 + $0xf4c] ss:$16 sps:$4 sm:$0xff]   ;;  %v16204_v27 = vld [vmem:[%s19204_s18 + $0x1008] ss:$16 sps:$4 sm:$0xff]  }
 0x4eb   : > { %7089 = vmatprep.subr.bf16.mxu1 %v16131_v2  ;;  %v16206_v26 = vld [vmem:[%s19204_s18 + $0x100c] ss:$16 sps:$4 sm:$0xff]   ;;  %v16201_v2 = vld [vmem:[%s19204_s18 + $0xf48] ss:$16 sps:$4 sm:$0xff]  }
 0x4ec   : > { %v6818_v13 = vpop.f32.mrf.mxu0  ;;  %v16209_v56 = vld [vmem:[%s19204_s18 + $0xf2c] ss:$16 sps:$4 sm:$0xff]  }
 0x4ed   : > { %7111 = vmatpush1.bf16.msra.mxu0 %v16132_v31  ;;  %v16207_v31 = vld [vmem:[%s19204_s18 + $0xf28] ss:$16 sps:$4 sm:$0xff]   ;;  %v16218_v13 = vld [vmem:[%s19204_s18 + $0x110c] ss:$16 sps:$4 sm:$0xff]  }
 0x4ee   : > { %7090 = vmatpush2.bf16.msra.mxu1 %v16129_v30  ;;  %v6819_v37 = vpop.f32.mrf.mxu0  ;;  %7112 = vmatprep.subr.bf16.mxu0 %v16140_v35  ;;  %v16212_v30 = vld [vmem:[%s19204_s18 + $0x112c] ss:$16 sps:$4 sm:$0xff]  }
 0x4ef   : > { %7091 = vmatprep.subr.bf16.mxu1 %v16137_v34  ;;  %v16210_v34 = vld [vmem:[%s19204_s18 + $0x1128] ss:$16 sps:$4 sm:$0xff]   ;;  %v16215_v35 = vld [vmem:[%s19204_s18 + $0xf0c] ss:$16 sps:$4 sm:$0xff]   ;;  %v3682_v37 = vsub.s32 3, %v19998_v51 }
 0x4f1   : > { %7113 = vmatpush1.bf16.msra.mxu0 %v16138_v36  ;;  %v3678_v36 = vsub.s32 2, %v19998_v51 }
 0x4f2   : > { %7092 = vmatpush2.bf16.msra.mxu1 %v16135_v29  ;;  %7114 = vmatprep.subr.bf16.mxu0 %v16146_v46  ;;  %v6817_v29 = vadd.f32 %v20606_v33, %v20562_v48  ;;  %v16216_v46 = vld [vmem:[%s19204_s18 + $0x1108] ss:$16 sps:$4 sm:$0xff]   ;;  %v16224_v33 = vld [vmem:[%s19187_s9 + $0xc4] ss:$16 sps:$4 sm:$0xff]  }
 0x4f3   : > { %7093 = vmatprep.subr.bf16.mxu1 %v16143_v38  ;;  %v16213_v38 = vld [vmem:[%s19204_s18 + $0xf08] ss:$16 sps:$4 sm:$0xff]  }
 0x4f4   : > { %v16219_v48 = vld [vmem:[%s19187_s9 + $0xe0] ss:$16 sps:$4 sm:$0xff]  }
 0x4f5   : > { %7115 = vmatpush1.bf16.msra.mxu0 %v16144_v47  ;;  %v7191_v47 = vmax.f32 %v6817_v29, 0.0  ;;  %v16341_v29 = vld [vmem:[%s19187_s9 + $0x3e4] ss:$16 sps:$4 sm:$0xff]  }
 0x4f6   : > { %7094 = vmatpush2.bf16.msra.mxu1 %v16141_v43  ;;  %7116 = vmatprep.subr.bf16.mxu0 %v16152_v12  ;;  %v16221_v43 = vld [vmem:[%s19187_s9 + $0xe4] ss:$16 sps:$4 sm:$0xff]  }
 0x4f7   : > { %7095 = vmatprep.subr.bf16.mxu1 %v16149_v45  ;;  %v16411_v45 = vld [vmem:[%s19182_s5] sm:$0xf]  ;;  %v20680_v51 = vpack.c.bf16 %v7191_v47, %v7191_v47 }
 0x4f8   : > { %v3679_v12 = vrot.slane %v16411_v45, %v3678_v36  ;;  %v16254_v36 = vld [vmem:[%s19187_s9 + $0x184] ss:$16 sps:$4 sm:$0xff]   ;;  %v16342_v47 = vld [vmem:[%s19187_s9 + $0x3c0] ss:$16 sps:$4 sm:$0xff]  }
 0x4f9   : > { %7117 = vmatpush1.bf16.msra.mxu0 %v16150_v25 }
 0x4fa   : > { %7096 = vmatpush2.bf16.msra.mxu1 %v16147_v52  ;;  %7118 = vmatprep.subr.bf16.mxu0 %v16158_v24  ;;  %v3683_v52 = vrot.slane %v16411_v45, %v3682_v37  ;;  %v16339_v37 = vld [vmem:[%s19187_s9 + $0x3e0] ss:$16 sps:$4 sm:$0xff]  }
 0x4fb   : > { %7097 = vmatprep.subr.bf16.mxu1 %v16155_v49  ;;  %v16255_v45 = vld [vmem:[%s19187_s9 + $0x160] ss:$16 sps:$4 sm:$0xff]  }
 0x4fd   : > { %7119 = vmatpush1.bf16.msra.mxu0 %v16156_v1  ;;  %v16222_v1 = vld [vmem:[%s19187_s9 + $0xc0] ss:$16 sps:$4 sm:$0xff]  }
 0x4fe   : > { %7098 = vmatpush2.bf16.msra.mxu1 %v16153_v0  ;;  %7120 = vmatprep.subr.bf16.mxu0 %v16161_v22 }
 0x4ff   : > { %7149 = vmatprep.subr.bf16.mxu1 %v16164_v18  ;;  %v16227_v18 = vld [vmem:[%s19187_s9 + $0xa4] ss:$16 sps:$4 sm:$0xff]  }
 0x501   : > { %v20631_v61 = vpop.f32.mrf.mxu1  ;;  %7100 = vmatmul.mubr.bf16.vlgmr.msra.gmra.mxu1 %v20313_v39  ;;  %7121 = vmatpush1.bf16.msra.mxu0 %v16159_v53  ;;  %v16171_v39 = vld [vmem:[%s19204_s18 + $0xfe8] ss:$16 sps:$4 sm:$0xff]  }
 0x502   : > { %7150 = vmatpush1.bf16.msra.mxu1 %v16162_v3  ;;  %7122 = vmatprep.subr.bf16.mxu0 %v16167_v10  ;;  %v6856_v25 = vadd.f32 %v20631_v61, %v3679_v12  ;;  %v16230_v10 = vld [vmem:[%s19187_s9 + $0x84] ss:$16 sps:$4 sm:$0xff]  }
 0x503   : > { %v20636_v62 = vpop.f32.mrf.mxu1  ;;  %7151 = vmatprep.subr.bf16.mxu1 %v16170_v54  ;;  %14440 = vmatprep.mubr.msk.bf16.mxu1 %vm6448_vm4, %v20323_v50  ;;  %v16180_v50 = vld [vmem:[%s19204_s18 + $0x1088] ss:$16 sps:$4 sm:$0xff]   ;;  %v16317_v61 = vld [vmem:[%s19187_s9 + $0x2e4] ss:$16 sps:$4 sm:$0xff]  }
 0x504   : > { %v6858_v24 = vadd.f32 %v20636_v62, %v3683_v52  ;;  %v16315_v54 = vld [vmem:[%s19187_s9 + $0x2e0] ss:$16 sps:$4 sm:$0xff]   ;;  %v16347_v12 = vld [vmem:[%s19187_s9 + $0x3a4] ss:$16 sps:$4 sm:$0xff]  }
 0x505   : > { %v6859_v32 = vpop.f32.mrf.mxu1  ;;  %7123 = vmatpush1.bf16.msra.mxu0 %v16165_v55  ;;  %v16320_v55 = vld [vmem:[%s19187_s9 + $0x2c4] ss:$16 sps:$4 sm:$0xff]   ;;  %v16318_v62 = vld [vmem:[%s19187_s9 + $0x2c0] ss:$16 sps:$4 sm:$0xff]  }
 0x506   : > { %7152 = vmatpush1.bf16.msra.mxu1 %v16168_v59  ;;  %7124 = vmatprep.subr.bf16.mxu0 %v16173_v63  ;;  %v16228_v59 = vld [vmem:[%s19187_s9 + $0x80] ss:$16 sps:$4 sm:$0xff]   ;;  %v16233_v63 = vld [vmem:[%s19187_s9 + $0x64] ss:$16 sps:$4 sm:$0xff]  }
 0x507   : > { %v6860_v7 = vpop.f32.mrf.mxu1  ;;  %7153 = vmatprep.subr.bf16.mxu1 %v16176_v4  ;;  %v16323_v4 = vld [vmem:[%s19187_s9 + $0x2a4] ss:$16 sps:$4 sm:$0xff]   ;;  %v16231_v32 = vld [vmem:[%s19187_s9 + $0x60] ss:$16 sps:$4 sm:$0xff]  }
 0x508   : > { %v16326_v7 = vld [vmem:[%s19187_s9 + $0x284] ss:$16 sps:$4 sm:$0xff]  }
 0x509   : > { %7125 = vmatpush2.bf16.msra.mxu0 %v16171_v39  ;;  %v16321_v39 = vld [vmem:[%s19187_s9 + $0x2a0] ss:$16 sps:$4 sm:$0xff]   ;;  %v16260_v52 = vld [vmem:[%s19187_s9 + $0x144] ss:$16 sps:$4 sm:$0xff]  }
 0x50a   : > { %7154 = vmatpush1.bf16.msra.mxu1 %v16174_v5  ;;  %7126 = vmatprep.subr.bf16.mxu0 %v16179_v8  ;;  %v16236_v5 = vld [vmem:[%s19187_s9 + $0x44] ss:$16 sps:$4 sm:$0xff]   ;;  %v16234_v8 = vld [vmem:[%s19187_s9 + $0x40] ss:$16 sps:$4 sm:$0xff]  }
 0x50b   : > { %7155 = vmatprep.subr.bf16.mxu1 %v16182_v9  ;;  %v16324_v9 = vld [vmem:[%s19187_s9 + $0x280] ss:$16 sps:$4 sm:$0xff]  }
 0x50d   : > { %7127 = vmatpush2.bf16.msra.mxu0 %v16177_v14  ;;  %v16239_v14 = vld [vmem:[%s19187_s9 + $0x24] ss:$16 sps:$4 sm:$0xff]  }
 0x50e   : > { %7156 = vmatpush1.bf16.msra.mxu1 %v16180_v50  ;;  %7128 = vmatprep.subr.bf16.mxu0 %v16185_v15  ;;  %v16237_v50 = vld [vmem:[%s19187_s9 + $0x20] ss:$16 sps:$4 sm:$0xff]   ;;  %v16242_v15 = vld [vmem:[%s19187_s9 + $0x4] ss:$16 sps:$4 sm:$0xff]  }
 0x50f   : > { %7157 = vmatprep.subr.bf16.mxu1 %v16188_v41 }
 0x511   : > { %7129 = vmatpush2.bf16.msra.mxu0 %v16183_v16 }
 0x512   : > { %7158 = vmatpush1.bf16.msra.mxu1 %v16186_v11  ;;  %7130 = vmatprep.subr.bf16.mxu0 %v16191_v17  ;;  %v16240_v11 = vld [vmem:[%s19187_s9] ss:$16 sps:$4 sm:$0xff]   ;;  %v16329_v17 = vld [vmem:[%s19187_s9 + $0x264] ss:$16 sps:$4 sm:$0xff]  }
 0x513   : > { %7159 = vmatprep.subr.bf16.mxu1 %v16194_v6 }
 0x515   : > { %7131 = vmatpush2.bf16.msra.mxu0 %v16189_v60  ;;  %v16245_v60 = vld [vmem:[%s19187_s9 + $0x1e4] ss:$16 sps:$4 sm:$0xff]  }
 0x516   : > { %7160 = vmatpush1.bf16.msra.mxu1 %v16192_v19  ;;  %7132 = vmatprep.subr.bf16.mxu0 %v16197_v20  ;;  %v16327_v19 = vld [vmem:[%s19187_s9 + $0x260] ss:$16 sps:$4 sm:$0xff]  }
 0x517   : > { %7161 = vmatprep.subr.bf16.mxu1 %v16200_v21 }
 0x519   : > { %7133 = vmatpush2.bf16.msra.mxu0 %v16195_v40  ;;  %v16243_v40 = vld [vmem:[%s19187_s9 + $0x1e0] ss:$16 sps:$4 sm:$0xff]  }
 0x51a   : > { %7162 = vmatpush1.bf16.msra.mxu1 %v16198_v44  ;;  %7134 = vmatprep.subr.bf16.mxu0 %v16203_v23  ;;  %v16332_v44 = vld [vmem:[%s19187_s9 + $0x244] ss:$16 sps:$4 sm:$0xff]  }
 0x51b   : > { %7163 = vmatprep.subr.bf16.mxu1 %v16206_v26  ;;  %v16248_v26 = vld [vmem:[%s19187_s9 + $0x1c4] ss:$16 sps:$4 sm:$0xff]  }
 0x51d   : > { %7135 = vmatpush2.bf16.msra.mxu0 %v16201_v2  ;;  %v16330_v2 = vld [vmem:[%s19187_s9 + $0x240] ss:$16 sps:$4 sm:$0xff]  }
 0x51e   : > { %7164 = vmatpush1.bf16.msra.mxu1 %v16204_v27  ;;  %7136 = vmatprep.subr.bf16.mxu0 %v16209_v56  ;;  %v16335_v27 = vld [vmem:[%s19187_s9 + $0x224] ss:$16 sps:$4 sm:$0xff]   ;;  %v16333_v56 = vld [vmem:[%s19187_s9 + $0x220] ss:$16 sps:$4 sm:$0xff]  }
 0x51f   : > { %7177 = vmatprep.subr.bf16.mxu1 %v16212_v30  ;;  %v16246_v30 = vld [vmem:[%s19187_s9 + $0x1c0] ss:$16 sps:$4 sm:$0xff]  }
 0x521   : > { %7137 = vmatpush2.bf16.msra.mxu0 %v16207_v31  ;;  %v16338_v31 = vld [vmem:[%s19187_s9 + $0x204] ss:$16 sps:$4 sm:$0xff]  }
 0x522   : > { %7178 = vmatpush2.bf16.msra.mxu1 %v16210_v34  ;;  %7138 = vmatprep.subr.bf16.mxu0 %v16215_v35  ;;  %v16251_v34 = vld [vmem:[%s19187_s9 + $0x1a4] ss:$16 sps:$4 sm:$0xff]   ;;  %v16336_v35 = vld [vmem:[%s19187_s9 + $0x200] ss:$16 sps:$4 sm:$0xff]  }
 0x523   : > { %7179 = vmatprep.subr.bf16.mxu1 %v16218_v13  ;;  %v16249_v13 = vld [vmem:[%s19187_s9 + $0x1a0] ss:$16 sps:$4 sm:$0xff]  }
 0x525   : > { %7139 = vmatpush2.bf16.msra.mxu0 %v16213_v38  ;;  %v16252_v38 = vld [vmem:[%s19187_s9 + $0x180] ss:$16 sps:$4 sm:$0xff]  }
 0x526   : > { %7180 = vmatpush2.bf16.msra.mxu1 %v16216_v46  ;;  %7967 = vmatprep.subr.bf16.mxu0 %v16221_v43  ;;  %v16344_v46 = vld [vmem:[%s19187_s9 + $0x3c4] ss:$16 sps:$4 sm:$0xff]  }
 0x527   : > { %8008 = vmatprep.subr.bf16.mxu1 %v16317_v61  ;;  %v16257_v43 = vld [vmem:[%s19187_s9 + $0x164] ss:$16 sps:$4 sm:$0xff]  }
 0x528   : > { %v6896_v49 = vpop.f32.mrf.mxu0  ;;  %7141 = vmatmul.mubr.bf16.vlgmr.msra.gmra.mxu0 %v20317_v42 }
 0x529   : > { %7182 = vmatmul.mubr.bf16.vlgmr.msra.gmra.mxu1 %v20374_v58  ;;  %v6897_v0 = vadd.f32 %v6896_v49, %v6856_v25  ;;  %7968 = vmatpush1.bf16.msra.mxu0 %v16219_v48  ;;  %v16225_v58 = vld [vmem:[%s19187_s9 + $0xa0] ss:$16 sps:$4 sm:$0xff]   ;;  %v16350_v25 = vld [vmem:[%s19187_s9 + $0x384] ss:$16 sps:$4 sm:$0xff]  }
 0x52a   : > { %7999 = vmatprep.mubr.bf16.mxu0 %v20680_v51  ;;  %v6898_v22 = vpop.f32.mrf.mxu0  ;;  %7969 = vmatprep.subr.bf16.mxu0 %v16224_v33  ;;  %v16345_v48 = vld [vmem:[%s19187_s9 + $0x3a0] ss:$16 sps:$4 sm:$0xff]   ;;  %v16263_v49 = vld [vmem:[%s19187_s9 + $0x124] ss:$16 sps:$4 sm:$0xff]  }
 0x52b   : > { %v6899_v53 = vadd.f32 %v6898_v22, %v6858_v24  ;;  %8009 = vmatpush1.bf16.msra.mxu1 %v16315_v54  ;;  %v16258_v33 = vld [vmem:[%s19187_s9 + $0x140] ss:$16 sps:$4 sm:$0xff]   ;;  %v16266_v22 = vld [vmem:[%s19187_s9 + $0x104] ss:$16 sps:$4 sm:$0xff]   ;;  %v16267_v54 = vld [vmem:[%s19187_s9 + $0xe8] ss:$16 sps:$4 sm:$0xff]  }
 0x52c   : > { %v6900_v42 = vpop.f32.mrf.mxu0  ;;  %8010 = vmatprep.subr.bf16.mxu1 %v16320_v55  ;;  %v16348_v24 = vld [vmem:[%s19187_s9 + $0x380] ss:$16 sps:$4 sm:$0xff]   ;;  %v16272_v55 = vld [vmem:[%s19187_s9 + $0xcc] ss:$16 sps:$4 sm:$0xff]  }
 0x52d   : > { %7970 = vmatpush1.bf16.msra.mxu0 %v16222_v1  ;;  %v16353_v1 = vld [vmem:[%s19187_s9 + $0x364] ss:$16 sps:$4 sm:$0xff]  }
 0x52e   : > { %v6901_v3 = vpop.f32.mrf.mxu0  ;;  %7971 = vmatprep.subr.bf16.mxu0 %v16227_v18  ;;  %v16351_v18 = vld [vmem:[%s19187_s9 + $0x360] ss:$16 sps:$4 sm:$0xff]   ;;  %v16356_v42 = vld [vmem:[%s19187_s9 + $0x344] ss:$16 sps:$4 sm:$0xff]  }
 0x52f   : > { %8011 = vmatpush1.bf16.msra.mxu1 %v16318_v62  ;;  %v16269_v3 = vld [vmem:[%s19187_s9 + $0xec] ss:$16 sps:$4 sm:$0xff]   ;;  %v16270_v62 = vld [vmem:[%s19187_s9 + $0xc8] ss:$16 sps:$4 sm:$0xff]  }
 0x530   : > { %8012 = vmatprep.subr.bf16.mxu1 %v16323_v4 }
 0x531   : > { %7972 = vmatpush1.bf16.msra.mxu0 %v16225_v58  ;;  %v7190_v58 = vmax.f32 %v20602_v28, 0.0 }
 0x532   : > { %7973 = vmatprep.subr.bf16.mxu0 %v16230_v10  ;;  %v16354_v10 = vld [vmem:[%s19187_s9 + $0x340] ss:$16 sps:$4 sm:$0xff]  }
 0x533   : > { %8013 = vmatpush1.bf16.msra.mxu1 %v16321_v39  ;;  %v20751_v61 = vpack.c.bf16 %v7190_v58, %v7190_v58  ;;  %v16357_v39 = vld [vmem:[%s19187_s9 + $0x320] ss:$16 sps:$4 sm:$0xff]  }
 0x534   : > { %8014 = vmatprep.subr.bf16.mxu1 %v16326_v7 }
 0x535   : > { %7974 = vmatpush1.bf16.msra.mxu0 %v16228_v59 }
 0x536   : > { %7975 = vmatprep.subr.bf16.mxu0 %v16233_v63  ;;  %v16359_v63 = vld [vmem:[%s19187_s9 + $0x324] ss:$16 sps:$4 sm:$0xff]  }
 0x537   : > { %8015 = vmatpush1.bf16.msra.mxu1 %v16324_v9 }
 0x538   : > { %8016 = vmatprep.subr.bf16.mxu1 %v16329_v17  ;;  %v16284_v17 = vld [vmem:[%s19187_s9 + $0x4c] ss:$16 sps:$4 sm:$0xff]  }
 0x539   : > { %7976 = vmatpush1.bf16.msra.mxu0 %v16231_v32  ;;  %v16275_v32 = vld [vmem:[%s19187_s9 + $0xac] ss:$16 sps:$4 sm:$0xff]  }
 0x53a   : > { %7977 = vmatprep.subr.bf16.mxu0 %v16236_v5 }
 0x53b   : > { %8017 = vmatpush1.bf16.msra.mxu1 %v16327_v19  ;;  %v16285_v19 = vld [vmem:[%s19187_s9 + $0x28] ss:$16 sps:$4 sm:$0xff]  }
 0x53c   : > { %8018 = vmatprep.subr.bf16.mxu1 %v16332_v44  ;;  %v16288_v44 = vld [vmem:[%s19187_s9 + $0x8] ss:$16 sps:$4 sm:$0xff]  }
 0x53d   : > { %7978 = vmatpush1.bf16.msra.mxu0 %v16234_v8  ;;  %v16273_v8 = vld [vmem:[%s19187_s9 + $0xa8] ss:$16 sps:$4 sm:$0xff]  }
 0x53e   : > { %7979 = vmatprep.subr.bf16.mxu0 %v16239_v14  ;;  %v16278_v14 = vld [vmem:[%s19187_s9 + $0x8c] ss:$16 sps:$4 sm:$0xff]  }
 0x53f   : > { %8019 = vmatpush1.bf16.msra.mxu1 %v16330_v2 }
 0x540   : > { %8020 = vmatprep.subr.bf16.mxu1 %v16335_v27 }
 0x541   : > { %v6937_v41 = vpop.f32.mrf.mxu1  ;;  %7980 = vmatpush1.bf16.msra.mxu0 %v16237_v50  ;;  %v16360_v50 = vld [vmem:[%s19187_s9 + $0x300] ss:$16 sps:$4 sm:$0xff]  }
 0x542   : > { %v20707_v16 = vadd.f32 %v6937_v41, %v6897_v0  ;;  %7981 = vmatprep.subr.bf16.mxu0 %v16242_v15  ;;  %v16261_v0 = vld [vmem:[%s19187_s9 + $0x120] ss:$16 sps:$4 sm:$0xff]   ;;  %v16276_v15 = vld [vmem:[%s19187_s9 + $0x88] ss:$16 sps:$4 sm:$0xff]   ;;  %v16365_v41 = vld [vmem:[%s19187_s9 + $0x2ec] ss:$16 sps:$4 sm:$0xff]  }
 0x543   : > { %v6939_v6 = vpop.f32.mrf.mxu1  ;;  %8021 = vmatpush1.bf16.msra.mxu1 %v16333_v56  ;;  %v16291_v56 = vld [vmem:[%s19187_s9 + $0x1e8] ss:$16 sps:$4 sm:$0xff]  }
 0x544   : > { %v20713_v20 = vadd.f32 %v6939_v6, %v6899_v53  ;;  %8022 = vmatprep.subr.bf16.mxu1 %v16338_v31  ;;  %v16264_v53 = vld [vmem:[%s19187_s9 + $0x100] ss:$16 sps:$4 sm:$0xff]   ;;  %v16282_v6 = vld [vmem:[%s19187_s9 + $0x48] ss:$16 sps:$4 sm:$0xff]   ;;  %v16296_v31 = vld [vmem:[%s19187_s9 + $0x1cc] ss:$16 sps:$4 sm:$0xff]  }
 0x545   : > { %v6941_v21 = vpop.f32.mrf.mxu1  ;;  %7982 = vmatpush1.bf16.msra.mxu0 %v16240_v11  ;;  %v16279_v11 = vld [vmem:[%s19187_s9 + $0x68] ss:$16 sps:$4 sm:$0xff]  }
 0x546   : > { %7983 = vmatprep.subr.bf16.mxu0 %v16245_v60  ;;  %v16287_v60 = vld [vmem:[%s19187_s9 + $0x2c] ss:$16 sps:$4 sm:$0xff]  }
 0x547   : > { %v6942_v23 = vpop.f32.mrf.mxu1  ;;  %8023 = vmatpush1.bf16.msra.mxu1 %v16336_v35  ;;  %v16299_v35 = vld [vmem:[%s19187_s9 + $0x1ac] ss:$16 sps:$4 sm:$0xff]  }
 0x548   : > { %8024 = vmatprep.subr.bf16.mxu1 %v16341_v29  ;;  %v16302_v29 = vld [vmem:[%s19187_s9 + $0x18c] ss:$16 sps:$4 sm:$0xff]  }
 0x549   : > { %7984 = vmatpush2.bf16.msra.mxu0 %v16243_v40 }
 0x54a   : > { %7985 = vmatprep.subr.bf16.mxu0 %v16248_v26  ;;  %v16293_v26 = vld [vmem:[%s19187_s9 + $0x1ec] ss:$16 sps:$4 sm:$0xff]  }
 0x54b   : > { %8025 = vmatpush2.bf16.msra.mxu1 %v16339_v37  ;;  %v16305_v37 = vld [vmem:[%s19187_s9 + $0x16c] ss:$16 sps:$4 sm:$0xff]  }
 0x54c   : > { %8026 = vmatprep.subr.bf16.mxu1 %v16344_v46  ;;  %v16308_v46 = vld [vmem:[%s19187_s9 + $0x14c] ss:$16 sps:$4 sm:$0xff]  }
 0x54d   : > { %7986 = vmatpush2.bf16.msra.mxu0 %v16246_v30 }
 0x54e   : > { %7987 = vmatprep.subr.bf16.mxu0 %v16251_v34  ;;  %v16294_v34 = vld [vmem:[%s19187_s9 + $0x1c8] ss:$16 sps:$4 sm:$0xff]  }
 0x54f   : > { %8027 = vmatpush2.bf16.msra.mxu1 %v16342_v47  ;;  %v16311_v47 = vld [vmem:[%s19187_s9 + $0x12c] ss:$16 sps:$4 sm:$0xff]  }
 0x550   : > { %8028 = vmatprep.subr.bf16.mxu1 %v16347_v12  ;;  %v16314_v12 = vld [vmem:[%s19187_s9 + $0x10c] ss:$16 sps:$4 sm:$0xff]  }
 0x551   : > { %7988 = vmatpush2.bf16.msra.mxu0 %v16249_v13  ;;  %v16297_v13 = vld [vmem:[%s19187_s9 + $0x1a8] ss:$16 sps:$4 sm:$0xff]  }
 0x552   : > { %7989 = vmatprep.subr.bf16.mxu0 %v16254_v36  ;;  %v16300_v36 = vld [vmem:[%s19187_s9 + $0x188] ss:$16 sps:$4 sm:$0xff]  }
 0x553   : > { %8029 = vmatpush2.bf16.msra.mxu1 %v16345_v48 }
 0x554   : > { %8030 = vmatprep.subr.bf16.mxu1 %v16350_v25 }
 0x555   : > { %7990 = vmatpush2.bf16.msra.mxu0 %v16252_v38  ;;  %v16303_v38 = vld [vmem:[%s19187_s9 + $0x168] ss:$16 sps:$4 sm:$0xff]  }
 0x556   : > { %7991 = vmatprep.subr.bf16.mxu0 %v16257_v43  ;;  %v16306_v43 = vld [vmem:[%s19187_s9 + $0x148] ss:$16 sps:$4 sm:$0xff]  }
 0x557   : > { %8031 = vmatpush2.bf16.msra.mxu1 %v16348_v24 }
 0x558   : > { %8032 = vmatprep.subr.bf16.mxu1 %v16353_v1 }
 0x559   : > { %7992 = vmatpush2.bf16.msra.mxu0 %v16255_v45  ;;  %v16309_v45 = vld [vmem:[%s19187_s9 + $0x128] ss:$16 sps:$4 sm:$0xff]  }
 0x55a   : > { %7993 = vmatprep.subr.bf16.mxu0 %v16260_v52  ;;  %v16312_v52 = vld [vmem:[%s19187_s9 + $0x108] ss:$16 sps:$4 sm:$0xff]  }
 0x55b   : > { %8033 = vmatpush2.bf16.msra.mxu1 %v16351_v18 }
 0x55c   : > { %8034 = vmatprep.subr.bf16.mxu1 %v16356_v42 }
 0x55d   : > { %7994 = vmatpush2.bf16.msra.mxu0 %v16258_v33 }
 0x55e   : > { %7995 = vmatprep.subr.bf16.mxu0 %v16263_v49 }
 0x55f   : > { %8035 = vmatpush2.bf16.msra.mxu1 %v16354_v10 }
 0x560   : > { %8036 = vmatprep.subr.bf16.mxu1 %v16359_v63 }
 0x561   : > { %7996 = vmatpush2.bf16.msra.mxu0 %v16261_v0 }
 0x562   : > { %7997 = vmatprep.subr.bf16.mxu0 %v16266_v22 }
 0x563   : > { %8037 = vmatpush2.bf16.msra.mxu1 %v16357_v39 }
 0x565   : > { %7998 = vmatpush2.bf16.msra.mxu0 %v16264_v53 }
 0x566   : > { %8049 = vmatprep.subr.bf16.mxu0 %v16269_v3 }
 0x568   : > { %v6978_v59 = vpop.f32.mrf.mxu0  ;;  %8000 = vmatmul.mubr.bf16.vlgmr.msra.gmra.mxu0 %v20751_v61 }
 0x569   : > { %v6979_v28 = vadd.f32 %v6978_v59, %v20707_v16  ;;  %8050 = vmatpush1.bf16.msra.mxu0 %v16267_v54  ;;  %8081 = vmatprep.mubr.bf16.mxu0 %v20680_v51  ;;  %v16362_v51 = vld [vmem:[%s19187_s9 + $0x304] ss:$16 sps:$4 sm:$0xff]   ;;  %v16281_v16 = vld [vmem:[%s19187_s9 + $0x6c] ss:$16 sps:$4 sm:$0xff]  }
 0x56a   : > { %v6980_v4 = vpop.f32.mrf.mxu0  ;;  %8051 = vmatprep.subr.bf16.mxu0 %v16272_v55  ;;  %8038 = vmatprep.subr.bf16.mxu1 %v16362_v51  ;;  %v16363_v51 = vld [vmem:[%s19187_s9 + $0x2e8] ss:$16 sps:$4 sm:$0xff]  }
 0x56b   : > { %v6981_v5 = vadd.f32 %v6980_v4, %v20713_v20  ;;  %8039 = vmatpush2.bf16.msra.mxu1 %v16360_v50  ;;  %v16290_v20 = vld [vmem:[%s19187_s9 + $0xc] ss:$16 sps:$4 sm:$0xff]   ;;  %v16366_v50 = vld [vmem:[%s19187_s9 + $0x2c8] ss:$16 sps:$4 sm:$0xff]  }
 0x56c   : > { %v6982_v7 = vpop.f32.mrf.mxu0  ;;  %8090 = vmatprep.subr.bf16.mxu1 %v16365_v41  ;;  %v16369_v41 = vld [vmem:[%s19187_s9 + $0x2a8] ss:$16 sps:$4 sm:$0xff]  }
 0x56d   : > { %8052 = vmatpush1.bf16.msra.mxu0 %v16270_v62 }
 0x56e   : > { %v6983_v9 = vpop.f32.mrf.mxu0  ;;  %8053 = vmatprep.subr.bf16.mxu0 %v16275_v32 }
 0x571   : > { %8054 = vmatpush1.bf16.msra.mxu0 %v16273_v8 }
 0x572   : > { %8055 = vmatprep.subr.bf16.mxu0 %v16278_v14  ;;  %v16368_v14 = vld [vmem:[%s19187_s9 + $0x2cc] ss:$16 sps:$4 sm:$0xff]  }
 0x575   : > { %8056 = vmatpush1.bf16.msra.mxu0 %v16276_v15  ;;  %v16371_v15 = vld [vmem:[%s19187_s9 + $0x2ac] ss:$16 sps:$4 sm:$0xff]  }
 0x576   : > { %8057 = vmatprep.subr.bf16.mxu0 %v16281_v16  ;;  %v16374_v16 = vld [vmem:[%s19187_s9 + $0x28c] ss:$16 sps:$4 sm:$0xff]  }
 0x579   : > { %8058 = vmatpush1.bf16.msra.mxu0 %v16279_v11  ;;  %v16372_v11 = vld [vmem:[%s19187_s9 + $0x288] ss:$16 sps:$4 sm:$0xff]  }
 0x57a   : > { %8059 = vmatprep.subr.bf16.mxu0 %v16284_v17  ;;  %v16377_v17 = vld [vmem:[%s19187_s9 + $0x26c] ss:$16 sps:$4 sm:$0xff]  }
 0x57d   : > { %8060 = vmatpush1.bf16.msra.mxu0 %v16282_v6  ;;  %v16375_v6 = vld [vmem:[%s19187_s9 + $0x268] ss:$16 sps:$4 sm:$0xff]  }
 0x57e   : > { %8061 = vmatprep.subr.bf16.mxu0 %v16287_v60  ;;  %v16380_v60 = vld [vmem:[%s19187_s9 + $0x24c] ss:$16 sps:$4 sm:$0xff]  }
 0x581   : > { %v7019_v21 = vpop.f32.mrf.mxu1  ;;  %8062 = vmatpush1.bf16.msra.mxu0 %v16285_v19  ;;  %v16378_v19 = vld [vmem:[%s19187_s9 + $0x248] ss:$16 sps:$4 sm:$0xff]  }
 0x582   : > { %v7020_v40 = vadd.f32 %v7019_v21, %v6979_v28  ;;  %8063 = vmatprep.subr.bf16.mxu0 %v16290_v20  ;;  %v16383_v20 = vld [vmem:[%s19187_s9 + $0x22c] ss:$16 sps:$4 sm:$0xff]   ;;  %v16381_v21 = vld [vmem:[%s19187_s9 + $0x228] ss:$16 sps:$4 sm:$0xff]  }
 0x583   : > { %v7021_v23 = vpop.f32.mrf.mxu1 }
 0x584   : > { %v7022_v2 = vadd.f32 %v7021_v23, %v6981_v5  ;;  %v16389_v23 = vld [vmem:[%s19187_s9 + $0x3ec] ss:$16 sps:$4 sm:$0xff]  }
 0x585   : > { %v7023_v27 = vpop.f32.mrf.mxu1  ;;  %8064 = vmatpush1.bf16.msra.mxu0 %v16288_v44  ;;  %v16384_v44 = vld [vmem:[%s19187_s9 + $0x208] ss:$16 sps:$4 sm:$0xff]  }
 0x586   : > { %8065 = vmatprep.subr.bf16.mxu0 %v16293_v26  ;;  %v16387_v26 = vld [vmem:[%s19187_s9 + $0x3e8] ss:$16 sps:$4 sm:$0xff]  }
 0x587   : > { %v7024_v30 = vpop.f32.mrf.mxu1  ;;  %v16390_v27 = vld [vmem:[%s19187_s9 + $0x3c8] ss:$16 sps:$4 sm:$0xff]  }
 0x588   : > { %v16393_v30 = vld [vmem:[%s19187_s9 + $0x3a8] ss:$16 sps:$4 sm:$0xff]  }
 0x589   : > { %8066 = vmatpush2.bf16.msra.mxu0 %v16291_v56  ;;  %v16395_v56 = vld [vmem:[%s19187_s9 + $0x3ac] ss:$16 sps:$4 sm:$0xff]  }
 0x58a   : > { %8067 = vmatprep.subr.bf16.mxu0 %v16296_v31  ;;  %v16398_v31 = vld [vmem:[%s19187_s9 + $0x38c] ss:$16 sps:$4 sm:$0xff]  }
 0x58d   : > { %8068 = vmatpush2.bf16.msra.mxu0 %v16294_v34  ;;  %v16396_v34 = vld [vmem:[%s19187_s9 + $0x388] ss:$16 sps:$4 sm:$0xff]  }
 0x58e   : > { %8069 = vmatprep.subr.bf16.mxu0 %v16299_v35  ;;  %v16401_v35 = vld [vmem:[%s19187_s9 + $0x36c] ss:$16 sps:$4 sm:$0xff]  }
 0x591   : > { %8070 = vmatpush2.bf16.msra.mxu0 %v16297_v13  ;;  %v16399_v13 = vld [vmem:[%s19187_s9 + $0x368] ss:$16 sps:$4 sm:$0xff]  }
 0x592   : > { %8071 = vmatprep.subr.bf16.mxu0 %v16302_v29  ;;  %v16404_v29 = vld [vmem:[%s19187_s9 + $0x34c] ss:$16 sps:$4 sm:$0xff]  }
 0x595   : > { %8072 = vmatpush2.bf16.msra.mxu0 %v16300_v36  ;;  %v16402_v36 = vld [vmem:[%s19187_s9 + $0x348] ss:$16 sps:$4 sm:$0xff]  }
 0x596   : > { %8073 = vmatprep.subr.bf16.mxu0 %v16305_v37  ;;  %v16407_v37 = vld [vmem:[%s19187_s9 + $0x32c] ss:$16 sps:$4 sm:$0xff]  }
 0x599   : > { %8074 = vmatpush2.bf16.msra.mxu0 %v16303_v38 }
 0x59a   : > { %8075 = vmatprep.subr.bf16.mxu0 %v16308_v46  ;;  %v16405_v46 = vld [vmem:[%s19187_s9 + $0x328] ss:$16 sps:$4 sm:$0xff]  }
 0x59d   : > { %8076 = vmatpush2.bf16.msra.mxu0 %v16306_v43 }
 0x59e   : > { %8077 = vmatprep.subr.bf16.mxu0 %v16311_v47  ;;  %v16410_v47 = vld [vmem:[%s19187_s9 + $0x30c] ss:$16 sps:$4 sm:$0xff]  }
 0x5a1   : > { %8078 = vmatpush2.bf16.msra.mxu0 %v16309_v45 }
 0x5a2   : > { %8079 = vmatprep.subr.bf16.mxu0 %v16314_v12  ;;  %v16408_v12 = vld [vmem:[%s19187_s9 + $0x308] ss:$16 sps:$4 sm:$0xff]  }
 0x5a5   : > { %8080 = vmatpush2.bf16.msra.mxu0 %v16312_v52 }
 0x5a8   : > { %v7060_v48 = vpop.f32.mrf.mxu0  ;;  %8082 = vmatmul.mubr.bf16.vlgmr.msra.gmra.mxu0 %v20751_v61 }
 0x5a9   : > { %v7061_v18 = vadd.f32 %v7060_v48, %v7020_v40  ;;  %v16386_v40 = vld [vmem:[%s19187_s9 + $0x20c] ss:$16 sps:$4 sm:$0xff]  }
 0x5aa   : > { %v7062_v33 = vpop.f32.mrf.mxu0 }
 0x5ab   : > { %v7063_v53 = vadd.f32 %v7062_v33, %v7022_v2  ;;  %v16392_v2 = vld [vmem:[%s19187_s9 + $0x3cc] ss:$16 sps:$4 sm:$0xff]  }
 0x5ac   : > { %v7064_v25 = vpop.f32.mrf.mxu0 }
 0x5ae   : > { %v7065_v49 = vpop.f32.mrf.mxu0 }
 0x5c1   : > { %v7101_v24 = vpop.f32.mrf.mxu1 }
 0x5c2   : > { %v7102_v42 = vadd.f32 %v7101_v24, %v7061_v18 }
 0x5c3   : > { %v7103_v0 = vpop.f32.mrf.mxu1 }
 0x5c4   : > { %v7104_v10 = vadd.f32 %v7103_v0, %v7063_v53 }
 0x5c5   : > { %v7105_v1 = vpop.f32.mrf.mxu1 }
 0x5c7   : > { %v7106_v22 = vpop.f32.mrf.mxu1 }
 0x5e8   : > { %v7142_v58 = vpop.f32.mrf.mxu0 }
 0x5e9   : > { %v7183_v3 = vpop.f32.mrf.mxu1  ;;  %v7143_v54 = vadd.f32 %v7142_v58, %v7102_v42 }
 0x5ea   : > { %v7144_v55 = vpop.f32.mrf.mxu0 }
 0x5eb   : > { %v7185_v59 = vpop.f32.mrf.mxu1  ;;  %v7184_v28 = vadd.f32 %v7183_v3, %v7143_v54  ;;  %v7145_v61 = vadd.f32 %v7144_v55, %v7104_v10 }
 0x5ec   : > { %v7146_v62 = vpop.f32.mrf.mxu0 }
 0x5ed   : > { %v7187_v63 = vpop.f32.mrf.mxu1  ;;  %v7186_v4 = vadd.f32 %v7185_v59, %v7145_v61  ;;  %v7192_v32 = vmax.f32 %v7184_v28, 0.0 }
 0x5ee   : > { %v7147_v39 = vpop.f32.mrf.mxu0  ;;  %v7194_v63 = vld [vmem:[#allocation3] sm:$0xff] }
 0x5ef   : > { %v7188_v5 = vpop.f32.mrf.mxu1  ;;  %v7193_v7 = vmax.f32 %v7186_v4, 0.0  ;;  %v20794_v9 = vpack.c.bf16 %v7192_v32, %v7192_v32 }
 0x5f1   : > { %v7198_v8 = vpack.c.bf16 %v7193_v7, %v7193_v7 }
 0x5f3   : > { %8040 = vmatprep.mubr.bf16.mxu1 %v7198_v8 }
 0x5f4   : > { %8041 = vmatmul.mubr.bf16.vlgmr.msra.gmra.mxu1 %v20794_v9 }
 0x5f5   : > { %8091 = vmatpush1.bf16.msra.mxu1 %v16363_v51  ;;  %8122 = vmatprep.mubr.bf16.mxu1 %v7198_v8 }
 0x5f6   : > { %8092 = vmatprep.subr.bf16.mxu1 %v16368_v14 }
 0x5f9   : > { %8093 = vmatpush1.bf16.msra.mxu1 %v16366_v50 }
 0x5fa   : > { %8094 = vmatprep.subr.bf16.mxu1 %v16371_v15 }
 0x5fd   : > { %8095 = vmatpush1.bf16.msra.mxu1 %v16369_v41 }
 0x5fe   : > { %8096 = vmatprep.subr.bf16.mxu1 %v16374_v16 }
 0x601   : > { %8097 = vmatpush1.bf16.msra.mxu1 %v16372_v11 }
 0x602   : > { %8098 = vmatprep.subr.bf16.mxu1 %v16377_v17 }
 0x605   : > { %8099 = vmatpush1.bf16.msra.mxu1 %v16375_v6 }
 0x606   : > { %8100 = vmatprep.subr.bf16.mxu1 %v16380_v60 }
 0x609   : > { %8101 = vmatpush1.bf16.msra.mxu1 %v16378_v19 }
 0x60a   : > { %8102 = vmatprep.subr.bf16.mxu1 %v16383_v20 }
 0x60d   : > { %8103 = vmatpush1.bf16.msra.mxu1 %v16381_v21 }
 0x60e   : > { %8104 = vmatprep.subr.bf16.mxu1 %v16386_v40 }
 0x611   : > { %8105 = vmatpush1.bf16.msra.mxu1 %v16384_v44 }
 0x612   : > { %8106 = vmatprep.subr.bf16.mxu1 %v16389_v23 }
 0x615   : > { %8107 = vmatpush2.bf16.msra.mxu1 %v16387_v26 }
 0x616   : > { %8108 = vmatprep.subr.bf16.mxu1 %v16392_v2 }
 0x619   : > { %8109 = vmatpush2.bf16.msra.mxu1 %v16390_v27 }
 0x61a   : > { %8110 = vmatprep.subr.bf16.mxu1 %v16395_v56 }
 0x61d   : > { %8111 = vmatpush2.bf16.msra.mxu1 %v16393_v30 }
 0x61e   : > { %8112 = vmatprep.subr.bf16.mxu1 %v16398_v31 }
 0x621   : > { %8113 = vmatpush2.bf16.msra.mxu1 %v16396_v34 }
 0x622   : > { %8114 = vmatprep.subr.bf16.mxu1 %v16401_v35 }
 0x625   : > { %8115 = vmatpush2.bf16.msra.mxu1 %v16399_v13 }
 0x626   : > { %8116 = vmatprep.subr.bf16.mxu1 %v16404_v29 }
 0x628   : > { %v8001_v38 = vpop.f32.mrf.mxu0 }
 0x629   : > { %8117 = vmatpush2.bf16.msra.mxu1 %v16402_v36 }
 0x62a   : > { %v8003_v43 = vpop.f32.mrf.mxu0  ;;  %8118 = vmatprep.subr.bf16.mxu1 %v16407_v37 }
 0x62c   : > { %v8005_v45 = vpop.f32.mrf.mxu0 }
 0x62d   : > { %8119 = vmatpush2.bf16.msra.mxu1 %v16405_v46 }
 0x62e   : > { %v8006_v52 = vpop.f32.mrf.mxu0  ;;  %8120 = vmatprep.subr.bf16.mxu1 %v16410_v47 }
 0x631   : > { %8121 = vmatpush2.bf16.msra.mxu1 %v16408_v12 }
 0x634   : > { %8123 = vmatmul.mubr.bf16.vlgmr.msra.gmra.mxu1 %v20794_v9 }
 0x668   : > { %v8083_v48 = vpop.f32.mrf.mxu0 }
 0x66a   : > { %v8085_v33 = vpop.f32.mrf.mxu0 }
 0x66c   : > { %v8087_v25 = vpop.f32.mrf.mxu0 }
 0x66e   : > { %v8088_v49 = vpop.f32.mrf.mxu0 }
 0x6b4   : > { %v8042_v24 = vpop.f32.mrf.mxu1 }
 0x6b5   : > { %v8043_v1 = vadd.f32 %v8042_v24, %v8001_v38 }
 0x6b6   : > { %v8044_v0 = vpop.f32.mrf.mxu1 }
 0x6b7   : > { %v8045_v22 = vadd.f32 %v8044_v0, %v8003_v43 }
 0x6b8   : > { %v8046_v18 = vpop.f32.mrf.mxu1 }
 0x6b9   : > { %v8135_v53 = vcombine.low %v8043_v1, %v8045_v22 }
 0x6ba   : > { %v8047_v42 = vpop.f32.mrf.mxu1 }
 0x6bb   : > { %v8143_v61 = vrot.slane %v8135_v53, %v20006_v57 }
 0x6f4   : > { %v8124_v58 = vpop.f32.mrf.mxu1 }
 0x6f5   : > { %v8125_v10 = vadd.f32 %v8124_v58, %v8083_v48 }
 0x6f6   : > { %v8126_v3 = vpop.f32.mrf.mxu1 }
 0x6f7   : > { %v8127_v54 = vadd.f32 %v8126_v3, %v8085_v33 }
 0x6f8   : > { %v8128_v55 = vpop.f32.mrf.mxu1 }
 0x6f9   : > { %v8136_v59 = vcombine.low %v8125_v10, %v8127_v54 }
 0x6fa   : > { %v8129_v28 = vpop.f32.mrf.mxu1 }
 0x6fb   : > { %v8150_v62 = vrot.slane %v8136_v59, %v20006_v57 }
 0x6fd   : > { %v8151_v4 = vcombine.low %v8143_v61, %v8150_v62 }
 0x6ff   : > { %v8153_v32 = vadd.f32 %v8151_v4, %v7194_v63 }
 0x701   : > { %8154 = vst [vmem:[#allocation3] sm:$0xff] %v8153_v32 }
 0x702 PF: > { %p8155_p7 = scmp.eq.s32.totalorder %s17603_s25, 1 }
 0x704   : > { %p8156_p8 = pnand %p8155_p7, %p1987_p13 }
 0x705   : > { %s21813_s18 = sld [smem:[#allocation21_spill]] (!%p8156_p8) }
 0x706   : > { %8159 = sbr.rel (%p8156_p8) target bundleno = 1822 (0x71e), region = 118 }
 0x70b   : > { %v8163_v39 = vlaneseq  ;;  %v17624_v5 = vmov 1983009808   ;;  %v8161_v57 = vld [vmem:[%s21813_s18] sm:$0xf]  ;;  %v8160_v40 = vld [vmem:[#allocation3] sm:$0xff] }
 0x70c   : > { %v8182_v7 = vunpack.c.l.s4 %v17624_v5 }
 0x70d   : > { %v8164_v8 = vshrl.u32 %v8163_v39, 7 }
 0x70e   : > { %v8183_v51 = vunpack.c.0.s8 %v8182_v7 }
 0x70f   : > { %v8165_v9 = vsub.s32 0, %v8164_v8  ;;  %v8169_v14 = vsub.s32 1, %v8164_v8  ;;  %v8173_v50 = vsub.s32 2, %v8164_v8  ;;  %v8177_v15 = vsub.s32 3, %v8164_v8 }
 0x710   : > { %v8186_v41 = vsub.s32 %v8183_v51, %v8164_v8 }
 0x711   : > { %v8166_v16 = vrot.slane %v8161_v57, %v8165_v9  ;;  %v8170_v11 = vrot.slane %v8161_v57, %v8169_v14  ;;  %v8174_v17 = vrot.slane %v8161_v57, %v8173_v50  ;;  %v8178_v6 = vrot.slane %v8161_v57, %v8177_v15 }
 0x713   : > { %v8179_v60 = vcombine.low %v8166_v16, %v8170_v11  ;;  %v8180_v19 = vcombine.low %v8174_v17, %v8178_v6 }
 0x715   : > { %v8187_v20 = vrot.slane %v8179_v60, %v8186_v41  ;;  %v8194_v21 = vrot.slane %v8180_v19, %v8186_v41 }
 0x717   : > { %v8195_v44 = vcombine.low %v8187_v20, %v8194_v21 }
 0x719   : > { %v8197_v23 = vadd.f32 %v8195_v44, %v8160_v40 }
 0x71b   : > { %v8198_v26 = vmax.f32 %v8197_v23, 0.0 }
 0x71d   : > { %8199 = vst [vmem:[#allocation4] sm:$0xff] %v8198_v26  ;;  %8200 = vst [vmem:[#allocation10] sm:$0xff] %v8198_v26 }
 0x71e PF: > { %p8201_p9 = scmp.eq.s32.totalorder %s17607_s26, 1  ;;  %p14569_p10 = scmp.ne.s32.totalorder %s17607_s26, 1 }
 0x720   : > { %8204 = sbr.rel (%p14569_p10) target bundleno = 2878 (0xb3e), region = 122 }
 0x725   : > { %v16412_v2 = vld [vmem:[%s19206_s14 + $0xe4] ss:$16 sps:$4 sm:$0xff]   ;;  %v16416_v56 = vld [vmem:[%s19206_s14 + $0xe0] ss:$16 sps:$4 sm:$0xff]   ;;  %v17625_v61 = vmov 1983009808   ;;  %v8211_v63 = vlaneseq }
 0x726   : > { %v16414_v27 = vld [vmem:[%s19206_s14 + $0x2e4] ss:$16 sps:$4 sm:$0xff]   ;;  %9022 = vmatprep.subr.bf16.mxu0 %v16412_v2  ;;  %v16417_v30 = vld [vmem:[%s19206_s14 + $0x2e0] ss:$16 sps:$4 sm:$0xff]   ;;  %v8209_v62 = vunpack.c.l.s4 %v17625_v61  ;;  %v16541_v61 = vld [vmem:[%s19206_s14 + $0x4c] ss:$16 sps:$4 sm:$0xff]  }
 0x727   : > { %9063 = vmatprep.subr.bf16.mxu1 %v16414_v27  ;;  %v16418_v31 = vld [vmem:[%s19206_s14 + $0xc4] ss:$16 sps:$4 sm:$0xff]   ;;  %9023 = vmatpush1.bf16.msra.mxu0 %v16416_v56  ;;  %v16422_v35 = vld [vmem:[%s19206_s14 + $0xc0] ss:$16 sps:$4 sm:$0xff]   ;;  %v20879_v7 = vshrl.u32 %v8211_v63, 7  ;;  %vm13501_vm5 = vcmask 1041408  }
 0x728   : > { %9064 = vmatpush1.bf16.msra.mxu1 %v16417_v30  ;;  %v16420_v34 = vld [vmem:[%s19206_s14 + $0x2c4] ss:$16 sps:$4 sm:$0xff]   ;;  %9024 = vmatprep.subr.bf16.mxu0 %v16418_v31  ;;  %v16423_v13 = vld [vmem:[%s19206_s14 + $0x2c0] ss:$16 sps:$4 sm:$0xff]   ;;  %v8210_v5 = vunpack.c.0.s8 %v8209_v62  ;;  %v16544_v62 = vld [vmem:[%s19206_s14 + $0x24c] ss:$16 sps:$4 sm:$0xff]  }
 0x729   : > { %9065 = vmatprep.subr.bf16.mxu1 %v16420_v34  ;;  %v16424_v29 = vld [vmem:[%s19206_s14 + $0xa4] ss:$16 sps:$4 sm:$0xff]   ;;  %v16428_v37 = vld [vmem:[%s19206_s14 + $0xa0] ss:$16 sps:$4 sm:$0xff]   ;;  %v16539_v63 = vld [vmem:[%s19206_s14 + $0x48] ss:$16 sps:$4 sm:$0xff]  }
 0x72a   : > { %v16426_v36 = vld [vmem:[%s19206_s14 + $0x2a4] ss:$16 sps:$4 sm:$0xff]   ;;  %v16429_v38 = vld [vmem:[%s19206_s14 + $0x2a0] ss:$16 sps:$4 sm:$0xff]   ;;  %v20887_v50 = vsub.s32 %v8210_v5, %v20879_v7  ;;  %v16545_v5 = vld [vmem:[%s19206_s14 + $0x28] ss:$16 sps:$4 sm:$0xff]  }
 0x72b   : > { %9025 = vmatpush1.bf16.msra.mxu0 %v16422_v35  ;;  %v16430_v46 = vld [vmem:[%s19206_s14 + $0x84] ss:$16 sps:$4 sm:$0xff]   ;;  %v16434_v47 = vld [vmem:[%s19206_s14 + $0x80] ss:$16 sps:$4 sm:$0xff]   ;;  %vm13502_vm6 = vcmask 257026  }
 0x72c   : > { %9066 = vmatpush1.bf16.msra.mxu1 %v16423_v13  ;;  %9026 = vmatprep.subr.bf16.mxu0 %v16424_v29  ;;  %v16432_v43 = vld [vmem:[%s19206_s14 + $0x284] ss:$16 sps:$4 sm:$0xff]   ;;  %v16435_v45 = vld [vmem:[%s19206_s14 + $0x280] ss:$16 sps:$4 sm:$0xff]   ;;  %vm13503_vm7 = vmor %vm13502_vm6, %vm13501_vm5 }
 0x72d   : > { %9067 = vmatprep.subr.bf16.mxu1 %v16426_v36  ;;  %v16436_v12 = vld [vmem:[%s19206_s14 + $0x64] ss:$16 sps:$4 sm:$0xff]   ;;  %v16440_v48 = vld [vmem:[%s19206_s14 + $0x60] ss:$16 sps:$4 sm:$0xff]  }
 0x72e   : > { %v16438_v52 = vld [vmem:[%s19206_s14 + $0x264] ss:$16 sps:$4 sm:$0xff]   ;;  %v16441_v33 = vld [vmem:[%s19206_s14 + $0x260] ss:$16 sps:$4 sm:$0xff]  }
 0x72f   : > { %9027 = vmatpush1.bf16.msra.mxu0 %v16428_v37  ;;  %v16442_v25 = vld [vmem:[%s19206_s14 + $0x44] ss:$16 sps:$4 sm:$0xff]   ;;  %v16446_v24 = vld [vmem:[%s19206_s14 + $0x40] ss:$16 sps:$4 sm:$0xff]  }
 0x730   : > { %9068 = vmatpush1.bf16.msra.mxu1 %v16429_v38  ;;  %9028 = vmatprep.subr.bf16.mxu0 %v16430_v46  ;;  %v16444_v49 = vld [vmem:[%s19206_s14 + $0x244] ss:$16 sps:$4 sm:$0xff]   ;;  %v16447_v0 = vld [vmem:[%s19206_s14 + $0x240] ss:$16 sps:$4 sm:$0xff]  }
 0x731   : > { %9069 = vmatprep.subr.bf16.mxu1 %v16432_v43  ;;  %v16448_v1 = vld [vmem:[%s19206_s14 + $0x24] ss:$16 sps:$4 sm:$0xff]   ;;  %v16452_v18 = vld [vmem:[%s19206_s14 + $0x20] ss:$16 sps:$4 sm:$0xff]  }
 0x732   : > { %v16450_v22 = vld [vmem:[%s19206_s14 + $0x224] ss:$16 sps:$4 sm:$0xff]   ;;  %v16453_v53 = vld [vmem:[%s19206_s14 + $0x220] ss:$16 sps:$4 sm:$0xff]  }
 0x733   : > { %9029 = vmatpush1.bf16.msra.mxu0 %v16434_v47  ;;  %v16454_v42 = vld [vmem:[%s19206_s14 + $0x4] ss:$16 sps:$4 sm:$0xff]   ;;  %v16458_v3 = vld [vmem:[%s19206_s14] ss:$16 sps:$4 sm:$0xff]   ;;  %v16511_v47 = vld [vmem:[%s19206_s14 + $0xec] ss:$16 sps:$4 sm:$0xff]  }
 0x734   : > { %9070 = vmatpush1.bf16.msra.mxu1 %v16435_v45  ;;  %9030 = vmatprep.subr.bf16.mxu0 %v16436_v12  ;;  %v16456_v58 = vld [vmem:[%s19206_s14 + $0x204] ss:$16 sps:$4 sm:$0xff]   ;;  %v16459_v10 = vld [vmem:[%s19206_s14 + $0x200] ss:$16 sps:$4 sm:$0xff]   ;;  %v16514_v45 = vld [vmem:[%s19206_s14 + $0x2ec] ss:$16 sps:$4 sm:$0xff]  }
 0x735   : > { %9071 = vmatprep.subr.bf16.mxu1 %v16438_v52  ;;  %v16460_v54 = vld [vmem:[%s19206_s14 + $0x1e4] ss:$16 sps:$4 sm:$0xff]   ;;  %v16464_v59 = vld [vmem:[%s19206_s14 + $0x1e0] ss:$16 sps:$4 sm:$0xff]  }
 0x736   : > { %v16462_v55 = vld [vmem:[%s19206_s14 + $0x3e4] ss:$16 sps:$4 sm:$0xff]   ;;  %v16465_v28 = vld [vmem:[%s19206_s14 + $0x3e0] ss:$16 sps:$4 sm:$0xff]  }
 0x737   : > { %9031 = vmatpush1.bf16.msra.mxu0 %v16440_v48  ;;  %v16466_v4 = vld [vmem:[%s19206_s14 + $0x1c4] ss:$16 sps:$4 sm:$0xff]   ;;  %v16470_v39 = vld [vmem:[%s19206_s14 + $0x1c0] ss:$16 sps:$4 sm:$0xff]   ;;  %v16509_v48 = vld [vmem:[%s19206_s14 + $0xe8] ss:$16 sps:$4 sm:$0xff]  }
 0x738   : > { %9072 = vmatpush1.bf16.msra.mxu1 %v16441_v33  ;;  %9032 = vmatprep.subr.bf16.mxu0 %v16442_v25  ;;  %v16468_v32 = vld [vmem:[%s19206_s14 + $0x3c4] ss:$16 sps:$4 sm:$0xff]   ;;  %v16471_v8 = vld [vmem:[%s19206_s14 + $0x3c0] ss:$16 sps:$4 sm:$0xff]   ;;  %v16512_v33 = vld [vmem:[%s19206_s14 + $0x2e8] ss:$16 sps:$4 sm:$0xff]  }
 0x739   : > { %9073 = vmatprep.subr.bf16.mxu1 %v16444_v49  ;;  %v16472_v57 = vld [vmem:[%s19206_s14 + $0x1a4] ss:$16 sps:$4 sm:$0xff]   ;;  %v16476_v9 = vld [vmem:[%s19206_s14 + $0x1a0] ss:$16 sps:$4 sm:$0xff]   ;;  %v16517_v25 = vld [vmem:[%s19206_s14 + $0xcc] ss:$16 sps:$4 sm:$0xff]  }
 0x73a   : > { %v16474_v51 = vld [vmem:[%s19206_s14 + $0x3a4] ss:$16 sps:$4 sm:$0xff]   ;;  %v16477_v14 = vld [vmem:[%s19206_s14 + $0x3a0] ss:$16 sps:$4 sm:$0xff]   ;;  %v16520_v49 = vld [vmem:[%s19206_s14 + $0x2cc] ss:$16 sps:$4 sm:$0xff]  }
 0x73b   : > { %9033 = vmatpush1.bf16.msra.mxu0 %v16446_v24  ;;  %v16478_v15 = vld [vmem:[%s19206_s14 + $0x184] ss:$16 sps:$4 sm:$0xff]   ;;  %v16482_v11 = vld [vmem:[%s19206_s14 + $0x180] ss:$16 sps:$4 sm:$0xff]   ;;  %v16515_v24 = vld [vmem:[%s19206_s14 + $0xc8] ss:$16 sps:$4 sm:$0xff]  }
 0x73c   : > { %9074 = vmatpush1.bf16.msra.mxu1 %v16447_v0  ;;  %9034 = vmatprep.subr.bf16.mxu0 %v16448_v1  ;;  %v16480_v41 = vld [vmem:[%s19206_s14 + $0x384] ss:$16 sps:$4 sm:$0xff]   ;;  %v16483_v60 = vld [vmem:[%s19206_s14 + $0x380] ss:$16 sps:$4 sm:$0xff]   ;;  %v16518_v0 = vld [vmem:[%s19206_s14 + $0x2c8] ss:$16 sps:$4 sm:$0xff]  }
 0x73d   : > { %9075 = vmatprep.subr.bf16.mxu1 %v16450_v22  ;;  %v8205_v16 = vld [vmem:[#allocation4] sm:$0xff]  ;;  %v16488_v44 = vld [vmem:[%s19206_s14 + $0x160] ss:$16 sps:$4 sm:$0xff]   ;;  %v16523_v1 = vld [vmem:[%s19206_s14 + $0xac] ss:$16 sps:$4 sm:$0xff]  }
 0x73e   : > { %v8214_v17 = vrot.slane %v8205_v16, %v20887_v50  ;;  %v8207_v6 = vcombine.high %v8205_v16, %v8205_v16  ;;  %v16484_v19 = vld [vmem:[%s19206_s14 + $0x164] ss:$16 sps:$4 sm:$0xff]   ;;  %v16489_v2 = vld [vmem:[%s19206_s14 + $0x360] ss:$16 sps:$4 sm:$0xff]   ;;  %v16526_v22 = vld [vmem:[%s19206_s14 + $0x2ac] ss:$16 sps:$4 sm:$0xff]  }
 0x73f   : > { %9035 = vmatpush1.bf16.msra.mxu0 %v16452_v18  ;;  %v16486_v20 = vld [vmem:[%s19206_s14 + $0x364] ss:$16 sps:$4 sm:$0xff]   ;;  %v16494_v31 = vld [vmem:[%s19206_s14 + $0x140] ss:$16 sps:$4 sm:$0xff]   ;;  %v16521_v18 = vld [vmem:[%s19206_s14 + $0xa8] ss:$16 sps:$4 sm:$0xff]  }
 0x740   : > { %9076 = vmatpush1.bf16.msra.mxu1 %v16453_v53  ;;  %9036 = vmatprep.subr.bf16.mxu0 %v16454_v42  ;;  %v8222_v21 = vcombine.high %v8214_v17, %v8214_v17  ;;  %v8221_v40 = vrot.slane %v8207_v6, %v20887_v50  ;;  %v16490_v27 = vld [vmem:[%s19206_s14 + $0x144] ss:$16 sps:$4 sm:$0xff]   ;;  %v16495_v34 = vld [vmem:[%s19206_s14 + $0x340] ss:$16 sps:$4 sm:$0xff]   ;;  %v20913_v12 = vpack.c.bf16 %v8214_v17, %v8214_v17  ;;  %v16524_v53 = vld [vmem:[%s19206_s14 + $0x2a8] ss:$16 sps:$4 sm:$0xff]  }
 0x741   : > { %9077 = vmatprep.subr.bf16.mxu1 %v16456_v58  ;;  %v16492_v56 = vld [vmem:[%s19206_s14 + $0x344] ss:$16 sps:$4 sm:$0xff]   ;;  %v16500_v29 = vld [vmem:[%s19206_s14 + $0x120] ss:$16 sps:$4 sm:$0xff]   ;;  %v16529_v42 = vld [vmem:[%s19206_s14 + $0x8c] ss:$16 sps:$4 sm:$0xff]  }
 0x742   : > { %v8229_v23 = vpack.c.bf16 %v8222_v21, %v8222_v21  ;;  %v8223_v26 = vcombine.high %v8221_v40, %v8221_v40  ;;  %v16496_v35 = vld [vmem:[%s19206_s14 + $0x124] ss:$16 sps:$4 sm:$0xff]   ;;  %v16501_v36 = vld [vmem:[%s19206_s14 + $0x320] ss:$16 sps:$4 sm:$0xff]   ;;  %v20915_v52 = vpack.c.bf16 %v8221_v40, %v8221_v40  ;;  %v16532_v58 = vld [vmem:[%s19206_s14 + $0x28c] ss:$16 sps:$4 sm:$0xff]  }
 0x743   : > { %9037 = vmatpush1.bf16.msra.mxu0 %v16458_v3  ;;  %v16498_v13 = vld [vmem:[%s19206_s14 + $0x324] ss:$16 sps:$4 sm:$0xff]   ;;  %v16506_v46 = vld [vmem:[%s19206_s14 + $0x100] ss:$16 sps:$4 sm:$0xff]   ;;  %v16527_v3 = vld [vmem:[%s19206_s14 + $0x88] ss:$16 sps:$4 sm:$0xff]  }
 0x744   : > { %9078 = vmatpush1.bf16.msra.mxu1 %v16459_v10  ;;  %9038 = vmatprep.subr.bf16.mxu0 %v16460_v54  ;;  %v8231_v30 = vpack.c.bf16 %v8223_v26, %v8223_v26  ;;  %v16502_v37 = vld [vmem:[%s19206_s14 + $0x104] ss:$16 sps:$4 sm:$0xff]   ;;  %v16507_v43 = vld [vmem:[%s19206_s14 + $0x300] ss:$16 sps:$4 sm:$0xff]   ;;  %v16530_v10 = vld [vmem:[%s19206_s14 + $0x288] ss:$16 sps:$4 sm:$0xff]  }
 0x745   : > { %9079 = vmatprep.subr.bf16.mxu1 %v16462_v55  ;;  %9054 = vmatprep.mubr.bf16.mxu0 %v8229_v23  ;;  %v16504_v38 = vld [vmem:[%s19206_s14 + $0x304] ss:$16 sps:$4 sm:$0xff]   ;;  %v16535_v54 = vld [vmem:[%s19206_s14 + $0x6c] ss:$16 sps:$4 sm:$0xff]   ;;  %v16557_v16 = vld [vmem:[%s19206_s14 + $0x1e8] ss:$16 sps:$4 sm:$0xff]  }
 0x746   : > { %9095 = vmatprep.mubr.bf16.mxu1 %v8231_v30  ;;  %v16538_v55 = vld [vmem:[%s19206_s14 + $0x26c] ss:$16 sps:$4 sm:$0xff]   ;;  %v16569_v40 = vld [vmem:[%s19206_s14 + $0x1a8] ss:$16 sps:$4 sm:$0xff]  }
 0x747   : > { %9039 = vmatpush2.bf16.msra.mxu0 %v16464_v59  ;;  %v16533_v59 = vld [vmem:[%s19206_s14 + $0x68] ss:$16 sps:$4 sm:$0xff]   ;;  %v16565_v17 = vld [vmem:[%s19206_s14 + $0x1cc] ss:$16 sps:$4 sm:$0xff]  }
 0x748   : > { %9080 = vmatpush2.bf16.msra.mxu1 %v16465_v28  ;;  %9040 = vmatprep.subr.bf16.mxu0 %v16466_v4  ;;  %v16536_v28 = vld [vmem:[%s19206_s14 + $0x268] ss:$16 sps:$4 sm:$0xff]   ;;  %v16568_v6 = vld [vmem:[%s19206_s14 + $0x3cc] ss:$16 sps:$4 sm:$0xff]  }
 0x749   : > { %9081 = vmatprep.subr.bf16.mxu1 %v16468_v32  ;;  %v16542_v4 = vld [vmem:[%s19206_s14 + $0x248] ss:$16 sps:$4 sm:$0xff]   ;;  %v16547_v32 = vld [vmem:[%s19206_s14 + $0x2c] ss:$16 sps:$4 sm:$0xff]  }
 0x74a   : > { %v16574_v21 = vld [vmem:[%s19206_s14 + $0x3ac] ss:$16 sps:$4 sm:$0xff]  }
 0x74b   : > { %9041 = vmatpush2.bf16.msra.mxu0 %v16470_v39  ;;  %v16550_v39 = vld [vmem:[%s19206_s14 + $0x22c] ss:$16 sps:$4 sm:$0xff]  }
 0x74c   : > { %9082 = vmatpush2.bf16.msra.mxu1 %v16471_v8  ;;  %9042 = vmatprep.subr.bf16.mxu0 %v16472_v57  ;;  %v16548_v8 = vld [vmem:[%s19206_s14 + $0x228] ss:$16 sps:$4 sm:$0xff]   ;;  %v16553_v57 = vld [vmem:[%s19206_s14 + $0xc] ss:$16 sps:$4 sm:$0xff]  }
 0x74d   : > { %9083 = vmatprep.subr.bf16.mxu1 %v16474_v51  ;;  %v16556_v51 = vld [vmem:[%s19206_s14 + $0x20c] ss:$16 sps:$4 sm:$0xff]  }
 0x74e   : > { %v16580_v26 = vld [vmem:[%s19206_s14 + $0x38c] ss:$16 sps:$4 sm:$0xff]  }
 0x74f   : > { %9043 = vmatpush2.bf16.msra.mxu0 %v16476_v9  ;;  %v16551_v9 = vld [vmem:[%s19206_s14 + $0x8] ss:$16 sps:$4 sm:$0xff]  }
 0x750   : > { %9084 = vmatpush2.bf16.msra.mxu1 %v16477_v14  ;;  %9044 = vmatprep.subr.bf16.mxu0 %v16478_v15  ;;  %v16554_v14 = vld [vmem:[%s19206_s14 + $0x208] ss:$16 sps:$4 sm:$0xff]   ;;  %v16559_v15 = vld [vmem:[%s19206_s14 + $0x1ec] ss:$16 sps:$4 sm:$0xff]  }
 0x751   : > { %9085 = vmatprep.subr.bf16.mxu1 %v16480_v41  ;;  %v16562_v41 = vld [vmem:[%s19206_s14 + $0x3ec] ss:$16 sps:$4 sm:$0xff]  }
 0x753   : > { %9045 = vmatpush2.bf16.msra.mxu0 %v16482_v11  ;;  %v16560_v11 = vld [vmem:[%s19206_s14 + $0x3e8] ss:$16 sps:$4 sm:$0xff]  }
 0x754   : > { %9086 = vmatpush2.bf16.msra.mxu1 %v16483_v60  ;;  %9046 = vmatprep.subr.bf16.mxu0 %v16484_v19  ;;  %v16563_v60 = vld [vmem:[%s19206_s14 + $0x1c8] ss:$16 sps:$4 sm:$0xff]  }
 0x755   : > { %9087 = vmatprep.subr.bf16.mxu1 %v16486_v20  ;;  %v16566_v19 = vld [vmem:[%s19206_s14 + $0x3c8] ss:$16 sps:$4 sm:$0xff]   ;;  %v16571_v20 = vld [vmem:[%s19206_s14 + $0x1ac] ss:$16 sps:$4 sm:$0xff]  }
 0x757   : > { %9047 = vmatpush2.bf16.msra.mxu0 %v16488_v44  ;;  %v16572_v44 = vld [vmem:[%s19206_s14 + $0x3a8] ss:$16 sps:$4 sm:$0xff]  }
 0x758   : > { %9088 = vmatpush2.bf16.msra.mxu1 %v16489_v2  ;;  %9048 = vmatprep.subr.bf16.mxu0 %v16490_v27  ;;  %v16575_v2 = vld [vmem:[%s19206_s14 + $0x188] ss:$16 sps:$4 sm:$0xff]  }
 0x759   : > { %9089 = vmatprep.subr.bf16.mxu1 %v16492_v56  ;;  %v16578_v27 = vld [vmem:[%s19206_s14 + $0x388] ss:$16 sps:$4 sm:$0xff]   ;;  %v16583_v56 = vld [vmem:[%s19206_s14 + $0x16c] ss:$16 sps:$4 sm:$0xff]  }
 0x75b   : > { %9049 = vmatpush2.bf16.msra.mxu0 %v16494_v31  ;;  %v16581_v31 = vld [vmem:[%s19206_s14 + $0x168] ss:$16 sps:$4 sm:$0xff]  }
 0x75c   : > { %9090 = vmatpush2.bf16.msra.mxu1 %v16495_v34  ;;  %9050 = vmatprep.subr.bf16.mxu0 %v16496_v35  ;;  %v16584_v34 = vld [vmem:[%s19206_s14 + $0x368] ss:$16 sps:$4 sm:$0xff]   ;;  %v16589_v35 = vld [vmem:[%s19206_s14 + $0x14c] ss:$16 sps:$4 sm:$0xff]  }
 0x75d   : > { %9091 = vmatprep.subr.bf16.mxu1 %v16498_v13  ;;  %v16592_v13 = vld [vmem:[%s19206_s14 + $0x34c] ss:$16 sps:$4 sm:$0xff]  }
 0x75f   : > { %9051 = vmatpush2.bf16.msra.mxu0 %v16500_v29  ;;  %v16587_v29 = vld [vmem:[%s19206_s14 + $0x148] ss:$16 sps:$4 sm:$0xff]  }
 0x760   : > { %9092 = vmatpush2.bf16.msra.mxu1 %v16501_v36  ;;  %9052 = vmatprep.subr.bf16.mxu0 %v16502_v37  ;;  %v16590_v36 = vld [vmem:[%s19206_s14 + $0x348] ss:$16 sps:$4 sm:$0xff]   ;;  %v16595_v37 = vld [vmem:[%s19206_s14 + $0x12c] ss:$16 sps:$4 sm:$0xff]  }
 0x761   : > { %9093 = vmatprep.subr.bf16.mxu1 %v16504_v38  ;;  %v16598_v38 = vld [vmem:[%s19206_s14 + $0x32c] ss:$16 sps:$4 sm:$0xff]  }
 0x763   : > { %9053 = vmatpush2.bf16.msra.mxu0 %v16506_v46  ;;  %v16593_v46 = vld [vmem:[%s19206_s14 + $0x128] ss:$16 sps:$4 sm:$0xff]  }
 0x764   : > { %9094 = vmatpush2.bf16.msra.mxu1 %v16507_v43  ;;  %9104 = vmatprep.subr.bf16.mxu0 %v16511_v47  ;;  %v16596_v43 = vld [vmem:[%s19206_s14 + $0x328] ss:$16 sps:$4 sm:$0xff]   ;;  %v16601_v47 = vld [vmem:[%s19206_s14 + $0x10c] ss:$16 sps:$4 sm:$0xff]  }
 0x765   : > { %9145 = vmatprep.subr.bf16.mxu1 %v16514_v45  ;;  %v16604_v45 = vld [vmem:[%s19206_s14 + $0x30c] ss:$16 sps:$4 sm:$0xff]  }
 0x766   : > { %9055 = vmatmul.mubr.bf16.vlgmr.msra.gmra.mxu0 %v20913_v12 }
 0x767   : > { %9096 = vmatmul.mubr.bf16.vlgmr.msra.gmra.mxu1 %v20915_v52  ;;  %9105 = vmatpush1.bf16.msra.mxu0 %v16509_v48  ;;  %v16599_v48 = vld [vmem:[%s19206_s14 + $0x108] ss:$16 sps:$4 sm:$0xff]  }
 0x768   : > { %9146 = vmatpush1.bf16.msra.mxu1 %v16512_v33  ;;  %9106 = vmatprep.subr.bf16.mxu0 %v16517_v25  ;;  %v16602_v33 = vld [vmem:[%s19206_s14 + $0x308] ss:$16 sps:$4 sm:$0xff]   ;;  %v16607_v25 = vld [vmem:[%s19202_s2 + $0x3f4] ss:$72 sps:$4 sm:$0xff]  }
 0x769   : > { %9147 = vmatprep.subr.bf16.mxu1 %v16520_v49  ;;  %9136 = vmatprep.mubr.bf16.mxu0 %v8229_v23  ;;  %v16577_v23 = vld [vmem:[%s19206_s14 + $0x18c] ss:$16 sps:$4 sm:$0xff]   ;;  %v16605_v49 = vld [vmem:[%s19202_s2 + $0x3f0] ss:$72 sps:$4 sm:$0xff]  }
 0x76a   : > { %9177 = vmatprep.mubr.bf16.mxu1 %v8231_v30  ;;  %v16586_v30 = vld [vmem:[%s19206_s14 + $0x36c] ss:$16 sps:$4 sm:$0xff]  }
 0x76b   : > { %9107 = vmatpush1.bf16.msra.mxu0 %v16515_v24  ;;  %v16610_v24 = vld [vmem:[%s19202_s2 + $0x364] ss:$72 sps:$4 sm:$0xff]  }
 0x76c   : > { %9148 = vmatpush1.bf16.msra.mxu1 %v16518_v0  ;;  %9108 = vmatprep.subr.bf16.mxu0 %v16523_v1  ;;  %v16608_v0 = vld [vmem:[%s19202_s2 + $0x360] ss:$72 sps:$4 sm:$0xff]   ;;  %v16613_v1 = vld [vmem:[%s19202_s2 + $0x2d4] ss:$72 sps:$4 sm:$0xff]  }
 0x76d   : > { %9149 = vmatprep.subr.bf16.mxu1 %v16526_v22  ;;  %v16611_v22 = vld [vmem:[%s19202_s2 + $0x2d0] ss:$72 sps:$4 sm:$0xff]  }
 0x76f   : > { %9109 = vmatpush1.bf16.msra.mxu0 %v16521_v18  ;;  %v16616_v18 = vld [vmem:[%s19202_s2 + $0x244] ss:$72 sps:$4 sm:$0xff]  }
 0x770   : > { %9150 = vmatpush1.bf16.msra.mxu1 %v16524_v53  ;;  %9110 = vmatprep.subr.bf16.mxu0 %v16529_v42  ;;  %v16614_v53 = vld [vmem:[%s19202_s2 + $0x240] ss:$72 sps:$4 sm:$0xff]   ;;  %v16655_v42 = vld [vmem:[%s19202_s2 + $0xcf4] ss:$72 sps:$4 sm:$0xff]  }
 0x771   : > { %9151 = vmatprep.subr.bf16.mxu1 %v16532_v58  ;;  %v16617_v58 = vld [vmem:[%s19202_s2 + $0x1b0] ss:$72 sps:$4 sm:$0xff]  }
 0x773   : > { %9111 = vmatpush1.bf16.msra.mxu0 %v16527_v3  ;;  %v16659_v3 = vld [vmem:[%s19202_s2 + $0xc60] ss:$72 sps:$4 sm:$0xff]  }
 0x774   : > { %9152 = vmatpush1.bf16.msra.mxu1 %v16530_v10  ;;  %9112 = vmatprep.subr.bf16.mxu0 %v16535_v54  ;;  %v16661_v10 = vld [vmem:[%s19202_s2 + $0xc64] ss:$72 sps:$4 sm:$0xff]  }
 0x775   : > { %9153 = vmatprep.subr.bf16.mxu1 %v16538_v55  ;;  %v16622_v54 = vld [vmem:[%s19202_s2 + $0x124] ss:$72 sps:$4 sm:$0xff]   ;;  %v16620_v55 = vld [vmem:[%s19202_s2 + $0x120] ss:$72 sps:$4 sm:$0xff]  }
 0x777   : > { %9113 = vmatpush1.bf16.msra.mxu0 %v16533_v59  ;;  %v16665_v59 = vld [vmem:[%s19202_s2 + $0xbd0] ss:$72 sps:$4 sm:$0xff]  }
 0x778   : > { %9154 = vmatpush1.bf16.msra.mxu1 %v16536_v28  ;;  %9114 = vmatprep.subr.bf16.mxu0 %v16541_v61  ;;  %v16667_v28 = vld [vmem:[%s19202_s2 + $0xbd4] ss:$72 sps:$4 sm:$0xff]  }
 0x779   : > { %9155 = vmatprep.subr.bf16.mxu1 %v16544_v62  ;;  %v16625_v61 = vld [vmem:[%s19202_s2 + $0x94] ss:$72 sps:$4 sm:$0xff]   ;;  %v16623_v62 = vld [vmem:[%s19202_s2 + $0x90] ss:$72 sps:$4 sm:$0xff]  }
 0x77b   : > { %9115 = vmatpush1.bf16.msra.mxu0 %v16539_v63  ;;  %v16671_v63 = vld [vmem:[%s19202_s2 + $0xb40] ss:$72 sps:$4 sm:$0xff]  }
 0x77c   : > { %9156 = vmatpush1.bf16.msra.mxu1 %v16542_v4  ;;  %9116 = vmatprep.subr.bf16.mxu0 %v16547_v32  ;;  %v16673_v4 = vld [vmem:[%s19202_s2 + $0xb44] ss:$72 sps:$4 sm:$0xff]  }
 0x77d   : > { %9157 = vmatprep.subr.bf16.mxu1 %v16550_v39  ;;  %v16628_v32 = vld [vmem:[%s19202_s2 + $0x4] ss:$72 sps:$4 sm:$0xff]   ;;  %v16626_v39 = vld [vmem:[%s19202_s2] ss:$72 sps:$4 sm:$0xff]  }
 0x77f   : > { %9117 = vmatpush1.bf16.msra.mxu0 %v16545_v5  ;;  %v16677_v5 = vld [vmem:[%s19202_s2 + $0xab0] ss:$72 sps:$4 sm:$0xff]  }
 0x780   : > { %9158 = vmatpush1.bf16.msra.mxu1 %v16548_v8  ;;  %9118 = vmatprep.subr.bf16.mxu0 %v16553_v57  ;;  %v16679_v8 = vld [vmem:[%s19202_s2 + $0xab4] ss:$72 sps:$4 sm:$0xff]  }
 0x781   : > { %9159 = vmatprep.subr.bf16.mxu1 %v16556_v51  ;;  %v16631_v57 = vld [vmem:[%s19202_s2 + $0x874] ss:$72 sps:$4 sm:$0xff]   ;;  %v16629_v51 = vld [vmem:[%s19202_s2 + $0x870] ss:$72 sps:$4 sm:$0xff]  }
 0x783   : > { %9119 = vmatpush1.bf16.msra.mxu0 %v16551_v9  ;;  %v16683_v9 = vld [vmem:[%s19202_s2 + $0xa20] ss:$72 sps:$4 sm:$0xff]  }
 0x784   : > { %9160 = vmatpush1.bf16.msra.mxu1 %v16554_v14  ;;  %9120 = vmatprep.subr.bf16.mxu0 %v16559_v15  ;;  %v16685_v14 = vld [vmem:[%s19202_s2 + $0xa24] ss:$72 sps:$4 sm:$0xff]  }
 0x785   : > { %9161 = vmatprep.subr.bf16.mxu1 %v16562_v41  ;;  %v16634_v15 = vld [vmem:[%s19202_s2 + $0x7e4] ss:$72 sps:$4 sm:$0xff]   ;;  %v16632_v41 = vld [vmem:[%s19202_s2 + $0x7e0] ss:$72 sps:$4 sm:$0xff]  }
 0x787   : > { %9121 = vmatpush2.bf16.msra.mxu0 %v16557_v16  ;;  %v16689_v16 = vld [vmem:[%s19202_s2 + $0x990] ss:$72 sps:$4 sm:$0xff]  }
 0x788   : > { %9162 = vmatpush2.bf16.msra.mxu1 %v16560_v11  ;;  %9122 = vmatprep.subr.bf16.mxu0 %v16565_v17  ;;  %v16691_v11 = vld [vmem:[%s19202_s2 + $0x994] ss:$72 sps:$4 sm:$0xff]  }
 0x789   : > { %9163 = vmatprep.subr.bf16.mxu1 %v16568_v6  ;;  %v16637_v17 = vld [vmem:[%s19202_s2 + $0x754] ss:$72 sps:$4 sm:$0xff]   ;;  %v16635_v6 = vld [vmem:[%s19202_s2 + $0x750] ss:$72 sps:$4 sm:$0xff]  }
 0x78b   : > { %9123 = vmatpush2.bf16.msra.mxu0 %v16563_v60  ;;  %v16695_v60 = vld [vmem:[%s19202_s2 + $0x900] ss:$72 sps:$4 sm:$0xff]  }
 0x78c   : > { %9164 = vmatpush2.bf16.msra.mxu1 %v16566_v19  ;;  %9124 = vmatprep.subr.bf16.mxu0 %v16571_v20  ;;  %v16697_v19 = vld [vmem:[%s19202_s2 + $0x904] ss:$72 sps:$4 sm:$0xff]  }
 0x78d   : > { %9165 = vmatprep.subr.bf16.mxu1 %v16574_v21  ;;  %v16640_v20 = vld [vmem:[%s19202_s2 + $0x6c4] ss:$72 sps:$4 sm:$0xff]   ;;  %v16638_v21 = vld [vmem:[%s19202_s2 + $0x6c0] ss:$72 sps:$4 sm:$0xff]  }
 0x78f   : > { %9125 = vmatpush2.bf16.msra.mxu0 %v16569_v40  ;;  %v16701_v40 = vld [vmem:[%s19202_s2 + $0x1170] ss:$72 sps:$4 sm:$0xff]  }
 0x790   : > { %9166 = vmatpush2.bf16.msra.mxu1 %v16572_v44  ;;  %9126 = vmatprep.subr.bf16.mxu0 %v16577_v23  ;;  %v16703_v44 = vld [vmem:[%s19202_s2 + $0x1174] ss:$72 sps:$4 sm:$0xff]  }
 0x791   : > { %9167 = vmatprep.subr.bf16.mxu1 %v16580_v26  ;;  %v16643_v23 = vld [vmem:[%s19202_s2 + $0x634] ss:$72 sps:$4 sm:$0xff]   ;;  %v16641_v26 = vld [vmem:[%s19202_s2 + $0x630] ss:$72 sps:$4 sm:$0xff]  }
 0x793   : > { %9127 = vmatpush2.bf16.msra.mxu0 %v16575_v2  ;;  %v16707_v2 = vld [vmem:[%s19202_s2 + $0x10e0] ss:$72 sps:$4 sm:$0xff]  }
 0x794   : > { %9168 = vmatpush2.bf16.msra.mxu1 %v16578_v27  ;;  %9128 = vmatprep.subr.bf16.mxu0 %v16583_v56  ;;  %v16709_v27 = vld [vmem:[%s19202_s2 + $0x10e4] ss:$72 sps:$4 sm:$0xff]  }
 0x795   : > { %9169 = vmatprep.subr.bf16.mxu1 %v16586_v30  ;;  %v16646_v56 = vld [vmem:[%s19202_s2 + $0x5a4] ss:$72 sps:$4 sm:$0xff]   ;;  %v16644_v30 = vld [vmem:[%s19202_s2 + $0x5a0] ss:$72 sps:$4 sm:$0xff]  }
 0x797   : > { %9129 = vmatpush2.bf16.msra.mxu0 %v16581_v31  ;;  %v16713_v31 = vld [vmem:[%s19202_s2 + $0x1050] ss:$72 sps:$4 sm:$0xff]  }
 0x798   : > { %9170 = vmatpush2.bf16.msra.mxu1 %v16584_v34  ;;  %9130 = vmatprep.subr.bf16.mxu0 %v16589_v35  ;;  %v16715_v34 = vld [vmem:[%s19202_s2 + $0x1054] ss:$72 sps:$4 sm:$0xff]  }
 0x799   : > { %9171 = vmatprep.subr.bf16.mxu1 %v16592_v13  ;;  %v16649_v35 = vld [vmem:[%s19202_s2 + $0x514] ss:$72 sps:$4 sm:$0xff]   ;;  %v16647_v13 = vld [vmem:[%s19202_s2 + $0x510] ss:$72 sps:$4 sm:$0xff]  }
 0x79b   : > { %9131 = vmatpush2.bf16.msra.mxu0 %v16587_v29  ;;  %v16719_v29 = vld [vmem:[%s19202_s2 + $0xfc0] ss:$72 sps:$4 sm:$0xff]  }
 0x79c   : > { %9172 = vmatpush2.bf16.msra.mxu1 %v16590_v36  ;;  %9132 = vmatprep.subr.bf16.mxu0 %v16595_v37  ;;  %v16721_v36 = vld [vmem:[%s19202_s2 + $0xfc4] ss:$72 sps:$4 sm:$0xff]  }
 0x79d   : > { %9173 = vmatprep.subr.bf16.mxu1 %v16598_v38  ;;  %v16652_v37 = vld [vmem:[%s19202_s2 + $0x484] ss:$72 sps:$4 sm:$0xff]   ;;  %v16650_v38 = vld [vmem:[%s19202_s2 + $0x480] ss:$72 sps:$4 sm:$0xff]  }
 0x79f   : > { %9133 = vmatpush2.bf16.msra.mxu0 %v16593_v46  ;;  %v16725_v46 = vld [vmem:[%s19202_s2 + $0xf30] ss:$72 sps:$4 sm:$0xff]  }
 0x7a0   : > { %9174 = vmatpush2.bf16.msra.mxu1 %v16596_v43  ;;  %9134 = vmatprep.subr.bf16.mxu0 %v16601_v47  ;;  %v16727_v43 = vld [vmem:[%s19202_s2 + $0xf34] ss:$72 sps:$4 sm:$0xff]  }
 0x7a1   : > { %9175 = vmatprep.subr.bf16.mxu1 %v16604_v45  ;;  %v16658_v47 = vld [vmem:[%s19202_s2 + $0x3fc] ss:$72 sps:$4 sm:$0xff]   ;;  %v16731_v45 = vld [vmem:[%s19202_s2 + $0xea0] ss:$72 sps:$4 sm:$0xff]  }
 0x7a3   : > { %9135 = vmatpush2.bf16.msra.mxu0 %v16599_v48  ;;  %v16733_v48 = vld [vmem:[%s19202_s2 + $0xea4] ss:$72 sps:$4 sm:$0xff]  }
 0x7a4   : > { %9176 = vmatpush2.bf16.msra.mxu1 %v16602_v33  ;;  %12655 = vmatprep.subr.bf16.mxu0 %v16607_v25  ;;  %v16739_v33 = vld [vmem:[%s19202_s2 + $0xe14] ss:$72 sps:$4 sm:$0xff]   ;;  %v16737_v25 = vld [vmem:[%s19202_s2 + $0xe10] ss:$72 sps:$4 sm:$0xff]  }
 0x7a5   : > { %12696 = vmatprep.subr.bf16.mxu1 %v16655_v42 }
 0x7a6   : > { %9137 = vmatmul.mubr.bf16.vlgmr.msra.gmra.mxu0 %v20913_v12  ;;  %v16619_v12 = vld [vmem:[%s19202_s2 + $0x1b4] ss:$72 sps:$4 sm:$0xff]  }
 0x7a7   : > { %9178 = vmatmul.mubr.bf16.vlgmr.msra.gmra.mxu1 %v20915_v52  ;;  %12656 = vmatpush1.bf16.msra.mxu0 %v16605_v49  ;;  %v16653_v52 = vld [vmem:[%s19202_s2 + $0xcf0] ss:$72 sps:$4 sm:$0xff]   ;;  %v16745_v49 = vld [vmem:[%s19202_s2 + $0xd84] ss:$72 sps:$4 sm:$0xff]  }
 0x7a8   : > { %12657 = vmatprep.subr.bf16.mxu0 %v16610_v24  ;;  %12697 = vmatpush1.bf16.msra.mxu1 %v16653_v52  ;;  %v16743_v24 = vld [vmem:[%s19202_s2 + $0xd80] ss:$72 sps:$4 sm:$0xff]  }
 0x7a9   : > { %12698 = vmatprep.subr.bf16.mxu1 %v16661_v10 }
 0x7ab   : > { %12658 = vmatpush1.bf16.msra.mxu0 %v16608_v0  ;;  %v16751_v0 = vld [vmem:[%s19202_s2 + $0xcfc] ss:$72 sps:$4 sm:$0xff]  }
 0x7ac   : > { %12659 = vmatprep.subr.bf16.mxu0 %v16613_v1  ;;  %12699 = vmatpush1.bf16.msra.mxu1 %v16659_v3  ;;  %v8364_v1 = vsub.s32 0, %v20879_v7 }
 0x7ad   : > { %12700 = vmatprep.subr.bf16.mxu1 %v16667_v28 }
 0x7af   : > { %12660 = vmatpush1.bf16.msra.mxu0 %v16611_v22  ;;  %v21055_v22 = vld [vmem:[%s1974_s19] sm:$0xf] }
 0x7b0   : > { %12661 = vmatprep.subr.bf16.mxu0 %v16616_v18  ;;  %12701 = vmatpush1.bf16.msra.mxu1 %v16665_v59  ;;  %v8368_v18 = vsub.s32 1, %v20879_v7 }
 0x7b1   : > { %12702 = vmatprep.subr.bf16.mxu1 %v16673_v4 }
 0x7b2   : > { %v8369_v42 = vrot.slane %v21055_v22, %v8368_v18 }
 0x7b3   : > { %12662 = vmatpush1.bf16.msra.mxu0 %v16614_v53  ;;  %v8365_v53 = vrot.slane %v21055_v22, %v8364_v1 }
 0x7b4   : > { %12663 = vmatprep.subr.bf16.mxu0 %v16619_v12  ;;  %12703 = vmatpush1.bf16.msra.mxu1 %v16671_v63 }
 0x7b5   : > { %12704 = vmatprep.subr.bf16.mxu1 %v16679_v8 }
 0x7b7   : > { %12664 = vmatpush1.bf16.msra.mxu0 %v16617_v58 }
 0x7b8   : > { %12665 = vmatprep.subr.bf16.mxu0 %v16622_v54  ;;  %12705 = vmatpush1.bf16.msra.mxu1 %v16677_v5  ;;  %v16664_v5 = vld [vmem:[%s19202_s2 + $0x36c] ss:$72 sps:$4 sm:$0xff]  }
 0x7b9   : > { %12706 = vmatprep.subr.bf16.mxu1 %v16685_v14  ;;  %v16668_v14 = vld [vmem:[%s19202_s2 + $0x2d8] ss:$72 sps:$4 sm:$0xff]  }
 0x7bb   : > { %12666 = vmatpush1.bf16.msra.mxu0 %v16620_v55 }
 0x7bc   : > { %12667 = vmatprep.subr.bf16.mxu0 %v16625_v61  ;;  %12707 = vmatpush1.bf16.msra.mxu1 %v16683_v9  ;;  %v16670_v9 = vld [vmem:[%s19202_s2 + $0x2dc] ss:$72 sps:$4 sm:$0xff]  }
 0x7bd   : > { %12708 = vmatprep.subr.bf16.mxu1 %v16691_v11  ;;  %v16680_v11 = vld [vmem:[%s19202_s2 + $0x1b8] ss:$72 sps:$4 sm:$0xff]  }
 0x7bf   : > { %12668 = vmatpush1.bf16.msra.mxu0 %v16623_v62 }
 0x7c0   : > { %12669 = vmatprep.subr.bf16.mxu0 %v16628_v32  ;;  %12709 = vmatpush1.bf16.msra.mxu1 %v16689_v16  ;;  %v16682_v16 = vld [vmem:[%s19202_s2 + $0x1bc] ss:$72 sps:$4 sm:$0xff]  }
 0x7c1   : > { %12710 = vmatprep.subr.bf16.mxu1 %v16697_v19  ;;  %v16692_v19 = vld [vmem:[%s19202_s2 + $0x98] ss:$72 sps:$4 sm:$0xff]  }
 0x7c3   : > { %12670 = vmatpush1.bf16.msra.mxu0 %v16626_v39  ;;  %v16656_v39 = vld [vmem:[%s19202_s2 + $0x3f8] ss:$72 sps:$4 sm:$0xff]  }
 0x7c4   : > { %12671 = vmatprep.subr.bf16.mxu0 %v16631_v57  ;;  %12711 = vmatpush1.bf16.msra.mxu1 %v16695_v60  ;;  %v16694_v60 = vld [vmem:[%s19202_s2 + $0x9c] ss:$72 sps:$4 sm:$0xff]  }
 0x7c5   : > { %12712 = vmatprep.subr.bf16.mxu1 %v16703_v44  ;;  %v16704_v44 = vld [vmem:[%s19202_s2 + $0x878] ss:$72 sps:$4 sm:$0xff]  }
 0x7c7   : > { %12672 = vmatpush2.bf16.msra.mxu0 %v16629_v51  ;;  %v16662_v51 = vld [vmem:[%s19202_s2 + $0x368] ss:$72 sps:$4 sm:$0xff]  }
 0x7c8   : > { %12673 = vmatprep.subr.bf16.mxu0 %v16634_v15  ;;  %12713 = vmatpush2.bf16.msra.mxu1 %v16701_v40  ;;  %v16676_v15 = vld [vmem:[%s19202_s2 + $0x24c] ss:$72 sps:$4 sm:$0xff]   ;;  %v16706_v40 = vld [vmem:[%s19202_s2 + $0x87c] ss:$72 sps:$4 sm:$0xff]  }
 0x7c9   : > { %12714 = vmatprep.subr.bf16.mxu1 %v16709_v27  ;;  %v16716_v27 = vld [vmem:[%s19202_s2 + $0x758] ss:$72 sps:$4 sm:$0xff]  }
 0x7cb   : > { %12674 = vmatpush2.bf16.msra.mxu0 %v16632_v41  ;;  %v16674_v41 = vld [vmem:[%s19202_s2 + $0x248] ss:$72 sps:$4 sm:$0xff]  }
 0x7cc   : > { %12675 = vmatprep.subr.bf16.mxu0 %v16637_v17  ;;  %12715 = vmatpush2.bf16.msra.mxu1 %v16707_v2  ;;  %v16688_v17 = vld [vmem:[%s19202_s2 + $0x12c] ss:$72 sps:$4 sm:$0xff]   ;;  %v16718_v2 = vld [vmem:[%s19202_s2 + $0x75c] ss:$72 sps:$4 sm:$0xff]  }
 0x7cd   : > { %12716 = vmatprep.subr.bf16.mxu1 %v16715_v34  ;;  %v16728_v34 = vld [vmem:[%s19202_s2 + $0x638] ss:$72 sps:$4 sm:$0xff]  }
 0x7cf   : > { %12676 = vmatpush2.bf16.msra.mxu0 %v16635_v6  ;;  %v16686_v6 = vld [vmem:[%s19202_s2 + $0x128] ss:$72 sps:$4 sm:$0xff]  }
 0x7d0   : > { %12677 = vmatprep.subr.bf16.mxu0 %v16640_v20  ;;  %12717 = vmatpush2.bf16.msra.mxu1 %v16713_v31  ;;  %v16700_v20 = vld [vmem:[%s19202_s2 + $0xc] ss:$72 sps:$4 sm:$0xff]   ;;  %v16730_v31 = vld [vmem:[%s19202_s2 + $0x63c] ss:$72 sps:$4 sm:$0xff]  }
 0x7d1   : > { %12718 = vmatprep.subr.bf16.mxu1 %v16721_v36  ;;  %v8376_v36 = vsub.s32 3, %v20879_v7 }
 0x7d3   : > { %12678 = vmatpush2.bf16.msra.mxu0 %v16638_v21  ;;  %v16698_v21 = vld [vmem:[%s19202_s2 + $0x8] ss:$72 sps:$4 sm:$0xff]  }
 0x7d4   : > { %12679 = vmatprep.subr.bf16.mxu0 %v16643_v23  ;;  %12719 = vmatpush2.bf16.msra.mxu1 %v16719_v29  ;;  %v16712_v23 = vld [vmem:[%s19202_s2 + $0x7ec] ss:$72 sps:$4 sm:$0xff]   ;;  %v16734_v29 = vld [vmem:[%s19202_s2 + $0x5a8] ss:$72 sps:$4 sm:$0xff]  }
 0x7d5   : > { %12720 = vmatprep.subr.bf16.mxu1 %v16727_v43  ;;  %v16740_v43 = vld [vmem:[%s19202_s2 + $0x518] ss:$72 sps:$4 sm:$0xff]  }
 0x7d7   : > { %12680 = vmatpush2.bf16.msra.mxu0 %v16641_v26  ;;  %v16710_v26 = vld [vmem:[%s19202_s2 + $0x7e8] ss:$72 sps:$4 sm:$0xff]  }
 0x7d8   : > { %12681 = vmatprep.subr.bf16.mxu0 %v16646_v56  ;;  %12721 = vmatpush2.bf16.msra.mxu1 %v16725_v46  ;;  %v16724_v56 = vld [vmem:[%s19202_s2 + $0x6cc] ss:$72 sps:$4 sm:$0xff]   ;;  %v8377_v46 = vrot.slane %v21055_v22, %v8376_v36  ;;  %v16806_v36 = vld [vmem:[%s19202_s2 + $0x7f0] ss:$72 sps:$4 sm:$0xff]  }
 0x7d9   : > { %12722 = vmatprep.subr.bf16.mxu1 %v16733_v48 }
 0x7db   : > { %12682 = vmatpush2.bf16.msra.mxu0 %v16644_v30  ;;  %v16722_v30 = vld [vmem:[%s19202_s2 + $0x6c8] ss:$72 sps:$4 sm:$0xff]  }
 0x7dc   : > { %12683 = vmatprep.subr.bf16.mxu0 %v16649_v35  ;;  %12723 = vmatpush2.bf16.msra.mxu1 %v16731_v45  ;;  %v8372_v35 = vsub.s32 2, %v20879_v7  ;;  %v16748_v7 = vld [vmem:[%s19202_s2 + $0x48c] ss:$72 sps:$4 sm:$0xff]  }
 0x7dd   : > { %12724 = vmatprep.subr.bf16.mxu1 %v16739_v33 }
 0x7df   : > { %12684 = vmatpush2.bf16.msra.mxu0 %v16647_v13  ;;  %v16736_v13 = vld [vmem:[%s19202_s2 + $0x5ac] ss:$72 sps:$4 sm:$0xff]  }
 0x7e0   : > { %12685 = vmatprep.subr.bf16.mxu0 %v16652_v37  ;;  %12725 = vmatpush2.bf16.msra.mxu1 %v16737_v25  ;;  %v8373_v37 = vrot.slane %v21055_v22, %v8372_v35  ;;  %v16805_v35 = vld [vmem:[%s19202_s2 + $0x10ec] ss:$72 sps:$4 sm:$0xff]  }
 0x7e1   : > { %12726 = vmatprep.subr.bf16.mxu1 %v16745_v49 }
 0x7e3   : > { %12686 = vmatpush2.bf16.msra.mxu0 %v16650_v38  ;;  %v16742_v38 = vld [vmem:[%s19202_s2 + $0x51c] ss:$72 sps:$4 sm:$0xff]  }
 0x7e4   : > { %12737 = vmatprep.subr.bf16.mxu0 %v16658_v47  ;;  %12727 = vmatpush2.bf16.msra.mxu1 %v16743_v24 }
 0x7e5   : > { %12778 = vmatprep.subr.bf16.mxu1 %v16751_v0  ;;  %v16746_v0 = vld [vmem:[%s19202_s2 + $0x488] ss:$72 sps:$4 sm:$0xff]  }
 0x826   : > { %v9056_v12 = vpop.f32.mrf.mxu0 }
 0x827   : > { %v9097_v52 = vpop.f32.mrf.mxu1  ;;  %v9057_v58 = vadd.f32 %v9056_v12, %v8365_v53 }
 0x828   : > { %v9058_v3 = vpop.f32.mrf.mxu0 }
 0x829   : > { %v9099_v10 = vpop.f32.mrf.mxu1  ;;  %v9098_v54 = vadd.f32 %v9097_v52, %v9057_v58  ;;  %v9059_v55 = vadd.f32 %v9058_v3, %v8369_v42  ;;  %v16754_v52 = vld [vmem:[%s19202_s2 + $0x404] ss:$72 sps:$4 sm:$0xff]   ;;  %v16749_v3 = vld [vmem:[%s19202_s2 + $0xcf8] ss:$72 sps:$4 sm:$0xff]  }
 0x82a   : > { %v9060_v59 = vpop.f32.mrf.mxu0 }
 0x82b   : > { %v9101_v28 = vpop.f32.mrf.mxu1  ;;  %v9100_v61 = vadd.f32 %v9099_v10, %v9059_v55  ;;  %v9186_v62 = vmax.f32 %v9098_v54, 0.0  ;;  %v16752_v10 = vld [vmem:[%s19202_s2 + $0x400] ss:$72 sps:$4 sm:$0xff]   ;;  %v16757_v55 = vld [vmem:[%s19202_s2 + $0xc6c] ss:$72 sps:$4 sm:$0xff]  }
 0x82c   : > { %v9061_v63 = vpop.f32.mrf.mxu0  ;;  %v16755_v28 = vld [vmem:[%s19202_s2 + $0xc68] ss:$72 sps:$4 sm:$0xff]  }
 0x82d   : > { %v9102_v4 = vpop.f32.mrf.mxu1  ;;  %v9187_v32 = vmax.f32 %v9100_v61, 0.0  ;;  %v21064_v57 = vpack.c.bf16 %v9186_v62, %v9186_v62  ;;  %v16758_v61 = vld [vmem:[%s19202_s2 + $0x370] ss:$72 sps:$4 sm:$0xff]   ;;  %v16760_v62 = vld [vmem:[%s19202_s2 + $0x374] ss:$72 sps:$4 sm:$0xff]  }
 0x82e   : > { %v16763_v63 = vld [vmem:[%s19202_s2 + $0xbdc] ss:$72 sps:$4 sm:$0xff]  }
 0x82f   : > { %v21062_v8 = vpack.c.bf16 %v9187_v32, %v9187_v32  ;;  %v16766_v4 = vld [vmem:[%s19202_s2 + $0x2e4] ss:$72 sps:$4 sm:$0xff]   ;;  %v16761_v32 = vld [vmem:[%s19202_s2 + $0xbd8] ss:$72 sps:$4 sm:$0xff]  }
 0x831   : > { %12687 = vmatprep.mubr.bf16.mxu0 %v21062_v8 }
 0x832   : > { %12688 = vmatmul.mubr.bf16.vlgmr.msra.gmra.mxu0 %v21064_v57 }
 0x833   : > { %12738 = vmatpush1.bf16.msra.mxu0 %v16656_v39  ;;  %12769 = vmatprep.mubr.bf16.mxu0 %v21062_v8  ;;  %v16764_v39 = vld [vmem:[%s19202_s2 + $0x2e0] ss:$72 sps:$4 sm:$0xff]  }
 0x834   : > { %12739 = vmatprep.subr.bf16.mxu0 %v16664_v5  ;;  %v16769_v5 = vld [vmem:[%s19202_s2 + $0xb4c] ss:$72 sps:$4 sm:$0xff]  }
 0x837   : > { %12740 = vmatpush1.bf16.msra.mxu0 %v16662_v51  ;;  %v16772_v51 = vld [vmem:[%s19202_s2 + $0x254] ss:$72 sps:$4 sm:$0xff]  }
 0x838   : > { %12741 = vmatprep.subr.bf16.mxu0 %v16670_v9  ;;  %v16767_v9 = vld [vmem:[%s19202_s2 + $0xb48] ss:$72 sps:$4 sm:$0xff]  }
 0x83b   : > { %12742 = vmatpush1.bf16.msra.mxu0 %v16668_v14  ;;  %v16770_v14 = vld [vmem:[%s19202_s2 + $0x250] ss:$72 sps:$4 sm:$0xff]  }
 0x83c   : > { %12743 = vmatprep.subr.bf16.mxu0 %v16676_v15  ;;  %v16775_v15 = vld [vmem:[%s19202_s2 + $0xabc] ss:$72 sps:$4 sm:$0xff]  }
 0x83f   : > { %12744 = vmatpush1.bf16.msra.mxu0 %v16674_v41  ;;  %v16778_v41 = vld [vmem:[%s19202_s2 + $0x1c4] ss:$72 sps:$4 sm:$0xff]  }
 0x840   : > { %12745 = vmatprep.subr.bf16.mxu0 %v16682_v16  ;;  %v16773_v16 = vld [vmem:[%s19202_s2 + $0xab8] ss:$72 sps:$4 sm:$0xff]  }
 0x843   : > { %12746 = vmatpush1.bf16.msra.mxu0 %v16680_v11  ;;  %v16776_v11 = vld [vmem:[%s19202_s2 + $0x1c0] ss:$72 sps:$4 sm:$0xff]  }
 0x844   : > { %12747 = vmatprep.subr.bf16.mxu0 %v16688_v17  ;;  %v16781_v17 = vld [vmem:[%s19202_s2 + $0xa2c] ss:$72 sps:$4 sm:$0xff]  }
 0x847   : > { %12748 = vmatpush1.bf16.msra.mxu0 %v16686_v6  ;;  %v16784_v6 = vld [vmem:[%s19202_s2 + $0x134] ss:$72 sps:$4 sm:$0xff]  }
 0x848   : > { %12749 = vmatprep.subr.bf16.mxu0 %v16694_v60  ;;  %v16779_v60 = vld [vmem:[%s19202_s2 + $0xa28] ss:$72 sps:$4 sm:$0xff]  }
 0x84b   : > { %12750 = vmatpush1.bf16.msra.mxu0 %v16692_v19  ;;  %v16782_v19 = vld [vmem:[%s19202_s2 + $0x130] ss:$72 sps:$4 sm:$0xff]  }
 0x84c   : > { %12751 = vmatprep.subr.bf16.mxu0 %v16700_v20  ;;  %v16787_v20 = vld [vmem:[%s19202_s2 + $0x99c] ss:$72 sps:$4 sm:$0xff]  }
 0x84f   : > { %12752 = vmatpush1.bf16.msra.mxu0 %v16698_v21  ;;  %v16790_v21 = vld [vmem:[%s19202_s2 + $0xa4] ss:$72 sps:$4 sm:$0xff]  }
 0x850   : > { %12753 = vmatprep.subr.bf16.mxu0 %v16706_v40  ;;  %v16785_v40 = vld [vmem:[%s19202_s2 + $0x998] ss:$72 sps:$4 sm:$0xff]  }
 0x853   : > { %12754 = vmatpush2.bf16.msra.mxu0 %v16704_v44  ;;  %v16788_v44 = vld [vmem:[%s19202_s2 + $0xa0] ss:$72 sps:$4 sm:$0xff]  }
 0x854   : > { %12755 = vmatprep.subr.bf16.mxu0 %v16712_v23  ;;  %v16793_v23 = vld [vmem:[%s19202_s2 + $0x90c] ss:$72 sps:$4 sm:$0xff]  }
 0x857   : > { %12756 = vmatpush2.bf16.msra.mxu0 %v16710_v26  ;;  %v16796_v26 = vld [vmem:[%s19202_s2 + $0x14] ss:$72 sps:$4 sm:$0xff]  }
 0x858   : > { %12757 = vmatprep.subr.bf16.mxu0 %v16718_v2  ;;  %v16791_v2 = vld [vmem:[%s19202_s2 + $0x908] ss:$72 sps:$4 sm:$0xff]  }
 0x85b   : > { %12758 = vmatpush2.bf16.msra.mxu0 %v16716_v27  ;;  %v16794_v27 = vld [vmem:[%s19202_s2 + $0x10] ss:$72 sps:$4 sm:$0xff]  }
 0x85c   : > { %12759 = vmatprep.subr.bf16.mxu0 %v16724_v56  ;;  %v16799_v56 = vld [vmem:[%s19202_s2 + $0x117c] ss:$72 sps:$4 sm:$0xff]  }
 0x85f   : > { %12760 = vmatpush2.bf16.msra.mxu0 %v16722_v30  ;;  %v16802_v30 = vld [vmem:[%s19202_s2 + $0x884] ss:$72 sps:$4 sm:$0xff]  }
 0x860   : > { %12761 = vmatprep.subr.bf16.mxu0 %v16730_v31  ;;  %v16797_v31 = vld [vmem:[%s19202_s2 + $0x1178] ss:$72 sps:$4 sm:$0xff]  }
 0x863   : > { %12762 = vmatpush2.bf16.msra.mxu0 %v16728_v34  ;;  %v16800_v34 = vld [vmem:[%s19202_s2 + $0x880] ss:$72 sps:$4 sm:$0xff]  }
 0x864   : > { %12763 = vmatprep.subr.bf16.mxu0 %v16736_v13  ;;  %v16808_v13 = vld [vmem:[%s19202_s2 + $0x7f4] ss:$72 sps:$4 sm:$0xff]  }
 0x866   : > { %v9138_v47 = vpop.f32.mrf.mxu0 }
 0x867   : > { %v9179_v45 = vpop.f32.mrf.mxu1  ;;  %v9139_v48 = vadd.f32 %v9138_v47, %v8373_v37  ;;  %12764 = vmatpush2.bf16.msra.mxu0 %v16734_v29  ;;  %v16803_v29 = vld [vmem:[%s19202_s2 + $0x10e8] ss:$72 sps:$4 sm:$0xff]   ;;  %v16811_v37 = vld [vmem:[%s19202_s2 + $0x105c] ss:$72 sps:$4 sm:$0xff]   ;;  %v16817_v47 = vld [vmem:[%s19202_s2 + $0xfcc] ss:$72 sps:$4 sm:$0xff]  }
 0x868   : > { %v9140_v33 = vpop.f32.mrf.mxu0  ;;  %12765 = vmatprep.subr.bf16.mxu0 %v16742_v38  ;;  %v16814_v38 = vld [vmem:[%s19202_s2 + $0x764] ss:$72 sps:$4 sm:$0xff]  }
 0x869   : > { %v9181_v25 = vpop.f32.mrf.mxu1  ;;  %v9180_v49 = vadd.f32 %v9179_v45, %v9139_v48  ;;  %v9141_v24 = vadd.f32 %v9140_v33, %v8377_v46  ;;  %v16809_v46 = vld [vmem:[%s19202_s2 + $0x1058] ss:$72 sps:$4 sm:$0xff]   ;;  %v16820_v45 = vld [vmem:[%s19202_s2 + $0x6d4] ss:$72 sps:$4 sm:$0xff]   ;;  %v16815_v48 = vld [vmem:[%s19202_s2 + $0xfc8] ss:$72 sps:$4 sm:$0xff]  }
 0x86a   : > { %v9142_v1 = vpop.f32.mrf.mxu0  ;;  %v16818_v33 = vld [vmem:[%s19202_s2 + $0x6d0] ss:$72 sps:$4 sm:$0xff]  }
 0x86b   : > { %v9183_v18 = vpop.f32.mrf.mxu1  ;;  %v9182_v53 = vadd.f32 %v9181_v25, %v9141_v24  ;;  %12766 = vmatpush2.bf16.msra.mxu0 %v16740_v43  ;;  %v9188_v22 = vmax.f32 %v9180_v49, 0.0  ;;  %v16812_v43 = vld [vmem:[%s19202_s2 + $0x760] ss:$72 sps:$4 sm:$0xff]   ;;  %v16823_v25 = vld [vmem:[%s19202_s2 + $0xf3c] ss:$72 sps:$4 sm:$0xff]  }
 0x86c   : > { %v9143_v42 = vpop.f32.mrf.mxu0  ;;  %12767 = vmatprep.subr.bf16.mxu0 %v16748_v7  ;;  %v16826_v7 = vld [vmem:[%s19202_s2 + $0x644] ss:$72 sps:$4 sm:$0xff]   ;;  %v16821_v49 = vld [vmem:[%s19202_s2 + $0xf38] ss:$72 sps:$4 sm:$0xff]   ;;  %v16832_v1 = vld [vmem:[%s19202_s2 + $0x5b4] ss:$72 sps:$4 sm:$0xff]  }
 0x86d   : > { %v9184_v12 = vpop.f32.mrf.mxu1  ;;  %v9189_v58 = vmax.f32 %v9182_v53, 0.0  ;;  %v21108_v59 = vpack.c.bf16 %v9188_v22, %v9188_v22  ;;  %v16824_v24 = vld [vmem:[%s19202_s2 + $0x640] ss:$72 sps:$4 sm:$0xff]   ;;  %v16830_v53 = vld [vmem:[%s19202_s2 + $0x5b0] ss:$72 sps:$4 sm:$0xff]  }
 0x86e   : > { %v16827_v18 = vld [vmem:[%s19202_s2 + $0xea8] ss:$72 sps:$4 sm:$0xff]   ;;  %v16835_v22 = vld [vmem:[%s19202_s2 + $0xe1c] ss:$72 sps:$4 sm:$0xff]   ;;  %v16833_v12 = vld [vmem:[%s19202_s2 + $0xe18] ss:$72 sps:$4 sm:$0xff]  }
 0x86f   : > { %v21105_v54 = vpack.c.bf16 %v9189_v58, %v9189_v58  ;;  %12768 = vmatpush2.bf16.msra.mxu0 %v16746_v0  ;;  %v16829_v0 = vld [vmem:[%s19202_s2 + $0xeac] ss:$72 sps:$4 sm:$0xff]  }
 0x870   : > { %12819 = vmatprep.subr.bf16.mxu0 %v16754_v52  ;;  %v16838_v42 = vld [vmem:[%s19202_s2 + $0x524] ss:$72 sps:$4 sm:$0xff]   ;;  %v16836_v52 = vld [vmem:[%s19202_s2 + $0x520] ss:$72 sps:$4 sm:$0xff]  }
 0x871   : > { %12728 = vmatprep.mubr.bf16.mxu1 %v21105_v54  ;;  %v16841_v58 = vld [vmem:[%s19202_s2 + $0xd8c] ss:$72 sps:$4 sm:$0xff]  }
 0x872   : > { %12770 = vmatmul.mubr.bf16.vlgmr.msra.gmra.mxu0 %v21064_v57  ;;  %12729 = vmatmul.mubr.bf16.vlgmr.msra.gmra.mxu1 %v21108_v59 }
 0x873   : > { %12779 = vmatpush1.bf16.msra.mxu1 %v16749_v3  ;;  %12820 = vmatpush1.bf16.msra.mxu0 %v16752_v10  ;;  %v16844_v3 = vld [vmem:[%s19202_s2 + $0x494] ss:$72 sps:$4 sm:$0xff]   ;;  %v16839_v10 = vld [vmem:[%s19202_s2 + $0xd88] ss:$72 sps:$4 sm:$0xff]  }
 0x874   : > { %12851 = vmatprep.mubr.bf16.mxu0 %v21062_v8  ;;  %12810 = vmatprep.mubr.bf16.mxu1 %v21105_v54 }
 0x875   : > { %12780 = vmatprep.subr.bf16.mxu1 %v16757_v55  ;;  %12821 = vmatprep.subr.bf16.mxu0 %v16760_v62  ;;  %v16842_v55 = vld [vmem:[%s19202_s2 + $0x490] ss:$72 sps:$4 sm:$0xff]   ;;  %v16845_v62 = vld [vmem:[%s19202_s2 + $0xd00] ss:$72 sps:$4 sm:$0xff]  }
 0x877   : > { %12781 = vmatpush1.bf16.msra.mxu1 %v16755_v28  ;;  %12822 = vmatpush1.bf16.msra.mxu0 %v16758_v61  ;;  %v16847_v28 = vld [vmem:[%s19202_s2 + $0xd04] ss:$72 sps:$4 sm:$0xff]  }
 0x878   : > { %12782 = vmatprep.subr.bf16.mxu1 %v16763_v63  ;;  %12823 = vmatprep.subr.bf16.mxu0 %v16766_v4  ;;  %v16850_v61 = vld [vmem:[%s19202_s2 + $0x40c] ss:$72 sps:$4 sm:$0xff]   ;;  %v16848_v63 = vld [vmem:[%s19202_s2 + $0x408] ss:$72 sps:$4 sm:$0xff]  }
 0x879   : > { %v16853_v4 = vld [vmem:[%s19202_s2 + $0xc74] ss:$72 sps:$4 sm:$0xff]  }
 0x87b   : > { %12783 = vmatpush1.bf16.msra.mxu1 %v16761_v32  ;;  %12824 = vmatpush1.bf16.msra.mxu0 %v16764_v39  ;;  %v16856_v32 = vld [vmem:[%s19202_s2 + $0x37c] ss:$72 sps:$4 sm:$0xff]   ;;  %v16851_v39 = vld [vmem:[%s19202_s2 + $0xc70] ss:$72 sps:$4 sm:$0xff]  }
 0x87c   : > { %12784 = vmatprep.subr.bf16.mxu1 %v16769_v5  ;;  %12825 = vmatprep.subr.bf16.mxu0 %v16772_v51  ;;  %v16854_v5 = vld [vmem:[%s19202_s2 + $0x378] ss:$72 sps:$4 sm:$0xff]   ;;  %v16859_v51 = vld [vmem:[%s19202_s2 + $0xbe4] ss:$72 sps:$4 sm:$0xff]  }
 0x87f   : > { %12785 = vmatpush1.bf16.msra.mxu1 %v16767_v9  ;;  %12826 = vmatpush1.bf16.msra.mxu0 %v16770_v14  ;;  %v16862_v9 = vld [vmem:[%s19202_s2 + $0x2ec] ss:$72 sps:$4 sm:$0xff]   ;;  %v16857_v14 = vld [vmem:[%s19202_s2 + $0xbe0] ss:$72 sps:$4 sm:$0xff]  }
 0x880   : > { %12786 = vmatprep.subr.bf16.mxu1 %v16775_v15  ;;  %12827 = vmatprep.subr.bf16.mxu0 %v16778_v41  ;;  %v16860_v15 = vld [vmem:[%s19202_s2 + $0x2e8] ss:$72 sps:$4 sm:$0xff]   ;;  %v16865_v41 = vld [vmem:[%s19202_s2 + $0xb54] ss:$72 sps:$4 sm:$0xff]  }
 0x883   : > { %12787 = vmatpush1.bf16.msra.mxu1 %v16773_v16  ;;  %12828 = vmatpush1.bf16.msra.mxu0 %v16776_v11  ;;  %v16868_v16 = vld [vmem:[%s19202_s2 + $0x25c] ss:$72 sps:$4 sm:$0xff]   ;;  %v16863_v11 = vld [vmem:[%s19202_s2 + $0xb50] ss:$72 sps:$4 sm:$0xff]  }
 0x884   : > { %12788 = vmatprep.subr.bf16.mxu1 %v16781_v17  ;;  %12829 = vmatprep.subr.bf16.mxu0 %v16784_v6  ;;  %v16866_v17 = vld [vmem:[%s19202_s2 + $0x258] ss:$72 sps:$4 sm:$0xff]   ;;  %v16871_v6 = vld [vmem:[%s19202_s2 + $0xac4] ss:$72 sps:$4 sm:$0xff]  }
 0x887   : > { %12789 = vmatpush1.bf16.msra.mxu1 %v16779_v60  ;;  %12830 = vmatpush1.bf16.msra.mxu0 %v16782_v19  ;;  %v16874_v60 = vld [vmem:[%s19202_s2 + $0x1cc] ss:$72 sps:$4 sm:$0xff]   ;;  %v16869_v19 = vld [vmem:[%s19202_s2 + $0xac0] ss:$72 sps:$4 sm:$0xff]  }
 0x888   : > { %12790 = vmatprep.subr.bf16.mxu1 %v16787_v20  ;;  %12831 = vmatprep.subr.bf16.mxu0 %v16790_v21  ;;  %v16872_v20 = vld [vmem:[%s19202_s2 + $0x1c8] ss:$72 sps:$4 sm:$0xff]   ;;  %v16877_v21 = vld [vmem:[%s19202_s2 + $0xa34] ss:$72 sps:$4 sm:$0xff]  }
 0x88b   : > { %12791 = vmatpush1.bf16.msra.mxu1 %v16785_v40  ;;  %12832 = vmatpush1.bf16.msra.mxu0 %v16788_v44  ;;  %v16880_v40 = vld [vmem:[%s19202_s2 + $0x13c] ss:$72 sps:$4 sm:$0xff]   ;;  %v16875_v44 = vld [vmem:[%s19202_s2 + $0xa30] ss:$72 sps:$4 sm:$0xff]  }
 0x88c   : > { %12792 = vmatprep.subr.bf16.mxu1 %v16793_v23  ;;  %12833 = vmatprep.subr.bf16.mxu0 %v16796_v26  ;;  %v16878_v23 = vld [vmem:[%s19202_s2 + $0x138] ss:$72 sps:$4 sm:$0xff]   ;;  %v16883_v26 = vld [vmem:[%s19202_s2 + $0x9a4] ss:$72 sps:$4 sm:$0xff]  }
 0x88f   : > { %12793 = vmatpush1.bf16.msra.mxu1 %v16791_v2  ;;  %12834 = vmatpush1.bf16.msra.mxu0 %v16794_v27  ;;  %v16886_v2 = vld [vmem:[%s19202_s2 + $0xac] ss:$72 sps:$4 sm:$0xff]   ;;  %v16881_v27 = vld [vmem:[%s19202_s2 + $0x9a0] ss:$72 sps:$4 sm:$0xff]  }
 0x890   : > { %12794 = vmatprep.subr.bf16.mxu1 %v16799_v56  ;;  %12835 = vmatprep.subr.bf16.mxu0 %v16802_v30  ;;  %v16884_v56 = vld [vmem:[%s19202_s2 + $0xa8] ss:$72 sps:$4 sm:$0xff]   ;;  %v16889_v30 = vld [vmem:[%s19202_s2 + $0x914] ss:$72 sps:$4 sm:$0xff]  }
 0x893   : > { %12795 = vmatpush2.bf16.msra.mxu1 %v16797_v31  ;;  %12836 = vmatpush2.bf16.msra.mxu0 %v16800_v34  ;;  %v16892_v31 = vld [vmem:[%s19202_s2 + $0x1c] ss:$72 sps:$4 sm:$0xff]   ;;  %v16887_v34 = vld [vmem:[%s19202_s2 + $0x910] ss:$72 sps:$4 sm:$0xff]  }
 0x894   : > { %12796 = vmatprep.subr.bf16.mxu1 %v16805_v35  ;;  %12837 = vmatprep.subr.bf16.mxu0 %v16808_v13  ;;  %v16890_v35 = vld [vmem:[%s19202_s2 + $0x18] ss:$72 sps:$4 sm:$0xff]   ;;  %v16895_v13 = vld [vmem:[%s19202_s2 + $0x1184] ss:$72 sps:$4 sm:$0xff]  }
 0x897   : > { %12797 = vmatpush2.bf16.msra.mxu1 %v16803_v29  ;;  %12838 = vmatpush2.bf16.msra.mxu0 %v16806_v36  ;;  %v16898_v29 = vld [vmem:[%s19202_s2 + $0x88c] ss:$72 sps:$4 sm:$0xff]   ;;  %v16893_v36 = vld [vmem:[%s19202_s2 + $0x1180] ss:$72 sps:$4 sm:$0xff]  }
 0x898   : > { %12798 = vmatprep.subr.bf16.mxu1 %v16811_v37  ;;  %12839 = vmatprep.subr.bf16.mxu0 %v16814_v38  ;;  %v16896_v37 = vld [vmem:[%s19202_s2 + $0x888] ss:$72 sps:$4 sm:$0xff]   ;;  %v16901_v38 = vld [vmem:[%s19202_s2 + $0x10f4] ss:$72 sps:$4 sm:$0xff]  }
 0x89b   : > { %12799 = vmatpush2.bf16.msra.mxu1 %v16809_v46  ;;  %12840 = vmatpush2.bf16.msra.mxu0 %v16812_v43  ;;  %v16904_v46 = vld [vmem:[%s19202_s2 + $0x7fc] ss:$72 sps:$4 sm:$0xff]   ;;  %v16899_v43 = vld [vmem:[%s19202_s2 + $0x10f0] ss:$72 sps:$4 sm:$0xff]  }
 0x89c   : > { %12800 = vmatprep.subr.bf16.mxu1 %v16817_v47  ;;  %12841 = vmatprep.subr.bf16.mxu0 %v16820_v45  ;;  %v16902_v47 = vld [vmem:[%s19202_s2 + $0x7f8] ss:$72 sps:$4 sm:$0xff]   ;;  %v16907_v45 = vld [vmem:[%s19202_s2 + $0x1064] ss:$72 sps:$4 sm:$0xff]  }
 0x89f   : > { %12801 = vmatpush2.bf16.msra.mxu1 %v16815_v48  ;;  %12842 = vmatpush2.bf16.msra.mxu0 %v16818_v33  ;;  %v16910_v48 = vld [vmem:[%s19202_s2 + $0x76c] ss:$72 sps:$4 sm:$0xff]   ;;  %v16905_v33 = vld [vmem:[%s19202_s2 + $0x1060] ss:$72 sps:$4 sm:$0xff]  }
 0x8a0   : > { %12802 = vmatprep.subr.bf16.mxu1 %v16823_v25  ;;  %12843 = vmatprep.subr.bf16.mxu0 %v16826_v7  ;;  %v16908_v25 = vld [vmem:[%s19202_s2 + $0x768] ss:$72 sps:$4 sm:$0xff]   ;;  %v16913_v7 = vld [vmem:[%s19202_s2 + $0xfd4] ss:$72 sps:$4 sm:$0xff]  }
 0x8a3   : > { %12803 = vmatpush2.bf16.msra.mxu1 %v16821_v49  ;;  %12844 = vmatpush2.bf16.msra.mxu0 %v16824_v24  ;;  %v16916_v49 = vld [vmem:[%s19202_s2 + $0x6dc] ss:$72 sps:$4 sm:$0xff]   ;;  %v16911_v24 = vld [vmem:[%s19202_s2 + $0xfd0] ss:$72 sps:$4 sm:$0xff]  }
 0x8a4   : > { %12804 = vmatprep.subr.bf16.mxu1 %v16829_v0  ;;  %12845 = vmatprep.subr.bf16.mxu0 %v16832_v1  ;;  %v16914_v0 = vld [vmem:[%s19202_s2 + $0x6d8] ss:$72 sps:$4 sm:$0xff]   ;;  %v16919_v1 = vld [vmem:[%s19202_s2 + $0xf44] ss:$72 sps:$4 sm:$0xff]  }
 0x8a7   : > { %12805 = vmatpush2.bf16.msra.mxu1 %v16827_v18  ;;  %12846 = vmatpush2.bf16.msra.mxu0 %v16830_v53  ;;  %v16922_v18 = vld [vmem:[%s19202_s2 + $0x64c] ss:$72 sps:$4 sm:$0xff]   ;;  %v16917_v53 = vld [vmem:[%s19202_s2 + $0xf40] ss:$72 sps:$4 sm:$0xff]  }
 0x8a8   : > { %12806 = vmatprep.subr.bf16.mxu1 %v16835_v22  ;;  %12847 = vmatprep.subr.bf16.mxu0 %v16838_v42  ;;  %v16920_v22 = vld [vmem:[%s19202_s2 + $0x648] ss:$72 sps:$4 sm:$0xff]   ;;  %v16925_v42 = vld [vmem:[%s19202_s2 + $0xeb4] ss:$72 sps:$4 sm:$0xff]  }
 0x8ab   : > { %12807 = vmatpush2.bf16.msra.mxu1 %v16833_v12  ;;  %12848 = vmatpush2.bf16.msra.mxu0 %v16836_v52  ;;  %v16928_v12 = vld [vmem:[%s19202_s2 + $0x5bc] ss:$72 sps:$4 sm:$0xff]   ;;  %v16923_v52 = vld [vmem:[%s19202_s2 + $0xeb0] ss:$72 sps:$4 sm:$0xff]  }
 0x8ac   : > { %12808 = vmatprep.subr.bf16.mxu1 %v16841_v58  ;;  %12849 = vmatprep.subr.bf16.mxu0 %v16844_v3  ;;  %v16926_v58 = vld [vmem:[%s19202_s2 + $0x5b8] ss:$72 sps:$4 sm:$0xff]   ;;  %v16931_v3 = vld [vmem:[%s19202_s2 + $0xe24] ss:$72 sps:$4 sm:$0xff]  }
 0x8af   : > { %12809 = vmatpush2.bf16.msra.mxu1 %v16839_v10  ;;  %12850 = vmatpush2.bf16.msra.mxu0 %v16842_v55  ;;  %v16934_v10 = vld [vmem:[%s19202_s2 + $0x52c] ss:$72 sps:$4 sm:$0xff]   ;;  %v16929_v55 = vld [vmem:[%s19202_s2 + $0xe20] ss:$72 sps:$4 sm:$0xff]  }
 0x8b0   : > { %12860 = vmatprep.subr.bf16.mxu1 %v16847_v28  ;;  %12901 = vmatprep.subr.bf16.mxu0 %v16850_v61  ;;  %v16932_v28 = vld [vmem:[%s19202_s2 + $0x528] ss:$72 sps:$4 sm:$0xff]   ;;  %v16937_v61 = vld [vmem:[%s19202_s2 + $0xd94] ss:$72 sps:$4 sm:$0xff]  }
 0x8b2   : > { %12811 = vmatmul.mubr.bf16.vlgmr.msra.gmra.mxu1 %v21108_v59  ;;  %12852 = vmatmul.mubr.bf16.vlgmr.msra.gmra.mxu0 %v21064_v57 }
 0x8b3   : > { %12861 = vmatpush1.bf16.msra.mxu1 %v16845_v62  ;;  %12892 = vmatprep.mubr.bf16.mxu1 %v21105_v54  ;;  %v16940_v62 = vld [vmem:[%s19202_s2 + $0x49c] ss:$72 sps:$4 sm:$0xff]  }
 0x8b4   : > { %12902 = vmatpush1.bf16.msra.mxu0 %v16848_v63  ;;  %12933 = vmatprep.mubr.bf16.mxu0 %v21062_v8  ;;  %v16935_v63 = vld [vmem:[%s19202_s2 + $0xd90] ss:$72 sps:$4 sm:$0xff]  }
 0x8b5   : > { %12862 = vmatprep.subr.bf16.mxu1 %v16853_v4  ;;  %12903 = vmatprep.subr.bf16.mxu0 %v16856_v32  ;;  %v16938_v4 = vld [vmem:[%s19202_s2 + $0x498] ss:$72 sps:$4 sm:$0xff]   ;;  %v16943_v32 = vld [vmem:[%s19202_s2 + $0xd0c] ss:$72 sps:$4 sm:$0xff]  }
 0x8b7   : > { %12863 = vmatpush1.bf16.msra.mxu1 %v16851_v39  ;;  %v16946_v39 = vld [vmem:[%s19202_s2 + $0x414] ss:$72 sps:$4 sm:$0xff]  }
 0x8b8   : > { %12904 = vmatpush1.bf16.msra.mxu0 %v16854_v5  ;;  %12864 = vmatprep.subr.bf16.mxu1 %v16859_v51  ;;  %v16941_v5 = vld [vmem:[%s19202_s2 + $0xd08] ss:$72 sps:$4 sm:$0xff]  }
 0x8b9   : > { %12905 = vmatprep.subr.bf16.mxu0 %v16862_v9  ;;  %v16944_v51 = vld [vmem:[%s19202_s2 + $0x410] ss:$72 sps:$4 sm:$0xff]   ;;  %v16949_v9 = vld [vmem:[%s19202_s2 + $0xc7c] ss:$72 sps:$4 sm:$0xff]  }
 0x8bb   : > { %12865 = vmatpush1.bf16.msra.mxu1 %v16857_v14 }
 0x8bc   : > { %12906 = vmatpush1.bf16.msra.mxu0 %v16860_v15  ;;  %12866 = vmatprep.subr.bf16.mxu1 %v16865_v41  ;;  %v16952_v15 = vld [vmem:[%s19202_s2 + $0x384] ss:$72 sps:$4 sm:$0xff]   ;;  %v16947_v41 = vld [vmem:[%s19202_s2 + $0xc78] ss:$72 sps:$4 sm:$0xff]  }
 0x8bd   : > { %12907 = vmatprep.subr.bf16.mxu0 %v16868_v16 }
 0x8bf   : > { %12867 = vmatpush1.bf16.msra.mxu1 %v16863_v11  ;;  %v16950_v11 = vld [vmem:[%s19202_s2 + $0x380] ss:$72 sps:$4 sm:$0xff]  }
 0x8c0   : > { %12908 = vmatpush1.bf16.msra.mxu0 %v16866_v17  ;;  %12868 = vmatprep.subr.bf16.mxu1 %v16871_v6  ;;  %v16955_v17 = vld [vmem:[%s19202_s2 + $0xbec] ss:$72 sps:$4 sm:$0xff]  }
 0x8c1   : > { %12909 = vmatprep.subr.bf16.mxu0 %v16874_v60  ;;  %v16958_v6 = vld [vmem:[%s19202_s2 + $0x2f4] ss:$72 sps:$4 sm:$0xff]  }
 0x8c3   : > { %12869 = vmatpush1.bf16.msra.mxu1 %v16869_v19  ;;  %v16953_v19 = vld [vmem:[%s19202_s2 + $0xbe8] ss:$72 sps:$4 sm:$0xff]  }
 0x8c4   : > { %12910 = vmatpush1.bf16.msra.mxu0 %v16872_v20  ;;  %12870 = vmatprep.subr.bf16.mxu1 %v16877_v21  ;;  %v16956_v21 = vld [vmem:[%s19202_s2 + $0x2f0] ss:$72 sps:$4 sm:$0xff]  }
 0x8c5   : > { %12911 = vmatprep.subr.bf16.mxu0 %v16880_v40  ;;  %v16961_v40 = vld [vmem:[%s19202_s2 + $0xb5c] ss:$72 sps:$4 sm:$0xff]  }
 0x8c7   : > { %12871 = vmatpush1.bf16.msra.mxu1 %v16875_v44  ;;  %v16964_v44 = vld [vmem:[%s19202_s2 + $0x264] ss:$72 sps:$4 sm:$0xff]  }
 0x8c8   : > { %12912 = vmatpush1.bf16.msra.mxu0 %v16878_v23  ;;  %12872 = vmatprep.subr.bf16.mxu1 %v16883_v26  ;;  %v16959_v23 = vld [vmem:[%s19202_s2 + $0xb58] ss:$72 sps:$4 sm:$0xff]  }
 0x8c9   : > { %12913 = vmatprep.subr.bf16.mxu0 %v16886_v2  ;;  %v16962_v26 = vld [vmem:[%s19202_s2 + $0x260] ss:$72 sps:$4 sm:$0xff]   ;;  %v16967_v2 = vld [vmem:[%s19202_s2 + $0xacc] ss:$72 sps:$4 sm:$0xff]  }
 0x8cb   : > { %12873 = vmatpush1.bf16.msra.mxu1 %v16881_v27  ;;  %v16970_v27 = vld [vmem:[%s19202_s2 + $0x1d4] ss:$72 sps:$4 sm:$0xff]  }
 0x8cc   : > { %12914 = vmatpush1.bf16.msra.mxu0 %v16884_v56  ;;  %12874 = vmatprep.subr.bf16.mxu1 %v16889_v30  ;;  %v16965_v56 = vld [vmem:[%s19202_s2 + $0xac8] ss:$72 sps:$4 sm:$0xff]  }
 0x8cd   : > { %12915 = vmatprep.subr.bf16.mxu0 %v16892_v31  ;;  %v16968_v30 = vld [vmem:[%s19202_s2 + $0x1d0] ss:$72 sps:$4 sm:$0xff]   ;;  %v16973_v31 = vld [vmem:[%s19202_s2 + $0xa3c] ss:$72 sps:$4 sm:$0xff]  }
 0x8cf   : > { %12875 = vmatpush1.bf16.msra.mxu1 %v16887_v34  ;;  %v16976_v34 = vld [vmem:[%s19202_s2 + $0x144] ss:$72 sps:$4 sm:$0xff]  }
 0x8d0   : > { %12916 = vmatpush1.bf16.msra.mxu0 %v16890_v35  ;;  %12876 = vmatprep.subr.bf16.mxu1 %v16895_v13  ;;  %v16971_v35 = vld [vmem:[%s19202_s2 + $0xa38] ss:$72 sps:$4 sm:$0xff]  }
 0x8d1   : > { %12917 = vmatprep.subr.bf16.mxu0 %v16898_v29  ;;  %v16974_v13 = vld [vmem:[%s19202_s2 + $0x140] ss:$72 sps:$4 sm:$0xff]   ;;  %v16979_v29 = vld [vmem:[%s19202_s2 + $0x9ac] ss:$72 sps:$4 sm:$0xff]  }
 0x8d3   : > { %12877 = vmatpush2.bf16.msra.mxu1 %v16893_v36  ;;  %v16982_v36 = vld [vmem:[%s19202_s2 + $0xb4] ss:$72 sps:$4 sm:$0xff]  }
 0x8d4   : > { %12918 = vmatpush2.bf16.msra.mxu0 %v16896_v37  ;;  %12878 = vmatprep.subr.bf16.mxu1 %v16901_v38  ;;  %v16977_v37 = vld [vmem:[%s19202_s2 + $0x9a8] ss:$72 sps:$4 sm:$0xff]  }
 0x8d5   : > { %12919 = vmatprep.subr.bf16.mxu0 %v16904_v46  ;;  %v16980_v38 = vld [vmem:[%s19202_s2 + $0xb0] ss:$72 sps:$4 sm:$0xff]   ;;  %v16985_v46 = vld [vmem:[%s19202_s2 + $0x91c] ss:$72 sps:$4 sm:$0xff]  }
 0x8d7   : > { %12879 = vmatpush2.bf16.msra.mxu1 %v16899_v43  ;;  %v16988_v43 = vld [vmem:[%s19202_s2 + $0x24] ss:$72 sps:$4 sm:$0xff]  }
 0x8d8   : > { %12920 = vmatpush2.bf16.msra.mxu0 %v16902_v47  ;;  %12880 = vmatprep.subr.bf16.mxu1 %v16907_v45  ;;  %v16983_v47 = vld [vmem:[%s19202_s2 + $0x918] ss:$72 sps:$4 sm:$0xff]  }
 0x8d9   : > { %12921 = vmatprep.subr.bf16.mxu0 %v16910_v48  ;;  %v16986_v45 = vld [vmem:[%s19202_s2 + $0x20] ss:$72 sps:$4 sm:$0xff]   ;;  %v16991_v48 = vld [vmem:[%s19202_s2 + $0x118c] ss:$72 sps:$4 sm:$0xff]  }
 0x8db   : > { %12881 = vmatpush2.bf16.msra.mxu1 %v16905_v33  ;;  %v16994_v33 = vld [vmem:[%s19202_s2 + $0x894] ss:$72 sps:$4 sm:$0xff]  }
 0x8dc   : > { %12922 = vmatpush2.bf16.msra.mxu0 %v16908_v25  ;;  %12882 = vmatprep.subr.bf16.mxu1 %v16913_v7  ;;  %v16989_v25 = vld [vmem:[%s19202_s2 + $0x1188] ss:$72 sps:$4 sm:$0xff]  }
 0x8dd   : > { %12923 = vmatprep.subr.bf16.mxu0 %v16916_v49  ;;  %v16992_v7 = vld [vmem:[%s19202_s2 + $0x890] ss:$72 sps:$4 sm:$0xff]   ;;  %v16997_v49 = vld [vmem:[%s19202_s2 + $0x10fc] ss:$72 sps:$4 sm:$0xff]  }
 0x8df   : > { %12883 = vmatpush2.bf16.msra.mxu1 %v16911_v24  ;;  %v17000_v24 = vld [vmem:[%s19202_s2 + $0x804] ss:$72 sps:$4 sm:$0xff]  }
 0x8e0   : > { %12924 = vmatpush2.bf16.msra.mxu0 %v16914_v0  ;;  %12884 = vmatprep.subr.bf16.mxu1 %v16919_v1  ;;  %v16995_v0 = vld [vmem:[%s19202_s2 + $0x10f8] ss:$72 sps:$4 sm:$0xff]  }
 0x8e1   : > { %12925 = vmatprep.subr.bf16.mxu0 %v16922_v18  ;;  %v16998_v1 = vld [vmem:[%s19202_s2 + $0x800] ss:$72 sps:$4 sm:$0xff]   ;;  %v17003_v18 = vld [vmem:[%s19202_s2 + $0x106c] ss:$72 sps:$4 sm:$0xff]  }
 0x8e3   : > { %12885 = vmatpush2.bf16.msra.mxu1 %v16917_v53  ;;  %v17006_v53 = vld [vmem:[%s19202_s2 + $0x774] ss:$72 sps:$4 sm:$0xff]  }
 0x8e4   : > { %12926 = vmatpush2.bf16.msra.mxu0 %v16920_v22  ;;  %12886 = vmatprep.subr.bf16.mxu1 %v16925_v42  ;;  %v17001_v22 = vld [vmem:[%s19202_s2 + $0x1068] ss:$72 sps:$4 sm:$0xff]  }
 0x8e5   : > { %12927 = vmatprep.subr.bf16.mxu0 %v16928_v12  ;;  %v17004_v42 = vld [vmem:[%s19202_s2 + $0x770] ss:$72 sps:$4 sm:$0xff]   ;;  %v17009_v12 = vld [vmem:[%s19202_s2 + $0xfdc] ss:$72 sps:$4 sm:$0xff]  }
 0x8e7   : > { %12887 = vmatpush2.bf16.msra.mxu1 %v16923_v52  ;;  %v17012_v52 = vld [vmem:[%s19202_s2 + $0x6e4] ss:$72 sps:$4 sm:$0xff]  }
 0x8e8   : > { %12928 = vmatpush2.bf16.msra.mxu0 %v16926_v58  ;;  %12888 = vmatprep.subr.bf16.mxu1 %v16931_v3  ;;  %v17007_v58 = vld [vmem:[%s19202_s2 + $0xfd8] ss:$72 sps:$4 sm:$0xff]  }
 0x8e9   : > { %12929 = vmatprep.subr.bf16.mxu0 %v16934_v10  ;;  %v17010_v3 = vld [vmem:[%s19202_s2 + $0x6e0] ss:$72 sps:$4 sm:$0xff]   ;;  %v17015_v10 = vld [vmem:[%s19202_s2 + $0xf4c] ss:$72 sps:$4 sm:$0xff]  }
 0x8eb   : > { %12889 = vmatpush2.bf16.msra.mxu1 %v16929_v55  ;;  %v17018_v55 = vld [vmem:[%s19202_s2 + $0x654] ss:$72 sps:$4 sm:$0xff]  }
 0x8ec   : > { %12930 = vmatpush2.bf16.msra.mxu0 %v16932_v28  ;;  %12890 = vmatprep.subr.bf16.mxu1 %v16937_v61  ;;  %v17013_v28 = vld [vmem:[%s19202_s2 + $0xf48] ss:$72 sps:$4 sm:$0xff]  }
 0x8ed   : > { %12931 = vmatprep.subr.bf16.mxu0 %v16940_v62  ;;  %v17016_v61 = vld [vmem:[%s19202_s2 + $0x650] ss:$72 sps:$4 sm:$0xff]   ;;  %v17021_v62 = vld [vmem:[%s19202_s2 + $0xebc] ss:$72 sps:$4 sm:$0xff]  }
 0x8ef   : > { %12891 = vmatpush2.bf16.msra.mxu1 %v16935_v63  ;;  %v17024_v63 = vld [vmem:[%s19202_s2 + $0x5c4] ss:$72 sps:$4 sm:$0xff]  }
 0x8f0   : > { %12932 = vmatpush2.bf16.msra.mxu0 %v16938_v4  ;;  %12942 = vmatprep.subr.bf16.mxu1 %v16943_v32  ;;  %v17019_v4 = vld [vmem:[%s19202_s2 + $0xeb8] ss:$72 sps:$4 sm:$0xff]  }
 0x8f1   : > { %12983 = vmatprep.subr.bf16.mxu0 %v16946_v39  ;;  %v17022_v32 = vld [vmem:[%s19202_s2 + $0x5c0] ss:$72 sps:$4 sm:$0xff]   ;;  %v17027_v39 = vld [vmem:[%s19202_s2 + $0xe2c] ss:$72 sps:$4 sm:$0xff]  }
 0x8f2   : > { %12893 = vmatmul.mubr.bf16.vlgmr.msra.gmra.mxu1 %v21108_v59  ;;  %v21248_v14 = vpop.f32.mrf.mxu0 }
 0x8f3   : > { %12934 = vmatmul.mubr.bf16.vlgmr.msra.gmra.mxu0 %v21064_v57  ;;  %12943 = vmatpush1.bf16.msra.mxu1 %v16941_v5  ;;  %v17030_v5 = vld [vmem:[%s19202_s2 + $0x534] ss:$72 sps:$4 sm:$0xff]  }
 0x8f4   : > { %12974 = vmatprep.mubr.bf16.mxu1 %v21105_v54  ;;  %12984 = vmatpush1.bf16.msra.mxu0 %v16944_v51  ;;  %v21254_v16 = vpop.f32.mrf.mxu0  ;;  %v17025_v51 = vld [vmem:[%s19202_s2 + $0xe28] ss:$72 sps:$4 sm:$0xff]  }
 0x8f5   : > { %13015 = vmatprep.mubr.bf16.mxu0 %v21062_v8  ;;  %12944 = vmatprep.subr.bf16.mxu1 %v16949_v9  ;;  %v17028_v9 = vld [vmem:[%s19202_s2 + $0x530] ss:$72 sps:$4 sm:$0xff]  }
 0x8f6   : > { %12985 = vmatprep.subr.bf16.mxu0 %v16952_v15  ;;  %v12693_v60 = vpop.f32.mrf.mxu0  ;;  %v17033_v15 = vld [vmem:[%s19202_s2 + $0xd9c] ss:$72 sps:$4 sm:$0xff]  }
 0x8f7   : > { %12945 = vmatpush1.bf16.msra.mxu1 %v16947_v41  ;;  %v17036_v41 = vld [vmem:[%s19202_s2 + $0x4a4] ss:$72 sps:$4 sm:$0xff]  }
 0x8f8   : > { %12986 = vmatpush1.bf16.msra.mxu0 %v16950_v11  ;;  %v12694_v20 = vpop.f32.mrf.mxu0  ;;  %12946 = vmatprep.subr.bf16.mxu1 %v16955_v17  ;;  %v17031_v11 = vld [vmem:[%s19202_s2 + $0xd98] ss:$72 sps:$4 sm:$0xff]   ;;  %v17042_v60 = vld [vmem:[%s19202_s2 + $0x41c] ss:$72 sps:$4 sm:$0xff]  }
 0x8f9   : > { %12987 = vmatprep.subr.bf16.mxu0 %v16958_v6  ;;  %v17034_v17 = vld [vmem:[%s19202_s2 + $0x4a0] ss:$72 sps:$4 sm:$0xff]   ;;  %v17039_v6 = vld [vmem:[%s19202_s2 + $0xd14] ss:$72 sps:$4 sm:$0xff]  }
 0x8fa   : > { %v17040_v20 = vld [vmem:[%s19202_s2 + $0x418] ss:$72 sps:$4 sm:$0xff]  }
 0x8fb   : > { %12947 = vmatpush1.bf16.msra.mxu1 %v16953_v19  ;;  %v17037_v19 = vld [vmem:[%s19202_s2 + $0xd10] ss:$72 sps:$4 sm:$0xff]  }
 0x8fc   : > { %12988 = vmatpush1.bf16.msra.mxu0 %v16956_v21  ;;  %12948 = vmatprep.subr.bf16.mxu1 %v16961_v40  ;;  %v17045_v21 = vld [vmem:[%s19202_s2 + $0xc84] ss:$72 sps:$4 sm:$0xff]  }
 0x8fd   : > { %12989 = vmatprep.subr.bf16.mxu0 %v16964_v44 }
 0x8ff   : > { %12949 = vmatpush1.bf16.msra.mxu1 %v16959_v23  ;;  %v17048_v23 = vld [vmem:[%s19202_s2 + $0x38c] ss:$72 sps:$4 sm:$0xff]  }
 0x900   : > { %12990 = vmatpush1.bf16.msra.mxu0 %v16962_v26  ;;  %12950 = vmatprep.subr.bf16.mxu1 %v16967_v2  ;;  %v17043_v2 = vld [vmem:[%s19202_s2 + $0xc80] ss:$72 sps:$4 sm:$0xff]  }
 0x901   : > { %12991 = vmatprep.subr.bf16.mxu0 %v16970_v27 }
 0x903   : > { %12951 = vmatpush1.bf16.msra.mxu1 %v16965_v56 }
 0x904   : > { %12992 = vmatpush1.bf16.msra.mxu0 %v16968_v30  ;;  %12952 = vmatprep.subr.bf16.mxu1 %v16973_v31  ;;  %v17046_v30 = vld [vmem:[%s19202_s2 + $0x388] ss:$72 sps:$4 sm:$0xff]   ;;  %v17051_v31 = vld [vmem:[%s19202_s2 + $0xbf4] ss:$72 sps:$4 sm:$0xff]  }
 0x905   : > { %12993 = vmatprep.subr.bf16.mxu0 %v16976_v34 }
 0x907   : > { %12953 = vmatpush1.bf16.msra.mxu1 %v16971_v35 }
 0x908   : > { %12994 = vmatpush1.bf16.msra.mxu0 %v16974_v13  ;;  %12954 = vmatprep.subr.bf16.mxu1 %v16979_v29 }
 0x909   : > { %12995 = vmatprep.subr.bf16.mxu0 %v16982_v36  ;;  %v17049_v36 = vld [vmem:[%s19202_s2 + $0xbf0] ss:$72 sps:$4 sm:$0xff]  }
 0x90b   : > { %12955 = vmatpush1.bf16.msra.mxu1 %v16977_v37 }
 0x90c   : > { %12996 = vmatpush1.bf16.msra.mxu0 %v16980_v38  ;;  %12956 = vmatprep.subr.bf16.mxu1 %v16985_v46  ;;  %v17052_v38 = vld [vmem:[%s19202_s2 + $0x2f8] ss:$72 sps:$4 sm:$0xff]   ;;  %v17057_v46 = vld [vmem:[%s19202_s2 + $0xb64] ss:$72 sps:$4 sm:$0xff]  }
 0x90d   : > { %12997 = vmatprep.subr.bf16.mxu0 %v16988_v43  ;;  %v17060_v43 = vld [vmem:[%s19202_s2 + $0x26c] ss:$72 sps:$4 sm:$0xff]  }
 0x90f   : > { %12957 = vmatpush1.bf16.msra.mxu1 %v16983_v47  ;;  %v17055_v47 = vld [vmem:[%s19202_s2 + $0xb60] ss:$72 sps:$4 sm:$0xff]  }
 0x910   : > { %12998 = vmatpush1.bf16.msra.mxu0 %v16986_v45  ;;  %12958 = vmatprep.subr.bf16.mxu1 %v16991_v48  ;;  %v17058_v45 = vld [vmem:[%s19202_s2 + $0x268] ss:$72 sps:$4 sm:$0xff]   ;;  %v17063_v48 = vld [vmem:[%s19202_s2 + $0xad4] ss:$72 sps:$4 sm:$0xff]  }
 0x911   : > { %12999 = vmatprep.subr.bf16.mxu0 %v16994_v33  ;;  %v17066_v33 = vld [vmem:[%s19202_s2 + $0x1dc] ss:$72 sps:$4 sm:$0xff]  }
 0x913   : > { %12959 = vmatpush2.bf16.msra.mxu1 %v16989_v25  ;;  %v17061_v25 = vld [vmem:[%s19202_s2 + $0xad0] ss:$72 sps:$4 sm:$0xff]  }
 0x914   : > { %13000 = vmatpush2.bf16.msra.mxu0 %v16992_v7  ;;  %12960 = vmatprep.subr.bf16.mxu1 %v16997_v49  ;;  %v17064_v7 = vld [vmem:[%s19202_s2 + $0x1d8] ss:$72 sps:$4 sm:$0xff]   ;;  %v17069_v49 = vld [vmem:[%s19202_s2 + $0xa44] ss:$72 sps:$4 sm:$0xff]  }
 0x915   : > { %13001 = vmatprep.subr.bf16.mxu0 %v17000_v24  ;;  %v17072_v24 = vld [vmem:[%s19202_s2 + $0x14c] ss:$72 sps:$4 sm:$0xff]  }
 0x917   : > { %12961 = vmatpush2.bf16.msra.mxu1 %v16995_v0  ;;  %v17067_v0 = vld [vmem:[%s19202_s2 + $0xa40] ss:$72 sps:$4 sm:$0xff]  }
 0x918   : > { %13002 = vmatpush2.bf16.msra.mxu0 %v16998_v1  ;;  %12962 = vmatprep.subr.bf16.mxu1 %v17003_v18  ;;  %v17070_v1 = vld [vmem:[%s19202_s2 + $0x148] ss:$72 sps:$4 sm:$0xff]   ;;  %v17075_v18 = vld [vmem:[%s19202_s2 + $0x9b4] ss:$72 sps:$4 sm:$0xff]  }
 0x919   : > { %13003 = vmatprep.subr.bf16.mxu0 %v17006_v53  ;;  %v17078_v53 = vld [vmem:[%s19202_s2 + $0xbc] ss:$72 sps:$4 sm:$0xff]  }
 0x91b   : > { %12963 = vmatpush2.bf16.msra.mxu1 %v17001_v22  ;;  %v17073_v22 = vld [vmem:[%s19202_s2 + $0x9b0] ss:$72 sps:$4 sm:$0xff]  }
 0x91c   : > { %13004 = vmatpush2.bf16.msra.mxu0 %v17004_v42  ;;  %12964 = vmatprep.subr.bf16.mxu1 %v17009_v12  ;;  %v17076_v42 = vld [vmem:[%s19202_s2 + $0xb8] ss:$72 sps:$4 sm:$0xff]   ;;  %v17081_v12 = vld [vmem:[%s19202_s2 + $0x924] ss:$72 sps:$4 sm:$0xff]  }
 0x91d   : > { %13005 = vmatprep.subr.bf16.mxu0 %v17012_v52  ;;  %v17084_v52 = vld [vmem:[%s19202_s2 + $0x2c] ss:$72 sps:$4 sm:$0xff]  }
 0x91f   : > { %12965 = vmatpush2.bf16.msra.mxu1 %v17007_v58  ;;  %v17079_v58 = vld [vmem:[%s19202_s2 + $0x920] ss:$72 sps:$4 sm:$0xff]  }
 0x920   : > { %13006 = vmatpush2.bf16.msra.mxu0 %v17010_v3  ;;  %12966 = vmatprep.subr.bf16.mxu1 %v17015_v10  ;;  %v17082_v3 = vld [vmem:[%s19202_s2 + $0x28] ss:$72 sps:$4 sm:$0xff]   ;;  %v17087_v10 = vld [vmem:[%s19202_s2 + $0x1194] ss:$72 sps:$4 sm:$0xff]  }
 0x921   : > { %13007 = vmatprep.subr.bf16.mxu0 %v17018_v55  ;;  %v17090_v55 = vld [vmem:[%s19202_s2 + $0x89c] ss:$72 sps:$4 sm:$0xff]  }
 0x923   : > { %12967 = vmatpush2.bf16.msra.mxu1 %v17013_v28  ;;  %v17085_v28 = vld [vmem:[%s19202_s2 + $0x1190] ss:$72 sps:$4 sm:$0xff]  }
 0x924   : > { %13008 = vmatpush2.bf16.msra.mxu0 %v17016_v61  ;;  %12968 = vmatprep.subr.bf16.mxu1 %v17021_v62  ;;  %v17088_v61 = vld [vmem:[%s19202_s2 + $0x898] ss:$72 sps:$4 sm:$0xff]   ;;  %v17093_v62 = vld [vmem:[%s19202_s2 + $0x1104] ss:$72 sps:$4 sm:$0xff]  }
 0x925   : > { %13009 = vmatprep.subr.bf16.mxu0 %v17024_v63  ;;  %v17096_v63 = vld [vmem:[%s19202_s2 + $0x80c] ss:$72 sps:$4 sm:$0xff]  }
 0x927   : > { %12969 = vmatpush2.bf16.msra.mxu1 %v17019_v4  ;;  %v17091_v4 = vld [vmem:[%s19202_s2 + $0x1100] ss:$72 sps:$4 sm:$0xff]  }
 0x928   : > { %13010 = vmatpush2.bf16.msra.mxu0 %v17022_v32  ;;  %12970 = vmatprep.subr.bf16.mxu1 %v17027_v39  ;;  %v17094_v32 = vld [vmem:[%s19202_s2 + $0x808] ss:$72 sps:$4 sm:$0xff]   ;;  %v17099_v39 = vld [vmem:[%s19202_s2 + $0x1074] ss:$72 sps:$4 sm:$0xff]  }
 0x929   : > { %13011 = vmatprep.subr.bf16.mxu0 %v17030_v5  ;;  %v17102_v5 = vld [vmem:[%s19202_s2 + $0x77c] ss:$72 sps:$4 sm:$0xff]  }
 0x92b   : > { %12971 = vmatpush2.bf16.msra.mxu1 %v17025_v51  ;;  %v17097_v51 = vld [vmem:[%s19202_s2 + $0x1070] ss:$72 sps:$4 sm:$0xff]  }
 0x92c   : > { %13012 = vmatpush2.bf16.msra.mxu0 %v17028_v9  ;;  %12972 = vmatprep.subr.bf16.mxu1 %v17033_v15  ;;  %v17100_v9 = vld [vmem:[%s19202_s2 + $0x778] ss:$72 sps:$4 sm:$0xff]   ;;  %v17105_v15 = vld [vmem:[%s19202_s2 + $0xfe4] ss:$72 sps:$4 sm:$0xff]  }
 0x92d   : > { %13013 = vmatprep.subr.bf16.mxu0 %v17036_v41  ;;  %v17108_v41 = vld [vmem:[%s19202_s2 + $0x6ec] ss:$72 sps:$4 sm:$0xff]  }
 0x92f   : > { %12973 = vmatpush2.bf16.msra.mxu1 %v17031_v11  ;;  %v17103_v11 = vld [vmem:[%s19202_s2 + $0xfe0] ss:$72 sps:$4 sm:$0xff]  }
 0x930   : > { %13014 = vmatpush2.bf16.msra.mxu0 %v17034_v17  ;;  %13024 = vmatprep.subr.bf16.mxu1 %v17039_v6  ;;  %v17106_v17 = vld [vmem:[%s19202_s2 + $0x6e8] ss:$72 sps:$4 sm:$0xff]   ;;  %v17111_v6 = vld [vmem:[%s19202_s2 + $0xf54] ss:$72 sps:$4 sm:$0xff]  }
 0x931   : > { %13065 = vmatprep.subr.bf16.mxu0 %v17042_v60  ;;  %v17114_v60 = vld [vmem:[%s19202_s2 + $0x65c] ss:$72 sps:$4 sm:$0xff]  }
 0x932   : > { %v21319_v40 = vpop.f32.mrf.mxu0  ;;  %12975 = vmatmul.mubr.bf16.vlgmr.msra.gmra.mxu1 %v21108_v59  ;;  %v12730_v44 = vpop.f32.mrf.mxu1 }
 0x933   : > { %13016 = vmatmul.mubr.bf16.vlgmr.msra.gmra.mxu0 %v21064_v57  ;;  %v21325_v26 = vadd.f32 %v12730_v44, %v21248_v14  ;;  %13025 = vmatpush1.bf16.msra.mxu1 %v17037_v19  ;;  %v17054_v14 = vld [vmem:[%s19202_s2 + $0x2fc] ss:$72 sps:$4 sm:$0xff]   ;;  %v17109_v19 = vld [vmem:[%s19202_s2 + $0xf50] ss:$72 sps:$4 sm:$0xff]   ;;  %v17120_v44 = vld [vmem:[%s19202_s2 + $0x5cc] ss:$72 sps:$4 sm:$0xff]  }
 0x934   : > { %13056 = vmatprep.mubr.bf16.mxu1 %v21105_v54  ;;  %13066 = vmatpush1.bf16.msra.mxu0 %v17040_v20  ;;  %v21329_v27 = vpop.f32.mrf.mxu0  ;;  %v12732_v56 = vpop.f32.mrf.mxu1  ;;  %v17112_v20 = vld [vmem:[%s19202_s2 + $0x658] ss:$72 sps:$4 sm:$0xff]  }
 0x935   : > { %13097 = vmatprep.mubr.bf16.mxu0 %v21062_v8  ;;  %v21335_v34 = vadd.f32 %v12732_v56, %v21254_v16  ;;  %13026 = vmatprep.subr.bf16.mxu1 %v17045_v21  ;;  %v17117_v21 = vld [vmem:[%s19202_s2 + $0xec4] ss:$72 sps:$4 sm:$0xff]   ;;  %v17123_v56 = vld [vmem:[%s19202_s2 + $0xe34] ss:$72 sps:$4 sm:$0xff]  }
 0x936   : > { %v12775_v35 = vpop.f32.mrf.mxu0  ;;  %13067 = vmatprep.subr.bf16.mxu0 %v17048_v23  ;;  %v12734_v13 = vpop.f32.mrf.mxu1  ;;  %v17115_v23 = vld [vmem:[%s19202_s2 + $0xec0] ss:$72 sps:$4 sm:$0xff]  }
 0x937   : > { %v13411_v29 = vcombine.low %v21325_v26, %v21335_v34  ;;  %13027 = vmatpush1.bf16.msra.mxu1 %v17043_v2  ;;  %v17118_v2 = vld [vmem:[%s19202_s2 + $0x5c8] ss:$72 sps:$4 sm:$0xff]   ;;  %v17129_v35 = vld [vmem:[%s19202_s2 + $0xda4] ss:$72 sps:$4 sm:$0xff]   ;;  %v17157_v34 = vld [vmem:[%s19202_s2 + $0xad8] ss:$72 sps:$4 sm:$0xff]  }
 0x938   : > { %13068 = vmatpush1.bf16.msra.mxu0 %v17046_v30  ;;  %v12776_v37 = vpop.f32.mrf.mxu0  ;;  %v12735_v16 = vpop.f32.mrf.mxu1  ;;  %13028 = vmatprep.subr.bf16.mxu1 %v17051_v31  ;;  %v17126_v30 = vld [vmem:[%s19202_s2 + $0x53c] ss:$72 sps:$4 sm:$0xff]   ;;  %v17121_v31 = vld [vmem:[%s19202_s2 + $0xe30] ss:$72 sps:$4 sm:$0xff]   ;;  %v17132_v13 = vld [vmem:[%s19202_s2 + $0x4ac] ss:$72 sps:$4 sm:$0xff]  }
 0x939   : > { %13069 = vmatprep.subr.bf16.mxu0 %v17054_v14  ;;  %v17124_v14 = vld [vmem:[%s19202_s2 + $0x538] ss:$72 sps:$4 sm:$0xff]   ;;  %v17130_v37 = vld [vmem:[%s19202_s2 + $0x4a8] ss:$72 sps:$4 sm:$0xff]   ;;  %v17135_v16 = vld [vmem:[%s19202_s2 + $0xd1c] ss:$72 sps:$4 sm:$0xff]  }
 0x93a   : > { %v17162_v26 = vld [vmem:[%s19202_s2 + $0x1e4] ss:$72 sps:$4 sm:$0xff]  }
 0x93b   : > { %13029 = vmatpush1.bf16.msra.mxu1 %v17049_v36  ;;  %v17127_v36 = vld [vmem:[%s19202_s2 + $0xda0] ss:$72 sps:$4 sm:$0xff]  }
 0x93c   : > { %13070 = vmatpush1.bf16.msra.mxu0 %v17052_v38  ;;  %13030 = vmatprep.subr.bf16.mxu1 %v17057_v46  ;;  %v17138_v38 = vld [vmem:[%s19202_s2 + $0x424] ss:$72 sps:$4 sm:$0xff]   ;;  %v17133_v46 = vld [vmem:[%s19202_s2 + $0xd18] ss:$72 sps:$4 sm:$0xff]  }
 0x93d   : > { %13071 = vmatprep.subr.bf16.mxu0 %v17060_v43  ;;  %v17136_v43 = vld [vmem:[%s19202_s2 + $0x420] ss:$72 sps:$4 sm:$0xff]  }
 0x93f   : > { %13031 = vmatpush1.bf16.msra.mxu1 %v17055_v47  ;;  %v17141_v47 = vld [vmem:[%s19202_s2 + $0xc8c] ss:$72 sps:$4 sm:$0xff]  }
 0x940   : > { %13072 = vmatpush1.bf16.msra.mxu0 %v17058_v45  ;;  %13032 = vmatprep.subr.bf16.mxu1 %v17063_v48 }
 0x941   : > { %13073 = vmatprep.subr.bf16.mxu0 %v17066_v33  ;;  %v17144_v33 = vld [vmem:[%s19202_s2 + $0x394] ss:$72 sps:$4 sm:$0xff]  }
 0x943   : > { %13033 = vmatpush1.bf16.msra.mxu1 %v17061_v25  ;;  %v17139_v25 = vld [vmem:[%s19202_s2 + $0xc88] ss:$72 sps:$4 sm:$0xff]  }
 0x944   : > { %13074 = vmatpush1.bf16.msra.mxu0 %v17064_v7  ;;  %13034 = vmatprep.subr.bf16.mxu1 %v17069_v49 }
 0x945   : > { %13075 = vmatprep.subr.bf16.mxu0 %v17072_v24  ;;  %v17142_v24 = vld [vmem:[%s19202_s2 + $0x390] ss:$72 sps:$4 sm:$0xff]  }
 0x947   : > { %13035 = vmatpush1.bf16.msra.mxu1 %v17067_v0  ;;  %v17147_v0 = vld [vmem:[%s19202_s2 + $0xbfc] ss:$72 sps:$4 sm:$0xff]  }
 0x948   : > { %13076 = vmatpush1.bf16.msra.mxu0 %v17070_v1  ;;  %13036 = vmatprep.subr.bf16.mxu1 %v17075_v18 }
 0x949   : > { %13077 = vmatprep.subr.bf16.mxu0 %v17078_v53  ;;  %v17150_v53 = vld [vmem:[%s19202_s2 + $0x304] ss:$72 sps:$4 sm:$0xff]  }
 0x94b   : > { %13037 = vmatpush1.bf16.msra.mxu1 %v17073_v22 }
 0x94c   : > { %13078 = vmatpush1.bf16.msra.mxu0 %v17076_v42  ;;  %13038 = vmatprep.subr.bf16.mxu1 %v17081_v12 }
 0x94d   : > { %13079 = vmatprep.subr.bf16.mxu0 %v17084_v52  ;;  %v17145_v52 = vld [vmem:[%s19202_s2 + $0xbf8] ss:$72 sps:$4 sm:$0xff]  }
 0x94f   : > { %13039 = vmatpush1.bf16.msra.mxu1 %v17079_v58 }
 0x950   : > { %13080 = vmatpush1.bf16.msra.mxu0 %v17082_v3  ;;  %13040 = vmatprep.subr.bf16.mxu1 %v17087_v10  ;;  %v17148_v3 = vld [vmem:[%s19202_s2 + $0x300] ss:$72 sps:$4 sm:$0xff]   ;;  %v17153_v10 = vld [vmem:[%s19202_s2 + $0xb6c] ss:$72 sps:$4 sm:$0xff]  }
 0x951   : > { %13081 = vmatprep.subr.bf16.mxu0 %v17090_v55 }
 0x953   : > { %13041 = vmatpush2.bf16.msra.mxu1 %v17085_v28  ;;  %v17156_v28 = vld [vmem:[%s19202_s2 + $0x274] ss:$72 sps:$4 sm:$0xff]  }
 0x954   : > { %13082 = vmatpush2.bf16.msra.mxu0 %v17088_v61  ;;  %13042 = vmatprep.subr.bf16.mxu1 %v17093_v62  ;;  %v9190_v61 = vld [vmem:[#allocation5] sm:$0xff] }
 0x955   : > { %13083 = vmatprep.subr.bf16.mxu0 %v17096_v63  ;;  %v17151_v63 = vld [vmem:[%s19202_s2 + $0xb68] ss:$72 sps:$4 sm:$0xff]  }
 0x957   : > { %13043 = vmatpush2.bf16.msra.mxu1 %v17091_v4  ;;  %v17154_v4 = vld [vmem:[%s19202_s2 + $0x270] ss:$72 sps:$4 sm:$0xff]  }
 0x958   : > { %13084 = vmatpush2.bf16.msra.mxu0 %v17094_v32  ;;  %13044 = vmatprep.subr.bf16.mxu1 %v17099_v39  ;;  %v17159_v32 = vld [vmem:[%s19202_s2 + $0xadc] ss:$72 sps:$4 sm:$0xff]  }
 0x959   : > { %13085 = vmatprep.subr.bf16.mxu0 %v17102_v5  ;;  %v17165_v5 = vld [vmem:[%s19202_s2 + $0xa4c] ss:$72 sps:$4 sm:$0xff]  }
 0x95b   : > { %13045 = vmatpush2.bf16.msra.mxu1 %v17097_v51  ;;  %v17168_v51 = vld [vmem:[%s19202_s2 + $0x154] ss:$72 sps:$4 sm:$0xff]  }
 0x95c   : > { %13086 = vmatpush2.bf16.msra.mxu0 %v17100_v9  ;;  %13046 = vmatprep.subr.bf16.mxu1 %v17105_v15  ;;  %v17163_v9 = vld [vmem:[%s19202_s2 + $0xa48] ss:$72 sps:$4 sm:$0xff]  }
 0x95d   : > { %13087 = vmatprep.subr.bf16.mxu0 %v17108_v41  ;;  %v17166_v15 = vld [vmem:[%s19202_s2 + $0x150] ss:$72 sps:$4 sm:$0xff]   ;;  %v17171_v41 = vld [vmem:[%s19202_s2 + $0x9bc] ss:$72 sps:$4 sm:$0xff]  }
 0x95f   : > { %13047 = vmatpush2.bf16.msra.mxu1 %v17103_v11  ;;  %v17174_v11 = vld [vmem:[%s19202_s2 + $0xc4] ss:$72 sps:$4 sm:$0xff]  }
 0x960   : > { %13088 = vmatpush2.bf16.msra.mxu0 %v17106_v17  ;;  %13048 = vmatprep.subr.bf16.mxu1 %v17111_v6  ;;  %v17169_v17 = vld [vmem:[%s19202_s2 + $0x9b8] ss:$72 sps:$4 sm:$0xff]  }
 0x961   : > { %13089 = vmatprep.subr.bf16.mxu0 %v17114_v60  ;;  %v17172_v6 = vld [vmem:[%s19202_s2 + $0xc0] ss:$72 sps:$4 sm:$0xff]   ;;  %v17177_v60 = vld [vmem:[%s19202_s2 + $0x92c] ss:$72 sps:$4 sm:$0xff]  }
 0x963   : > { %13049 = vmatpush2.bf16.msra.mxu1 %v17109_v19  ;;  %v17180_v19 = vld [vmem:[%s19202_s2 + $0x34] ss:$72 sps:$4 sm:$0xff]  }
 0x964   : > { %13090 = vmatpush2.bf16.msra.mxu0 %v17112_v20  ;;  %13050 = vmatprep.subr.bf16.mxu1 %v17117_v21  ;;  %v17175_v20 = vld [vmem:[%s19202_s2 + $0x928] ss:$72 sps:$4 sm:$0xff]  }
 0x965   : > { %13091 = vmatprep.subr.bf16.mxu0 %v17120_v44  ;;  %v17178_v21 = vld [vmem:[%s19202_s2 + $0x30] ss:$72 sps:$4 sm:$0xff]   ;;  %v17183_v44 = vld [vmem:[%s19202_s2 + $0x119c] ss:$72 sps:$4 sm:$0xff]  }
 0x967   : > { %13051 = vmatpush2.bf16.msra.mxu1 %v17115_v23  ;;  %v17186_v23 = vld [vmem:[%s19202_s2 + $0x8a4] ss:$72 sps:$4 sm:$0xff]  }
 0x968   : > { %13092 = vmatpush2.bf16.msra.mxu0 %v17118_v2  ;;  %13052 = vmatprep.subr.bf16.mxu1 %v17123_v56  ;;  %v17181_v2 = vld [vmem:[%s19202_s2 + $0x1198] ss:$72 sps:$4 sm:$0xff]  }
 0x969   : > { %13093 = vmatprep.subr.bf16.mxu0 %v17126_v30  ;;  %v17184_v56 = vld [vmem:[%s19202_s2 + $0x8a0] ss:$72 sps:$4 sm:$0xff]   ;;  %v17189_v30 = vld [vmem:[%s19202_s2 + $0x110c] ss:$72 sps:$4 sm:$0xff]  }
 0x96b   : > { %13053 = vmatpush2.bf16.msra.mxu1 %v17121_v31  ;;  %v17192_v31 = vld [vmem:[%s19202_s2 + $0x814] ss:$72 sps:$4 sm:$0xff]  }
 0x96c   : > { %13094 = vmatpush2.bf16.msra.mxu0 %v17124_v14  ;;  %13054 = vmatprep.subr.bf16.mxu1 %v17129_v35  ;;  %v17187_v14 = vld [vmem:[%s19202_s2 + $0x1108] ss:$72 sps:$4 sm:$0xff]  }
 0x96d   : > { %13095 = vmatprep.subr.bf16.mxu0 %v17132_v13  ;;  %v17190_v35 = vld [vmem:[%s19202_s2 + $0x810] ss:$72 sps:$4 sm:$0xff]   ;;  %v17195_v13 = vld [vmem:[%s19202_s2 + $0x107c] ss:$72 sps:$4 sm:$0xff]  }
 0x96f   : > { %13055 = vmatpush2.bf16.msra.mxu1 %v17127_v36  ;;  %v17198_v36 = vld [vmem:[%s19202_s2 + $0x784] ss:$72 sps:$4 sm:$0xff]  }
 0x970   : > { %13096 = vmatpush2.bf16.msra.mxu0 %v17130_v37  ;;  %13106 = vmatprep.subr.bf16.mxu1 %v17135_v16  ;;  %v17193_v37 = vld [vmem:[%s19202_s2 + $0x1078] ss:$72 sps:$4 sm:$0xff]  }
 0x971   : > { %13147 = vmatprep.subr.bf16.mxu0 %v17138_v38  ;;  %v17196_v16 = vld [vmem:[%s19202_s2 + $0x780] ss:$72 sps:$4 sm:$0xff]   ;;  %v17201_v38 = vld [vmem:[%s19202_s2 + $0xfec] ss:$72 sps:$4 sm:$0xff]  }
 0x972   : > { %v12812_v45 = vpop.f32.mrf.mxu1  ;;  %v21399_v48 = vpop.f32.mrf.mxu0  ;;  %13057 = vmatmul.mubr.bf16.vlgmr.msra.gmra.mxu1 %v21108_v59 }
 0x973   : > { %13098 = vmatmul.mubr.bf16.vlgmr.msra.gmra.mxu0 %v21064_v57  ;;  %13107 = vmatpush1.bf16.msra.mxu1 %v17133_v46  ;;  %v12813_v1 = vadd.f32 %v12812_v45, %v21319_v40  ;;  %v17204_v46 = vld [vmem:[%s19202_s2 + $0x6f4] ss:$72 sps:$4 sm:$0xff]  }
 0x974   : > { %13138 = vmatprep.mubr.bf16.mxu1 %v21105_v54  ;;  %13148 = vmatpush1.bf16.msra.mxu0 %v17136_v43  ;;  %v12814_v7 = vpop.f32.mrf.mxu1  ;;  %v21406_v49 = vpop.f32.mrf.mxu0  ;;  %v17199_v43 = vld [vmem:[%s19202_s2 + $0xfe8] ss:$72 sps:$4 sm:$0xff]   ;;  %v17207_v45 = vld [vmem:[%s19202_s2 + $0xf5c] ss:$72 sps:$4 sm:$0xff]  }
 0x975   : > { %13179 = vmatprep.mubr.bf16.mxu0 %v21062_v8  ;;  %v12815_v18 = vadd.f32 %v12814_v7, %v21329_v27  ;;  %13108 = vmatprep.subr.bf16.mxu1 %v17141_v47  ;;  %v13419_v27 = vrot.slane %v13411_v29, %v20887_v50  ;;  %v17160_v29 = vld [vmem:[%s19202_s2 + $0x1e0] ss:$72 sps:$4 sm:$0xff]   ;;  %v17202_v47 = vld [vmem:[%s19202_s2 + $0x6f0] ss:$72 sps:$4 sm:$0xff]  }
 0x976   : > { %v12816_v22 = vpop.f32.mrf.mxu1  ;;  %v12857_v42 = vpop.f32.mrf.mxu0  ;;  %13149 = vmatprep.subr.bf16.mxu0 %v17144_v33  ;;  %v17210_v33 = vld [vmem:[%s19202_s2 + $0x664] ss:$72 sps:$4 sm:$0xff]   ;;  %v17208_v7 = vld [vmem:[%s19202_s2 + $0x660] ss:$72 sps:$4 sm:$0xff]  }
 0x977   : > { %v13412_v12 = vcombine.low %v12813_v1, %v12815_v18  ;;  %13109 = vmatpush1.bf16.msra.mxu1 %v17139_v25  ;;  %v17205_v25 = vld [vmem:[%s19202_s2 + $0xf58] ss:$72 sps:$4 sm:$0xff]   ;;  %v17211_v1 = vld [vmem:[%s19202_s2 + $0xec8] ss:$72 sps:$4 sm:$0xff]   ;;  %v17222_v22 = vld [vmem:[%s19202_s2 + $0x544] ss:$72 sps:$4 sm:$0xff]  }
 0x978   : > { %13150 = vmatpush1.bf16.msra.mxu0 %v17142_v24  ;;  %v12817_v58 = vpop.f32.mrf.mxu1  ;;  %v12858_v40 = vpop.f32.mrf.mxu0  ;;  %13110 = vmatprep.subr.bf16.mxu1 %v17147_v0  ;;  %v17213_v24 = vld [vmem:[%s19202_s2 + $0xecc] ss:$72 sps:$4 sm:$0xff]   ;;  %v17214_v18 = vld [vmem:[%s19202_s2 + $0x5d0] ss:$72 sps:$4 sm:$0xff]  }
 0x979   : > { %v13426_v55 = vrot.slane %v13412_v12, %v20887_v50  ;;  %13151 = vmatprep.subr.bf16.mxu0 %v17150_v53  ;;  %v17216_v0 = vld [vmem:[%s19202_s2 + $0x5d4] ss:$72 sps:$4 sm:$0xff]   ;;  %v17217_v42 = vld [vmem:[%s19202_s2 + $0xe38] ss:$72 sps:$4 sm:$0xff]   ;;  %v17223_v40 = vld [vmem:[%s19202_s2 + $0xda8] ss:$72 sps:$4 sm:$0xff]  }
 0x97a   : > { %v17219_v53 = vld [vmem:[%s19202_s2 + $0xe3c] ss:$72 sps:$4 sm:$0xff]   ;;  %v17220_v12 = vld [vmem:[%s19202_s2 + $0x540] ss:$72 sps:$4 sm:$0xff]  }
 0x97b   : > { %v13427_v62 = vcombine.low %v13419_v27, %v13426_v55  ;;  %13111 = vmatpush1.bf16.msra.mxu1 %v17145_v52  ;;  %v17225_v52 = vld [vmem:[%s19202_s2 + $0xdac] ss:$72 sps:$4 sm:$0xff]   ;;  %v17229_v55 = vld [vmem:[%s19202_s2 + $0xd20] ss:$72 sps:$4 sm:$0xff]  }
 0x97c   : > { %13152 = vmatpush1.bf16.msra.mxu0 %v17148_v3  ;;  %13112 = vmatprep.subr.bf16.mxu1 %v17153_v10  ;;  %v17228_v58 = vld [vmem:[%s19202_s2 + $0x4b4] ss:$72 sps:$4 sm:$0xff]   ;;  %v17226_v3 = vld [vmem:[%s19202_s2 + $0x4b0] ss:$72 sps:$4 sm:$0xff]   ;;  %v17231_v10 = vld [vmem:[%s19202_s2 + $0xd24] ss:$72 sps:$4 sm:$0xff]  }
 0x97d   : > { %v13492_v39 = vadd.f32 %v13427_v62, %v9190_v61  ;;  %13153 = vmatprep.subr.bf16.mxu0 %v17156_v28  ;;  %v17234_v27 = vld [vmem:[%s19202_s2 + $0x42c] ss:$72 sps:$4 sm:$0xff]   ;;  %v17232_v28 = vld [vmem:[%s19202_s2 + $0x428] ss:$72 sps:$4 sm:$0xff]  }
 0x97e   : > { %v17237_v61 = vld [vmem:[%s19202_s2 + $0xc94] ss:$72 sps:$4 sm:$0xff]  }
 0x97f   : > { %13497 = vst [vmem:[#allocation5] sm:$0xff] %v13492_v39  ;;  %13113 = vmatpush1.bf16.msra.mxu1 %v17151_v63  ;;  %v17240_v63 = vld [vmem:[%s19202_s2 + $0x39c] ss:$72 sps:$4 sm:$0xff]   ;;  %v17235_v39 = vld [vmem:[%s19202_s2 + $0xc90] ss:$72 sps:$4 sm:$0xff]  }
 0x980   : > { %13154 = vmatpush1.bf16.msra.mxu0 %v17154_v4  ;;  %13114 = vmatprep.subr.bf16.mxu1 %v17159_v32 }
 0x981   : > { %13155 = vmatprep.subr.bf16.mxu0 %v17162_v26 }
 0x983   : > { %13115 = vmatpush1.bf16.msra.mxu1 %v17157_v34  ;;  %v17238_v34 = vld [vmem:[%s19202_s2 + $0x398] ss:$72 sps:$4 sm:$0xff]  }
 0x984   : > { %13156 = vmatpush1.bf16.msra.mxu0 %v17160_v29  ;;  %13116 = vmatprep.subr.bf16.mxu1 %v17165_v5  ;;  %v17243_v29 = vld [vmem:[%s19202_s2 + $0xc04] ss:$72 sps:$4 sm:$0xff]  }
 0x985   : > { %13157 = vmatprep.subr.bf16.mxu0 %v17168_v51  ;;  %v17246_v51 = vld [vmem:[%s19202_s2 + $0x30c] ss:$72 sps:$4 sm:$0xff]  }
 0x987   : > { %13117 = vmatpush1.bf16.msra.mxu1 %v17163_v9 }
 0x988   : > { %13158 = vmatpush1.bf16.msra.mxu0 %v17166_v15  ;;  %13118 = vmatprep.subr.bf16.mxu1 %v17171_v41 }
 0x989   : > { %13159 = vmatprep.subr.bf16.mxu0 %v17174_v11  ;;  %v17241_v11 = vld [vmem:[%s19202_s2 + $0xc00] ss:$72 sps:$4 sm:$0xff]  }
 0x98b   : > { %13119 = vmatpush1.bf16.msra.mxu1 %v17169_v17  ;;  %v17244_v17 = vld [vmem:[%s19202_s2 + $0x308] ss:$72 sps:$4 sm:$0xff]  }
 0x98c   : > { %13160 = vmatpush1.bf16.msra.mxu0 %v17172_v6  ;;  %13120 = vmatprep.subr.bf16.mxu1 %v17177_v60  ;;  %v17249_v6 = vld [vmem:[%s19202_s2 + $0xb74] ss:$72 sps:$4 sm:$0xff]  }
 0x98d   : > { %13161 = vmatprep.subr.bf16.mxu0 %v17180_v19  ;;  %v17252_v19 = vld [vmem:[%s19202_s2 + $0x27c] ss:$72 sps:$4 sm:$0xff]  }
 0x98f   : > { %13121 = vmatpush1.bf16.msra.mxu1 %v17175_v20  ;;  %v17247_v20 = vld [vmem:[%s19202_s2 + $0xb70] ss:$72 sps:$4 sm:$0xff]  }
 0x990   : > { %13162 = vmatpush1.bf16.msra.mxu0 %v17178_v21  ;;  %13122 = vmatprep.subr.bf16.mxu1 %v17183_v44  ;;  %v17250_v21 = vld [vmem:[%s19202_s2 + $0x278] ss:$72 sps:$4 sm:$0xff]   ;;  %v17255_v44 = vld [vmem:[%s19202_s2 + $0xae4] ss:$72 sps:$4 sm:$0xff]  }
 0x991   : > { %13163 = vmatprep.subr.bf16.mxu0 %v17186_v23  ;;  %v17258_v23 = vld [vmem:[%s19202_s2 + $0x1ec] ss:$72 sps:$4 sm:$0xff]  }
 0x993   : > { %13123 = vmatpush2.bf16.msra.mxu1 %v17181_v2  ;;  %v17253_v2 = vld [vmem:[%s19202_s2 + $0xae0] ss:$72 sps:$4 sm:$0xff]  }
 0x994   : > { %13164 = vmatpush2.bf16.msra.mxu0 %v17184_v56  ;;  %13124 = vmatprep.subr.bf16.mxu1 %v17189_v30  ;;  %v17256_v56 = vld [vmem:[%s19202_s2 + $0x1e8] ss:$72 sps:$4 sm:$0xff]   ;;  %v17261_v30 = vld [vmem:[%s19202_s2 + $0xa54] ss:$72 sps:$4 sm:$0xff]  }
 0x995   : > { %13165 = vmatprep.subr.bf16.mxu0 %v17192_v31  ;;  %v17264_v31 = vld [vmem:[%s19202_s2 + $0x15c] ss:$72 sps:$4 sm:$0xff]  }
 0x997   : > { %13125 = vmatpush2.bf16.msra.mxu1 %v17187_v14  ;;  %v17259_v14 = vld [vmem:[%s19202_s2 + $0xa50] ss:$72 sps:$4 sm:$0xff]  }
 0x998   : > { %13166 = vmatpush2.bf16.msra.mxu0 %v17190_v35  ;;  %13126 = vmatprep.subr.bf16.mxu1 %v17195_v13  ;;  %v17262_v35 = vld [vmem:[%s19202_s2 + $0x158] ss:$72 sps:$4 sm:$0xff]   ;;  %v17267_v13 = vld [vmem:[%s19202_s2 + $0x9c4] ss:$72 sps:$4 sm:$0xff]  }
 0x999   : > { %13167 = vmatprep.subr.bf16.mxu0 %v17198_v36  ;;  %v17270_v36 = vld [vmem:[%s19202_s2 + $0xcc] ss:$72 sps:$4 sm:$0xff]  }
 0x99b   : > { %13127 = vmatpush2.bf16.msra.mxu1 %v17193_v37  ;;  %v17265_v37 = vld [vmem:[%s19202_s2 + $0x9c0] ss:$72 sps:$4 sm:$0xff]  }
 0x99c   : > { %13168 = vmatpush2.bf16.msra.mxu0 %v17196_v16  ;;  %13128 = vmatprep.subr.bf16.mxu1 %v17201_v38  ;;  %v17268_v16 = vld [vmem:[%s19202_s2 + $0xc8] ss:$72 sps:$4 sm:$0xff]   ;;  %v17273_v38 = vld [vmem:[%s19202_s2 + $0x934] ss:$72 sps:$4 sm:$0xff]  }
 0x99d   : > { %13169 = vmatprep.subr.bf16.mxu0 %v17204_v46  ;;  %v17276_v46 = vld [vmem:[%s19202_s2 + $0x3c] ss:$72 sps:$4 sm:$0xff]  }
 0x99f   : > { %13129 = vmatpush2.bf16.msra.mxu1 %v17199_v43  ;;  %v17271_v43 = vld [vmem:[%s19202_s2 + $0x930] ss:$72 sps:$4 sm:$0xff]  }
 0x9a0   : > { %13170 = vmatpush2.bf16.msra.mxu0 %v17202_v47  ;;  %13130 = vmatprep.subr.bf16.mxu1 %v17207_v45  ;;  %v17274_v47 = vld [vmem:[%s19202_s2 + $0x38] ss:$72 sps:$4 sm:$0xff]   ;;  %v17279_v45 = vld [vmem:[%s19202_s2 + $0x11a4] ss:$72 sps:$4 sm:$0xff]  }
 0x9a1   : > { %13171 = vmatprep.subr.bf16.mxu0 %v17210_v33  ;;  %v17282_v33 = vld [vmem:[%s19202_s2 + $0x8ac] ss:$72 sps:$4 sm:$0xff]  }
 0x9a3   : > { %13131 = vmatpush2.bf16.msra.mxu1 %v17205_v25  ;;  %v17277_v25 = vld [vmem:[%s19202_s2 + $0x11a0] ss:$72 sps:$4 sm:$0xff]  }
 0x9a4   : > { %13172 = vmatpush2.bf16.msra.mxu0 %v17208_v7  ;;  %13132 = vmatprep.subr.bf16.mxu1 %v17213_v24  ;;  %v17280_v7 = vld [vmem:[%s19202_s2 + $0x8a8] ss:$72 sps:$4 sm:$0xff]   ;;  %v17285_v24 = vld [vmem:[%s19202_s2 + $0x1114] ss:$72 sps:$4 sm:$0xff]  }
 0x9a5   : > { %13173 = vmatprep.subr.bf16.mxu0 %v17216_v0  ;;  %v17288_v0 = vld [vmem:[%s19202_s2 + $0x81c] ss:$72 sps:$4 sm:$0xff]  }
 0x9a7   : > { %13133 = vmatpush2.bf16.msra.mxu1 %v17211_v1  ;;  %v17283_v1 = vld [vmem:[%s19202_s2 + $0x1110] ss:$72 sps:$4 sm:$0xff]  }
 0x9a8   : > { %13174 = vmatpush2.bf16.msra.mxu0 %v17214_v18  ;;  %13134 = vmatprep.subr.bf16.mxu1 %v17219_v53  ;;  %v17286_v18 = vld [vmem:[%s19202_s2 + $0x818] ss:$72 sps:$4 sm:$0xff]   ;;  %v17291_v53 = vld [vmem:[%s19202_s2 + $0x1084] ss:$72 sps:$4 sm:$0xff]  }
 0x9a9   : > { %13175 = vmatprep.subr.bf16.mxu0 %v17222_v22  ;;  %v17294_v22 = vld [vmem:[%s19202_s2 + $0x78c] ss:$72 sps:$4 sm:$0xff]  }
 0x9ab   : > { %13135 = vmatpush2.bf16.msra.mxu1 %v17217_v42  ;;  %v17289_v42 = vld [vmem:[%s19202_s2 + $0x1080] ss:$72 sps:$4 sm:$0xff]  }
 0x9ac   : > { %13176 = vmatpush2.bf16.msra.mxu0 %v17220_v12  ;;  %13136 = vmatprep.subr.bf16.mxu1 %v17225_v52  ;;  %v17292_v12 = vld [vmem:[%s19202_s2 + $0x788] ss:$72 sps:$4 sm:$0xff]   ;;  %v17297_v52 = vld [vmem:[%s19202_s2 + $0xff4] ss:$72 sps:$4 sm:$0xff]  }
 0x9ad   : > { %13177 = vmatprep.subr.bf16.mxu0 %v17228_v58  ;;  %v17300_v58 = vld [vmem:[%s19202_s2 + $0x6fc] ss:$72 sps:$4 sm:$0xff]  }
 0x9af   : > { %13137 = vmatpush2.bf16.msra.mxu1 %v17223_v40  ;;  %v17295_v40 = vld [vmem:[%s19202_s2 + $0xff0] ss:$72 sps:$4 sm:$0xff]  }
 0x9b0   : > { %13178 = vmatpush2.bf16.msra.mxu0 %v17226_v3  ;;  %13188 = vmatprep.subr.bf16.mxu1 %v17231_v10  ;;  %v17298_v3 = vld [vmem:[%s19202_s2 + $0x6f8] ss:$72 sps:$4 sm:$0xff]   ;;  %v17303_v10 = vld [vmem:[%s19202_s2 + $0xf64] ss:$72 sps:$4 sm:$0xff]  }
 0x9b1   : > { %13229 = vmatprep.subr.bf16.mxu0 %v17234_v27  ;;  %v17306_v27 = vld [vmem:[%s19202_s2 + $0x66c] ss:$72 sps:$4 sm:$0xff]  }
 0x9b2   : > { %v12894_v62 = vpop.f32.mrf.mxu1  ;;  %13139 = vmatmul.mubr.bf16.vlgmr.msra.gmra.mxu1 %v21108_v59 }
 0x9b3   : > { %v21481_v4 = vadd.f32 %v12894_v62, %v21399_v48  ;;  %v21483_v32 = vpop.f32.mrf.mxu0  ;;  %13180 = vmatmul.mubr.bf16.vlgmr.msra.gmra.mxu0 %v21064_v57  ;;  %13189 = vmatpush1.bf16.msra.mxu1 %v17229_v55  ;;  %v17301_v55 = vld [vmem:[%s19202_s2 + $0xf60] ss:$72 sps:$4 sm:$0xff]   ;;  %v17312_v62 = vld [vmem:[%s19202_s2 + $0x5dc] ss:$72 sps:$4 sm:$0xff]  }
 0x9b4   : > { %13220 = vmatprep.mubr.bf16.mxu1 %v21105_v54  ;;  %13230 = vmatpush1.bf16.msra.mxu0 %v17232_v28  ;;  %v12896_v26 = vpop.f32.mrf.mxu1  ;;  %v17304_v28 = vld [vmem:[%s19202_s2 + $0x668] ss:$72 sps:$4 sm:$0xff]  }
 0x9b5   : > { %13261 = vmatprep.mubr.bf16.mxu0 %v21062_v8  ;;  %v21492_v48 = vadd.f32 %v12896_v26, %v21406_v49  ;;  %v21494_v5 = vpop.f32.mrf.mxu0  ;;  %13190 = vmatprep.subr.bf16.mxu1 %v17237_v61  ;;  %v17309_v61 = vld [vmem:[%s19202_s2 + $0xed4] ss:$72 sps:$4 sm:$0xff]   ;;  %v17315_v26 = vld [vmem:[%s19202_s2 + $0xe44] ss:$72 sps:$4 sm:$0xff]  }
 0x9b6   : > { %v12898_v9 = vpop.f32.mrf.mxu1  ;;  %13231 = vmatprep.subr.bf16.mxu0 %v17240_v63  ;;  %v17307_v63 = vld [vmem:[%s19202_s2 + $0xed0] ss:$72 sps:$4 sm:$0xff]  }
 0x9b7   : > { %v13428_v15 = vcombine.low %v21481_v4, %v21492_v48  ;;  %v12939_v41 = vpop.f32.mrf.mxu0  ;;  %13191 = vmatpush1.bf16.msra.mxu1 %v17235_v39  ;;  %v17310_v39 = vld [vmem:[%s19202_s2 + $0x5d8] ss:$72 sps:$4 sm:$0xff]   ;;  %v17321_v9 = vld [vmem:[%s19202_s2 + $0xdb4] ss:$72 sps:$4 sm:$0xff]  }
 0x9b8   : > { %13232 = vmatpush1.bf16.msra.mxu0 %v17238_v34  ;;  %v12899_v49 = vpop.f32.mrf.mxu1  ;;  %13192 = vmatprep.subr.bf16.mxu1 %v17243_v29  ;;  %v17318_v34 = vld [vmem:[%s19202_s2 + $0x54c] ss:$72 sps:$4 sm:$0xff]   ;;  %v17313_v29 = vld [vmem:[%s19202_s2 + $0xe40] ss:$72 sps:$4 sm:$0xff]   ;;  %v17324_v41 = vld [vmem:[%s19202_s2 + $0x4bc] ss:$72 sps:$4 sm:$0xff]  }
 0x9b9   : > { %v12940_v60 = vpop.f32.mrf.mxu0  ;;  %13233 = vmatprep.subr.bf16.mxu0 %v17246_v51  ;;  %v17316_v51 = vld [vmem:[%s19202_s2 + $0x548] ss:$72 sps:$4 sm:$0xff]   ;;  %v17322_v49 = vld [vmem:[%s19202_s2 + $0x4b8] ss:$72 sps:$4 sm:$0xff]   ;;  %v17351_v4 = vld [vmem:[%s19202_s2 + $0xaec] ss:$72 sps:$4 sm:$0xff]  }
 0x9ba   : > { %v17325_v60 = vld [vmem:[%s19202_s2 + $0xd28] ss:$72 sps:$4 sm:$0xff]  }
 0x9bb   : > { %13193 = vmatpush1.bf16.msra.mxu1 %v17241_v11  ;;  %v17319_v11 = vld [vmem:[%s19202_s2 + $0xdb0] ss:$72 sps:$4 sm:$0xff]  }
 0x9bc   : > { %13234 = vmatpush1.bf16.msra.mxu0 %v17244_v17  ;;  %13194 = vmatprep.subr.bf16.mxu1 %v17249_v6  ;;  %v17327_v17 = vld [vmem:[%s19202_s2 + $0xd2c] ss:$72 sps:$4 sm:$0xff]  }
 0x9bd   : > { %13235 = vmatprep.subr.bf16.mxu0 %v17252_v19  ;;  %v17330_v6 = vld [vmem:[%s19202_s2 + $0x434] ss:$72 sps:$4 sm:$0xff]   ;;  %v17328_v19 = vld [vmem:[%s19202_s2 + $0x430] ss:$72 sps:$4 sm:$0xff]  }
 0x9bf   : > { %13195 = vmatpush1.bf16.msra.mxu1 %v17247_v20  ;;  %v17333_v20 = vld [vmem:[%s19202_s2 + $0xc9c] ss:$72 sps:$4 sm:$0xff]  }
 0x9c0   : > { %13236 = vmatpush1.bf16.msra.mxu0 %v17250_v21  ;;  %13196 = vmatprep.subr.bf16.mxu1 %v17255_v44  ;;  %v17336_v44 = vld [vmem:[%s19202_s2 + $0x3a4] ss:$72 sps:$4 sm:$0xff]  }
 0x9c1   : > { %13237 = vmatprep.subr.bf16.mxu0 %v17258_v23 }
 0x9c3   : > { %13197 = vmatpush1.bf16.msra.mxu1 %v17253_v2  ;;  %v17331_v2 = vld [vmem:[%s19202_s2 + $0xc98] ss:$72 sps:$4 sm:$0xff]  }
 0x9c4   : > { %13238 = vmatpush1.bf16.msra.mxu0 %v17256_v56  ;;  %13198 = vmatprep.subr.bf16.mxu1 %v17261_v30  ;;  %v17334_v30 = vld [vmem:[%s19202_s2 + $0x3a0] ss:$72 sps:$4 sm:$0xff]  }
 0x9c5   : > { %13239 = vmatprep.subr.bf16.mxu0 %v17264_v31  ;;  %v17339_v31 = vld [vmem:[%s19202_s2 + $0xc0c] ss:$72 sps:$4 sm:$0xff]  }
 0x9c7   : > { %13199 = vmatpush1.bf16.msra.mxu1 %v17259_v14 }
 0x9c8   : > { %13240 = vmatpush1.bf16.msra.mxu0 %v17262_v35  ;;  %13200 = vmatprep.subr.bf16.mxu1 %v17267_v13 }
 0x9c9   : > { %13241 = vmatprep.subr.bf16.mxu0 %v17270_v36  ;;  %v17342_v36 = vld [vmem:[%s19202_s2 + $0x314] ss:$72 sps:$4 sm:$0xff]  }
 0x9cb   : > { %13201 = vmatpush1.bf16.msra.mxu1 %v17265_v37 }
 0x9cc   : > { %13242 = vmatpush1.bf16.msra.mxu0 %v17268_v16  ;;  %13202 = vmatprep.subr.bf16.mxu1 %v17273_v38 }
 0x9cd   : > { %13243 = vmatprep.subr.bf16.mxu0 %v17276_v46  ;;  %v17337_v46 = vld [vmem:[%s19202_s2 + $0xc08] ss:$72 sps:$4 sm:$0xff]  }
 0x9cf   : > { %13203 = vmatpush1.bf16.msra.mxu1 %v17271_v43  ;;  %v17345_v43 = vld [vmem:[%s19202_s2 + $0xb7c] ss:$72 sps:$4 sm:$0xff]  }
 0x9d0   : > { %13244 = vmatpush1.bf16.msra.mxu0 %v17274_v47  ;;  %13204 = vmatprep.subr.bf16.mxu1 %v17279_v45 }
 0x9d1   : > { %13245 = vmatprep.subr.bf16.mxu0 %v17282_v33  ;;  %v17348_v33 = vld [vmem:[%s19202_s2 + $0x284] ss:$72 sps:$4 sm:$0xff]  }
 0x9d3   : > { %13205 = vmatpush2.bf16.msra.mxu1 %v17277_v25  ;;  %v9191_v25 = vld [vmem:[#allocation5 + $0x8] sm:$0xff] }
 0x9d4   : > { %13246 = vmatpush2.bf16.msra.mxu0 %v17280_v7  ;;  %13206 = vmatprep.subr.bf16.mxu1 %v17285_v24  ;;  %v17343_v24 = vld [vmem:[%s19202_s2 + $0xb78] ss:$72 sps:$4 sm:$0xff]  }
 0x9d5   : > { %13247 = vmatprep.subr.bf16.mxu0 %v17288_v0  ;;  %v17346_v0 = vld [vmem:[%s19202_s2 + $0x280] ss:$72 sps:$4 sm:$0xff]  }
 0x9d7   : > { %13207 = vmatpush2.bf16.msra.mxu1 %v17283_v1  ;;  %v17349_v1 = vld [vmem:[%s19202_s2 + $0xae8] ss:$72 sps:$4 sm:$0xff]  }
 0x9d8   : > { %13248 = vmatpush2.bf16.msra.mxu0 %v17286_v18  ;;  %13208 = vmatprep.subr.bf16.mxu1 %v17291_v53  ;;  %v17352_v18 = vld [vmem:[%s19202_s2 + $0x1f0] ss:$72 sps:$4 sm:$0xff]   ;;  %v17357_v53 = vld [vmem:[%s19202_s2 + $0xa5c] ss:$72 sps:$4 sm:$0xff]  }
 0x9d9   : > { %13249 = vmatprep.subr.bf16.mxu0 %v17294_v22  ;;  %v17360_v22 = vld [vmem:[%s19202_s2 + $0x164] ss:$72 sps:$4 sm:$0xff]  }
 0x9db   : > { %13209 = vmatpush2.bf16.msra.mxu1 %v17289_v42  ;;  %v17355_v42 = vld [vmem:[%s19202_s2 + $0xa58] ss:$72 sps:$4 sm:$0xff]  }
 0x9dc   : > { %13250 = vmatpush2.bf16.msra.mxu0 %v17292_v12  ;;  %13210 = vmatprep.subr.bf16.mxu1 %v17297_v52  ;;  %v17358_v12 = vld [vmem:[%s19202_s2 + $0x160] ss:$72 sps:$4 sm:$0xff]   ;;  %v17363_v52 = vld [vmem:[%s19202_s2 + $0x9cc] ss:$72 sps:$4 sm:$0xff]  }
 0x9dd   : > { %13251 = vmatprep.subr.bf16.mxu0 %v17300_v58  ;;  %v17366_v58 = vld [vmem:[%s19202_s2 + $0xd4] ss:$72 sps:$4 sm:$0xff]  }
 0x9df   : > { %13211 = vmatpush2.bf16.msra.mxu1 %v17295_v40  ;;  %v17361_v40 = vld [vmem:[%s19202_s2 + $0x9c8] ss:$72 sps:$4 sm:$0xff]  }
 0x9e0   : > { %13252 = vmatpush2.bf16.msra.mxu0 %v17298_v3  ;;  %13212 = vmatprep.subr.bf16.mxu1 %v17303_v10  ;;  %v17364_v3 = vld [vmem:[%s19202_s2 + $0xd0] ss:$72 sps:$4 sm:$0xff]   ;;  %v17369_v10 = vld [vmem:[%s19202_s2 + $0x93c] ss:$72 sps:$4 sm:$0xff]  }
 0x9e1   : > { %13253 = vmatprep.subr.bf16.mxu0 %v17306_v27  ;;  %v17372_v27 = vld [vmem:[%s19202_s2 + $0x44] ss:$72 sps:$4 sm:$0xff]  }
 0x9e3   : > { %13213 = vmatpush2.bf16.msra.mxu1 %v17301_v55  ;;  %v17367_v55 = vld [vmem:[%s19202_s2 + $0x938] ss:$72 sps:$4 sm:$0xff]  }
 0x9e4   : > { %13254 = vmatpush2.bf16.msra.mxu0 %v17304_v28  ;;  %13214 = vmatprep.subr.bf16.mxu1 %v17309_v61  ;;  %v17370_v28 = vld [vmem:[%s19202_s2 + $0x40] ss:$72 sps:$4 sm:$0xff]   ;;  %v17375_v61 = vld [vmem:[%s19202_s2 + $0x11ac] ss:$72 sps:$4 sm:$0xff]  }
 0x9e5   : > { %13255 = vmatprep.subr.bf16.mxu0 %v17312_v62  ;;  %v17378_v62 = vld [vmem:[%s19202_s2 + $0x8b4] ss:$72 sps:$4 sm:$0xff]  }
 0x9e7   : > { %13215 = vmatpush2.bf16.msra.mxu1 %v17307_v63  ;;  %v17373_v63 = vld [vmem:[%s19202_s2 + $0x11a8] ss:$72 sps:$4 sm:$0xff]  }
 0x9e8   : > { %13256 = vmatpush2.bf16.msra.mxu0 %v17310_v39  ;;  %13216 = vmatprep.subr.bf16.mxu1 %v17315_v26  ;;  %v17376_v39 = vld [vmem:[%s19202_s2 + $0x8b0] ss:$72 sps:$4 sm:$0xff]   ;;  %v17381_v26 = vld [vmem:[%s19202_s2 + $0x111c] ss:$72 sps:$4 sm:$0xff]  }
 0x9e9   : > { %13257 = vmatprep.subr.bf16.mxu0 %v17318_v34  ;;  %v17384_v34 = vld [vmem:[%s19202_s2 + $0x824] ss:$72 sps:$4 sm:$0xff]  }
 0x9eb   : > { %13217 = vmatpush2.bf16.msra.mxu1 %v17313_v29  ;;  %v17379_v29 = vld [vmem:[%s19202_s2 + $0x1118] ss:$72 sps:$4 sm:$0xff]  }
 0x9ec   : > { %13258 = vmatpush2.bf16.msra.mxu0 %v17316_v51  ;;  %13218 = vmatprep.subr.bf16.mxu1 %v17321_v9  ;;  %v17382_v51 = vld [vmem:[%s19202_s2 + $0x820] ss:$72 sps:$4 sm:$0xff]   ;;  %v17387_v9 = vld [vmem:[%s19202_s2 + $0x108c] ss:$72 sps:$4 sm:$0xff]  }
 0x9ed   : > { %13259 = vmatprep.subr.bf16.mxu0 %v17324_v41  ;;  %v17390_v41 = vld [vmem:[%s19202_s2 + $0x794] ss:$72 sps:$4 sm:$0xff]  }
 0x9ef   : > { %13219 = vmatpush2.bf16.msra.mxu1 %v17319_v11  ;;  %v17385_v11 = vld [vmem:[%s19202_s2 + $0x1088] ss:$72 sps:$4 sm:$0xff]  }
 0x9f0   : > { %13260 = vmatpush2.bf16.msra.mxu0 %v17322_v49  ;;  %13270 = vmatprep.subr.bf16.mxu1 %v17327_v17  ;;  %v17388_v49 = vld [vmem:[%s19202_s2 + $0x790] ss:$72 sps:$4 sm:$0xff]   ;;  %v17393_v17 = vld [vmem:[%s19202_s2 + $0xffc] ss:$72 sps:$4 sm:$0xff]  }
 0x9f1   : > { %13311 = vmatprep.subr.bf16.mxu0 %v17330_v6  ;;  %v17396_v6 = vld [vmem:[%s19202_s2 + $0x704] ss:$72 sps:$4 sm:$0xff]  }
 0x9f2   : > { %v12976_v21 = vpop.f32.mrf.mxu1  ;;  %13221 = vmatmul.mubr.bf16.vlgmr.msra.gmra.mxu1 %v21108_v59 }
 0x9f3   : > { %v21560_v23 = vpop.f32.mrf.mxu0  ;;  %13262 = vmatmul.mubr.bf16.vlgmr.msra.gmra.mxu0 %v21064_v57  ;;  %13271 = vmatpush1.bf16.msra.mxu1 %v17325_v60  ;;  %v12977_v14 = vadd.f32 %v12976_v21, %v21483_v32  ;;  %v17391_v60 = vld [vmem:[%s19202_s2 + $0xff8] ss:$72 sps:$4 sm:$0xff]   ;;  %v17402_v21 = vld [vmem:[%s19202_s2 + $0x674] ss:$72 sps:$4 sm:$0xff]  }
 0x9f4   : > { %13302 = vmatprep.mubr.bf16.mxu1 %v21105_v54  ;;  %13312 = vmatpush1.bf16.msra.mxu0 %v17328_v19  ;;  %v12978_v56 = vpop.f32.mrf.mxu1  ;;  %v17394_v19 = vld [vmem:[%s19202_s2 + $0x700] ss:$72 sps:$4 sm:$0xff]  }
 0x9f5   : > { %13343 = vmatprep.mubr.bf16.mxu0 %v21062_v8  ;;  %v12979_v35 = vadd.f32 %v12978_v56, %v21494_v5  ;;  %v21570_v13 = vpop.f32.mrf.mxu0  ;;  %13272 = vmatprep.subr.bf16.mxu1 %v17333_v20  ;;  %v17340_v8 = vld [vmem:[%s19202_s2 + $0x310] ss:$72 sps:$4 sm:$0xff]   ;;  %v13436_v5 = vrot.slane %v13428_v15, %v20887_v50  ;;  %v17354_v15 = vld [vmem:[%s19202_s2 + $0x1f4] ss:$72 sps:$4 sm:$0xff]  }
 0x9f6   : > { %v12980_v37 = vpop.f32.mrf.mxu1  ;;  %13313 = vmatprep.subr.bf16.mxu0 %v17336_v44  ;;  %v17399_v20 = vld [vmem:[%s19202_s2 + $0xf6c] ss:$72 sps:$4 sm:$0xff]   ;;  %v17397_v44 = vld [vmem:[%s19202_s2 + $0xf68] ss:$72 sps:$4 sm:$0xff]   ;;  %v17405_v56 = vld [vmem:[%s19202_s2 + $0xedc] ss:$72 sps:$4 sm:$0xff]  }
 0x9f7   : > { %v13429_v16 = vcombine.low %v12977_v14, %v12979_v35  ;;  %v13021_v38 = vpop.f32.mrf.mxu0  ;;  %13273 = vmatpush1.bf16.msra.mxu1 %v17331_v2  ;;  %v17400_v2 = vld [vmem:[%s19202_s2 + $0x670] ss:$72 sps:$4 sm:$0xff]   ;;  %v17406_v14 = vld [vmem:[%s19202_s2 + $0x5e0] ss:$72 sps:$4 sm:$0xff]   ;;  %v17411_v35 = vld [vmem:[%s19202_s2 + $0xe4c] ss:$72 sps:$4 sm:$0xff]  }
 0x9f8   : > { %13314 = vmatpush1.bf16.msra.mxu0 %v17334_v30  ;;  %v12981_v32 = vpop.f32.mrf.mxu1  ;;  %13274 = vmatprep.subr.bf16.mxu1 %v17339_v31  ;;  %v17408_v30 = vld [vmem:[%s19202_s2 + $0x5e4] ss:$72 sps:$4 sm:$0xff]   ;;  %v17403_v31 = vld [vmem:[%s19202_s2 + $0xed8] ss:$72 sps:$4 sm:$0xff]   ;;  %v17409_v37 = vld [vmem:[%s19202_s2 + $0xe48] ss:$72 sps:$4 sm:$0xff]  }
 0x9f9   : > { %v13443_v47 = vrot.slane %v13429_v16, %v20887_v50  ;;  %v13022_v45 = vpop.f32.mrf.mxu0  ;;  %13315 = vmatprep.subr.bf16.mxu0 %v17342_v36  ;;  %v17414_v36 = vld [vmem:[%s19202_s2 + $0x554] ss:$72 sps:$4 sm:$0xff]   ;;  %v17412_v16 = vld [vmem:[%s19202_s2 + $0x550] ss:$72 sps:$4 sm:$0xff]  }
 0x9fa   : > { %v17417_v38 = vld [vmem:[%s19202_s2 + $0xdbc] ss:$72 sps:$4 sm:$0xff]   ;;  %v17415_v32 = vld [vmem:[%s19202_s2 + $0xdb8] ss:$72 sps:$4 sm:$0xff]  }
 0x9fb   : > { %v13444_v7 = vcombine.low %v13436_v5, %v13443_v47  ;;  %13275 = vmatpush1.bf16.msra.mxu1 %v17337_v46  ;;  %v17420_v46 = vld [vmem:[%s19202_s2 + $0x4c4] ss:$72 sps:$4 sm:$0xff]   ;;  %v17421_v5 = vld [vmem:[%s19202_s2 + $0xd30] ss:$72 sps:$4 sm:$0xff]  }
 0x9fc   : > { %13316 = vmatpush1.bf16.msra.mxu0 %v17340_v8  ;;  %13276 = vmatprep.subr.bf16.mxu1 %v17345_v43  ;;  %v17418_v8 = vld [vmem:[%s19202_s2 + $0x4c0] ss:$72 sps:$4 sm:$0xff]   ;;  %v17423_v43 = vld [vmem:[%s19202_s2 + $0xd34] ss:$72 sps:$4 sm:$0xff]   ;;  %v17426_v47 = vld [vmem:[%s19202_s2 + $0xca4] ss:$72 sps:$4 sm:$0xff]  }
 0x9fd   : > { %v13493_v48 = vadd.f32 %v13444_v7, %v9191_v25  ;;  %13317 = vmatprep.subr.bf16.mxu0 %v17348_v33  ;;  %v17424_v7 = vld [vmem:[%s19202_s2 + $0xca0] ss:$72 sps:$4 sm:$0xff]  }
 0x9ff   : > { %13498 = vst [vmem:[#allocation5 + $0x8] sm:$0xff] %v13493_v48  ;;  %13277 = vmatpush1.bf16.msra.mxu1 %v17343_v24 }
 0xa00   : > { %13318 = vmatpush1.bf16.msra.mxu0 %v17346_v0  ;;  %13278 = vmatprep.subr.bf16.mxu1 %v17351_v4  ;;  %v17429_v0 = vld [vmem:[%s19202_s2 + $0xc14] ss:$72 sps:$4 sm:$0xff]  }
 0xa01   : > { %13319 = vmatprep.subr.bf16.mxu0 %v17354_v15 }
 0xa03   : > { %13279 = vmatpush1.bf16.msra.mxu1 %v17349_v1 }
 0xa04   : > { %13320 = vmatpush1.bf16.msra.mxu0 %v17352_v18  ;;  %13280 = vmatprep.subr.bf16.mxu1 %v17357_v53  ;;  %v17432_v18 = vld [vmem:[%s19202_s2 + $0xb84] ss:$72 sps:$4 sm:$0xff]  }
 0xa05   : > { %13321 = vmatprep.subr.bf16.mxu0 %v17360_v22  ;;  %v17435_v22 = vld [vmem:[%s19202_s2 + $0xaf4] ss:$72 sps:$4 sm:$0xff]  }
 0xa07   : > { %13281 = vmatpush1.bf16.msra.mxu1 %v17355_v42  ;;  %v17433_v42 = vld [vmem:[%s19202_s2 + $0xaf0] ss:$72 sps:$4 sm:$0xff]  }
 0xa08   : > { %13322 = vmatpush1.bf16.msra.mxu0 %v17358_v12  ;;  %13282 = vmatprep.subr.bf16.mxu1 %v17363_v52  ;;  %v17438_v12 = vld [vmem:[%s19202_s2 + $0xa64] ss:$72 sps:$4 sm:$0xff]   ;;  %v17436_v52 = vld [vmem:[%s19202_s2 + $0xa60] ss:$72 sps:$4 sm:$0xff]  }
 0xa09   : > { %13323 = vmatprep.subr.bf16.mxu0 %v17366_v58  ;;  %v17441_v58 = vld [vmem:[%s19202_s2 + $0x9d4] ss:$72 sps:$4 sm:$0xff]  }
 0xa0b   : > { %13283 = vmatpush1.bf16.msra.mxu1 %v17361_v40  ;;  %v17439_v40 = vld [vmem:[%s19202_s2 + $0x9d0] ss:$72 sps:$4 sm:$0xff]  }
 0xa0c   : > { %13324 = vmatpush1.bf16.msra.mxu0 %v17364_v3  ;;  %13284 = vmatprep.subr.bf16.mxu1 %v17369_v10  ;;  %v17444_v3 = vld [vmem:[%s19202_s2 + $0x944] ss:$72 sps:$4 sm:$0xff]   ;;  %v17442_v10 = vld [vmem:[%s19202_s2 + $0x940] ss:$72 sps:$4 sm:$0xff]  }
 0xa0d   : > { %13325 = vmatprep.subr.bf16.mxu0 %v17372_v27  ;;  %v17447_v27 = vld [vmem:[%s19202_s2 + $0x11b4] ss:$72 sps:$4 sm:$0xff]  }
 0xa0f   : > { %13285 = vmatpush1.bf16.msra.mxu1 %v17367_v55  ;;  %v17445_v55 = vld [vmem:[%s19202_s2 + $0x11b0] ss:$72 sps:$4 sm:$0xff]  }
 0xa10   : > { %13326 = vmatpush1.bf16.msra.mxu0 %v17370_v28  ;;  %13286 = vmatprep.subr.bf16.mxu1 %v17375_v61  ;;  %v17450_v28 = vld [vmem:[%s19202_s2 + $0x1124] ss:$72 sps:$4 sm:$0xff]   ;;  %v17448_v61 = vld [vmem:[%s19202_s2 + $0x1120] ss:$72 sps:$4 sm:$0xff]  }
 0xa11   : > { %13327 = vmatprep.subr.bf16.mxu0 %v17378_v62  ;;  %v17453_v62 = vld [vmem:[%s19202_s2 + $0x1094] ss:$72 sps:$4 sm:$0xff]  }
 0xa13   : > { %13287 = vmatpush2.bf16.msra.mxu1 %v17373_v63  ;;  %v17451_v63 = vld [vmem:[%s19202_s2 + $0x1090] ss:$72 sps:$4 sm:$0xff]  }
 0xa14   : > { %13328 = vmatpush2.bf16.msra.mxu0 %v17376_v39  ;;  %13288 = vmatprep.subr.bf16.mxu1 %v17381_v26  ;;  %v17456_v39 = vld [vmem:[%s19202_s2 + $0x1004] ss:$72 sps:$4 sm:$0xff]   ;;  %v17454_v26 = vld [vmem:[%s19202_s2 + $0x1000] ss:$72 sps:$4 sm:$0xff]  }
 0xa15   : > { %13329 = vmatprep.subr.bf16.mxu0 %v17384_v34  ;;  %v17459_v34 = vld [vmem:[%s19202_s2 + $0xf74] ss:$72 sps:$4 sm:$0xff]  }
 0xa17   : > { %13289 = vmatpush2.bf16.msra.mxu1 %v17379_v29  ;;  %v17457_v29 = vld [vmem:[%s19202_s2 + $0xf70] ss:$72 sps:$4 sm:$0xff]  }
 0xa18   : > { %13330 = vmatpush2.bf16.msra.mxu0 %v17382_v51  ;;  %13290 = vmatprep.subr.bf16.mxu1 %v17387_v9  ;;  %v17462_v51 = vld [vmem:[%s19202_s2 + $0xee4] ss:$72 sps:$4 sm:$0xff]   ;;  %v17460_v9 = vld [vmem:[%s19202_s2 + $0xee0] ss:$72 sps:$4 sm:$0xff]  }
 0xa19   : > { %13331 = vmatprep.subr.bf16.mxu0 %v17390_v41  ;;  %v17465_v41 = vld [vmem:[%s19202_s2 + $0xe54] ss:$72 sps:$4 sm:$0xff]  }
 0xa1b   : > { %13291 = vmatpush2.bf16.msra.mxu1 %v17385_v11  ;;  %v17463_v11 = vld [vmem:[%s19202_s2 + $0xe50] ss:$72 sps:$4 sm:$0xff]  }
 0xa1c   : > { %13332 = vmatpush2.bf16.msra.mxu0 %v17388_v49  ;;  %13292 = vmatprep.subr.bf16.mxu1 %v17393_v17  ;;  %v17468_v49 = vld [vmem:[%s19202_s2 + $0xdc4] ss:$72 sps:$4 sm:$0xff]   ;;  %v17466_v17 = vld [vmem:[%s19202_s2 + $0xdc0] ss:$72 sps:$4 sm:$0xff]  }
 0xa1d   : > { %13333 = vmatprep.subr.bf16.mxu0 %v17396_v6 }
 0xa1f   : > { %13293 = vmatpush2.bf16.msra.mxu1 %v17391_v60 }
 0xa20   : > { %13334 = vmatpush2.bf16.msra.mxu0 %v17394_v19  ;;  %13294 = vmatprep.subr.bf16.mxu1 %v17399_v20 }
 0xa21   : > { %13335 = vmatprep.subr.bf16.mxu0 %v17402_v21 }
 0xa23   : > { %13295 = vmatpush2.bf16.msra.mxu1 %v17397_v44 }
 0xa24   : > { %13336 = vmatpush2.bf16.msra.mxu0 %v17400_v2  ;;  %13296 = vmatprep.subr.bf16.mxu1 %v17405_v56 }
 0xa25   : > { %13337 = vmatprep.subr.bf16.mxu0 %v17408_v30 }
 0xa27   : > { %13297 = vmatpush2.bf16.msra.mxu1 %v17403_v31 }
 0xa28   : > { %13338 = vmatpush2.bf16.msra.mxu0 %v17406_v14  ;;  %13298 = vmatprep.subr.bf16.mxu1 %v17411_v35 }
 0xa29   : > { %13339 = vmatprep.subr.bf16.mxu0 %v17414_v36 }
 0xa2b   : > { %13299 = vmatpush2.bf16.msra.mxu1 %v17409_v37 }
 0xa2c   : > { %13340 = vmatpush2.bf16.msra.mxu0 %v17412_v16  ;;  %13300 = vmatprep.subr.bf16.mxu1 %v17417_v38 }
 0xa2d   : > { %13341 = vmatprep.subr.bf16.mxu0 %v17420_v46 }
 0xa2f   : > { %13301 = vmatpush2.bf16.msra.mxu1 %v17415_v32 }
 0xa30   : > { %13342 = vmatpush2.bf16.msra.mxu0 %v17418_v8  ;;  %13352 = vmatprep.subr.bf16.mxu1 %v17423_v43 }
 0xa32   : > { %v13058_v45 = vpop.f32.mrf.mxu1  ;;  %13303 = vmatmul.mubr.bf16.vlgmr.msra.gmra.mxu1 %v21108_v59 }
 0xa33   : > { %v21637_v33 = vadd.f32 %v13058_v45, %v21560_v23  ;;  %v21639_v25 = vpop.f32.mrf.mxu0  ;;  %13344 = vmatmul.mubr.bf16.vlgmr.msra.gmra.mxu0 %v21064_v57  ;;  %13353 = vmatpush1.bf16.msra.mxu1 %v17421_v5 }
 0xa34   : > { %13384 = vmatprep.mubr.bf16.mxu1 %v21105_v54  ;;  %v13060_v24 = vpop.f32.mrf.mxu1  ;;  %13354 = vmatprep.subr.bf16.mxu1 %v17426_v47  ;;  %v17427_v54 = vld [vmem:[%s19202_s2 + $0xc10] ss:$72 sps:$4 sm:$0xff]  }
 0xa35   : > { %v21646_v4 = vadd.f32 %v13060_v24, %v21570_v13  ;;  %v21648_v23 = vpop.f32.mrf.mxu0  ;;  %v17430_v13 = vld [vmem:[%s19202_s2 + $0xb80] ss:$72 sps:$4 sm:$0xff]  }
 0xa36   : > { %v13062_v48 = vpop.f32.mrf.mxu1 }
 0xa37   : > { %v13445_v57 = vcombine.low %v21637_v33, %v21646_v4  ;;  %v13103_v15 = vpop.f32.mrf.mxu0  ;;  %13355 = vmatpush1.bf16.msra.mxu1 %v17424_v7 }
 0xa38   : > { %v13063_v1 = vpop.f32.mrf.mxu1  ;;  %13356 = vmatprep.subr.bf16.mxu1 %v17429_v0 }
 0xa39   : > { %v13104_v53 = vpop.f32.mrf.mxu0  ;;  %v13453_v14 = vrot.slane %v13445_v57, %v20887_v50 }
 0xa3b   : > { %13357 = vmatpush1.bf16.msra.mxu1 %v17427_v54 }
 0xa3c   : > { %13358 = vmatprep.subr.bf16.mxu1 %v17432_v18 }
 0xa3f   : > { %13359 = vmatpush1.bf16.msra.mxu1 %v17430_v13 }
 0xa40   : > { %13360 = vmatprep.subr.bf16.mxu1 %v17435_v22 }
 0xa43   : > { %13361 = vmatpush1.bf16.msra.mxu1 %v17433_v42  ;;  %v9193_v42 = vld [vmem:[#allocation5 + $0x18] sm:$0xff] }
 0xa44   : > { %13362 = vmatprep.subr.bf16.mxu1 %v17438_v12 }
 0xa47   : > { %13363 = vmatpush1.bf16.msra.mxu1 %v17436_v52 }
 0xa48   : > { %13364 = vmatprep.subr.bf16.mxu1 %v17441_v58 }
 0xa4b   : > { %13365 = vmatpush1.bf16.msra.mxu1 %v17439_v40 }
 0xa4c   : > { %13366 = vmatprep.subr.bf16.mxu1 %v17444_v3 }
 0xa4f   : > { %13367 = vmatpush1.bf16.msra.mxu1 %v17442_v10 }
 0xa50   : > { %13368 = vmatprep.subr.bf16.mxu1 %v17447_v27 }
 0xa53   : > { %13369 = vmatpush2.bf16.msra.mxu1 %v17445_v55 }
 0xa54   : > { %13370 = vmatprep.subr.bf16.mxu1 %v17450_v28  ;;  %v9194_v28 = vld [vmem:[#allocation5 + $0x20] sm:$0xf] }
 0xa57   : > { %13371 = vmatpush2.bf16.msra.mxu1 %v17448_v61 }
 0xa58   : > { %13372 = vmatprep.subr.bf16.mxu1 %v17453_v62 }
 0xa5b   : > { %13373 = vmatpush2.bf16.msra.mxu1 %v17451_v63 }
 0xa5c   : > { %13374 = vmatprep.subr.bf16.mxu1 %v17456_v39 }
 0xa5f   : > { %13375 = vmatpush2.bf16.msra.mxu1 %v17454_v26 }
 0xa60   : > { %13376 = vmatprep.subr.bf16.mxu1 %v17459_v34 }
 0xa63   : > { %13377 = vmatpush2.bf16.msra.mxu1 %v17457_v29 }
 0xa64   : > { %13378 = vmatprep.subr.bf16.mxu1 %v17462_v51 }
 0xa67   : > { %13379 = vmatpush2.bf16.msra.mxu1 %v17460_v9 }
 0xa68   : > { %13380 = vmatprep.subr.bf16.mxu1 %v17465_v41 }
 0xa6b   : > { %13381 = vmatpush2.bf16.msra.mxu1 %v17463_v11 }
 0xa6c   : > { %13382 = vmatprep.subr.bf16.mxu1 %v17468_v49 }
 0xa6f   : > { %13383 = vmatpush2.bf16.msra.mxu1 %v17466_v17 }
 0xa72   : > { %v13140_v6 = vpop.f32.mrf.mxu1  ;;  %13385 = vmatmul.mubr.bf16.vlgmr.msra.gmra.mxu1 %v21108_v59  ;;  %v9192_v59 = vld [vmem:[#allocation5 + $0x10] sm:$0xff] }
 0xa73   : > { %v13181_v60 = vpop.f32.mrf.mxu0  ;;  %v13141_v20 = vadd.f32 %v13140_v6, %v21639_v25 }
 0xa74   : > { %v13142_v19 = vpop.f32.mrf.mxu1 }
 0xa75   : > { %v13143_v21 = vadd.f32 %v13142_v19, %v21648_v23  ;;  %v13183_v44 = vpop.f32.mrf.mxu0 }
 0xa76   : > { %v13144_v2 = vpop.f32.mrf.mxu1 }
 0xa77   : > { %v13446_v56 = vcombine.low %v13141_v20, %v13143_v21  ;;  %v13185_v30 = vpop.f32.mrf.mxu0 }
 0xa78   : > { %v13145_v31 = vpop.f32.mrf.mxu1 }
 0xa79   : > { %v13460_v35 = vrot.slane %v13446_v56, %v20887_v50  ;;  %v13186_v36 = vpop.f32.mrf.mxu0 }
 0xa7b   : > { %v13461_v37 = vcombine.low %v13453_v14, %v13460_v35 }
 0xa7d   : > { %v13494_v16 = vadd.f32 %v13461_v37, %v9192_v59 }
 0xa7f   : > { %13499 = vst [vmem:[#allocation5 + $0x10] sm:$0xff] %v13494_v16 }
 0xab2   : > { %v13222_v38 = vpop.f32.mrf.mxu1 }
 0xab3   : > { %v13223_v46 = vadd.f32 %v13222_v38, %v13181_v60  ;;  %v13263_v32 = vpop.f32.mrf.mxu0 }
 0xab4   : > { %v13224_v8 = vpop.f32.mrf.mxu1 }
 0xab5   : > { %v13225_v43 = vadd.f32 %v13224_v8, %v13183_v44  ;;  %v13265_v5 = vpop.f32.mrf.mxu0 }
 0xab6   : > { %v13226_v47 = vpop.f32.mrf.mxu1 }
 0xab7   : > { %v13462_v45 = vcombine.low %v13223_v46, %v13225_v43  ;;  %v13267_v25 = vpop.f32.mrf.mxu0 }
 0xab8   : > { %v13227_v7 = vpop.f32.mrf.mxu1 }
 0xab9   : > { %v13268_v24 = vpop.f32.mrf.mxu0  ;;  %v13470_v53 = vrot.slane %v13462_v45, %v20887_v50 }
 0xaf2   : > { %v13304_v33 = vpop.f32.mrf.mxu1 }
 0xaf3   : > { %v13345_v0 = vpop.f32.mrf.mxu0  ;;  %v13305_v23 = vadd.f32 %v13304_v33, %v13263_v32 }
 0xaf4   : > { %v13306_v4 = vpop.f32.mrf.mxu1 }
 0xaf5   : > { %v13307_v48 = vadd.f32 %v13306_v4, %v13265_v5  ;;  %v13347_v57 = vpop.f32.mrf.mxu0 }
 0xaf6   : > { %v13308_v15 = vpop.f32.mrf.mxu1 }
 0xaf7   : > { %v13463_v54 = vcombine.low %v13305_v23, %v13307_v48  ;;  %v13349_v1 = vpop.f32.mrf.mxu0 }
 0xaf8   : > { %v13309_v18 = vpop.f32.mrf.mxu1 }
 0xaf9   : > { %v13477_v13 = vrot.slane %v13463_v54, %v20887_v50  ;;  %v13350_v22 = vpop.f32.mrf.mxu0 }
 0xafb   : > { %v13478_v12 = vcombine.low %v13470_v53, %v13477_v13 }
 0xafd   : > { %v13495_v52 = vadd.f32 %v13478_v12, %v9193_v42 }
 0xaff   : > { %13500 = vst [vmem:[#allocation5 + $0x18] sm:$0xff] %v13495_v52 }
 0xb32   : > { %v13386_v58 = vpop.f32.mrf.mxu1 }
 0xb33   : > { %v13387_v3 = vadd.f32 %v13386_v58, %v13345_v0 }
 0xb34   : > { %v13388_v40 = vpop.f32.mrf.mxu1 }
 0xb35   : > { %v13389_v10 = vadd.f32 %v13388_v40, %v13347_v57 }
 0xb36   : > { %v13390_v27 = vpop.f32.mrf.mxu1 }
 0xb37   : > { %v13479_v55 = vcombine.low %v13387_v3, %v13389_v10 }
 0xb38   : > { %v13391_v61 = vpop.f32.mrf.mxu1 }
 0xb39   : > { %v13486_v62 = vrot.slane %v13479_v55, %v20887_v50 }
 0xb3b   : > { %v13496_v63 = vadd.f32 %v13486_v62, %v9194_v28 }
 0xb3d   : > { %13504 = vst.msk [vmem:[#allocation5 + $0x20] sm:$0xf] %vm13503_vm7, %v13496_v63 }
 0xb3e PF: > { %p13505_p11 = pnand %p8201_p9, %p8155_p7 }
 0xb3f   : > { %s21814_s19 = sld [smem:[#allocation23_spill]] (!%p13505_p11) }
 0xb40   : > { %13508 = sbr.rel (%p13505_p11) target bundleno = 2910 (0xb5e), region = 126 }
 0xb45   : > { %v13520_v39 = vlaneseq  ;;  %v17626_v26 = vmov 1983009808   ;;  %v13514_v51 = vld [vmem:[%s21814_s19] sm:$0xff]  ;;  %v13515_v20 = vld [vmem:[%s21814_s19 + $0x8] sm:$0xff]  ;;  %v13516_v25 = vld [vmem:[%s21814_s19 + $0x10] sm:$0x3] }
 0xb46   : > { %v13595_v34 = vunpack.c.l.s4 %v17626_v26  ;;  %v13509_v7 = vld [vmem:[#allocation5] sm:$0xff]  ;;  %v13510_v22 = vld [vmem:[#allocation5 + $0x8] sm:$0xff]  ;;  %v13511_v42 = vld [vmem:[#allocation5 + $0x10] sm:$0xff]  ;;  %vm13687_vm8 = vcmask 1041408   ;;  %vm13688_vm9 = vcmask 257026  }
 0xb47   : > { %v13521_v29 = vshrl.u32 %v13520_v39, 7  ;;  %v13512_v62 = vld [vmem:[#allocation5 + $0x18] sm:$0xff]  ;;  %v13513_v63 = vld [vmem:[#allocation5 + $0x20] sm:$0xf]  ;;  %vm13689_vm10 = vmor %vm13688_vm9, %vm13687_vm8 }
 0xb48   : > { %v13596_v9 = vunpack.c.0.s8 %v13595_v34 }
 0xb49   : > { %v13522_v50 = vsub.s32 0, %v13521_v29  ;;  %v13526_v41 = vsub.s32 1, %v13521_v29  ;;  %v13530_v11 = vsub.s32 2, %v13521_v29  ;;  %v13534_v49 = vsub.s32 3, %v13521_v29 }
 0xb4a   : > { %v21697_v17 = vsub.s32 %v13596_v9, %v13521_v29  ;;  %v13538_v6 = vsub.s32 4, %v13521_v29  ;;  %v13542_v60 = vsub.s32 5, %v13521_v29  ;;  %v13546_v19 = vsub.s32 6, %v13521_v29 }
 0xb4b   : > { %v13523_v21 = vrot.slane %v13514_v51, %v13522_v50  ;;  %v13527_v44 = vrot.slane %v13514_v51, %v13526_v41  ;;  %v13531_v2 = vrot.slane %v13514_v51, %v13530_v11  ;;  %v13535_v56 = vrot.slane %v13514_v51, %v13534_v49 }
 0xb4c   : > { %v13539_v30 = vrot.slane %v13514_v51, %v13538_v6  ;;  %v13543_v31 = vrot.slane %v13514_v51, %v13542_v60  ;;  %v13547_v14 = vrot.slane %v13514_v51, %v13546_v19  ;;  %v13550_v35 = vsub.s32 7, %v13521_v29 }
 0xb4d   : > { %v13592_v36 = vcombine.low %v13523_v21, %v13527_v44  ;;  %v13593_v59 = vcombine.low %v13531_v2, %v13535_v56  ;;  %v13555_v37 = vrot.slane %v13515_v20, %v13522_v50  ;;  %v13559_v16 = vrot.slane %v13515_v20, %v13526_v41 }
 0xb4e   : > { %v13551_v38 = vrot.slane %v13514_v51, %v13550_v35  ;;  %v13609_v46 = vcombine.low %v13539_v30, %v13543_v31  ;;  %v13563_v32 = vrot.slane %v13515_v20, %v13530_v11  ;;  %v13567_v8 = vrot.slane %v13515_v20, %v13534_v49 }
 0xb4f   : > { %v13600_v43 = vrot.slane %v13592_v36, %v21697_v17  ;;  %v13607_v5 = vrot.slane %v13593_v59, %v21697_v17  ;;  %v13626_v47 = vcombine.low %v13555_v37, %v13559_v16  ;;  %v13571_v45 = vrot.slane %v13515_v20, %v13538_v6 }
 0xb50   : > { %v13610_v24 = vcombine.low %v13547_v14, %v13551_v38  ;;  %v13617_v33 = vrot.slane %v13609_v46, %v21697_v17  ;;  %v13627_v0 = vcombine.low %v13563_v32, %v13567_v8  ;;  %v13575_v4 = vrot.slane %v13515_v20, %v13542_v60 }
 0xb51   : > { %v13608_v23 = vcombine.low %v13600_v43, %v13607_v5  ;;  %v13634_v48 = vrot.slane %v13626_v47, %v21697_v17  ;;  %v13579_v57 = vrot.slane %v13515_v20, %v13546_v19  ;;  %v13583_v15 = vrot.slane %v13515_v20, %v13550_v35 }
 0xb52   : > { %v13624_v54 = vrot.slane %v13610_v24, %v21697_v17  ;;  %v13641_v1 = vrot.slane %v13627_v0, %v21697_v17  ;;  %v13643_v18 = vcombine.low %v13571_v45, %v13575_v4  ;;  %v13587_v53 = vrot.slane %v13516_v25, %v13522_v50 }
 0xb53   : > { %v13673_v13 = vadd.f32 %v13608_v23, %v13509_v7  ;;  %v13644_v12 = vcombine.low %v13579_v57, %v13583_v15  ;;  %v13591_v52 = vrot.slane %v13516_v25, %v13526_v41 }
 0xb54   : > { %v13625_v58 = vcombine.low %v13617_v33, %v13624_v54  ;;  %v13642_v40 = vcombine.low %v13634_v48, %v13641_v1  ;;  %v13651_v3 = vrot.slane %v13643_v18, %v21697_v17 }
 0xb55   : > { %v13678_v10 = vmax.f32 %v13673_v13, 0.0  ;;  %v13658_v27 = vrot.slane %v13644_v12, %v21697_v17  ;;  %v13660_v55 = vcombine.low %v13587_v53, %v13591_v52 }
 0xb56   : > { %v13674_v28 = vadd.f32 %v13625_v58, %v13510_v22  ;;  %v13675_v61 = vadd.f32 %v13642_v40, %v13511_v42 }
 0xb57   : > { %13683 = vst [vmem:[#allocation12] sm:$0xff] %v13678_v10  ;;  %v13659_v39 = vcombine.low %v13651_v3, %v13658_v27  ;;  %v13667_v26 = vrot.slane %v13660_v55, %v21697_v17 }
 0xb58   : > { %v13679_v34 = vmax.f32 %v13674_v28, 0.0  ;;  %v13680_v29 = vmax.f32 %v13675_v61, 0.0 }
 0xb59   : > { %v13676_v51 = vadd.f32 %v13659_v39, %v13512_v62  ;;  %v13677_v9 = vadd.f32 %v13667_v26, %v13513_v63 }
 0xb5a   : > { %13684 = vst [vmem:[#allocation12 + $0x8] sm:$0xff] %v13679_v34  ;;  %13685 = vst [vmem:[#allocation12 + $0x10] sm:$0xff] %v13680_v29 }
 0xb5b   : > { %v13681_v50 = vmax.f32 %v13676_v51, 0.0  ;;  %v13682_v41 = vmax.f32 %v13677_v9, 0.0 }
 0xb5d   : > { %13686 = vst [vmem:[#allocation12 + $0x18] sm:$0xff] %v13681_v50  ;;  %13690 = vst.msk [vmem:[#allocation12 + $0x20] sm:$0xf] %vm13689_vm10, %v13682_v41 }
 0xb5e PF: > { %s21815_s10 = sadd.s32 4294967295, %s17619_s29   ;;  %s17627_s11 = smov [#allocation10]  }
 0xb5f   : > { %p21716_p12 = scmp.eq.s32.totalorder %s21815_s10, 3  ;;  %s13709_s30 = sshll.u32 %s17627_s11, 4  ;;  %s13710_s30 = int_to_ptr.vmem [resolvable:$true] %s13709_s30 }
 0xb60   : > { %s17469_s23 = scalar_lea.vmem %s13710_s30, 128  ;;  %p17476_p2 = scmp.lt.s32.totalorder %s13710_s30, %s13710_s30 }
 0xb61   : > { %p17470_p13 = scmp.ne.s32.totalorder %s13710_s30, %s17469_s23  ;;  %p17477_p3 = scmp.lt.s32.totalorder %s17469_s23, %s17469_s23 }
 0xb63   : > { %p17471_p0 = pnand %p17470_p13, %p21716_p12  ;;  %p17478_p4 = por %p17477_p3, %p17476_p2 }
 0xb65   : > { %p17472_p1 = pneg %p17471_p0 }
 0xb67   : > { %p17479_p5 = pnand %p17478_p4, %p17472_p1 }
 0xb69   : > { %17482 = shalt.err (!%p17479_p5)
}
 0xb6a   : > { %s21817_s4 = sld [smem:[#allocation25_spill]]  ;;  %s17628_s6 = smov [#allocation8]  }
 0xb6b   : > { %s13698_s5 = sshll.u32 %s17628_s6, 4  ;;  %s17629_s9 = smov [#allocation12]   ;;  %s13699_s5 = int_to_ptr.vmem [resolvable:$true] %s13698_s5 }
 0xb6c   : > { %s13720_s18 = sshll.u32 %s17629_s9, 4  ;;  %s17493_s14 = scalar_lea.vmem %s13699_s5, 576  ;;  %s13721_s18 = int_to_ptr.vmem [resolvable:$true] %s13720_s18 }
 0xb6d   : > { %p17494_p6 = scmp.ne.s32.totalorder %s13699_s5, %s17493_s14  ;;  %p17500_p9 = scmp.lt.s32.totalorder %s13699_s5, %s13699_s5 }
 0xb6e   : > { %p17501_p10 = scmp.lt.s32.totalorder %s17493_s14, %s17493_s14 }
 0xb6f   : > { %p17495_p7 = pnand %p17494_p6, %p21716_p12 }
 0xb70   : > { %15291 = dma.vmem_to_hbm [thread:$0]  (%p21716_p12), %s13710_s30, 128, %s21817_s4, [#allocation11]  }
 0xb71   : > { %p17496_p8 = pneg %p17495_p7  ;;  %p17502_p11 = por %p17501_p10, %p17500_p9 }
 0xb73   : > { %p17503_p13 = pnand %p17502_p11, %p17496_p8 }
 0xb75   : > { %17506 = shalt.err (!%p17503_p13)
}
 0xb76   : > { %s21818_s12 = sld [smem:[#allocation24_spill]]  ;;  %s17517_s25 = scalar_lea.vmem %s13721_s18, 576 }
 0xb77   : > { %p17518_p0 = scmp.ne.s32.totalorder %s13721_s18, %s17517_s25  ;;  %p17524_p3 = scmp.lt.s32.totalorder %s13721_s18, %s13721_s18 }
 0xb78   : > { %p17525_p4 = scmp.lt.s32.totalorder %s17517_s25, %s17517_s25 }
 0xb79   : > { %p17519_p1 = pnand %p17518_p0, %p21716_p12 }
 0xb7a   : > { %p17526_p5 = por %p17525_p4, %p17524_p3 }
 0xb7b   : > { %p17520_p2 = pneg %p17519_p1 }
 0xb7c   : > { %15289 = dma.vmem_to_hbm [thread:$0]  (%p21716_p12), %s13699_s5, 576, %s21818_s12, [#allocation9]  }
 0xb7d   : > { %p17527_p6 = pnand %p17526_p5, %p17520_p2 }
 0xb7f   : > { %17530 = shalt.err (!%p17527_p6)
}
 0xb80   : > { %s21819_s27 = sld [smem:[#allocation26_spill]] }
 0xb86   : > { %15293 = dma.vmem_to_hbm [thread:$0]  (%p21716_p12), %s13721_s18, 576, %s21819_s27, [#allocation11]  }
 0xb87   : > { %17578 = dma.done.wait (%p21716_p12), [#allocation9], 576  }
 0xb88   : > { %17580 = vsyncadd (%p21716_p12), [#allocation9], 4294966720 }
 0xb89   : > { %17582 = dma.done.wait (%p21716_p12), [#allocation11], 704  }
 0xb8a   : > { %17584 = vsyncadd (%p21716_p12), [#allocation11], 4294966592 }
 0xb8b PF: > { %s25_s29 = sadd.s32 1, %s17619_s29   ;;  %s21820_s25 = sld [smem:[#allocation15_spill]] }
 0xb8c   : > { %p22_p7 = scmp.ge.s32.totalorder %s25_s29, 6   ;;  %s21821_s26 = sld [smem:[#allocation16_spill]] }
 0xb8d   : > { %s21822_s10 = sld [smem:[#allocation17_spill]]  ;;  %s21823_s21 = smov %s17591_s22 }
 0xb8e   : > { %s21824_s22 = smov %s17781_s16  ;;  %s21825_s23 = smov %s17599_s24 }
 0xb8f   : > { %s21826_s24 = smov %s17784_s28  ;;  %s21827_s27 = smov %s21830_s13 }
 0xb90   :  { %24 = sbr.rel (!%p22_p7) target bundleno = 16 (0x10), region = 194 }
 0xb93   : > { %s21828_s28 = smov %s21822_s10 }
 0xb95   :  { %13741 = vsyncpa [#allocation9], 1 }
 0xb96   :  { %13743 = vsyncpa [#allocation9 + $0x1], 1 }
 0xb97   :  { %13744 = vsyncpa [#allocation11], 1 }

</bundles_post_ra>
